<compile_context>
chip_gen: v7x
topology: tpu7x:2x2x1
jax: 0.10.0
libtpu: 0.0.40
codegen_flags: <defaults>
</compile_context>

<pallas_src>
import jax
import jax.numpy as jnp
import numpy as np
from jax import lax
from jax.experimental import pallas as pl
from jax.experimental.pallas import tpu as pltpu

NEG_SLOPE = 0.2


def _round_up(v, m):
    return ((v + m - 1) // m) * m


def resblock_d_forward(x_ncdhw, params):
    """x_ncdhw: (N, prev_chan, D, H, W) float32 (PyTorch layout).
       Returns (N, next_chan, (D-4)//2, (H-4)//2, (W-4)//2) float32."""
    w1, b1, w2, b2, ws, bs = params
    N, Cp, D, H, W = x_ncdhw.shape
    Cn = w2.shape[0]

    S2d, S2h, S2w = D - 4, H - 4, W - 4
    assert min(S2d, S2h, S2w) >= 2 and S2d % 2 == 0 and S2h % 2 == 0 and S2w % 2 == 0, (
        "trilinear 0.5x downsample == 2x2x2 mean pool only for even (size - 4)")
    S3d, S3h, S3w = S2d // 2, S2h // 2, S2w // 2

    HW = H * W
    # Flat-index slab lengths (spatial flattened C-order: q = d*H*W + h*W + w).
    # All lane-aligned (multiples of 128).
    L3 = S2d * HW                                   # pooled (uncompacted) output slab
    L2 = _round_up(L3 + HW + W + 2, 128)            # residual / skip / conv2-output slab
    L1 = _round_up(L2 + 2 * HW + 2 * W + 2, 128)    # conv1-output slab
    L0 = _round_up(L1 + 2 * HW + 2 * W + 2, 128)    # input slab (>= D*H*W, zero padded)
    Lcol = _round_up(L1 + 2 * HW, 128)              # (kh,kw)-im2col staging width

    Cpp = _round_up(Cp, 16)                         # bf16 tile is (16, 128)
    Cnp = _round_up(Cn, 16)

    # ---- input: NCDHW is already (N, C, D*H*W) flat; pad channels + lanes, cast bf16 ----
    x_flat = x_ncdhw.reshape(N, Cp, D * H * W).astype(jnp.float32)
    x_flat = jnp.pad(x_flat, ((0, 0), (0, Cpp - Cp), (0, L0 - D * H * W)))
    x_flat = x_flat.astype(jnp.bfloat16)

    # ---- conv weights: (3[kd], Cout_p, 9*Cin_p) bf16 with j = kh*3+kw, biases (Cout_p,1) f32
    def pack_conv3(w, b, cout_p, cin_p):
        cout, cin = w.shape[0], w.shape[1]
        wt = jnp.transpose(w, (2, 3, 4, 0, 1)).reshape(3, 9, cout, cin).astype(jnp.float32)
        wp = jnp.zeros((3, 9, cout_p, cin_p), jnp.float32).at[:, :, :cout, :cin].set(wt)
        wcat = jnp.transpose(wp, (0, 2, 1, 3)).reshape(3, cout_p, 9 * cin_p)
        bp = jnp.zeros((cout_p, 1), jnp.float32).at[:cout, 0].set(b.astype(jnp.float32))
        return wcat.astype(jnp.bfloat16), bp

    w1k, b1k = pack_conv3(w1, b1, Cpp, Cpp)
    w2k, b2k = pack_conv3(w2, b2, Cnp, Cpp)
    wsk = jnp.zeros((Cnp, Cpp), jnp.float32).at[:Cn, :Cp].set(
        ws[:, :, 0, 0, 0].astype(jnp.float32)).astype(jnp.bfloat16)
    bsk = jnp.zeros((Cnp, 1), jnp.float32).at[:Cn, 0].set(bs.astype(jnp.float32))

    lcol1 = L1 + 2 * HW                             # conv1 staging width
    lcol2 = L2 + 2 * HW                             # conv2 staging width
    soff = 2 * HW + 2 * W + 2                       # narrow_by(2) flat offset

    # ---- the kernel (one batch element per grid step, everything resident in VMEM) ----
    def _kernel(x_ref, w1_ref, b1_ref, w2_ref, b2_ref, ws_ref, bs_ref,
                o_ref, col_ref, y1_ref):

        def leaky(v):                               # max(v, 0.2*v): mul + max only
            return jnp.maximum(v, NEG_SLOPE * v)

        def conv3x3x3(src_ref, w_ref, b_ref, out_len, col_len):
            # Stage only the 9 (kh, kw) lane shifts (3x fewer copy stores than a full
            # 27-tap im2col).  The 3 kd taps are then lane-aligned slices of col_ref
            # (offset kd*H*W) feeding 3 accumulating MXU matmuls with K = 9*Cin.
            for kh in range(3):
                for kw in range(3):
                    j = kh * 3 + kw
                    off = kh * W + kw
                    col_ref[j * Cpp:(j + 1) * Cpp, :col_len] = src_ref[:, off:off + col_len]
            acc = b_ref[...]                        # bias once, in the epilogue
            for kd in range(3):
                acc = acc + jnp.dot(w_ref[kd], col_ref[:, kd * HW:kd * HW + out_len],
                                    preferred_element_type=jnp.float32)
            return acc

        # conv branch
        y1_ref[...] = leaky(conv3x3x3(x_ref, w1_ref, b1_ref, L1, lcol1)).astype(jnp.bfloat16)
        y2 = leaky(conv3x3x3(y1_ref, w2_ref, b2_ref, L2, lcol2))                # (Cnp, L2) f32

        # skip branch: 1x1x1 conv; narrow_by(2) == flat offset 2*H*W + 2*W + 2
        s = jnp.dot(ws_ref[...], x_ref[:, soff:soff + L2],
                    preferred_element_type=jnp.float32) + bs_ref[...]           # (Cnp, L2) f32

        z = s + y2                                                              # f32 residual

        # structured 2x2x2 mean pool: hierarchical pair sums over w, h, d (all f32);
        # valid voxels (even d2,h2,w2) are selected by a strided slice in the wrapper.
        zw = z[:, :L3 + HW + W] + z[:, 1:L3 + HW + W + 1]
        zh = zw[:, :L3 + HW] + zw[:, W:L3 + HW + W]
        zd = zh[:, :L3] + zh[:, HW:L3 + HW]
        o_ref[...] = (zd * 0.125).astype(o_ref.dtype)

    flops = 2 * N * (Cpp * (27 * Cpp) * L1          # conv1
                     + Cnp * (27 * Cpp) * L2        # conv2
                     + Cnp * Cpp * L2)              # skip
    flops += N * 8 * Cnp * L3                       # structured pooling
    bytes_accessed = (N * Cpp * L0 * 2
                      + int(w1k.size + w2k.size + wsk.size) * 2
                      + int(b1k.size + b2k.size + bsk.size) * 4
                      + N * Cnp * L3 * 4)

    out = pl.pallas_call(
        _kernel,
        out_shape=jax.ShapeDtypeStruct((N, Cnp, L3), jnp.float32),
        grid=(N,),
        in_specs=[
            pl.BlockSpec((None, Cpp, L0), lambda n: (n, 0, 0)),
            pl.BlockSpec((3, Cpp, 9 * Cpp), lambda n: (0, 0, 0)),
            pl.BlockSpec((Cpp, 1), lambda n: (0, 0)),
            pl.BlockSpec((3, Cnp, 9 * Cpp), lambda n: (0, 0, 0)),
            pl.BlockSpec((Cnp, 1), lambda n: (0, 0)),
            pl.BlockSpec((Cnp, Cpp), lambda n: (0, 0)),
            pl.BlockSpec((Cnp, 1), lambda n: (0, 0)),
        ],
        out_specs=pl.BlockSpec((None, Cnp, L3), lambda n: (n, 0, 0)),
        scratch_shapes=[pltpu.VMEM((9 * Cpp, Lcol), jnp.bfloat16),
                        pltpu.VMEM((Cpp, L1), jnp.bfloat16)],
        compiler_params=pltpu.CompilerParams(
            dimension_semantics=("parallel",),
            vmem_limit_bytes=32 * 1024 * 1024),
        cost_estimate=pl.CostEstimate(
            flops=int(flops), transcendentals=0, bytes_accessed=int(bytes_accessed)),
    )(x_flat, w1k, b1k, w2k, b2k, wsk, bsk)

    # strip channel padding, then stride-2^3 selection of the pooled (uncompacted) slab
    pooled = out[:, :Cn, :].reshape(N, Cn, S2d, H, W)
    return pooled[:, :, 0:S2d:2, 0:S2h:2, 0:S2w:2]


def init_params(key, prev_chan, next_chan):
    ks = jax.random.split(key, 6)
    w1 = 0.1 * jax.random.normal(ks[0], (prev_chan, prev_chan, 3, 3, 3), jnp.float32)
    b1 = 0.1 * jax.random.normal(ks[1], (prev_chan,), jnp.float32)
    w2 = 0.1 * jax.random.normal(ks[2], (next_chan, prev_chan, 3, 3, 3), jnp.float32)
    b2 = 0.1 * jax.random.normal(ks[3], (next_chan,), jnp.float32)
    ws = 0.1 * jax.random.normal(ks[4], (next_chan, prev_chan, 1, 1, 1), jnp.float32)
    bs = 0.1 * jax.random.normal(ks[5], (next_chan,), jnp.float32)
    return (w1, b1, w2, b2, ws, bs)


def reference_forward(x, params):
    """Pure-JAX f32 reference matching the PyTorch module (NCDHW)."""
    w1, b1, w2, b2, ws, bs = params
    dn = ('NCDHW', 'OIDHW', 'NCDHW')

    def conv(inp, w):
        return lax.conv_general_dilated(
            inp, w, window_strides=(1, 1, 1), padding='VALID',
            dimension_numbers=dn, precision=lax.Precision.HIGHEST)

    def leaky(v):
        return jnp.where(v > 0, v, NEG_SLOPE * v)

    y = leaky(conv(x, w1) + b1[None, :, None, None, None])
    y = leaky(conv(y, w2) + b2[None, :, None, None, None])
    s = conv(x, ws) + bs[None, :, None, None, None]
    s = s[:, :, 2:-2, 2:-2, 2:-2]
    z = s + y
    N, C, d, h, w = z.shape
    # trilinear x0.5 (align_corners=False) on even sizes == 2x2x2 mean pool
    return z.reshape(N, C, d // 2, 2, h // 2, 2, w // 2, 2).mean(axis=(3, 5, 7))


if __name__ == "__main__":
    key = jax.random.PRNGKey(0)
    k_x, k_p = jax.random.split(key)

    N, prev_chan, next_chan, S = 2, 4, 8, 16
    x = jax.random.normal(k_x, (N, prev_chan, S, S, S), jnp.float32)   # NCDHW
    params = init_params(k_p, prev_chan, next_chan)

    out = jax.block_until_ready(resblock_d_forward(x, params))
    ref = reference_forward(x, params)

    # tolerance reflects bf16 inputs/weights in the kernel (all accumulation is f32)
    np.testing.assert_allclose(np.asarray(out), np.asarray(ref), rtol=5e-2, atol=5e-2)

    print("KERNEL_OK")
</pallas_src>

<mosaic_0001>
module attributes {stable_mosaic.version = 11 : i64} {
  func.func @_kernel(%arg0: i32, %arg1: memref<1x16x4736xbf16, #tpu.memory_space<vmem>>, %arg2: memref<3x16x144xbf16, #tpu.memory_space<vmem>>, %arg3: memref<16x1xf32, #tpu.memory_space<vmem>>, %arg4: memref<3x16x144xbf16, #tpu.memory_space<vmem>>, %arg5: memref<16x1xf32, #tpu.memory_space<vmem>>, %arg6: memref<16x16xbf16, #tpu.memory_space<vmem>>, %arg7: memref<16x1xf32, #tpu.memory_space<vmem>>, %arg8: memref<1x16x3072xf32, #tpu.memory_space<vmem>>, %arg9: memref<144x4608xbf16, #tpu.memory_space<vmem>>, %arg10: memref<16x4096xbf16, #tpu.memory_space<vmem>>) attributes {dimension_semantics = [#tpu.dimension_semantics<parallel>], iteration_bounds = array<i64: 2>, scalar_prefetch = 0 : i64, scratch_operands = 2 : i64, tpu.core_type = #tpu.core_type<tc>, window_params = [{transform_indices = @transform_0, window_bounds = array<i64: 1, 16, 4736>}, {pipeline_mode = #tpu.pipeline_mode<synchronous>, transform_indices = @transform_1, window_bounds = array<i64: 3, 16, 144>}, {pipeline_mode = #tpu.pipeline_mode<synchronous>, transform_indices = @transform_2, window_bounds = array<i64: 16, 1>}, {pipeline_mode = #tpu.pipeline_mode<synchronous>, transform_indices = @transform_3, window_bounds = array<i64: 3, 16, 144>}, {pipeline_mode = #tpu.pipeline_mode<synchronous>, transform_indices = @transform_4, window_bounds = array<i64: 16, 1>}, {pipeline_mode = #tpu.pipeline_mode<synchronous>, transform_indices = @transform_5, window_bounds = array<i64: 16, 16>}, {pipeline_mode = #tpu.pipeline_mode<synchronous>, transform_indices = @transform_6, window_bounds = array<i64: 16, 1>}, {transform_indices = @transform_7, window_bounds = array<i64: 1, 16, 3072>}]} {
    %c0 = arith.constant 0 : index
    %c0_0 = arith.constant 0 : index
    %c0_1 = arith.constant 0 : index
    %0 = vector.load %arg1[%c0, %c0_0, %c0_1] : memref<1x16x4736xbf16, #tpu.memory_space<vmem>>, vector<1x16x4608xbf16>
    %1 = vector.shape_cast %0 : vector<1x16x4608xbf16> to vector<16x4608xbf16>
    %c0_2 = arith.constant 0 : index
    %c0_3 = arith.constant 0 : index
    %2 = vector.load %arg9[%c0_2, %c0_3] : memref<144x4608xbf16, #tpu.memory_space<vmem>>, vector<16x4608xbf16>
    tpu.vector_store %arg9[%c0_2, %c0_3], %1 {strides = array<i32>} : memref<144x4608xbf16, #tpu.memory_space<vmem>>, vector<16x4608xbf16>,
    %c0_4 = arith.constant 0 : index
    %c0_5 = arith.constant 0 : index
    %c1 = arith.constant 1 : index
    %3 = vector.load %arg1[%c0_4, %c0_5, %c1] : memref<1x16x4736xbf16, #tpu.memory_space<vmem>>, vector<1x16x4608xbf16>
    %4 = vector.shape_cast %3 : vector<1x16x4608xbf16> to vector<16x4608xbf16>
    %c16 = arith.constant 16 : index
    %c0_6 = arith.constant 0 : index
    %5 = vector.load %arg9[%c16, %c0_6] : memref<144x4608xbf16, #tpu.memory_space<vmem>>, vector<16x4608xbf16>
    tpu.vector_store %arg9[%c16, %c0_6], %4 {strides = array<i32>} : memref<144x4608xbf16, #tpu.memory_space<vmem>>, vector<16x4608xbf16>,
    %c0_7 = arith.constant 0 : index
    %c0_8 = arith.constant 0 : index
    %c2 = arith.constant 2 : index
    %6 = vector.load %arg1[%c0_7, %c0_8, %c2] : memref<1x16x4736xbf16, #tpu.memory_space<vmem>>, vector<1x16x4608xbf16>
    %7 = vector.shape_cast %6 : vector<1x16x4608xbf16> to vector<16x4608xbf16>
    %c32 = arith.constant 32 : index
    %c0_9 = arith.constant 0 : index
    %8 = vector.load %arg9[%c32, %c0_9] : memref<144x4608xbf16, #tpu.memory_space<vmem>>, vector<16x4608xbf16>
    tpu.vector_store %arg9[%c32, %c0_9], %7 {strides = array<i32>} : memref<144x4608xbf16, #tpu.memory_space<vmem>>, vector<16x4608xbf16>,
    %c0_10 = arith.constant 0 : index
    %c0_11 = arith.constant 0 : index
    %c16_12 = arith.constant 16 : index
    %9 = vector.load %arg1[%c0_10, %c0_11, %c16_12] : memref<1x16x4736xbf16, #tpu.memory_space<vmem>>, vector<1x16x4608xbf16>
    %10 = vector.shape_cast %9 : vector<1x16x4608xbf16> to vector<16x4608xbf16>
    %c48 = arith.constant 48 : index
    %c0_13 = arith.constant 0 : index
    %11 = vector.load %arg9[%c48, %c0_13] : memref<144x4608xbf16, #tpu.memory_space<vmem>>, vector<16x4608xbf16>
    tpu.vector_store %arg9[%c48, %c0_13], %10 {strides = array<i32>} : memref<144x4608xbf16, #tpu.memory_space<vmem>>, vector<16x4608xbf16>,
    %c0_14 = arith.constant 0 : index
    %c0_15 = arith.constant 0 : index
    %c17 = arith.constant 17 : index
    %12 = vector.load %arg1[%c0_14, %c0_15, %c17] : memref<1x16x4736xbf16, #tpu.memory_space<vmem>>, vector<1x16x4608xbf16>
    %13 = vector.shape_cast %12 : vector<1x16x4608xbf16> to vector<16x4608xbf16>
    %c64 = arith.constant 64 : index
    %c0_16 = arith.constant 0 : index
    %14 = vector.load %arg9[%c64, %c0_16] : memref<144x4608xbf16, #tpu.memory_space<vmem>>, vector<16x4608xbf16>
    tpu.vector_store %arg9[%c64, %c0_16], %13 {strides = array<i32>} : memref<144x4608xbf16, #tpu.memory_space<vmem>>, vector<16x4608xbf16>,
    %c0_17 = arith.constant 0 : index
    %c0_18 = arith.constant 0 : index
    %c18 = arith.constant 18 : index
    %15 = vector.load %arg1[%c0_17, %c0_18, %c18] : memref<1x16x4736xbf16, #tpu.memory_space<vmem>>, vector<1x16x4608xbf16>
    %16 = vector.shape_cast %15 : vector<1x16x4608xbf16> to vector<16x4608xbf16>
    %c80 = arith.constant 80 : index
    %c0_19 = arith.constant 0 : index
    %17 = vector.load %arg9[%c80, %c0_19] : memref<144x4608xbf16, #tpu.memory_space<vmem>>, vector<16x4608xbf16>
    tpu.vector_store %arg9[%c80, %c0_19], %16 {strides = array<i32>} : memref<144x4608xbf16, #tpu.memory_space<vmem>>, vector<16x4608xbf16>,
    %c0_20 = arith.constant 0 : index
    %c0_21 = arith.constant 0 : index
    %c32_22 = arith.constant 32 : index
    %18 = vector.load %arg1[%c0_20, %c0_21, %c32_22] : memref<1x16x4736xbf16, #tpu.memory_space<vmem>>, vector<1x16x4608xbf16>
    %19 = vector.shape_cast %18 : vector<1x16x4608xbf16> to vector<16x4608xbf16>
    %c96 = arith.constant 96 : index
    %c0_23 = arith.constant 0 : index
    %20 = vector.load %arg9[%c96, %c0_23] : memref<144x4608xbf16, #tpu.memory_space<vmem>>, vector<16x4608xbf16>
    tpu.vector_store %arg9[%c96, %c0_23], %19 {strides = array<i32>} : memref<144x4608xbf16, #tpu.memory_space<vmem>>, vector<16x4608xbf16>,
    %c0_24 = arith.constant 0 : index
    %c0_25 = arith.constant 0 : index
    %c33 = arith.constant 33 : index
    %21 = vector.load %arg1[%c0_24, %c0_25, %c33] : memref<1x16x4736xbf16, #tpu.memory_space<vmem>>, vector<1x16x4608xbf16>
    %22 = vector.shape_cast %21 : vector<1x16x4608xbf16> to vector<16x4608xbf16>
    %c112 = arith.constant 112 : index
    %c0_26 = arith.constant 0 : index
    %23 = vector.load %arg9[%c112, %c0_26] : memref<144x4608xbf16, #tpu.memory_space<vmem>>, vector<16x4608xbf16>
    tpu.vector_store %arg9[%c112, %c0_26], %22 {strides = array<i32>} : memref<144x4608xbf16, #tpu.memory_space<vmem>>, vector<16x4608xbf16>,
    %c0_27 = arith.constant 0 : index
    %c0_28 = arith.constant 0 : index
    %c34 = arith.constant 34 : index
    %24 = vector.load %arg1[%c0_27, %c0_28, %c34] : memref<1x16x4736xbf16, #tpu.memory_space<vmem>>, vector<1x16x4608xbf16>
    %25 = vector.shape_cast %24 : vector<1x16x4608xbf16> to vector<16x4608xbf16>
    %c128 = arith.constant 128 : index
    %c0_29 = arith.constant 0 : index
    %26 = vector.load %arg9[%c128, %c0_29] : memref<144x4608xbf16, #tpu.memory_space<vmem>>, vector<16x4608xbf16>
    tpu.vector_store %arg9[%c128, %c0_29], %25 {strides = array<i32>} : memref<144x4608xbf16, #tpu.memory_space<vmem>>, vector<16x4608xbf16>,
    %c0_30 = arith.constant 0 : index
    %c0_31 = arith.constant 0 : index
    %27 = vector.load %arg3[%c0_30, %c0_31] : memref<16x1xf32, #tpu.memory_space<vmem>>, vector<16x1xf32>
    %c0_32 = arith.constant 0 : index
    %c0_33 = arith.constant 0 : index
    %c0_34 = arith.constant 0 : index
    %28 = vector.load %arg2[%c0_32, %c0_33, %c0_34] : memref<3x16x144xbf16, #tpu.memory_space<vmem>>, vector<1x16x144xbf16>
    %29 = vector.shape_cast %28 : vector<1x16x144xbf16> to vector<16x144xbf16>
    %c0_35 = arith.constant 0 : index
    %c0_36 = arith.constant 0 : index
    %30 = vector.load %arg9[%c0_35, %c0_36] : memref<144x4608xbf16, #tpu.memory_space<vmem>>, vector<144x4096xbf16>
    %cst = arith.constant dense<0.000000e+00> : vector<16x4096xf32>
    %31 = tpu.matmul %29, %30, %cst {dimension_numbers = #tpu.dot_dimension_numbers<[1], [0], [0], [1], [0, 0, 1, 1], [], []>} : vector<16x144xbf16>, vector<144x4096xbf16>, vector<16x4096xf32> -> vector<16x4096xf32>
    %32 = vector.broadcast %27 : vector<16x1xf32> to vector<16x4096xf32>
    %33 = arith.addf %32, %31 : vector<16x4096xf32>
    %c1_37 = arith.constant 1 : index
    %c0_38 = arith.constant 0 : index
    %c0_39 = arith.constant 0 : index
    %34 = vector.load %arg2[%c1_37, %c0_38, %c0_39] : memref<3x16x144xbf16, #tpu.memory_space<vmem>>, vector<1x16x144xbf16>
    %35 = vector.shape_cast %34 : vector<1x16x144xbf16> to vector<16x144xbf16>
    %c0_40 = arith.constant 0 : index
    %c256 = arith.constant 256 : index
    %36 = vector.load %arg9[%c0_40, %c256] : memref<144x4608xbf16, #tpu.memory_space<vmem>>, vector<144x4096xbf16>
    %cst_41 = arith.constant dense<0.000000e+00> : vector<16x4096xf32>
    %37 = tpu.matmul %35, %36, %cst_41 {dimension_numbers = #tpu.dot_dimension_numbers<[1], [0], [0], [1], [0, 0, 1, 1], [], []>} : vector<16x144xbf16>, vector<144x4096xbf16>, vector<16x4096xf32> -> vector<16x4096xf32>
    %38 = arith.addf %33, %37 : vector<16x4096xf32>
    %c2_42 = arith.constant 2 : index
    %c0_43 = arith.constant 0 : index
    %c0_44 = arith.constant 0 : index
    %39 = vector.load %arg2[%c2_42, %c0_43, %c0_44] : memref<3x16x144xbf16, #tpu.memory_space<vmem>>, vector<1x16x144xbf16>
    %40 = vector.shape_cast %39 : vector<1x16x144xbf16> to vector<16x144xbf16>
    %c0_45 = arith.constant 0 : index
    %c512 = arith.constant 512 : index
    %41 = vector.load %arg9[%c0_45, %c512] : memref<144x4608xbf16, #tpu.memory_space<vmem>>, vector<144x4096xbf16>
    %cst_46 = arith.constant dense<0.000000e+00> : vector<16x4096xf32>
    %42 = tpu.matmul %40, %41, %cst_46 {dimension_numbers = #tpu.dot_dimension_numbers<[1], [0], [0], [1], [0, 0, 1, 1], [], []>} : vector<16x144xbf16>, vector<144x4096xbf16>, vector<16x4096xf32> -> vector<16x4096xf32>
    %43 = arith.addf %38, %42 : vector<16x4096xf32>
    %cst_47 = arith.constant 2.000000e-01 : f32
    %44 = vector.broadcast %cst_47 : f32 to vector<16x4096xf32>
    %45 = arith.mulf %44, %43 : vector<16x4096xf32>
    %46 = arith.maximumf %43, %45 : vector<16x4096xf32>
    %47 = arith.truncf %46 : vector<16x4096xf32> to vector<16x4096xbf16>
    %c0_48 = arith.constant 0 : index
    %c0_49 = arith.constant 0 : index
    %48 = vector.load %arg10[%c0_48, %c0_49] : memref<16x4096xbf16, #tpu.memory_space<vmem>>, vector<16x4096xbf16>
    tpu.vector_store %arg10[%c0_48, %c0_49], %47 {strides = array<i32>} : memref<16x4096xbf16, #tpu.memory_space<vmem>>, vector<16x4096xbf16>,
    %c0_50 = arith.constant 0 : index
    %c0_51 = arith.constant 0 : index
    %49 = vector.load %arg10[%c0_50, %c0_51] : memref<16x4096xbf16, #tpu.memory_space<vmem>>, vector<16x3968xbf16>
    %c0_52 = arith.constant 0 : index
    %c0_53 = arith.constant 0 : index
    %50 = vector.load %arg9[%c0_52, %c0_53] : memref<144x4608xbf16, #tpu.memory_space<vmem>>, vector<16x3968xbf16>
    tpu.vector_store %arg9[%c0_52, %c0_53], %49 {strides = array<i32>} : memref<144x4608xbf16, #tpu.memory_space<vmem>>, vector<16x3968xbf16>,
    %c0_54 = arith.constant 0 : index
    %c1_55 = arith.constant 1 : index
    %51 = vector.load %arg10[%c0_54, %c1_55] : memref<16x4096xbf16, #tpu.memory_space<vmem>>, vector<16x3968xbf16>
    %c16_56 = arith.constant 16 : index
    %c0_57 = arith.constant 0 : index
    %52 = vector.load %arg9[%c16_56, %c0_57] : memref<144x4608xbf16, #tpu.memory_space<vmem>>, vector<16x3968xbf16>
    tpu.vector_store %arg9[%c16_56, %c0_57], %51 {strides = array<i32>} : memref<144x4608xbf16, #tpu.memory_space<vmem>>, vector<16x3968xbf16>,
    %c0_58 = arith.constant 0 : index
    %c2_59 = arith.constant 2 : index
    %53 = vector.load %arg10[%c0_58, %c2_59] : memref<16x4096xbf16, #tpu.memory_space<vmem>>, vector<16x3968xbf16>
    %c32_60 = arith.constant 32 : index
    %c0_61 = arith.constant 0 : index
    %54 = vector.load %arg9[%c32_60, %c0_61] : memref<144x4608xbf16, #tpu.memory_space<vmem>>, vector<16x3968xbf16>
    tpu.vector_store %arg9[%c32_60, %c0_61], %53 {strides = array<i32>} : memref<144x4608xbf16, #tpu.memory_space<vmem>>, vector<16x3968xbf16>,
    %c0_62 = arith.constant 0 : index
    %c16_63 = arith.constant 16 : index
    %55 = vector.load %arg10[%c0_62, %c16_63] : memref<16x4096xbf16, #tpu.memory_space<vmem>>, vector<16x3968xbf16>
    %c48_64 = arith.constant 48 : index
    %c0_65 = arith.constant 0 : index
    %56 = vector.load %arg9[%c48_64, %c0_65] : memref<144x4608xbf16, #tpu.memory_space<vmem>>, vector<16x3968xbf16>
    tpu.vector_store %arg9[%c48_64, %c0_65], %55 {strides = array<i32>} : memref<144x4608xbf16, #tpu.memory_space<vmem>>, vector<16x3968xbf16>,
    %c0_66 = arith.constant 0 : index
    %c17_67 = arith.constant 17 : index
    %57 = vector.load %arg10[%c0_66, %c17_67] : memref<16x4096xbf16, #tpu.memory_space<vmem>>, vector<16x3968xbf16>
    %c64_68 = arith.constant 64 : index
    %c0_69 = arith.constant 0 : index
    %58 = vector.load %arg9[%c64_68, %c0_69] : memref<144x4608xbf16, #tpu.memory_space<vmem>>, vector<16x3968xbf16>
    tpu.vector_store %arg9[%c64_68, %c0_69], %57 {strides = array<i32>} : memref<144x4608xbf16, #tpu.memory_space<vmem>>, vector<16x3968xbf16>,
    %c0_70 = arith.constant 0 : index
    %c18_71 = arith.constant 18 : index
    %59 = vector.load %arg10[%c0_70, %c18_71] : memref<16x4096xbf16, #tpu.memory_space<vmem>>, vector<16x3968xbf16>
    %c80_72 = arith.constant 80 : index
    %c0_73 = arith.constant 0 : index
    %60 = vector.load %arg9[%c80_72, %c0_73] : memref<144x4608xbf16, #tpu.memory_space<vmem>>, vector<16x3968xbf16>
    tpu.vector_store %arg9[%c80_72, %c0_73], %59 {strides = array<i32>} : memref<144x4608xbf16, #tpu.memory_space<vmem>>, vector<16x3968xbf16>,
    %c0_74 = arith.constant 0 : index
    %c32_75 = arith.constant 32 : index
    %61 = vector.load %arg10[%c0_74, %c32_75] : memref<16x4096xbf16, #tpu.memory_space<vmem>>, vector<16x3968xbf16>
    %c96_76 = arith.constant 96 : index
    %c0_77 = arith.constant 0 : index
    %62 = vector.load %arg9[%c96_76, %c0_77] : memref<144x4608xbf16, #tpu.memory_space<vmem>>, vector<16x3968xbf16>
    tpu.vector_store %arg9[%c96_76, %c0_77], %61 {strides = array<i32>} : memref<144x4608xbf16, #tpu.memory_space<vmem>>, vector<16x3968xbf16>,
    %c0_78 = arith.constant 0 : index
    %c33_79 = arith.constant 33 : index
    %63 = vector.load %arg10[%c0_78, %c33_79] : memref<16x4096xbf16, #tpu.memory_space<vmem>>, vector<16x3968xbf16>
    %c112_80 = arith.constant 112 : index
    %c0_81 = arith.constant 0 : index
    %64 = vector.load %arg9[%c112_80, %c0_81] : memref<144x4608xbf16, #tpu.memory_space<vmem>>, vector<16x3968xbf16>
    tpu.vector_store %arg9[%c112_80, %c0_81], %63 {strides = array<i32>} : memref<144x4608xbf16, #tpu.memory_space<vmem>>, vector<16x3968xbf16>,
    %c0_82 = arith.constant 0 : index
    %c34_83 = arith.constant 34 : index
    %65 = vector.load %arg10[%c0_82, %c34_83] : memref<16x4096xbf16, #tpu.memory_space<vmem>>, vector<16x3968xbf16>
    %c128_84 = arith.constant 128 : index
    %c0_85 = arith.constant 0 : index
    %66 = vector.load %arg9[%c128_84, %c0_85] : memref<144x4608xbf16, #tpu.memory_space<vmem>>, vector<16x3968xbf16>
    tpu.vector_store %arg9[%c128_84, %c0_85], %65 {strides = array<i32>} : memref<144x4608xbf16, #tpu.memory_space<vmem>>, vector<16x3968xbf16>,
    %c0_86 = arith.constant 0 : index
    %c0_87 = arith.constant 0 : index
    %67 = vector.load %arg5[%c0_86, %c0_87] : memref<16x1xf32, #tpu.memory_space<vmem>>, vector<16x1xf32>
    %c0_88 = arith.constant 0 : index
    %c0_89 = arith.constant 0 : index
    %c0_90 = arith.constant 0 : index
    %68 = vector.load %arg4[%c0_88, %c0_89, %c0_90] : memref<3x16x144xbf16, #tpu.memory_space<vmem>>, vector<1x16x144xbf16>
    %69 = vector.shape_cast %68 : vector<1x16x144xbf16> to vector<16x144xbf16>
    %c0_91 = arith.constant 0 : index
    %c0_92 = arith.constant 0 : index
    %70 = vector.load %arg9[%c0_91, %c0_92] : memref<144x4608xbf16, #tpu.memory_space<vmem>>, vector<144x3456xbf16>
    %cst_93 = arith.constant dense<0.000000e+00> : vector<16x3456xf32>
    %71 = tpu.matmul %69, %70, %cst_93 {dimension_numbers = #tpu.dot_dimension_numbers<[1], [0], [0], [1], [0, 0, 1, 1], [], []>} : vector<16x144xbf16>, vector<144x3456xbf16>, vector<16x3456xf32> -> vector<16x3456xf32>
    %72 = vector.broadcast %67 : vector<16x1xf32> to vector<16x3456xf32>
    %73 = arith.addf %72, %71 : vector<16x3456xf32>
    %c1_94 = arith.constant 1 : index
    %c0_95 = arith.constant 0 : index
    %c0_96 = arith.constant 0 : index
    %74 = vector.load %arg4[%c1_94, %c0_95, %c0_96] : memref<3x16x144xbf16, #tpu.memory_space<vmem>>, vector<1x16x144xbf16>
    %75 = vector.shape_cast %74 : vector<1x16x144xbf16> to vector<16x144xbf16>
    %c0_97 = arith.constant 0 : index
    %c256_98 = arith.constant 256 : index
    %76 = vector.load %arg9[%c0_97, %c256_98] : memref<144x4608xbf16, #tpu.memory_space<vmem>>, vector<144x3456xbf16>
    %cst_99 = arith.constant dense<0.000000e+00> : vector<16x3456xf32>
    %77 = tpu.matmul %75, %76, %cst_99 {dimension_numbers = #tpu.dot_dimension_numbers<[1], [0], [0], [1], [0, 0, 1, 1], [], []>} : vector<16x144xbf16>, vector<144x3456xbf16>, vector<16x3456xf32> -> vector<16x3456xf32>
    %78 = arith.addf %73, %77 : vector<16x3456xf32>
    %c2_100 = arith.constant 2 : index
    %c0_101 = arith.constant 0 : index
    %c0_102 = arith.constant 0 : index
    %79 = vector.load %arg4[%c2_100, %c0_101, %c0_102] : memref<3x16x144xbf16, #tpu.memory_space<vmem>>, vector<1x16x144xbf16>
    %80 = vector.shape_cast %79 : vector<1x16x144xbf16> to vector<16x144xbf16>
    %c0_103 = arith.constant 0 : index
    %c512_104 = arith.constant 512 : index
    %81 = vector.load %arg9[%c0_103, %c512_104] : memref<144x4608xbf16, #tpu.memory_space<vmem>>, vector<144x3456xbf16>
    %cst_105 = arith.constant dense<0.000000e+00> : vector<16x3456xf32>
    %82 = tpu.matmul %80, %81, %cst_105 {dimension_numbers = #tpu.dot_dimension_numbers<[1], [0], [0], [1], [0, 0, 1, 1], [], []>} : vector<16x144xbf16>, vector<144x3456xbf16>, vector<16x3456xf32> -> vector<16x3456xf32>
    %83 = arith.addf %78, %82 : vector<16x3456xf32>
    %cst_106 = arith.constant 2.000000e-01 : f32
    %84 = vector.broadcast %cst_106 : f32 to vector<16x3456xf32>
    %85 = arith.mulf %84, %83 : vector<16x3456xf32>
    %86 = arith.maximumf %83, %85 : vector<16x3456xf32>
    %c0_107 = arith.constant 0 : index
    %c0_108 = arith.constant 0 : index
    %87 = vector.load %arg6[%c0_107, %c0_108] : memref<16x16xbf16, #tpu.memory_space<vmem>>, vector<16x16xbf16>
    %c0_109 = arith.constant 0 : index
    %c0_110 = arith.constant 0 : index
    %c546 = arith.constant 546 : index
    %88 = vector.load %arg1[%c0_109, %c0_110, %c546] : memref<1x16x4736xbf16, #tpu.memory_space<vmem>>, vector<1x16x3456xbf16>
    %89 = vector.shape_cast %88 : vector<1x16x3456xbf16> to vector<16x3456xbf16>
    %cst_111 = arith.constant dense<0.000000e+00> : vector<16x3456xf32>
    %90 = tpu.matmul %87, %89, %cst_111 {dimension_numbers = #tpu.dot_dimension_numbers<[1], [0], [0], [1], [0, 0, 1, 1], [], []>} : vector<16x16xbf16>, vector<16x3456xbf16>, vector<16x3456xf32> -> vector<16x3456xf32>
    %c0_112 = arith.constant 0 : index
    %c0_113 = arith.constant 0 : index
    %91 = vector.load %arg7[%c0_112, %c0_113] : memref<16x1xf32, #tpu.memory_space<vmem>>, vector<16x1xf32>
    %92 = vector.broadcast %91 : vector<16x1xf32> to vector<16x3456xf32>
    %93 = arith.addf %90, %92 : vector<16x3456xf32>
    %94 = arith.addf %93, %86 : vector<16x3456xf32>
    %95 = vector.extract_strided_slice %94 {offsets = [0, 0], sizes = [16, 3344], strides = [1, 1]} : vector<16x3456xf32> to vector<16x3344xf32>
    %96 = vector.extract_strided_slice %94 {offsets = [0, 1], sizes = [16, 3344], strides = [1, 1]} : vector<16x3456xf32> to vector<16x3344xf32>
    %97 = arith.addf %95, %96 : vector<16x3344xf32>
    %98 = vector.extract_strided_slice %97 {offsets = [0, 0], sizes = [16, 3328], strides = [1, 1]} : vector<16x3344xf32> to vector<16x3328xf32>
    %99 = vector.extract_strided_slice %97 {offsets = [0, 16], sizes = [16, 3328], strides = [1, 1]} : vector<16x3344xf32> to vector<16x3328xf32>
    %100 = arith.addf %98, %99 : vector<16x3328xf32>
    %101 = vector.extract_strided_slice %100 {offsets = [0, 0], sizes = [16, 3072], strides = [1, 1]} : vector<16x3328xf32> to vector<16x3072xf32>
    %102 = vector.extract_strided_slice %100 {offsets = [0, 256], sizes = [16, 3072], strides = [1, 1]} : vector<16x3328xf32> to vector<16x3072xf32>
    %103 = arith.addf %101, %102 : vector<16x3072xf32>
    %cst_114 = arith.constant 1.250000e-01 : f32
    %104 = vector.broadcast %cst_114 : f32 to vector<16x3072xf32>
    %105 = arith.mulf %103, %104 : vector<16x3072xf32>
    %c0_115 = arith.constant 0 : index
    %c0_116 = arith.constant 0 : index
    %c0_117 = arith.constant 0 : index
    %106 = vector.load %arg8[%c0_115, %c0_116, %c0_117] : memref<1x16x3072xf32, #tpu.memory_space<vmem>>, vector<1x16x3072xf32>
    %107 = vector.shape_cast %106 : vector<1x16x3072xf32> to vector<16x3072xf32>
    %108 = vector.shape_cast %105 : vector<16x3072xf32> to vector<1x16x3072xf32>
    tpu.vector_store %arg8[%c0_115, %c0_116, %c0_117], %108 {strides = array<i32>} : memref<1x16x3072xf32, #tpu.memory_space<vmem>>, vector<1x16x3072xf32>,
    return
  }
  func.func @transform_0(%arg0: i32) -> (i32, i32, i32) {
    %c0_i32 = arith.constant 0 : i32
    %c0_i32_0 = arith.constant 0 : i32
    %c0_i32_1 = arith.constant 0 : i32
    return %arg0, %c0_i32, %c0_i32_0 : i32, i32, i32
  }
  func.func @transform_1(%arg0: i32) -> (i32, i32, i32) {
    %c0_i32 = arith.constant 0 : i32
    %c0_i32_0 = arith.constant 0 : i32
    %c0_i32_1 = arith.constant 0 : i32
    %c0_i32_2 = arith.constant 0 : i32
    return %c0_i32, %c0_i32_0, %c0_i32_1 : i32, i32, i32
  }
  func.func @transform_2(%arg0: i32) -> (i32, i32) {
    %c0_i32 = arith.constant 0 : i32
    %c0_i32_0 = arith.constant 0 : i32
    %c0_i32_1 = arith.constant 0 : i32
    return %c0_i32, %c0_i32_0 : i32, i32
  }
  func.func @transform_3(%arg0: i32) -> (i32, i32, i32) {
    %c0_i32 = arith.constant 0 : i32
    %c0_i32_0 = arith.constant 0 : i32
    %c0_i32_1 = arith.constant 0 : i32
    %c0_i32_2 = arith.constant 0 : i32
    return %c0_i32, %c0_i32_0, %c0_i32_1 : i32, i32, i32
  }
  func.func @transform_4(%arg0: i32) -> (i32, i32) {
    %c0_i32 = arith.constant 0 : i32
    %c0_i32_0 = arith.constant 0 : i32
    %c0_i32_1 = arith.constant 0 : i32
    return %c0_i32, %c0_i32_0 : i32, i32
  }
  func.func @transform_5(%arg0: i32) -> (i32, i32) {
    %c0_i32 = arith.constant 0 : i32
    %c0_i32_0 = arith.constant 0 : i32
    %c0_i32_1 = arith.constant 0 : i32
    return %c0_i32, %c0_i32_0 : i32, i32
  }
  func.func @transform_6(%arg0: i32) -> (i32, i32) {
    %c0_i32 = arith.constant 0 : i32
    %c0_i32_0 = arith.constant 0 : i32
    %c0_i32_1 = arith.constant 0 : i32
    return %c0_i32, %c0_i32_0 : i32, i32
  }
  func.func @transform_7(%arg0: i32) -> (i32, i32, i32) {
    %c0_i32 = arith.constant 0 : i32
    %c0_i32_0 = arith.constant 0 : i32
    %c0_i32_1 = arith.constant 0 : i32
    return %arg0, %c0_i32, %c0_i32_0 : i32, i32, i32
  }
}

</mosaic_0001>

<bundles_post_ra>
// kernel: tpu_custom_call.1
= control target key start
LH: loop header
LB: loop body
LE: loop exit
PB: predicated region body
PF: predicated region fallthrough
CT: control target
= control target key end

     0   :  { %s22307_s0 = inlined_call_operand.hbm [shape: bf16[2,16,4736], index: 0, kind: input, shape index: {}]   ;;  %s22308_s1 = inlined_call_operand.hbm [shape: bf16[3,16,144], index: 1, kind: input, shape index: {}]   ;;  %s22309_s2 = inlined_call_operand.vmem [shape: f32[16,1], index: 2, kind: input, shape index: {}]   ;;  %s22310_s3 = inlined_call_operand.hbm [shape: bf16[3,16,144], index: 3, kind: input, shape index: {}]   ;;  %s22311_s4 = inlined_call_operand.vmem [shape: f32[16,1], index: 4, kind: input, shape index: {}]   ;;  %s22312_s5 = inlined_call_operand.vmem [shape: bf16[16,16], index: 5, kind: input, shape index: {}]   ;;  %s22313_s6 = inlined_call_operand.vmem [shape: f32[16,1], index: 6, kind: input, shape index: {}]   ;;  %s22314_s7 = inlined_call_operand.hbm [shape: f32[2,16,3072], index: 7, kind: output, shape index: {}]  }
   0x1   :  { %23166 = sst [smem:[#allocation239_spill]] %s22308_s1 }
   0x2   :  { %12 = vsyncpa [#allocation5], 0 }
   0x3   :  { %14 = vsyncpa [#allocation5 + $0x1], 0 }
   0x4   :  { %15 = vsyncpa [#allocation8], 0 }
   0x5   :  { %16 = vsyncpa [#allocation6], 0 }
   0x6   :  { %18 = vsyncpa [#allocation6 + $0x1], 0  ;;  %s14756_s24 = smov 0   ;;  %s14758_s25 = smov 0  }
   0x7   :  { %s14760_s26 = smov 0   ;;  %s14762_s27 = smov 0  }
   0x8 LB: > { %s14777_s28 = sadd.s32 4294967295, %s14693_s27   ;;  %s13411_s29 = sadd.s32 4294967294, %s14693_s27   ;;  %s14693_s27 = sphi %s14762_s27, %s24544_s27   ;;  %s14689_s26 = sphi %s14760_s26, %s24543_s26   ;;  %s14685_s25 = sphi %s14758_s25, %s24542_s25   ;;  %s14681_s24 = sphi %s14756_s24, %s24541_s24  }
   0x9   : > { %p44_p0 = scmp.ne.s32.totalorder %s14685_s25, %s14681_s24  ;;  %p22315_p1 = scmp.eq.s32.totalorder %s14777_s28, 0 }
   0xa   : > { %p200_p3 = scmp.eq.s32.totalorder %s13411_s29, 1  ;;  %p13412_p5 = scmp.ge.s32.totalorder %s14693_s27, 1 }
   0xb   : > { %p14786_p4 = por %p22315_p1, %p44_p0  ;;  %p207_p7 = scmp.lt.s32.totalorder %s14693_s27, 3 }
   0xc   : > { %p14791_p6 = por %p200_p3, %p44_p0  ;;  %s14695_s10 = smov [#allocation7]  }
   0xd   : > { %s23167_s30 = scalar_select %p14786_p4, 1, 0 }
   0xe   : > { %s23168_s8 = scalar_select %p14791_p6, 1, 0 }
   0xf   : > { %p14796_p8 = pnand %p13412_p5, %p207_p7  ;;  %s219_s11 = sshll.u32 %s14695_s10, 4  ;;  %s14800_s11 = int_to_ptr.vmem [resolvable:$true] %s219_s11 }
  0x10   : > { %s14696_s13 = smov [#allocation9]   ;;  %s23171_s1 = sld [smem:[#allocation239_spill]] }
  0x11   : > { %p14283_p9 = pneg %p14796_p8  ;;  %s235_s14 = sshll.u32 %s14696_s13, 4  ;;  %s14811_s14 = int_to_ptr.vmem [resolvable:$true] %s235_s14 }
  0x13   : > { %p14807_p11 = pnand %p14283_p9, %p22315_p1 }
  0x15   : > { %p14539_p13 = pneg %p14807_p11 }
  0x16   : > { %s14537_s17 = scalar_lea.hbm %s23171_s1, 768 }
  0x17   : > { %p14538_p12 = scmp.ne.s32.totalorder %s23171_s1, %s14537_s17  ;;  %p14544_p5 = scmp.lt.u32.totalorder %s14537_s17, %s23171_s1 }
  0x19   : > { %p14540_p0 = pnand %p14539_p13, %p14538_p12 }
  0x1b   : > { %p14541_p3 = pneg %p14540_p0 }
  0x1d   : > { %p14546_p7 = pnand %p14544_p5, %p14541_p3 }
  0x1f   : > { %14549 = shalt.err (!%p14546_p7)
}
  0x20   : > { %s14550_s22 = scalar_lea.vmem %s14800_s11, 768  ;;  %p14558_p2 = scmp.lt.s32.totalorder %s14800_s11, %s14800_s11 }
  0x21   : > { %p14551_p9 = scmp.ne.s32.totalorder %s14800_s11, %s14550_s22  ;;  %p14559_p12 = scmp.lt.s32.totalorder %s14550_s22, %s14550_s22 }
  0x23   : > { %p14553_p10 = pnand %p14551_p9, %p14539_p13  ;;  %p14560_p0 = por %p14559_p12, %p14558_p2 }
  0x25   : > { %p14554_p1 = pneg %p14553_p10 }
  0x27   : > { %p14561_p6 = pnand %p14560_p0, %p14554_p1 }
  0x29   : > { %14564 = shalt.err (!%p14561_p6)
}
  0x2a   : > { %s14697_s23 = smov 128   ;;  %s14698_s29 = smov 8  }
  0x2b   : > { %14286 = dma.hbm_to_vmem [thread:$0]  (!%p14807_p11), %s23171_s1, 768, %s14800_s11, [#allocation8], %s14697_s23, %s14697_s23, %s14698_s29  }
  0x2c   : > { %s14565_s17 = scalar_lea.hbm %s22310_s3, 768 }
  0x2d   : > { %p14566_p2 = scmp.ne.s32.totalorder %s22310_s3, %s14565_s17  ;;  %p14572_p10 = scmp.lt.u32.totalorder %s14565_s17, %s22310_s3 }
  0x2f   : > { %p14568_p1 = pnand %p14566_p2, %p14539_p13 }
  0x31   : > { %p14569_p6 = pneg %p14568_p1 }
  0x33   : > { %p14574_p3 = pnand %p14572_p10, %p14569_p6 }
  0x35   : > { %14577 = shalt.err (!%p14574_p3)
}
  0x36   : > { %s14578_s11 = scalar_lea.vmem %s14811_s14, 768  ;;  %p14586_p12 = scmp.lt.s32.totalorder %s14811_s14, %s14811_s14 }
  0x37   : > { %p14579_p5 = scmp.ne.s32.totalorder %s14811_s14, %s14578_s11  ;;  %p14587_p0 = scmp.lt.s32.totalorder %s14578_s11, %s14578_s11 }
  0x39   : > { %p14581_p7 = pnand %p14579_p5, %p14539_p13  ;;  %p14588_p2 = por %p14587_p0, %p14586_p12 }
  0x3b   : > { %p14582_p9 = pneg %p14581_p7 }
  0x3d   : > { %p14589_p1 = pnand %p14588_p2, %p14582_p9 }
  0x3f   : > { %14592 = shalt.err (!%p14589_p1)
}
  0x40   : > { %14289 = dma.hbm_to_vmem [thread:$0]  (!%p14807_p11), %s22310_s3, 768, %s14811_s14, [#allocation8], %s14697_s23, %s14697_s23, %s14698_s29  }
  0x41   : > { %s14866_s13 = sadd.s32 1, %s14693_s27   ;;  %s31_s12 = sadd.s32 1, %s14689_s26 }
  0x42   : > { %s28_s15 = ssub.s32 %s14693_s27, %s14866_s13  ;;  %p38_p13 = scmp.ne.s32.totalorder %s14689_s26, %s14685_s25 }
  0x43   : > { %p29_p6 = scmp.eq.s32.totalorder %s28_s15, 0  ;;  %p39_p10 = scmp.eq.s32.totalorder %s14693_s27, 0 }
  0x44   : > { %p23172_p3 = scmp.eq.s32.totalorder %s14777_s28, 1  ;;  %p14300_p7 = scmp.lt.s32.totalorder %s14693_s27, 2 }
  0x45   : > { %s14882_s17 = scalar_select %p29_p6, %s14689_s26, %s31_s12  }
  0x46   : > { %p14876_p5 = por %p23172_p3, %p38_p13  ;;  %p40_p9 = por %p39_p10, %p38_p13 }
  0x47   : > { %s258_s18 = sand.u32 1, %s14689_s26   ;;  %s14267_s14 = smul.u32 4736, %s14693_s27 }
  0x48   : > { %s23173_s16 = scalar_select %p14876_p5, 1, 0 }
  0x49   : > { %s14266_s19 = smul.u32 296, %s258_s18  ;;  %p14886_p11 = pnand %p14300_p7, %p40_p9 }
  0x4a   : > { %s14893_s21 = scalar_lea.hbm %s22307_s0, %s14267_s14  ;;  %s14897_s10 = scalar_lea.sflag [#allocation5], %s258_s18 }
  0x4b   : > { %s262_s11 = scalar_lea.vmem [#allocation4], %s14266_s19  ;;  %s14593_s12 = scalar_lea.hbm %s14893_s21, 4736 }
  0x4c   : > { %s269_s22 = sshll.u32 %s262_s11, 4  ;;  %p14594_p12 = scmp.ne.s32.totalorder %s14893_s21, %s14593_s12  ;;  %s14895_s22 = int_to_ptr.vmem [resolvable:$true] %s269_s22 }
  0x4d   : > { %p14595_p0 = pneg %p14886_p11  ;;  %s14598_s29 = scalar_lea.hbm %s22307_s0, 9472 }
  0x4e   : > { %p14599_p13 = scmp.lt.u32.totalorder %s14893_s21, %s22307_s0  ;;  %p14600_p6 = scmp.lt.u32.totalorder %s14598_s29, %s14593_s12 }
  0x4f   : > { %p14596_p2 = pnand %p14595_p0, %p14594_p12  ;;  %p14602_p3 = scmp.lt.u32.totalorder %s14593_s12, %s14893_s21 }
  0x50   : > { %p14601_p10 = por %p14600_p6, %p14599_p13 }
  0x51   : > { %p14597_p1 = pneg %p14596_p2 }
  0x52   : > { %p14603_p7 = por %p14602_p3, %p14601_p10 }
  0x54   : > { %p14604_p9 = pnand %p14603_p7, %p14597_p1 }
  0x56   : > { %14607 = shalt.err (!%p14604_p9)
}
  0x57   : > { %s14608_s18 = scalar_lea.vmem %s14895_s22, 4736  ;;  %s14699_s19 = smov [#allocation4]  }
  0x58   : > { %p14609_p12 = scmp.ne.s32.totalorder %s14895_s22, %s14608_s18  ;;  %s14613_s11 = sshll.u32 %s14699_s19, 4  ;;  %s14614_s11 = int_to_ptr.vmem [resolvable:$false] %s14613_s11 }
  0x59   : > { %s14615_s1 = scalar_lea.vmem %s14614_s11, 9472  ;;  %p14616_p4 = scmp.lt.s32.totalorder %s14895_s22, %s14614_s11 }
  0x5a   : > { %p14611_p2 = pnand %p14609_p12, %p14595_p0  ;;  %p14617_p13 = scmp.lt.s32.totalorder %s14615_s1, %s14608_s18 }
  0x5c   : > { %p14612_p5 = pneg %p14611_p2  ;;  %p14618_p6 = por %p14617_p13, %p14616_p4 }
  0x5e   : > { %p14619_p10 = pnand %p14618_p6, %p14612_p5 }
  0x60   : > { %14622 = shalt.err (!%p14619_p10)
}
  0x61   : > { %s14700_s12 = smov 2368   ;;  %s14701_s15 = smov 148  }
  0x62   : > { %14293 = dma.hbm_to_vmem [thread:$0]  (!%p14886_p11), %s14893_s21, 4736, %s14895_s22, %s14897_s10, %s14700_s12, %s14700_s12, %s14701_s15  }
  0x63   : > { %281 = sbr.rel (%p14796_p8) target bundleno = 2981 (0xba5), region = 48 }
  0x6a   : > { %s14928_s14 = sand.u32 1, %s14685_s25   ;;  %p23175_p4 = scmp.ne.s32.totalorder %s23167_s30, 0 }
  0x6b   : > { %s14268_s29 = smul.u32 296, %s14928_s14  ;;  %s284_s20 = scalar_lea.sflag [#allocation5], %s14928_s14 }
  0x6d   : > { %s14932_s18 = scalar_lea.vmem [#allocation4], %s14268_s29 }
  0x6e   : > { %14668 = dma.done.wait (%p23175_p4), %s284_s20, 4736  }
  0x6f   : > { %14670 = vsyncadd (%p23175_p4), %s284_s20, 4294962560  ;;  %p23176_p5 = scmp.eq.s32.totalorder %s14777_s28, 0 }
  0x71   : > { %14672 = dma.done.wait (%p23176_p5), [#allocation8], 1536   ;;  %p23177_p8 = pmov %p23176_p5 }
  0x72   : > { %v14357_v0 = vld [vmem:[%s14932_s18 + $0x4] ss:$148 sps:$4 sm:$0xff]   ;;  %v14359_v1 = vld [vmem:[%s14932_s18] ss:$148 sps:$4 sm:$0xff]   ;;  %s14702_s9 = smov 127   ;;  %s14703_s30 = smov 126  }
  0x73   : > { %14674 = vsyncadd (%p23177_p8), [#allocation8], 4294965760  ;;  %768 = vrot.lane.b32.xlu0 %v14357_v0, %s14702_s9  ;;  %v14360_v2 = vld [vmem:[%s14932_s18 + $0x8] ss:$148 sps:$4 sm:$0xff]   ;;  %v14947_v3 = vld [vmem:[%s14932_s18 + $0xc] ss:$148 sps:$4 sm:$0xff]   ;;  %3844 = vmatprep.subr.bf16.mxu0 %v14357_v0 }
  0x74   : > { %766 = vrot.lane.b32.xlu1 %v14359_v1, %s14702_s9  ;;  %3845 = vmatpush1.bf16.msra.mxu0 %v14359_v1  ;;  %s14704_s23 = smov 112   ;;  %s14705_s21 = smov 111   ;;  %v14967_v4 = vld [vmem:[#allocation7 + $0x4] ss:$8 sps:$4 sm:$0xff]   ;;  %vm3840_vm0 = vcmask 130048   ;;  %vm840_vm1 = vcmask 1039360  }
  0x75   : > { %3887 = vmatprep.subr.bf16.mxu1 %v14947_v3  ;;  %s14706_s22 = smov 110   ;;  %s14707_s10 = smov 96   ;;  %13754 = vmatprep.mubr.msk.bf16.mxu0 %vm3840_vm0, %v14967_v4  ;;  %v14980_v5 = vld [vmem:[%s14932_s18 + $0x10] ss:$148 sps:$4 sm:$0xff]   ;;  %v14985_v6 = vld [vmem:[%s14932_s18 + $0x14] ss:$148 sps:$4 sm:$0xff]  }
  0x76   : > { %3888 = vmatpush1.bf16.msra.mxu1 %v14360_v2  ;;  %s14708_s19 = smov 95   ;;  %13755 = vmatprep.mubr.msk.bf16.mxu1 %vm3840_vm0, %v14967_v4  ;;  %s14709_s11 = smov 94   ;;  %v14990_v7 = vld [vmem:[%s14932_s18 + $0x18] ss:$148 sps:$4 sm:$0xff]   ;;  %v15051_v8 = vld [vmem:[%s14932_s18 + $0x1c] ss:$148 sps:$4 sm:$0xff]  }
  0x77   : > { %770 = vrot.lane.b32.xlu0 %v14360_v2, %s14702_s9  ;;  %v15056_v9 = vld [vmem:[%s14932_s18 + $0x20] ss:$148 sps:$4 sm:$0xff]   ;;  %v15061_v10 = vld [vmem:[%s14932_s18 + $0x24] ss:$148 sps:$4 sm:$0xff]   ;;  %v15066_v11 = vld [vmem:[%s14932_s18 + $0x28] ss:$148 sps:$4 sm:$0xff]  }
  0x78   : > { %1138 = vrot.lane.b32.xlu1 %v14357_v0, %s14703_s30  ;;  %vm1210_vm2 = vcmask 1031168   ;;  %vm1580_vm3 = vcmask 916480   ;;  %vm1950_vm4 = vcmask 908288   ;;  %vm2320_vm5 = vcmask 900096   ;;  %v15154_v52 = vld [vmem:[#allocation7] ss:$8 sps:$4 sm:$0xff]  }
  0x79   : > { %vm2690_vm6 = vcmask 785408   ;;  %vm3060_vm7 = vcmask 777216   ;;  %vm3430_vm8 = vcmask 769024   ;;  %vm14712_vm9 = vmmov 0   ;;  %s14270_s15 = smul.u32 6144, %s14777_s28  ;;  %s13306_s28 = scalar_lea.sflag [#allocation6], %s14928_s14 }
  0x7a   : > { %p24538_p0 = scmp.ne.s32.totalorder %s23173_s16, 0 }
  0x7b   : > { %1140 = vrot.lane.b32.xlu0 %v14360_v2, %s14703_s30 }
  0x7c   : > { %1136 = vrot.lane.b32.xlu1 %v14359_v1, %s14703_s30 }
  0x7f   : > { %1508 = vrot.lane.b32.xlu0 %v14357_v0, %s14704_s23 }
  0x80   : > { %1510 = vrot.lane.b32.xlu1 %v14360_v2, %s14704_s23 }
  0x83   : > { %1506 = vrot.lane.b32.xlu0 %v14359_v1, %s14704_s23 }
  0x84   : > { %1878 = vrot.lane.b32.xlu1 %v14357_v0, %s14705_s21 }
  0x87   : > { %1880 = vrot.lane.b32.xlu0 %v14360_v2, %s14705_s21 }
  0x88   : > { %1876 = vrot.lane.b32.xlu1 %v14359_v1, %s14705_s21 }
  0x8b   : > { %2248 = vrot.lane.b32.xlu0 %v14357_v0, %s14706_s22 }
  0x8c   : > { %2250 = vrot.lane.b32.xlu1 %v14360_v2, %s14706_s22 }
  0x8f   : > { %2246 = vrot.lane.b32.xlu0 %v14359_v1, %s14706_s22 }
  0x90   : > { %2618 = vrot.lane.b32.xlu1 %v14357_v0, %s14707_s10 }
  0x93   : > { %2620 = vrot.lane.b32.xlu0 %v14360_v2, %s14707_s10 }
  0x94   : > { %2616 = vrot.lane.b32.xlu1 %v14359_v1, %s14707_s10 }
  0x97   : > { %2988 = vrot.lane.b32.xlu0 %v14357_v0, %s14708_s19 }
  0x98   : > { %2990 = vrot.lane.b32.xlu1 %v14360_v2, %s14708_s19 }
  0x9b   : > { %2986 = vrot.lane.b32.xlu0 %v14359_v1, %s14708_s19 }
  0x9c   : > { %3358 = vrot.lane.b32.xlu1 %v14357_v0, %s14709_s11  ;;  %v15196_v0 = vld [vmem:[%s14932_s18 + $0x2c] ss:$148 sps:$4 sm:$0xff]  }
  0x9f   : > { %3360 = vrot.lane.b32.xlu0 %v14360_v2, %s14709_s11  ;;  %v15207_v2 = vld [vmem:[%s14932_s18 + $0x30] ss:$148 sps:$4 sm:$0xff]  }
  0xa0   : > { %3356 = vrot.lane.b32.xlu1 %v14359_v1, %s14709_s11 }
  0xa3   : > { %772 = vrot.lane.b32.xlu0 %v14947_v3, %s14702_s9 }
  0xa4   : > { %774 = vrot.lane.b32.xlu1 %v14980_v5, %s14702_s9 }
  0xa7   : > { %776 = vrot.lane.b32.xlu0 %v14985_v6, %s14702_s9 }
  0xa8   : > { %778 = vrot.lane.b32.xlu1 %v14990_v7, %s14702_s9 }
  0xab   : > { %1142 = vrot.lane.b32.xlu0 %v14947_v3, %s14703_s30 }
  0xac   : > { %1144 = vrot.lane.b32.xlu1 %v14980_v5, %s14703_s30 }
  0xaf   : > { %1146 = vrot.lane.b32.xlu0 %v14985_v6, %s14703_s30 }
  0xb0   : > { %1148 = vrot.lane.b32.xlu1 %v14990_v7, %s14703_s30 }
  0xb3   : > { %1512 = vrot.lane.b32.xlu0 %v14947_v3, %s14704_s23 }
  0xb4   : > { %1514 = vrot.lane.b32.xlu1 %v14980_v5, %s14704_s23 }
  0xb7   : > { %1516 = vrot.lane.b32.xlu0 %v14985_v6, %s14704_s23 }
  0xb8   : > { %1518 = vrot.lane.b32.xlu1 %v14990_v7, %s14704_s23 }
  0xbb   : > { %1882 = vrot.lane.b32.xlu0 %v14947_v3, %s14705_s21 }
  0xbc   : > { %1884 = vrot.lane.b32.xlu1 %v14980_v5, %s14705_s21 }
  0xbf   : > { %1886 = vrot.lane.b32.xlu0 %v14985_v6, %s14705_s21 }
  0xc0   : > { %1888 = vrot.lane.b32.xlu1 %v14990_v7, %s14705_s21 }
  0xc3   : > { %2252 = vrot.lane.b32.xlu0 %v14947_v3, %s14706_s22 }
  0xc4   : > { %2254 = vrot.lane.b32.xlu1 %v14980_v5, %s14706_s22 }
  0xc7   : > { %2256 = vrot.lane.b32.xlu0 %v14985_v6, %s14706_s22 }
  0xc8   : > { %2258 = vrot.lane.b32.xlu1 %v14990_v7, %s14706_s22 }
  0xcb   : > { %2622 = vrot.lane.b32.xlu0 %v14947_v3, %s14707_s10 }
  0xcc   : > { %2624 = vrot.lane.b32.xlu1 %v14980_v5, %s14707_s10 }
  0xcf   : > { %2626 = vrot.lane.b32.xlu0 %v14985_v6, %s14707_s10 }
  0xd0   : > { %2628 = vrot.lane.b32.xlu1 %v14990_v7, %s14707_s10 }
  0xd3   : > { %2992 = vrot.lane.b32.xlu0 %v14947_v3, %s14708_s19 }
  0xd4   : > { %2994 = vrot.lane.b32.xlu1 %v14980_v5, %s14708_s19 }
  0xd7   : > { %2996 = vrot.lane.b32.xlu0 %v14985_v6, %s14708_s19 }
  0xd8   : > { %2998 = vrot.lane.b32.xlu1 %v14990_v7, %s14708_s19 }
  0xdb   : > { %3362 = vrot.lane.b32.xlu0 %v14947_v3, %s14709_s11 }
  0xdc   : > { %3364 = vrot.lane.b32.xlu1 %v14980_v5, %s14709_s11 }
  0xdf   : > { %3366 = vrot.lane.b32.xlu0 %v14985_v6, %s14709_s11 }
  0xe0   : > { %3368 = vrot.lane.b32.xlu1 %v14990_v7, %s14709_s11 }
  0xe3   : > { %780 = vrot.lane.b32.xlu0 %v15051_v8, %s14702_s9 }
  0xe4   : > { %782 = vrot.lane.b32.xlu1 %v15056_v9, %s14702_s9 }
  0xe5   : > { %v769_v12 = vpop.permute.xlu0 %768 }
  0xe6   : > { %v767_v13 = vpop.permute.xlu1 %766 }
  0xe7   : > { %784 = vrot.lane.b32.xlu0 %v15061_v10, %s14702_s9  ;;  %v841_v17 = vsel %vm840_vm1, %v767_v13, %v769_v12  ;;  %v15228_v13 = vld [vmem:[%s14932_s18 + $0x38] ss:$148 sps:$4 sm:$0xff]  }
  0xe8   : > { %786 = vrot.lane.b32.xlu1 %v15066_v11, %s14702_s9 }
  0xe9   : > { %v15072_v14 = vpop.permute.xlu0 %770 }
  0xea   : > { %v1139_v15 = vpop.permute.xlu1 %1138  ;;  %v842_v16 = vsel %vm840_vm1, %v769_v12, %v15072_v14 }
  0xeb   : > { %1150 = vrot.lane.b32.xlu0 %v15051_v8, %s14703_s30  ;;  %3846 = vmatprep.subr.bf16.mxu0 %v842_v16 }
  0xec   : > { %1152 = vrot.lane.b32.xlu1 %v15056_v9, %s14703_s30  ;;  %3847 = vmatpush1.bf16.msra.mxu0 %v841_v17 }
  0xed   : > { %v15081_v18 = vpop.permute.xlu0 %1140 }
  0xee   : > { %v1137_v19 = vpop.permute.xlu1 %1136  ;;  %v1212_v20 = vsel %vm1210_vm2, %v1139_v15, %v15081_v18 }
  0xef   : > { %1154 = vrot.lane.b32.xlu0 %v15061_v10, %s14703_s30  ;;  %3848 = vmatprep.subr.bf16.mxu0 %v1212_v20  ;;  %v1211_v21 = vsel %vm1210_vm2, %v1137_v19, %v1139_v15 }
  0xf0   : > { %1156 = vrot.lane.b32.xlu1 %v15066_v11, %s14703_s30  ;;  %3849 = vmatpush1.bf16.msra.mxu0 %v1211_v21 }
  0xf1   : > { %v1509_v22 = vpop.permute.xlu0 %1508 }
  0xf2   : > { %v15090_v23 = vpop.permute.xlu1 %1510 }
  0xf3   : > { %1520 = vrot.lane.b32.xlu0 %v15051_v8, %s14704_s23  ;;  %v1582_v24 = vsel %vm1580_vm3, %v1509_v22, %v15090_v23 }
  0xf4   : > { %1522 = vrot.lane.b32.xlu1 %v15056_v9, %s14704_s23  ;;  %3850 = vmatprep.subr.bf16.mxu0 %v1582_v24 }
  0xf5   : > { %v1507_v25 = vpop.permute.xlu0 %1506 }
  0xf6   : > { %v1879_v26 = vpop.permute.xlu1 %1878  ;;  %v1581_v27 = vsel %vm1580_vm3, %v1507_v25, %v1509_v22 }
  0xf7   : > { %1524 = vrot.lane.b32.xlu0 %v15061_v10, %s14704_s23  ;;  %3851 = vmatpush1.bf16.msra.mxu0 %v1581_v27 }
  0xf8   : > { %1526 = vrot.lane.b32.xlu1 %v15066_v11, %s14704_s23 }
  0xf9   : > { %v15103_v28 = vpop.permute.xlu0 %1880 }
  0xfa   : > { %v1877_v29 = vpop.permute.xlu1 %1876  ;;  %v1952_v30 = vsel %vm1950_vm4, %v1879_v26, %v15103_v28 }
  0xfb   : > { %1890 = vrot.lane.b32.xlu0 %v15051_v8, %s14705_s21  ;;  %3852 = vmatprep.subr.bf16.mxu0 %v1952_v30  ;;  %v1951_v31 = vsel %vm1950_vm4, %v1877_v29, %v1879_v26 }
  0xfc   : > { %1892 = vrot.lane.b32.xlu1 %v15056_v9, %s14705_s21  ;;  %3853 = vmatpush1.bf16.msra.mxu0 %v1951_v31 }
  0xfd   : > { %v2249_v32 = vpop.permute.xlu0 %2248 }
  0xfe   : > { %v15112_v33 = vpop.permute.xlu1 %2250 }
  0xff   : > { %1894 = vrot.lane.b32.xlu0 %v15061_v10, %s14705_s21  ;;  %v2322_v34 = vsel %vm2320_vm5, %v2249_v32, %v15112_v33 }
 0x100   : > { %1896 = vrot.lane.b32.xlu1 %v15066_v11, %s14705_s21  ;;  %3854 = vmatprep.subr.bf16.mxu0 %v2322_v34 }
 0x101   : > { %v2247_v35 = vpop.permute.xlu0 %2246 }
 0x102   : > { %v2619_v36 = vpop.permute.xlu1 %2618  ;;  %v2321_v37 = vsel %vm2320_vm5, %v2247_v35, %v2249_v32 }
 0x103   : > { %2260 = vrot.lane.b32.xlu0 %v15051_v8, %s14706_s22  ;;  %3855 = vmatpush1.bf16.msra.mxu0 %v2321_v37 }
 0x104   : > { %2262 = vrot.lane.b32.xlu1 %v15056_v9, %s14706_s22 }
 0x105   : > { %v15125_v38 = vpop.permute.xlu0 %2620 }
 0x106   : > { %v2617_v39 = vpop.permute.xlu1 %2616  ;;  %v2692_v40 = vsel %vm2690_vm6, %v2619_v36, %v15125_v38 }
 0x107   : > { %2264 = vrot.lane.b32.xlu0 %v15061_v10, %s14706_s22  ;;  %3856 = vmatprep.subr.bf16.mxu0 %v2692_v40  ;;  %v2691_v41 = vsel %vm2690_vm6, %v2617_v39, %v2619_v36 }
 0x108   : > { %2266 = vrot.lane.b32.xlu1 %v15066_v11, %s14706_s22  ;;  %3857 = vmatpush1.bf16.msra.mxu0 %v2691_v41 }
 0x109   : > { %v2989_v42 = vpop.permute.xlu0 %2988 }
 0x10a   : > { %v15134_v43 = vpop.permute.xlu1 %2990 }
 0x10b   : > { %2630 = vrot.lane.b32.xlu0 %v15051_v8, %s14707_s10  ;;  %v3062_v44 = vsel %vm3060_vm7, %v2989_v42, %v15134_v43 }
 0x10c   : > { %2632 = vrot.lane.b32.xlu1 %v15056_v9, %s14707_s10  ;;  %3858 = vmatprep.subr.bf16.mxu0 %v3062_v44 }
 0x10d   : > { %v2987_v45 = vpop.permute.xlu0 %2986 }
 0x10e   : > { %v3359_v46 = vpop.permute.xlu1 %3358  ;;  %v3061_v47 = vsel %vm3060_vm7, %v2987_v45, %v2989_v42 }
 0x10f   : > { %2634 = vrot.lane.b32.xlu0 %v15061_v10, %s14707_s10  ;;  %3859 = vmatpush1.bf16.msra.mxu0 %v3061_v47 }
 0x110   : > { %2636 = vrot.lane.b32.xlu1 %v15066_v11, %s14707_s10 }
 0x111   : > { %v15147_v48 = vpop.permute.xlu0 %3360 }
 0x112   : > { %v3357_v49 = vpop.permute.xlu1 %3356  ;;  %v3432_v50 = vsel %vm3430_vm8, %v3359_v46, %v15147_v48 }
 0x113   : > { %3000 = vrot.lane.b32.xlu0 %v15051_v8, %s14708_s19  ;;  %3860 = vmatprep.subr.bf16.mxu0 %v3432_v50  ;;  %v3431_v51 = vsel %vm3430_vm8, %v3357_v49, %v3359_v46 }
 0x114   : > { %3002 = vrot.lane.b32.xlu1 %v15056_v9, %s14708_s19  ;;  %3861 = vmatpush1.bf16.msra.mxu0 %v3431_v51 }
 0x115   : > { %v773_v53 = vpop.permute.xlu0 %772  ;;  %3930 = vmatprep.subr.bf16.mxu0 %v14985_v6 }
 0x116   : > { %v775_v54 = vpop.permute.xlu1 %774  ;;  %v15161_v55 = vsel %vm840_vm1, %v15072_v14, %v773_v53 }
 0x117   : > { %3004 = vrot.lane.b32.xlu0 %v15061_v10, %s14708_s19  ;;  %v15166_v56 = vsel %vm840_vm1, %v773_v53, %v775_v54  ;;  %3877 = vmatmul.mubr.bf16.vlgmr.msra.gmra.mrb[0].mxu0 %v15154_v52 }
 0x118   : > { %3006 = vrot.lane.b32.xlu1 %v15066_v11, %s14708_s19  ;;  %3889 = vmatprep.subr.bf16.mxu1 %v15166_v56 }
 0x119   : > { %3890 = vmatpush1.bf16.msra.mxu1 %v15161_v55  ;;  %3931 = vmatpush1.bf16.msra.mxu0 %v14980_v5  ;;  %v777_v57 = vpop.permute.xlu0 %776 }
 0x11a   : > { %v15174_v58 = vpop.permute.xlu1 %778  ;;  %v15177_v59 = vsel %vm840_vm1, %v775_v54, %v777_v57  ;;  %13756 = vmatprep.mubr.msk.bf16.mxu0 %vm3840_vm0, %v14967_v4 }
 0x11b   : > { %3370 = vrot.lane.b32.xlu0 %v15051_v8, %s14709_s11  ;;  %v15185_v60 = vsel %vm840_vm1, %v777_v57, %v15174_v58 }
 0x11c   : > { %3372 = vrot.lane.b32.xlu1 %v15056_v9, %s14709_s11  ;;  %3932 = vmatprep.subr.bf16.mxu0 %v15185_v60 }
 0x11d   : > { %3933 = vmatpush1.bf16.msra.mxu0 %v15177_v59  ;;  %v1143_v61 = vpop.permute.xlu0 %1142 }
 0x11e   : > { %v1145_v62 = vpop.permute.xlu1 %1144  ;;  %v15193_v63 = vsel %vm1210_vm2, %v15081_v18, %v1143_v61 }
 0x11f   : > { %3374 = vrot.lane.b32.xlu0 %v15061_v10, %s14709_s11  ;;  %v15201_v1 = vsel %vm1210_vm2, %v1143_v61, %v1145_v62 }
 0x120   : > { %3376 = vrot.lane.b32.xlu1 %v15066_v11, %s14709_s11  ;;  %3891 = vmatprep.subr.bf16.mxu1 %v15201_v1  ;;  %v15222_v11 = vld [vmem:[%s14932_s18 + $0x34] ss:$148 sps:$4 sm:$0xff]  }
 0x121   : > { %3892 = vmatpush1.bf16.msra.mxu1 %v15193_v63  ;;  %v1147_v3 = vpop.permute.xlu0 %1146 }
 0x122   : > { %v15210_v5 = vpop.permute.xlu1 %1148  ;;  %v15213_v6 = vsel %vm1210_vm2, %v1145_v62, %v1147_v3 }
 0x123   : > { %788 = vrot.lane.b32.xlu0 %v15196_v0, %s14702_s9  ;;  %v15219_v12 = vsel %vm1210_vm2, %v1147_v3, %v15210_v5 }
 0x124   : > { %790 = vrot.lane.b32.xlu1 %v15207_v2, %s14702_s9  ;;  %3934 = vmatprep.subr.bf16.mxu0 %v15219_v12 }
 0x125   : > { %3935 = vmatpush1.bf16.msra.mxu0 %v15213_v6  ;;  %v1513_v14 = vpop.permute.xlu0 %1512 }
 0x126   : > { %v1515_v15 = vpop.permute.xlu1 %1514  ;;  %v15233_v16 = vsel %vm1580_vm3, %v15090_v23, %v1513_v14 }
 0x127   : > { %792 = vrot.lane.b32.xlu0 %v15222_v11, %s14702_s9  ;;  %v15238_v17 = vsel %vm1580_vm3, %v1513_v14, %v1515_v15 }
 0x128   : > { %794 = vrot.lane.b32.xlu1 %v15228_v13, %s14702_s9  ;;  %3893 = vmatprep.subr.bf16.mxu1 %v15238_v17 }
 0x129   : > { %3894 = vmatpush1.bf16.msra.mxu1 %v15233_v16  ;;  %v1517_v18 = vpop.permute.xlu0 %1516 }
 0x12a   : > { %v15244_v19 = vpop.permute.xlu1 %1518  ;;  %v15247_v20 = vsel %vm1580_vm3, %v1515_v15, %v1517_v18 }
 0x12b   : > { %1158 = vrot.lane.b32.xlu0 %v15196_v0, %s14703_s30  ;;  %v15253_v21 = vsel %vm1580_vm3, %v1517_v18, %v15244_v19 }
 0x12c   : > { %1160 = vrot.lane.b32.xlu1 %v15207_v2, %s14703_s30  ;;  %3936 = vmatprep.subr.bf16.mxu0 %v15253_v21 }
 0x12d   : > { %3937 = vmatpush1.bf16.msra.mxu0 %v15247_v20  ;;  %v1883_v22 = vpop.permute.xlu0 %1882 }
 0x12e   : > { %v1885_v23 = vpop.permute.xlu1 %1884  ;;  %v15261_v24 = vsel %vm1950_vm4, %v15103_v28, %v1883_v22 }
 0x12f   : > { %1162 = vrot.lane.b32.xlu0 %v15222_v11, %s14703_s30  ;;  %v15266_v25 = vsel %vm1950_vm4, %v1883_v22, %v1885_v23 }
 0x130   : > { %1164 = vrot.lane.b32.xlu1 %v15228_v13, %s14703_s30  ;;  %3895 = vmatprep.subr.bf16.mxu1 %v15266_v25 }
 0x131   : > { %3896 = vmatpush1.bf16.msra.mxu1 %v15261_v24  ;;  %v1887_v26 = vpop.permute.xlu0 %1886 }
 0x132   : > { %v15272_v27 = vpop.permute.xlu1 %1888  ;;  %v15275_v29 = vsel %vm1950_vm4, %v1885_v23, %v1887_v26 }
 0x133   : > { %1528 = vrot.lane.b32.xlu0 %v15196_v0, %s14704_s23  ;;  %v15281_v28 = vsel %vm1950_vm4, %v1887_v26, %v15272_v27 }
 0x134   : > { %1530 = vrot.lane.b32.xlu1 %v15207_v2, %s14704_s23  ;;  %3938 = vmatprep.subr.bf16.mxu0 %v15281_v28 }
 0x135   : > { %3939 = vmatpush1.bf16.msra.mxu0 %v15275_v29  ;;  %v2253_v30 = vpop.permute.xlu0 %2252 }
 0x136   : > { %v2255_v31 = vpop.permute.xlu1 %2254  ;;  %v15289_v32 = vsel %vm2320_vm5, %v15112_v33, %v2253_v30 }
 0x137   : > { %1532 = vrot.lane.b32.xlu0 %v15222_v11, %s14704_s23  ;;  %v15294_v34 = vsel %vm2320_vm5, %v2253_v30, %v2255_v31 }
 0x138   : > { %1534 = vrot.lane.b32.xlu1 %v15228_v13, %s14704_s23  ;;  %3897 = vmatprep.subr.bf16.mxu1 %v15294_v34 }
 0x139   : > { %3898 = vmatpush1.bf16.msra.mxu1 %v15289_v32  ;;  %v2257_v35 = vpop.permute.xlu0 %2256 }
 0x13a   : > { %v15300_v36 = vpop.permute.xlu1 %2258  ;;  %v15303_v37 = vsel %vm2320_vm5, %v2255_v31, %v2257_v35 }
 0x13b   : > { %1898 = vrot.lane.b32.xlu0 %v15196_v0, %s14705_s21  ;;  %v15309_v33 = vsel %vm2320_vm5, %v2257_v35, %v15300_v36 }
 0x13c   : > { %1900 = vrot.lane.b32.xlu1 %v15207_v2, %s14705_s21  ;;  %3940 = vmatprep.subr.bf16.mxu0 %v15309_v33 }
 0x13d   : > { %3941 = vmatpush1.bf16.msra.mxu0 %v15303_v37  ;;  %v2623_v39 = vpop.permute.xlu0 %2622 }
 0x13e   : > { %v2625_v40 = vpop.permute.xlu1 %2624  ;;  %v15317_v41 = vsel %vm2690_vm6, %v15125_v38, %v2623_v39 }
 0x13f   : > { %1902 = vrot.lane.b32.xlu0 %v15222_v11, %s14705_s21  ;;  %v15322_v42 = vsel %vm2690_vm6, %v2623_v39, %v2625_v40  ;;  %v15442_v39 = vld [vmem:[%s14932_s18 + $0x3c] ss:$148 sps:$4 sm:$0xff]  }
 0x140   : > { %1904 = vrot.lane.b32.xlu1 %v15228_v13, %s14705_s21  ;;  %3899 = vmatprep.subr.bf16.mxu1 %v15322_v42 }
 0x141   : > { %3900 = vmatpush1.bf16.msra.mxu1 %v15317_v41  ;;  %v2627_v44 = vpop.permute.xlu0 %2626 }
 0x142   : > { %v15328_v45 = vpop.permute.xlu1 %2628  ;;  %v15331_v46 = vsel %vm2690_vm6, %v2625_v40, %v2627_v44 }
 0x143   : > { %2268 = vrot.lane.b32.xlu0 %v15196_v0, %s14706_s22  ;;  %v15337_v38 = vsel %vm2690_vm6, %v2627_v44, %v15328_v45  ;;  %v15453_v44 = vld [vmem:[%s14932_s18 + $0x40] ss:$148 sps:$4 sm:$0xff]  }
 0x144   : > { %2270 = vrot.lane.b32.xlu1 %v15207_v2, %s14706_s22  ;;  %3942 = vmatprep.subr.bf16.mxu0 %v15337_v38 }
 0x145   : > { %3943 = vmatpush1.bf16.msra.mxu0 %v15331_v46  ;;  %v2993_v47 = vpop.permute.xlu0 %2992 }
 0x146   : > { %v2995_v49 = vpop.permute.xlu1 %2994  ;;  %v15345_v50 = vsel %vm3060_vm7, %v15134_v43, %v2993_v47 }
 0x147   : > { %2272 = vrot.lane.b32.xlu0 %v15222_v11, %s14706_s22  ;;  %v15350_v51 = vsel %vm3060_vm7, %v2993_v47, %v2995_v49 }
 0x148   : > { %2274 = vrot.lane.b32.xlu1 %v15228_v13, %s14706_s22  ;;  %3901 = vmatprep.subr.bf16.mxu1 %v15350_v51 }
 0x149   : > { %3902 = vmatpush1.bf16.msra.mxu1 %v15345_v50  ;;  %v2997_v53 = vpop.permute.xlu0 %2996 }
 0x14a   : > { %v15356_v54 = vpop.permute.xlu1 %2998  ;;  %v15359_v57 = vsel %vm3060_vm7, %v2995_v49, %v2997_v53 }
 0x14b   : > { %23178 = vst [vmem:[#allocation14_spill] sm:$0xff] %v15359_v57  ;;  %2638 = vrot.lane.b32.xlu0 %v15196_v0, %s14707_s10  ;;  %v15365_v43 = vsel %vm3060_vm7, %v2997_v53, %v15356_v54 }
 0x14c   : > { %2640 = vrot.lane.b32.xlu1 %v15207_v2, %s14707_s10  ;;  %3944 = vmatprep.subr.bf16.mxu0 %v15365_v43 }
 0x14d   : > { %3945 = vmatpush1.bf16.msra.mxu0 %v15359_v57  ;;  %v3363_v61 = vpop.permute.xlu0 %3362  ;;  %v14389_v57 = vld [vmem:[%s14932_s18 + $0x28] ss:$148 sps:$4 sm:$0xff]  }
 0x14e   : > { %v3365_v62 = vpop.permute.xlu1 %3364  ;;  %v15373_v3 = vsel %vm3430_vm8, %v15147_v48, %v3363_v61 }
 0x14f   : > { %2642 = vrot.lane.b32.xlu0 %v15222_v11, %s14707_s10  ;;  %v15378_v14 = vsel %vm3430_vm8, %v3363_v61, %v3365_v62  ;;  %v15474_v61 = vld [vmem:[%s14932_s18 + $0x48] ss:$148 sps:$4 sm:$0xff]  }
 0x150   : > { %2644 = vrot.lane.b32.xlu1 %v15228_v13, %s14707_s10  ;;  %3903 = vmatprep.subr.bf16.mxu1 %v15378_v14 }
 0x151   : > { %3904 = vmatpush1.bf16.msra.mxu1 %v15373_v3  ;;  %v3367_v15 = vpop.permute.xlu0 %3366 }
 0x152   : > { %v15384_v18 = vpop.permute.xlu1 %3368  ;;  %3973 = vmatprep.subr.bf16.mxu1 %v15051_v8  ;;  %v15388_v48 = vsel %vm3430_vm8, %v3365_v62, %v3367_v15 }
 0x153   : > { %23179 = vst [vmem:[#allocation15_spill] sm:$0xff] %v15388_v48  ;;  %3008 = vrot.lane.b32.xlu0 %v15196_v0, %s14708_s19  ;;  %v15394_v22 = vsel %vm3430_vm8, %v3367_v15, %v15384_v18 }
 0x154   : > { %23180 = vst [vmem:[#allocation16_spill] sm:$0xff] %v15394_v22  ;;  %3010 = vrot.lane.b32.xlu1 %v15207_v2, %s14708_s19  ;;  %3946 = vmatprep.subr.bf16.mxu0 %v15394_v22 }
 0x155   : > { %3920 = vmatmul.mubr.bf16.vlgmr.msra.gmra.mrb[0].mxu1 %v15154_v52  ;;  %3947 = vmatpush1.bf16.msra.mxu0 %v15388_v48  ;;  %v781_v8 = vpop.permute.xlu0 %780 }
 0x156   : > { %3974 = vmatpush1.bf16.msra.mxu1 %v14990_v7  ;;  %v783_v23 = vpop.permute.xlu1 %782  ;;  %4016 = vmatprep.subr.bf16.mxu0 %v15061_v10  ;;  %v15410_v30 = vsel %vm840_vm1, %v15174_v58, %v781_v8 }
 0x157   : > { %3012 = vrot.lane.b32.xlu0 %v15222_v11, %s14708_s19  ;;  %v15406_v26 = vsel %vm840_vm1, %v781_v8, %v783_v23  ;;  %23181 = vst [vmem:[#allocation17_spill] sm:$0xff] %v15410_v30  ;;  %13757 = vmatprep.mubr.msk.bf16.mxu1 %vm3840_vm0, %v14967_v4 }
 0x158   : > { %3014 = vrot.lane.b32.xlu1 %v15228_v13, %s14708_s19  ;;  %3975 = vmatprep.subr.bf16.mxu1 %v15406_v26 }
 0x159   : > { %3963 = vmatmul.mubr.bf16.vlgmr.msra.gmra.mrb[4].mxu0 %v15154_v52  ;;  %v785_v7 = vpop.permute.xlu0 %784 }
 0x15a   : > { %3976 = vmatpush1.bf16.msra.mxu1 %v15410_v30  ;;  %4017 = vmatpush1.bf16.msra.mxu0 %v15056_v9  ;;  %v15420_v10 = vpop.permute.xlu1 %786  ;;  %v15429_v31 = vsel %vm840_vm1, %v783_v23, %v785_v7 }
 0x15b   : > { %3378 = vrot.lane.b32.xlu0 %v15196_v0, %s14709_s11  ;;  %v15426_v58 = vsel %vm840_vm1, %v785_v7, %v15420_v10  ;;  %23183 = vst [vmem:[#allocation19_spill] sm:$0xff] %v15429_v31  ;;  %13758 = vmatprep.mubr.msk.bf16.mxu0 %vm3840_vm0, %v14967_v4 }
 0x15c   : > { %23182 = vst [vmem:[#allocation18_spill] sm:$0xff] %v15426_v58  ;;  %3380 = vrot.lane.b32.xlu1 %v15207_v2, %s14709_s11  ;;  %4018 = vmatprep.subr.bf16.mxu0 %v15426_v58 }
 0x15d   : > { %v1151_v9 = vpop.permute.xlu0 %1150 }
 0x15e   : > { %4019 = vmatpush1.bf16.msra.mxu0 %v15429_v31  ;;  %v1153_v0 = vpop.permute.xlu1 %1152  ;;  %v15439_v35 = vsel %vm1210_vm2, %v15210_v5, %v1151_v9 }
 0x15f   : > { %23184 = vst [vmem:[#allocation20_spill] sm:$0xff] %v15439_v35  ;;  %3382 = vrot.lane.b32.xlu0 %v15222_v11, %s14709_s11  ;;  %v15447_v40 = vsel %vm1210_vm2, %v1151_v9, %v1153_v0 }
 0x160   : > { %23185 = vst [vmem:[#allocation21_spill] sm:$0xff] %v15447_v40  ;;  %3384 = vrot.lane.b32.xlu1 %v15228_v13, %s14709_s11  ;;  %3977 = vmatprep.subr.bf16.mxu1 %v15447_v40  ;;  %v15468_v13 = vld [vmem:[%s14932_s18 + $0x44] ss:$148 sps:$4 sm:$0xff]  }
 0x161   : > { %3978 = vmatpush1.bf16.msra.mxu1 %v15439_v35  ;;  %v1155_v5 = vpop.permute.xlu0 %1154 }
 0x162   : > { %v15456_v47 = vpop.permute.xlu1 %1156  ;;  %v15459_v49 = vsel %vm1210_vm2, %v1153_v0, %v1155_v5 }
 0x163   : > { %23186 = vst [vmem:[#allocation22_spill] sm:$0xff] %v15459_v49  ;;  %796 = vrot.lane.b32.xlu0 %v15442_v39, %s14702_s9  ;;  %v15465_v53 = vsel %vm1210_vm2, %v1155_v5, %v15456_v47 }
 0x164   : > { %23187 = vst [vmem:[#allocation23_spill] sm:$0xff] %v15465_v53  ;;  %798 = vrot.lane.b32.xlu1 %v15453_v44, %s14702_s9  ;;  %4020 = vmatprep.subr.bf16.mxu0 %v15465_v53 }
 0x165   : > { %4021 = vmatpush1.bf16.msra.mxu0 %v15459_v49  ;;  %v1521_v62 = vpop.permute.xlu0 %1520 }
 0x166   : > { %v1523_v15 = vpop.permute.xlu1 %1522  ;;  %v15479_v8 = vsel %vm1580_vm3, %v15244_v19, %v1521_v62 }
 0x167   : > { %23188 = vst [vmem:[#allocation24_spill] sm:$0xff] %v15479_v8  ;;  %800 = vrot.lane.b32.xlu0 %v15468_v13, %s14702_s9  ;;  %v15484_v23 = vsel %vm1580_vm3, %v1521_v62, %v1523_v15 }
 0x168   : > { %23189 = vst [vmem:[#allocation25_spill] sm:$0xff] %v15484_v23  ;;  %802 = vrot.lane.b32.xlu1 %v15474_v61, %s14702_s9  ;;  %3979 = vmatprep.subr.bf16.mxu1 %v15484_v23 }
 0x169   : > { %3980 = vmatpush1.bf16.msra.mxu1 %v15479_v8  ;;  %v1525_v7 = vpop.permute.xlu0 %1524 }
 0x16a   : > { %v15490_v9 = vpop.permute.xlu1 %1526  ;;  %v15493_v0 = vsel %vm1580_vm3, %v1523_v15, %v1525_v7 }
 0x16b   : > { %23190 = vst [vmem:[#allocation26_spill] sm:$0xff] %v15493_v0  ;;  %1166 = vrot.lane.b32.xlu0 %v15442_v39, %s14703_s30  ;;  %v15499_v19 = vsel %vm1580_vm3, %v1525_v7, %v15490_v9 }
 0x16c   : > { %23191 = vst [vmem:[#allocation27_spill] sm:$0xff] %v15499_v19  ;;  %1168 = vrot.lane.b32.xlu1 %v15453_v44, %s14703_s30  ;;  %4022 = vmatprep.subr.bf16.mxu0 %v15499_v19 }
 0x16d   : > { %4023 = vmatpush1.bf16.msra.mxu0 %v15493_v0  ;;  %v1891_v5 = vpop.permute.xlu0 %1890 }
 0x16e   : > { %v1893_v62 = vpop.permute.xlu1 %1892  ;;  %v15507_v15 = vsel %vm1950_vm4, %v15272_v27, %v1891_v5 }
 0x16f   : > { %23192 = vst [vmem:[#allocation28_spill] sm:$0xff] %v15507_v15  ;;  %1170 = vrot.lane.b32.xlu0 %v15468_v13, %s14703_s30  ;;  %v15512_v49 = vsel %vm1950_vm4, %v1891_v5, %v1893_v62 }
 0x170   : > { %23193 = vst [vmem:[#allocation29_spill] sm:$0xff] %v15512_v49  ;;  %1172 = vrot.lane.b32.xlu1 %v15474_v61, %s14703_s30  ;;  %3981 = vmatprep.subr.bf16.mxu1 %v15512_v49 }
 0x171   : > { %3982 = vmatpush1.bf16.msra.mxu1 %v15507_v15  ;;  %v1895_v7 = vpop.permute.xlu0 %1894 }
 0x172   : > { %v15518_v0 = vpop.permute.xlu1 %1896  ;;  %v15521_v19 = vsel %vm1950_vm4, %v1893_v62, %v1895_v7 }
 0x173   : > { %23194 = vst [vmem:[#allocation30_spill] sm:$0xff] %v15521_v19  ;;  %1536 = vrot.lane.b32.xlu0 %v15442_v39, %s14704_s23  ;;  %v15527_v27 = vsel %vm1950_vm4, %v1895_v7, %v15518_v0 }
 0x174   : > { %23195 = vst [vmem:[#allocation31_spill] sm:$0xff] %v15527_v27  ;;  %1538 = vrot.lane.b32.xlu1 %v15453_v44, %s14704_s23  ;;  %4024 = vmatprep.subr.bf16.mxu0 %v15527_v27 }
 0x175   : > { %4025 = vmatpush1.bf16.msra.mxu0 %v15521_v19  ;;  %v2261_v5 = vpop.permute.xlu0 %2260 }
 0x176   : > { %v2263_v53 = vpop.permute.xlu1 %2262  ;;  %v15535_v62 = vsel %vm2320_vm5, %v15300_v36, %v2261_v5 }
 0x177   : > { %23196 = vst [vmem:[#allocation32_spill] sm:$0xff] %v15535_v62  ;;  %1540 = vrot.lane.b32.xlu0 %v15468_v13, %s14704_s23  ;;  %v15540_v31 = vsel %vm2320_vm5, %v2261_v5, %v2263_v53 }
 0x178   : > { %23197 = vst [vmem:[#allocation33_spill] sm:$0xff] %v15540_v31  ;;  %1542 = vrot.lane.b32.xlu1 %v15474_v61, %s14704_s23  ;;  %3983 = vmatprep.subr.bf16.mxu1 %v15540_v31 }
 0x179   : > { %3984 = vmatpush1.bf16.msra.mxu1 %v15535_v62  ;;  %v2265_v7 = vpop.permute.xlu0 %2264 }
 0x17a   : > { %v15546_v19 = vpop.permute.xlu1 %2266  ;;  %v15549_v27 = vsel %vm2320_vm5, %v2263_v53, %v2265_v7 }
 0x17b   : > { %23198 = vst [vmem:[#allocation34_spill] sm:$0xff] %v15549_v27  ;;  %1906 = vrot.lane.b32.xlu0 %v15442_v39, %s14705_s21  ;;  %v15555_v36 = vsel %vm2320_vm5, %v2265_v7, %v15546_v19 }
 0x17c   : > { %23199 = vst [vmem:[#allocation35_spill] sm:$0xff] %v15555_v36  ;;  %1908 = vrot.lane.b32.xlu1 %v15453_v44, %s14705_s21  ;;  %4026 = vmatprep.subr.bf16.mxu0 %v15555_v36 }
 0x17d   : > { %4027 = vmatpush1.bf16.msra.mxu0 %v15549_v27  ;;  %v2631_v5 = vpop.permute.xlu0 %2630 }
 0x17e   : > { %v2633_v58 = vpop.permute.xlu1 %2632  ;;  %v15563_v53 = vsel %vm2690_vm6, %v15328_v45, %v2631_v5 }
 0x17f   : > { %23200 = vst [vmem:[#allocation36_spill] sm:$0xff] %v15563_v53  ;;  %1910 = vrot.lane.b32.xlu0 %v15468_v13, %s14705_s21  ;;  %v15568_v48 = vsel %vm2690_vm6, %v2631_v5, %v2633_v58 }
 0x180   : > { %23201 = vst [vmem:[#allocation37_spill] sm:$0xff] %v15568_v48  ;;  %1912 = vrot.lane.b32.xlu1 %v15474_v61, %s14705_s21  ;;  %3985 = vmatprep.subr.bf16.mxu1 %v15568_v48 }
 0x181   : > { %3986 = vmatpush1.bf16.msra.mxu1 %v15563_v53  ;;  %v2635_v7 = vpop.permute.xlu0 %2634  ;;  %v14391_v53 = vld [vmem:[%s14932_s18 + $0x2c] ss:$148 sps:$4 sm:$0xff]  }
 0x182   : > { %v15574_v27 = vpop.permute.xlu1 %2636  ;;  %v15577_v36 = vsel %vm2690_vm6, %v2633_v58, %v2635_v7 }
 0x183   : > { %23202 = vst [vmem:[#allocation38_spill] sm:$0xff] %v15577_v36  ;;  %2276 = vrot.lane.b32.xlu0 %v15442_v39, %s14706_s22  ;;  %v15583_v45 = vsel %vm2690_vm6, %v2635_v7, %v15574_v27 }
 0x184   : > { %23203 = vst [vmem:[#allocation39_spill] sm:$0xff] %v15583_v45  ;;  %2278 = vrot.lane.b32.xlu1 %v15453_v44, %s14706_s22  ;;  %4028 = vmatprep.subr.bf16.mxu0 %v15583_v45 }
 0x185   : > { %4029 = vmatpush1.bf16.msra.mxu0 %v15577_v36  ;;  %v3001_v5 = vpop.permute.xlu0 %3000 }
 0x186   : > { %v3003_v22 = vpop.permute.xlu1 %3002  ;;  %v15591_v58 = vsel %vm3060_vm7, %v15356_v54, %v3001_v5 }
 0x187   : > { %23204 = vst [vmem:[#allocation40_spill] sm:$0xff] %v15591_v58  ;;  %2280 = vrot.lane.b32.xlu0 %v15468_v13, %s14706_s22  ;;  %v15596_v7 = vsel %vm3060_vm7, %v3001_v5, %v3003_v22 }
 0x188   : > { %23205 = vst [vmem:[#allocation41_spill] sm:$0xff] %v15596_v7  ;;  %2282 = vrot.lane.b32.xlu1 %v15474_v61, %s14706_s22  ;;  %3987 = vmatprep.subr.bf16.mxu1 %v15596_v7 }
 0x189   : > { %3988 = vmatpush1.bf16.msra.mxu1 %v15591_v58  ;;  %v3005_v36 = vpop.permute.xlu0 %3004 }
 0x18a   : > { %v15602_v45 = vpop.permute.xlu1 %3006  ;;  %v15605_v54 = vsel %vm3060_vm7, %v3003_v22, %v3005_v36 }
 0x18b   : > { %23206 = vst [vmem:[#allocation42_spill] sm:$0xff] %v15605_v54  ;;  %2646 = vrot.lane.b32.xlu0 %v15442_v39, %s14707_s10  ;;  %v15611_v5 = vsel %vm3060_vm7, %v3005_v36, %v15602_v45 }
 0x18c   : > { %23207 = vst [vmem:[#allocation43_spill] sm:$0xff] %v15611_v5  ;;  %2648 = vrot.lane.b32.xlu1 %v15453_v44, %s14707_s10  ;;  %4030 = vmatprep.subr.bf16.mxu0 %v15611_v5 }
 0x18d   : > { %4031 = vmatpush1.bf16.msra.mxu0 %v15605_v54  ;;  %v3371_v58 = vpop.permute.xlu0 %3370 }
 0x18e   : > { %v3373_v7 = vpop.permute.xlu1 %3372  ;;  %v15619_v22 = vsel %vm3430_vm8, %v15384_v18, %v3371_v58 }
 0x18f   : > { %23208 = vst [vmem:[#allocation44_spill] sm:$0xff] %v15619_v22  ;;  %2650 = vrot.lane.b32.xlu0 %v15468_v13, %s14707_s10  ;;  %v15625_v36 = vsel %vm3430_vm8, %v3371_v58, %v3373_v7 }
 0x190   : > { %23209 = vst [vmem:[#allocation45_spill] sm:$0xff] %v15625_v36  ;;  %2652 = vrot.lane.b32.xlu1 %v15474_v61, %s14707_s10  ;;  %3989 = vmatprep.subr.bf16.mxu1 %v15625_v36  ;;  %v14416_v36 = vld [vmem:[%s14932_s18 + $0x58] ss:$148 sps:$4 sm:$0xff]  }
 0x191   : > { %3990 = vmatpush1.bf16.msra.mxu1 %v15619_v22  ;;  %v3375_v54 = vpop.permute.xlu0 %3374 }
 0x192   : > { %v15631_v5 = vpop.permute.xlu1 %3376  ;;  %4059 = vmatprep.subr.bf16.mxu1 %v14391_v53  ;;  %v15635_v18 = vsel %vm3430_vm8, %v3373_v7, %v3375_v54 }
 0x193   : > { %23210 = vst [vmem:[#allocation46_spill] sm:$0xff] %v15635_v18  ;;  %3016 = vrot.lane.b32.xlu0 %v15442_v39, %s14708_s19  ;;  %v15641_v58 = vsel %vm3430_vm8, %v3375_v54, %v15631_v5 }
 0x194   : > { %23211 = vst [vmem:[#allocation47_spill] sm:$0xff] %v15641_v58  ;;  %3018 = vrot.lane.b32.xlu1 %v15453_v44, %s14708_s19  ;;  %4032 = vmatprep.subr.bf16.mxu0 %v15641_v58  ;;  %v15720_v58 = vld [vmem:[%s14932_s18 + $0x58] ss:$148 sps:$4 sm:$0xff]  }
 0x195   : > { %4006 = vmatmul.mubr.bf16.vlgmr.msra.gmra.mrb[4].mxu1 %v15154_v52  ;;  %4033 = vmatpush1.bf16.msra.mxu0 %v15635_v18  ;;  %v789_v53 = vpop.permute.xlu0 %788 }
 0x196   : > { %4060 = vmatpush1.bf16.msra.mxu1 %v14389_v57  ;;  %v791_v7 = vpop.permute.xlu1 %790  ;;  %4102 = vmatprep.subr.bf16.mxu0 %v15222_v11  ;;  %v15656_v22 = vsel %vm840_vm1, %v15420_v10, %v789_v53 }
 0x197   : > { %3020 = vrot.lane.b32.xlu0 %v15468_v13, %s14708_s19  ;;  %v15652_v54 = vsel %vm840_vm1, %v789_v53, %v791_v7  ;;  %23213 = vst [vmem:[#allocation49_spill] sm:$0xff] %v15656_v22  ;;  %13759 = vmatprep.mubr.msk.bf16.mxu1 %vm3840_vm0, %v14967_v4 }
 0x198   : > { %23212 = vst [vmem:[#allocation48_spill] sm:$0xff] %v15652_v54  ;;  %3022 = vrot.lane.b32.xlu1 %v15474_v61, %s14708_s19  ;;  %4061 = vmatprep.subr.bf16.mxu1 %v15652_v54  ;;  %v14398_v54 = vld [vmem:[%s14932_s18 + $0x38] ss:$148 sps:$4 sm:$0xff]  }
 0x199   : > { %4049 = vmatmul.mubr.bf16.vlgmr.msra.gmra.mrb[8].mxu0 %v15154_v52  ;;  %v793_v11 = vpop.permute.xlu0 %792 }
 0x19a   : > { %4062 = vmatpush1.bf16.msra.mxu1 %v15656_v22  ;;  %4103 = vmatpush1.bf16.msra.mxu0 %v15207_v2  ;;  %v15666_v57 = vpop.permute.xlu1 %794  ;;  %v15675_v53 = vsel %vm840_vm1, %v791_v7, %v793_v11  ;;  %v15693_v7 = vld [vmem:[%s14932_s18 + $0x4c] ss:$148 sps:$4 sm:$0xff]  }
 0x19b   : > { %3386 = vrot.lane.b32.xlu0 %v15442_v39, %s14709_s11  ;;  %v15672_v10 = vsel %vm840_vm1, %v793_v11, %v15666_v57  ;;  %23215 = vst [vmem:[#allocation51_spill] sm:$0xff] %v15675_v53  ;;  %13760 = vmatprep.mubr.msk.bf16.mxu0 %vm3840_vm0, %v14967_v4  ;;  %v15699_v11 = vld [vmem:[%s14932_s18 + $0x50] ss:$148 sps:$4 sm:$0xff]  }
 0x19c   : > { %23214 = vst [vmem:[#allocation50_spill] sm:$0xff] %v15672_v10  ;;  %3388 = vrot.lane.b32.xlu1 %v15453_v44, %s14709_s11  ;;  %4104 = vmatprep.subr.bf16.mxu0 %v15672_v10 }
 0x19d   : > { %v1159_v2 = vpop.permute.xlu0 %1158 }
 0x19e   : > { %4105 = vmatpush1.bf16.msra.mxu0 %v15675_v53  ;;  %v1161_v39 = vpop.permute.xlu1 %1160  ;;  %v15685_v18 = vsel %vm1210_vm2, %v15456_v47, %v1159_v2 }
 0x19f   : > { %23216 = vst [vmem:[#allocation52_spill] sm:$0xff] %v15685_v18  ;;  %3390 = vrot.lane.b32.xlu0 %v15468_v13, %s14709_s11  ;;  %v15690_v4 = vsel %vm1210_vm2, %v1159_v2, %v1161_v39 }
 0x1a0   : > { %23217 = vst [vmem:[#allocation53_spill] sm:$0xff] %v15690_v4  ;;  %3392 = vrot.lane.b32.xlu1 %v15474_v61, %s14709_s11  ;;  %4063 = vmatprep.subr.bf16.mxu1 %v15690_v4  ;;  %v15714_v61 = vld [vmem:[%s14932_s18 + $0x54] ss:$148 sps:$4 sm:$0xff]  }
 0x1a1   : > { %4064 = vmatpush1.bf16.msra.mxu1 %v15685_v18  ;;  %v1163_v47 = vpop.permute.xlu0 %1162 }
 0x1a2   : > { %v15702_v53 = vpop.permute.xlu1 %1164  ;;  %v15705_v10 = vsel %vm1210_vm2, %v1161_v39, %v1163_v47 }
 0x1a3   : > { %23218 = vst [vmem:[#allocation54_spill] sm:$0xff] %v15705_v10  ;;  %804 = vrot.lane.b32.xlu0 %v15693_v7, %s14702_s9  ;;  %v15711_v2 = vsel %vm1210_vm2, %v1163_v47, %v15702_v53 }
 0x1a4   : > { %23219 = vst [vmem:[#allocation55_spill] sm:$0xff] %v15711_v2  ;;  %806 = vrot.lane.b32.xlu1 %v15699_v11, %s14702_s9  ;;  %4106 = vmatprep.subr.bf16.mxu0 %v15711_v2 }
 0x1a5   : > { %4107 = vmatpush1.bf16.msra.mxu0 %v15705_v10  ;;  %v1529_v39 = vpop.permute.xlu0 %1528 }
 0x1a6   : > { %v1531_v18 = vpop.permute.xlu1 %1530  ;;  %v15725_v4 = vsel %vm1580_vm3, %v15490_v9, %v1529_v39 }
 0x1a7   : > { %23220 = vst [vmem:[#allocation56_spill] sm:$0xff] %v15725_v4  ;;  %808 = vrot.lane.b32.xlu0 %v15714_v61, %s14702_s9  ;;  %v15730_v47 = vsel %vm1580_vm3, %v1529_v39, %v1531_v18 }
 0x1a8   : > { %23221 = vst [vmem:[#allocation57_spill] sm:$0xff] %v15730_v47  ;;  %810 = vrot.lane.b32.xlu1 %v15720_v58, %s14702_s9  ;;  %4065 = vmatprep.subr.bf16.mxu1 %v15730_v47 }
 0x1a9   : > { %4066 = vmatpush1.bf16.msra.mxu1 %v15725_v4  ;;  %v1533_v10 = vpop.permute.xlu0 %1532 }
 0x1aa   : > { %v15736_v2 = vpop.permute.xlu1 %1534  ;;  %v15739_v22 = vsel %vm1580_vm3, %v1531_v18, %v1533_v10 }
 0x1ab   : > { %23222 = vst [vmem:[#allocation58_spill] sm:$0xff] %v15739_v22  ;;  %1174 = vrot.lane.b32.xlu0 %v15693_v7, %s14703_s30  ;;  %v15745_v9 = vsel %vm1580_vm3, %v1533_v10, %v15736_v2 }
 0x1ac   : > { %23223 = vst [vmem:[#allocation59_spill] sm:$0xff] %v15745_v9  ;;  %1176 = vrot.lane.b32.xlu1 %v15699_v11, %s14703_s30  ;;  %4108 = vmatprep.subr.bf16.mxu0 %v15745_v9 }
 0x1ad   : > { %4109 = vmatpush1.bf16.msra.mxu0 %v15739_v22  ;;  %v1899_v39 = vpop.permute.xlu0 %1898 }
 0x1ae   : > { %v1901_v4 = vpop.permute.xlu1 %1900  ;;  %v15753_v18 = vsel %vm1950_vm4, %v15518_v0, %v1899_v39 }
 0x1af   : > { %23224 = vst [vmem:[#allocation60_spill] sm:$0xff] %v15753_v18  ;;  %1178 = vrot.lane.b32.xlu0 %v15714_v61, %s14703_s30  ;;  %v15758_v47 = vsel %vm1950_vm4, %v1899_v39, %v1901_v4 }
 0x1b0   : > { %23225 = vst [vmem:[#allocation61_spill] sm:$0xff] %v15758_v47  ;;  %1180 = vrot.lane.b32.xlu1 %v15720_v58, %s14703_s30  ;;  %4067 = vmatprep.subr.bf16.mxu1 %v15758_v47 }
 0x1b1   : > { %4068 = vmatpush1.bf16.msra.mxu1 %v15753_v18  ;;  %v1903_v10 = vpop.permute.xlu0 %1902 }
 0x1b2   : > { %v15764_v22 = vpop.permute.xlu1 %1904  ;;  %v15767_v9 = vsel %vm1950_vm4, %v1901_v4, %v1903_v10 }
 0x1b3   : > { %23226 = vst [vmem:[#allocation62_spill] sm:$0xff] %v15767_v9  ;;  %1544 = vrot.lane.b32.xlu0 %v15693_v7, %s14704_s23  ;;  %v15773_v0 = vsel %vm1950_vm4, %v1903_v10, %v15764_v22 }
 0x1b4   : > { %23227 = vst [vmem:[#allocation63_spill] sm:$0xff] %v15773_v0  ;;  %1546 = vrot.lane.b32.xlu1 %v15699_v11, %s14704_s23  ;;  %4110 = vmatprep.subr.bf16.mxu0 %v15773_v0 }
 0x1b5   : > { %4111 = vmatpush1.bf16.msra.mxu0 %v15767_v9  ;;  %v2269_v39 = vpop.permute.xlu0 %2268 }
 0x1b6   : > { %v2271_v18 = vpop.permute.xlu1 %2270  ;;  %v15781_v4 = vsel %vm2320_vm5, %v15546_v19, %v2269_v39 }
 0x1b7   : > { %23228 = vst [vmem:[#allocation64_spill] sm:$0xff] %v15781_v4  ;;  %1548 = vrot.lane.b32.xlu0 %v15714_v61, %s14704_s23  ;;  %v15786_v47 = vsel %vm2320_vm5, %v2269_v39, %v2271_v18 }
 0x1b8   : > { %23229 = vst [vmem:[#allocation65_spill] sm:$0xff] %v15786_v47  ;;  %1550 = vrot.lane.b32.xlu1 %v15720_v58, %s14704_s23  ;;  %4069 = vmatprep.subr.bf16.mxu1 %v15786_v47 }
 0x1b9   : > { %4070 = vmatpush1.bf16.msra.mxu1 %v15781_v4  ;;  %v2273_v10 = vpop.permute.xlu0 %2272 }
 0x1ba   : > { %v15792_v9 = vpop.permute.xlu1 %2274  ;;  %v15795_v0 = vsel %vm2320_vm5, %v2271_v18, %v2273_v10 }
 0x1bb   : > { %23230 = vst [vmem:[#allocation66_spill] sm:$0xff] %v15795_v0  ;;  %1914 = vrot.lane.b32.xlu0 %v15693_v7, %s14705_s21  ;;  %v15801_v19 = vsel %vm2320_vm5, %v2273_v10, %v15792_v9 }
 0x1bc   : > { %23231 = vst [vmem:[#allocation67_spill] sm:$0xff] %v15801_v19  ;;  %1916 = vrot.lane.b32.xlu1 %v15699_v11, %s14705_s21  ;;  %4112 = vmatprep.subr.bf16.mxu0 %v15801_v19 }
 0x1bd   : > { %4113 = vmatpush1.bf16.msra.mxu0 %v15795_v0  ;;  %v2639_v39 = vpop.permute.xlu0 %2638 }
 0x1be   : > { %v2641_v4 = vpop.permute.xlu1 %2640  ;;  %v15809_v18 = vsel %vm2690_vm6, %v15574_v27, %v2639_v39 }
 0x1bf   : > { %23232 = vst [vmem:[#allocation68_spill] sm:$0xff] %v15809_v18  ;;  %1918 = vrot.lane.b32.xlu0 %v15714_v61, %s14705_s21  ;;  %v15814_v47 = vsel %vm2690_vm6, %v2639_v39, %v2641_v4 }
 0x1c0   : > { %23233 = vst [vmem:[#allocation69_spill] sm:$0xff] %v15814_v47  ;;  %1920 = vrot.lane.b32.xlu1 %v15720_v58, %s14705_s21  ;;  %4071 = vmatprep.subr.bf16.mxu1 %v15814_v47  ;;  %v14400_v47 = vld [vmem:[%s14932_s18 + $0x3c] ss:$148 sps:$4 sm:$0xff]  }
 0x1c1   : > { %4072 = vmatpush1.bf16.msra.mxu1 %v15809_v18  ;;  %v2643_v10 = vpop.permute.xlu0 %2642 }
 0x1c2   : > { %v15820_v0 = vpop.permute.xlu1 %2644  ;;  %v15823_v19 = vsel %vm2690_vm6, %v2641_v4, %v2643_v10 }
 0x1c3   : > { %23234 = vst [vmem:[#allocation70_spill] sm:$0xff] %v15823_v19  ;;  %2284 = vrot.lane.b32.xlu0 %v15693_v7, %s14706_s22  ;;  %v15829_v27 = vsel %vm2690_vm6, %v2643_v10, %v15820_v0 }
 0x1c4   : > { %23235 = vst [vmem:[#allocation71_spill] sm:$0xff] %v15829_v27  ;;  %2286 = vrot.lane.b32.xlu1 %v15699_v11, %s14706_s22  ;;  %4114 = vmatprep.subr.bf16.mxu0 %v15829_v27 }
 0x1c5   : > { %4115 = vmatpush1.bf16.msra.mxu0 %v15823_v19  ;;  %v3009_v39 = vpop.permute.xlu0 %3008 }
 0x1c6   : > { %v3011_v18 = vpop.permute.xlu1 %3010  ;;  %v15837_v4 = vsel %vm3060_vm7, %v15602_v45, %v3009_v39 }
 0x1c7   : > { %23236 = vst [vmem:[#allocation72_spill] sm:$0xff] %v15837_v4  ;;  %2288 = vrot.lane.b32.xlu0 %v15714_v61, %s14706_s22  ;;  %v15842_v10 = vsel %vm3060_vm7, %v3009_v39, %v3011_v18 }
 0x1c8   : > { %23237 = vst [vmem:[#allocation73_spill] sm:$0xff] %v15842_v10  ;;  %2290 = vrot.lane.b32.xlu1 %v15720_v58, %s14706_s22  ;;  %4073 = vmatprep.subr.bf16.mxu1 %v15842_v10 }
 0x1c9   : > { %4074 = vmatpush1.bf16.msra.mxu1 %v15837_v4  ;;  %v3013_v19 = vpop.permute.xlu0 %3012 }
 0x1ca   : > { %v15848_v27 = vpop.permute.xlu1 %3014  ;;  %v15851_v45 = vsel %vm3060_vm7, %v3011_v18, %v3013_v19 }
 0x1cb   : > { %23238 = vst [vmem:[#allocation74_spill] sm:$0xff] %v15851_v45  ;;  %2654 = vrot.lane.b32.xlu0 %v15693_v7, %s14707_s10  ;;  %v15857_v39 = vsel %vm3060_vm7, %v3013_v19, %v15848_v27 }
 0x1cc   : > { %23239 = vst [vmem:[#allocation75_spill] sm:$0xff] %v15857_v39  ;;  %2656 = vrot.lane.b32.xlu1 %v15699_v11, %s14707_s10  ;;  %4116 = vmatprep.subr.bf16.mxu0 %v15857_v39 }
 0x1cd   : > { %4117 = vmatpush1.bf16.msra.mxu0 %v15851_v45  ;;  %v3379_v4 = vpop.permute.xlu0 %3378 }
 0x1ce   : > { %v3381_v10 = vpop.permute.xlu1 %3380  ;;  %v15865_v18 = vsel %vm3430_vm8, %v15631_v5, %v3379_v4 }
 0x1cf   : > { %23240 = vst [vmem:[#allocation76_spill] sm:$0xff] %v15865_v18  ;;  %2658 = vrot.lane.b32.xlu0 %v15714_v61, %s14707_s10  ;;  %v15871_v19 = vsel %vm3430_vm8, %v3379_v4, %v3381_v10 }
 0x1d0   : > { %23241 = vst [vmem:[#allocation77_spill] sm:$0xff] %v15871_v19  ;;  %2660 = vrot.lane.b32.xlu1 %v15720_v58, %s14707_s10  ;;  %4075 = vmatprep.subr.bf16.mxu1 %v15871_v19  ;;  %v14407_v19 = vld [vmem:[%s14932_s18 + $0x48] ss:$148 sps:$4 sm:$0xff]  }
 0x1d1   : > { %4076 = vmatpush1.bf16.msra.mxu1 %v15865_v18  ;;  %v3383_v45 = vpop.permute.xlu0 %3382 }
 0x1d2   : > { %v15877_v39 = vpop.permute.xlu1 %3384  ;;  %4145 = vmatprep.subr.bf16.mxu1 %v14400_v47  ;;  %v15881_v5 = vsel %vm3430_vm8, %v3381_v10, %v3383_v45 }
 0x1d3   : > { %23242 = vst [vmem:[#allocation78_spill] sm:$0xff] %v15881_v5  ;;  %3024 = vrot.lane.b32.xlu0 %v15693_v7, %s14708_s19  ;;  %v15887_v4 = vsel %vm3430_vm8, %v3383_v45, %v15877_v39 }
 0x1d4   : > { %23243 = vst [vmem:[#allocation79_spill] sm:$0xff] %v15887_v4  ;;  %3026 = vrot.lane.b32.xlu1 %v15699_v11, %s14708_s19  ;;  %4118 = vmatprep.subr.bf16.mxu0 %v15887_v4  ;;  %v15904_v4 = vld [vmem:[#allocation7 + $0x4] ss:$8 sps:$4 sm:$0xff]  }
 0x1d5   : > { %4092 = vmatmul.mubr.bf16.vlgmr.msra.gmra.mrb[8].mxu1 %v15154_v52  ;;  %4119 = vmatpush1.bf16.msra.mxu0 %v15881_v5  ;;  %v797_v47 = vpop.permute.xlu0 %796 }
 0x1d6   : > { %4146 = vmatpush1.bf16.msra.mxu1 %v14398_v54  ;;  %v799_v10 = vpop.permute.xlu1 %798  ;;  %4188 = vmatprep.subr.bf16.mxu0 %v15468_v13  ;;  %v15902_v18 = vsel %vm840_vm1, %v15666_v57, %v797_v47 }
 0x1d7   : > { %3028 = vrot.lane.b32.xlu0 %v15714_v61, %s14708_s19  ;;  %v15898_v45 = vsel %vm840_vm1, %v797_v47, %v799_v10  ;;  %23245 = vst [vmem:[#allocation81_spill] sm:$0xff] %v15902_v18  ;;  %13761 = vmatprep.mubr.msk.bf16.mxu1 %vm3840_vm0, %v15904_v4 }
 0x1d8   : > { %23244 = vst [vmem:[#allocation80_spill] sm:$0xff] %v15898_v45  ;;  %3030 = vrot.lane.b32.xlu1 %v15720_v58, %s14708_s19  ;;  %4147 = vmatprep.subr.bf16.mxu1 %v15898_v45 }
 0x1d9   : > { %4135 = vmatmul.mubr.bf16.vlgmr.msra.gmra.mrb[12].mxu0 %v15154_v52  ;;  %v801_v13 = vpop.permute.xlu0 %800 }
 0x1da   : > { %4148 = vmatpush1.bf16.msra.mxu1 %v15902_v18  ;;  %4189 = vmatpush1.bf16.msra.mxu0 %v15453_v44  ;;  %v15914_v54 = vpop.permute.xlu1 %802  ;;  %v15923_v47 = vsel %vm840_vm1, %v799_v10, %v801_v13 }
 0x1db   : > { %3394 = vrot.lane.b32.xlu0 %v15693_v7, %s14709_s11  ;;  %v15920_v57 = vsel %vm840_vm1, %v801_v13, %v15914_v54  ;;  %23247 = vst [vmem:[#allocation83_spill] sm:$0xff] %v15923_v47  ;;  %13762 = vmatprep.mubr.msk.bf16.mxu0 %vm3840_vm0, %v15904_v4  ;;  %v15941_v13 = vld [vmem:[%s14932_s18 + $0x5c] ss:$148 sps:$4 sm:$0xff]  }
 0x1dc   : > { %23246 = vst [vmem:[#allocation82_spill] sm:$0xff] %v15920_v57  ;;  %3396 = vrot.lane.b32.xlu1 %v15699_v11, %s14709_s11  ;;  %4190 = vmatprep.subr.bf16.mxu0 %v15920_v57 }
 0x1dd   : > { %v1167_v52 = vpop.permute.xlu0 %1166 }
 0x1de   : > { %4191 = vmatpush1.bf16.msra.mxu0 %v15923_v47  ;;  %v1169_v44 = vpop.permute.xlu1 %1168  ;;  %v15933_v7 = vsel %vm1210_vm2, %v15702_v53, %v1167_v52  ;;  %v15947_v47 = vld [vmem:[%s14932_s18 + $0x60] ss:$148 sps:$4 sm:$0xff]  }
 0x1df   : > { %23248 = vst [vmem:[#allocation84_spill] sm:$0xff] %v15933_v7  ;;  %3398 = vrot.lane.b32.xlu0 %v15714_v61, %s14709_s11  ;;  %v15938_v10 = vsel %vm1210_vm2, %v1167_v52, %v1169_v44 }
 0x1e0   : > { %23249 = vst [vmem:[#allocation85_spill] sm:$0xff] %v15938_v10  ;;  %3400 = vrot.lane.b32.xlu1 %v15720_v58, %s14709_s11  ;;  %4149 = vmatprep.subr.bf16.mxu1 %v15938_v10  ;;  %v15962_v58 = vld [vmem:[%s14932_s18 + $0x64] ss:$148 sps:$4 sm:$0xff]  }
 0x1e1   : > { %4150 = vmatpush1.bf16.msra.mxu1 %v15933_v7  ;;  %v1171_v53 = vpop.permute.xlu0 %1170  ;;  %v15968_v7 = vld [vmem:[%s14932_s18 + $0x68] ss:$148 sps:$4 sm:$0xff]  }
 0x1e2   : > { %v15950_v57 = vpop.permute.xlu1 %1172  ;;  %v15953_v5 = vsel %vm1210_vm2, %v1169_v44, %v1171_v53 }
 0x1e3   : > { %23250 = vst [vmem:[#allocation86_spill] sm:$0xff] %v15953_v5  ;;  %812 = vrot.lane.b32.xlu0 %v15941_v13, %s14702_s9  ;;  %v15959_v52 = vsel %vm1210_vm2, %v1171_v53, %v15950_v57 }
 0x1e4   : > { %23251 = vst [vmem:[#allocation87_spill] sm:$0xff] %v15959_v52  ;;  %814 = vrot.lane.b32.xlu1 %v15947_v47, %s14702_s9  ;;  %4192 = vmatprep.subr.bf16.mxu0 %v15959_v52 }
 0x1e5   : > { %4193 = vmatpush1.bf16.msra.mxu0 %v15953_v5  ;;  %v1537_v44 = vpop.permute.xlu0 %1536 }
 0x1e6   : > { %v1539_v10 = vpop.permute.xlu1 %1538  ;;  %v15973_v18 = vsel %vm1580_vm3, %v15736_v2, %v1537_v44 }
 0x1e7   : > { %23252 = vst [vmem:[#allocation88_spill] sm:$0xff] %v15973_v18  ;;  %816 = vrot.lane.b32.xlu0 %v15962_v58, %s14702_s9  ;;  %v15978_v53 = vsel %vm1580_vm3, %v1537_v44, %v1539_v10 }
 0x1e8   : > { %23253 = vst [vmem:[#allocation89_spill] sm:$0xff] %v15978_v53  ;;  %818 = vrot.lane.b32.xlu1 %v15968_v7, %s14702_s9  ;;  %4151 = vmatprep.subr.bf16.mxu1 %v15978_v53 }
 0x1e9   : > { %4152 = vmatpush1.bf16.msra.mxu1 %v15973_v18  ;;  %v1541_v5 = vpop.permute.xlu0 %1540 }
 0x1ea   : > { %v15984_v52 = vpop.permute.xlu1 %1542  ;;  %v15987_v45 = vsel %vm1580_vm3, %v1539_v10, %v1541_v5 }
 0x1eb   : > { %23254 = vst [vmem:[#allocation90_spill] sm:$0xff] %v15987_v45  ;;  %1182 = vrot.lane.b32.xlu0 %v15941_v13, %s14703_s30  ;;  %v15993_v2 = vsel %vm1580_vm3, %v1541_v5, %v15984_v52 }
 0x1ec   : > { %23255 = vst [vmem:[#allocation91_spill] sm:$0xff] %v15993_v2  ;;  %1184 = vrot.lane.b32.xlu1 %v15947_v47, %s14703_s30  ;;  %4194 = vmatprep.subr.bf16.mxu0 %v15993_v2 }
 0x1ed   : > { %4195 = vmatpush1.bf16.msra.mxu0 %v15987_v45  ;;  %v1907_v44 = vpop.permute.xlu0 %1906 }
 0x1ee   : > { %v1909_v18 = vpop.permute.xlu1 %1908  ;;  %v16001_v10 = vsel %vm1950_vm4, %v15764_v22, %v1907_v44 }
 0x1ef   : > { %23256 = vst [vmem:[#allocation92_spill] sm:$0xff] %v16001_v10  ;;  %1186 = vrot.lane.b32.xlu0 %v15962_v58, %s14703_s30  ;;  %v16006_v53 = vsel %vm1950_vm4, %v1907_v44, %v1909_v18 }
 0x1f0   : > { %23257 = vst [vmem:[#allocation93_spill] sm:$0xff] %v16006_v53  ;;  %1188 = vrot.lane.b32.xlu1 %v15968_v7, %s14703_s30  ;;  %4153 = vmatprep.subr.bf16.mxu1 %v16006_v53 }
 0x1f1   : > { %4154 = vmatpush1.bf16.msra.mxu1 %v16001_v10  ;;  %v1911_v5 = vpop.permute.xlu0 %1910 }
 0x1f2   : > { %v16012_v45 = vpop.permute.xlu1 %1912  ;;  %v16015_v2 = vsel %vm1950_vm4, %v1909_v18, %v1911_v5 }
 0x1f3   : > { %23258 = vst [vmem:[#allocation94_spill] sm:$0xff] %v16015_v2  ;;  %1552 = vrot.lane.b32.xlu0 %v15941_v13, %s14704_s23  ;;  %v16021_v22 = vsel %vm1950_vm4, %v1911_v5, %v16012_v45 }
 0x1f4   : > { %23259 = vst [vmem:[#allocation95_spill] sm:$0xff] %v16021_v22  ;;  %1554 = vrot.lane.b32.xlu1 %v15947_v47, %s14704_s23  ;;  %4196 = vmatprep.subr.bf16.mxu0 %v16021_v22 }
 0x1f5   : > { %4197 = vmatpush1.bf16.msra.mxu0 %v16015_v2  ;;  %v2277_v44 = vpop.permute.xlu0 %2276 }
 0x1f6   : > { %v2279_v10 = vpop.permute.xlu1 %2278  ;;  %v16029_v18 = vsel %vm2320_vm5, %v15792_v9, %v2277_v44 }
 0x1f7   : > { %23260 = vst [vmem:[#allocation96_spill] sm:$0xff] %v16029_v18  ;;  %1556 = vrot.lane.b32.xlu0 %v15962_v58, %s14704_s23  ;;  %v16034_v53 = vsel %vm2320_vm5, %v2277_v44, %v2279_v10 }
 0x1f8   : > { %23261 = vst [vmem:[#allocation97_spill] sm:$0xff] %v16034_v53  ;;  %1558 = vrot.lane.b32.xlu1 %v15968_v7, %s14704_s23  ;;  %4155 = vmatprep.subr.bf16.mxu1 %v16034_v53 }
 0x1f9   : > { %4156 = vmatpush1.bf16.msra.mxu1 %v16029_v18  ;;  %v2281_v5 = vpop.permute.xlu0 %2280 }
 0x1fa   : > { %v16040_v2 = vpop.permute.xlu1 %2282  ;;  %v16043_v22 = vsel %vm2320_vm5, %v2279_v10, %v2281_v5 }
 0x1fb   : > { %23262 = vst [vmem:[#allocation98_spill] sm:$0xff] %v16043_v22  ;;  %1922 = vrot.lane.b32.xlu0 %v15941_v13, %s14705_s21  ;;  %v16049_v9 = vsel %vm2320_vm5, %v2281_v5, %v16040_v2 }
 0x1fc   : > { %23263 = vst [vmem:[#allocation99_spill] sm:$0xff] %v16049_v9  ;;  %1924 = vrot.lane.b32.xlu1 %v15947_v47, %s14705_s21  ;;  %4198 = vmatprep.subr.bf16.mxu0 %v16049_v9 }
 0x1fd   : > { %4199 = vmatpush1.bf16.msra.mxu0 %v16043_v22  ;;  %v2647_v44 = vpop.permute.xlu0 %2646 }
 0x1fe   : > { %v2649_v18 = vpop.permute.xlu1 %2648  ;;  %v16057_v10 = vsel %vm2690_vm6, %v15820_v0, %v2647_v44 }
 0x1ff   : > { %23264 = vst [vmem:[#allocation100_spill] sm:$0xff] %v16057_v10  ;;  %1926 = vrot.lane.b32.xlu0 %v15962_v58, %s14705_s21  ;;  %v16062_v53 = vsel %vm2690_vm6, %v2647_v44, %v2649_v18 }
 0x200   : > { %23265 = vst [vmem:[#allocation101_spill] sm:$0xff] %v16062_v53  ;;  %1928 = vrot.lane.b32.xlu1 %v15968_v7, %s14705_s21  ;;  %4157 = vmatprep.subr.bf16.mxu1 %v16062_v53  ;;  %v14409_v53 = vld [vmem:[%s14932_s18 + $0x4c] ss:$148 sps:$4 sm:$0xff]  }
 0x201   : > { %4158 = vmatpush1.bf16.msra.mxu1 %v16057_v10  ;;  %v2651_v5 = vpop.permute.xlu0 %2650 }
 0x202   : > { %v16068_v22 = vpop.permute.xlu1 %2652  ;;  %v16071_v9 = vsel %vm2690_vm6, %v2649_v18, %v2651_v5 }
 0x203   : > { %23266 = vst [vmem:[#allocation102_spill] sm:$0xff] %v16071_v9  ;;  %2292 = vrot.lane.b32.xlu0 %v15941_v13, %s14706_s22  ;;  %v16077_v0 = vsel %vm2690_vm6, %v2651_v5, %v16068_v22 }
 0x204   : > { %23267 = vst [vmem:[#allocation103_spill] sm:$0xff] %v16077_v0  ;;  %2294 = vrot.lane.b32.xlu1 %v15947_v47, %s14706_s22  ;;  %4200 = vmatprep.subr.bf16.mxu0 %v16077_v0 }
 0x205   : > { %4201 = vmatpush1.bf16.msra.mxu0 %v16071_v9  ;;  %v3017_v44 = vpop.permute.xlu0 %3016 }
 0x206   : > { %v3019_v10 = vpop.permute.xlu1 %3018  ;;  %v16085_v18 = vsel %vm3060_vm7, %v15848_v27, %v3017_v44 }
 0x207   : > { %23268 = vst [vmem:[#allocation104_spill] sm:$0xff] %v16085_v18  ;;  %2296 = vrot.lane.b32.xlu0 %v15962_v58, %s14706_s22  ;;  %v16090_v5 = vsel %vm3060_vm7, %v3017_v44, %v3019_v10 }
 0x208   : > { %23269 = vst [vmem:[#allocation105_spill] sm:$0xff] %v16090_v5  ;;  %2298 = vrot.lane.b32.xlu1 %v15968_v7, %s14706_s22  ;;  %4159 = vmatprep.subr.bf16.mxu1 %v16090_v5 }
 0x209   : > { %4160 = vmatpush1.bf16.msra.mxu1 %v16085_v18  ;;  %v3021_v9 = vpop.permute.xlu0 %3020 }
 0x20a   : > { %v16096_v0 = vpop.permute.xlu1 %3022  ;;  %v16099_v27 = vsel %vm3060_vm7, %v3019_v10, %v3021_v9 }
 0x20b   : > { %23270 = vst [vmem:[#allocation106_spill] sm:$0xff] %v16099_v27  ;;  %2662 = vrot.lane.b32.xlu0 %v15941_v13, %s14707_s10  ;;  %v16105_v44 = vsel %vm3060_vm7, %v3021_v9, %v16096_v0 }
 0x20c   : > { %23271 = vst [vmem:[#allocation107_spill] sm:$0xff] %v16105_v44  ;;  %2664 = vrot.lane.b32.xlu1 %v15947_v47, %s14707_s10  ;;  %4202 = vmatprep.subr.bf16.mxu0 %v16105_v44 }
 0x20d   : > { %4203 = vmatpush1.bf16.msra.mxu0 %v16099_v27  ;;  %v3387_v18 = vpop.permute.xlu0 %3386 }
 0x20e   : > { %v3389_v5 = vpop.permute.xlu1 %3388  ;;  %v16113_v10 = vsel %vm3430_vm8, %v15877_v39, %v3387_v18 }
 0x20f   : > { %23272 = vst [vmem:[#allocation108_spill] sm:$0xff] %v16113_v10  ;;  %2666 = vrot.lane.b32.xlu0 %v15962_v58, %s14707_s10  ;;  %v16119_v9 = vsel %vm3430_vm8, %v3387_v18, %v3389_v5 }
 0x210   : > { %23273 = vst [vmem:[#allocation109_spill] sm:$0xff] %v16119_v9  ;;  %2668 = vrot.lane.b32.xlu1 %v15968_v7, %s14707_s10  ;;  %4161 = vmatprep.subr.bf16.mxu1 %v16119_v9 }
 0x211   : > { %4162 = vmatpush1.bf16.msra.mxu1 %v16113_v10  ;;  %v3391_v27 = vpop.permute.xlu0 %3390  ;;  %v16140_v10 = vld [vmem:[#allocation7] ss:$8 sps:$4 sm:$0xff]  }
 0x212   : > { %v16125_v44 = vpop.permute.xlu1 %3392  ;;  %4231 = vmatprep.subr.bf16.mxu1 %v14409_v53  ;;  %v16129_v39 = vsel %vm3430_vm8, %v3389_v5, %v3391_v27 }
 0x213   : > { %23274 = vst [vmem:[#allocation110_spill] sm:$0xff] %v16129_v39  ;;  %3032 = vrot.lane.b32.xlu0 %v15941_v13, %s14708_s19  ;;  %v16135_v18 = vsel %vm3430_vm8, %v3391_v27, %v16125_v44 }
 0x214   : > { %23275 = vst [vmem:[#allocation111_spill] sm:$0xff] %v16135_v18  ;;  %3034 = vrot.lane.b32.xlu1 %v15947_v47, %s14708_s19  ;;  %4204 = vmatprep.subr.bf16.mxu0 %v16135_v18 }
 0x215   : > { %4178 = vmatmul.mubr.bf16.vlgmr.msra.gmra.mrb[12].mxu1 %v16140_v10  ;;  %4205 = vmatpush1.bf16.msra.mxu0 %v16129_v39  ;;  %v805_v53 = vpop.permute.xlu0 %804 }
 0x216   : > { %4232 = vmatpush1.bf16.msra.mxu1 %v14407_v19  ;;  %v807_v5 = vpop.permute.xlu1 %806  ;;  %4274 = vmatprep.subr.bf16.mxu0 %v15714_v61  ;;  %v16152_v18 = vsel %vm840_vm1, %v15914_v54, %v805_v53 }
 0x217   : > { %3036 = vrot.lane.b32.xlu0 %v15962_v58, %s14708_s19  ;;  %v16148_v27 = vsel %vm840_vm1, %v805_v53, %v807_v5  ;;  %23277 = vst [vmem:[#allocation113_spill] sm:$0xff] %v16152_v18  ;;  %13763 = vmatprep.mubr.msk.bf16.mxu1 %vm3840_vm0, %v15904_v4 }
 0x218   : > { %23276 = vst [vmem:[#allocation112_spill] sm:$0xff] %v16148_v27  ;;  %3038 = vrot.lane.b32.xlu1 %v15968_v7, %s14708_s19  ;;  %4233 = vmatprep.subr.bf16.mxu1 %v16148_v27 }
 0x219   : > { %4221 = vmatmul.mubr.bf16.vlgmr.msra.gmra.mrb[16].mxu0 %v16140_v10  ;;  %v809_v61 = vpop.permute.xlu0 %808 }
 0x21a   : > { %4234 = vmatpush1.bf16.msra.mxu1 %v16152_v18  ;;  %4275 = vmatpush1.bf16.msra.mxu0 %v15699_v11  ;;  %v16162_v19 = vpop.permute.xlu1 %810  ;;  %v16171_v53 = vsel %vm840_vm1, %v807_v5, %v809_v61 }
 0x21b   : > { %3402 = vrot.lane.b32.xlu0 %v15941_v13, %s14709_s11  ;;  %v16168_v54 = vsel %vm840_vm1, %v809_v61, %v16162_v19  ;;  %23279 = vst [vmem:[#allocation115_spill] sm:$0xff] %v16171_v53  ;;  %13764 = vmatprep.mubr.msk.bf16.mxu0 %vm3840_vm0, %v15904_v4  ;;  %v16189_v61 = vld [vmem:[%s14932_s18 + $0x6c] ss:$148 sps:$4 sm:$0xff]  }
 0x21c   : > { %23278 = vst [vmem:[#allocation114_spill] sm:$0xff] %v16168_v54  ;;  %3404 = vrot.lane.b32.xlu1 %v15947_v47, %s14709_s11  ;;  %4276 = vmatprep.subr.bf16.mxu0 %v16168_v54 }
 0x21d   : > { %v1175_v11 = vpop.permute.xlu0 %1174 }
 0x21e   : > { %4277 = vmatpush1.bf16.msra.mxu0 %v16171_v53  ;;  %v1177_v13 = vpop.permute.xlu1 %1176  ;;  %v16181_v39 = vsel %vm1210_vm2, %v15950_v57, %v1175_v11  ;;  %v16195_v53 = vld [vmem:[%s14932_s18 + $0x70] ss:$148 sps:$4 sm:$0xff]  }
 0x21f   : > { %23280 = vst [vmem:[#allocation116_spill] sm:$0xff] %v16181_v39  ;;  %3406 = vrot.lane.b32.xlu0 %v15962_v58, %s14709_s11  ;;  %v16186_v5 = vsel %vm1210_vm2, %v1175_v11, %v1177_v13 }
 0x220   : > { %23281 = vst [vmem:[#allocation117_spill] sm:$0xff] %v16186_v5  ;;  %3408 = vrot.lane.b32.xlu1 %v15968_v7, %s14709_s11  ;;  %4235 = vmatprep.subr.bf16.mxu1 %v16186_v5  ;;  %v16210_v7 = vld [vmem:[%s14932_s18 + $0x74] ss:$148 sps:$4 sm:$0xff]  }
 0x221   : > { %4236 = vmatpush1.bf16.msra.mxu1 %v16181_v39  ;;  %v1179_v57 = vpop.permute.xlu0 %1178  ;;  %v16216_v39 = vld [vmem:[%s14932_s18 + $0x78] ss:$148 sps:$4 sm:$0xff]  }
 0x222   : > { %v16198_v54 = vpop.permute.xlu1 %1180  ;;  %v16201_v18 = vsel %vm1210_vm2, %v1177_v13, %v1179_v57 }
 0x223   : > { %23282 = vst [vmem:[#allocation118_spill] sm:$0xff] %v16201_v18  ;;  %820 = vrot.lane.b32.xlu0 %v16189_v61, %s14702_s9  ;;  %v16207_v11 = vsel %vm1210_vm2, %v1179_v57, %v16198_v54 }
 0x224   : > { %23283 = vst [vmem:[#allocation119_spill] sm:$0xff] %v16207_v11  ;;  %822 = vrot.lane.b32.xlu1 %v16195_v53, %s14702_s9  ;;  %4278 = vmatprep.subr.bf16.mxu0 %v16207_v11 }
 0x225   : > { %4279 = vmatpush1.bf16.msra.mxu0 %v16201_v18  ;;  %v1545_v13 = vpop.permute.xlu0 %1544 }
 0x226   : > { %v1547_v5 = vpop.permute.xlu1 %1546  ;;  %v16221_v27 = vsel %vm1580_vm3, %v15984_v52, %v1545_v13 }
 0x227   : > { %23284 = vst [vmem:[#allocation120_spill] sm:$0xff] %v16221_v27  ;;  %824 = vrot.lane.b32.xlu0 %v16210_v7, %s14702_s9  ;;  %v16226_v57 = vsel %vm1580_vm3, %v1545_v13, %v1547_v5 }
 0x228   : > { %23285 = vst [vmem:[#allocation121_spill] sm:$0xff] %v16226_v57  ;;  %826 = vrot.lane.b32.xlu1 %v16216_v39, %s14702_s9  ;;  %4237 = vmatprep.subr.bf16.mxu1 %v16226_v57 }
 0x229   : > { %4238 = vmatpush1.bf16.msra.mxu1 %v16221_v27  ;;  %v1549_v18 = vpop.permute.xlu0 %1548 }
 0x22a   : > { %v16232_v11 = vpop.permute.xlu1 %1550  ;;  %v16235_v9 = vsel %vm1580_vm3, %v1547_v5, %v1549_v18 }
 0x22b   : > { %23286 = vst [vmem:[#allocation122_spill] sm:$0xff] %v16235_v9  ;;  %1190 = vrot.lane.b32.xlu0 %v16189_v61, %s14703_s30  ;;  %v16241_v52 = vsel %vm1580_vm3, %v1549_v18, %v16232_v11 }
 0x22c   : > { %23287 = vst [vmem:[#allocation123_spill] sm:$0xff] %v16241_v52  ;;  %1192 = vrot.lane.b32.xlu1 %v16195_v53, %s14703_s30  ;;  %4280 = vmatprep.subr.bf16.mxu0 %v16241_v52 }
 0x22d   : > { %4281 = vmatpush1.bf16.msra.mxu0 %v16235_v9  ;;  %v1915_v13 = vpop.permute.xlu0 %1914 }
 0x22e   : > { %v1917_v27 = vpop.permute.xlu1 %1916  ;;  %v16249_v5 = vsel %vm1950_vm4, %v16012_v45, %v1915_v13 }
 0x22f   : > { %23288 = vst [vmem:[#allocation124_spill] sm:$0xff] %v16249_v5  ;;  %1194 = vrot.lane.b32.xlu0 %v16210_v7, %s14703_s30  ;;  %v16254_v57 = vsel %vm1950_vm4, %v1915_v13, %v1917_v27 }
 0x230   : > { %23289 = vst [vmem:[#allocation125_spill] sm:$0xff] %v16254_v57  ;;  %1196 = vrot.lane.b32.xlu1 %v16216_v39, %s14703_s30  ;;  %4239 = vmatprep.subr.bf16.mxu1 %v16254_v57 }
 0x231   : > { %4240 = vmatpush1.bf16.msra.mxu1 %v16249_v5  ;;  %v1919_v18 = vpop.permute.xlu0 %1918 }
 0x232   : > { %v16260_v9 = vpop.permute.xlu1 %1920  ;;  %v16263_v52 = vsel %vm1950_vm4, %v1917_v27, %v1919_v18 }
 0x233   : > { %23290 = vst [vmem:[#allocation126_spill] sm:$0xff] %v16263_v52  ;;  %1560 = vrot.lane.b32.xlu0 %v16189_v61, %s14704_s23  ;;  %v16269_v45 = vsel %vm1950_vm4, %v1919_v18, %v16260_v9 }
 0x234   : > { %23291 = vst [vmem:[#allocation127_spill] sm:$0xff] %v16269_v45  ;;  %1562 = vrot.lane.b32.xlu1 %v16195_v53, %s14704_s23  ;;  %4282 = vmatprep.subr.bf16.mxu0 %v16269_v45 }
 0x235   : > { %4283 = vmatpush1.bf16.msra.mxu0 %v16263_v52  ;;  %v2285_v13 = vpop.permute.xlu0 %2284 }
 0x236   : > { %v2287_v5 = vpop.permute.xlu1 %2286  ;;  %v16277_v27 = vsel %vm2320_vm5, %v16040_v2, %v2285_v13 }
 0x237   : > { %23292 = vst [vmem:[#allocation128_spill] sm:$0xff] %v16277_v27  ;;  %1564 = vrot.lane.b32.xlu0 %v16210_v7, %s14704_s23  ;;  %v16282_v57 = vsel %vm2320_vm5, %v2285_v13, %v2287_v5 }
 0x238   : > { %23293 = vst [vmem:[#allocation129_spill] sm:$0xff] %v16282_v57  ;;  %1566 = vrot.lane.b32.xlu1 %v16216_v39, %s14704_s23  ;;  %4241 = vmatprep.subr.bf16.mxu1 %v16282_v57 }
 0x239   : > { %4242 = vmatpush1.bf16.msra.mxu1 %v16277_v27  ;;  %v2289_v18 = vpop.permute.xlu0 %2288 }
 0x23a   : > { %v16288_v52 = vpop.permute.xlu1 %2290  ;;  %v16291_v45 = vsel %vm2320_vm5, %v2287_v5, %v2289_v18 }
 0x23b   : > { %23294 = vst [vmem:[#allocation130_spill] sm:$0xff] %v16291_v45  ;;  %1930 = vrot.lane.b32.xlu0 %v16189_v61, %s14705_s21  ;;  %v16297_v2 = vsel %vm2320_vm5, %v2289_v18, %v16288_v52 }
 0x23c   : > { %23295 = vst [vmem:[#allocation131_spill] sm:$0xff] %v16297_v2  ;;  %1932 = vrot.lane.b32.xlu1 %v16195_v53, %s14705_s21  ;;  %4284 = vmatprep.subr.bf16.mxu0 %v16297_v2 }
 0x23d   : > { %4285 = vmatpush1.bf16.msra.mxu0 %v16291_v45  ;;  %v2655_v13 = vpop.permute.xlu0 %2654 }
 0x23e   : > { %v2657_v27 = vpop.permute.xlu1 %2656  ;;  %v16305_v5 = vsel %vm2690_vm6, %v16068_v22, %v2655_v13 }
 0x23f   : > { %23296 = vst [vmem:[#allocation132_spill] sm:$0xff] %v16305_v5  ;;  %1934 = vrot.lane.b32.xlu0 %v16210_v7, %s14705_s21  ;;  %v16310_v57 = vsel %vm2690_vm6, %v2655_v13, %v2657_v27 }
 0x240   : > { %23297 = vst [vmem:[#allocation133_spill] sm:$0xff] %v16310_v57  ;;  %1936 = vrot.lane.b32.xlu1 %v16216_v39, %s14705_s21  ;;  %4243 = vmatprep.subr.bf16.mxu1 %v16310_v57  ;;  %v14418_v57 = vld [vmem:[%s14932_s18 + $0x5c] ss:$148 sps:$4 sm:$0xff]  }
 0x241   : > { %4244 = vmatpush1.bf16.msra.mxu1 %v16305_v5  ;;  %v2659_v18 = vpop.permute.xlu0 %2658 }
 0x242   : > { %v16316_v45 = vpop.permute.xlu1 %2660  ;;  %v16319_v2 = vsel %vm2690_vm6, %v2657_v27, %v2659_v18 }
 0x243   : > { %23298 = vst [vmem:[#allocation134_spill] sm:$0xff] %v16319_v2  ;;  %2300 = vrot.lane.b32.xlu0 %v16189_v61, %s14706_s22  ;;  %v16325_v22 = vsel %vm2690_vm6, %v2659_v18, %v16316_v45 }
 0x244   : > { %23299 = vst [vmem:[#allocation135_spill] sm:$0xff] %v16325_v22  ;;  %2302 = vrot.lane.b32.xlu1 %v16195_v53, %s14706_s22  ;;  %4286 = vmatprep.subr.bf16.mxu0 %v16325_v22 }
 0x245   : > { %4287 = vmatpush1.bf16.msra.mxu0 %v16319_v2  ;;  %v3025_v13 = vpop.permute.xlu0 %3024 }
 0x246   : > { %v3027_v5 = vpop.permute.xlu1 %3026  ;;  %v16333_v27 = vsel %vm3060_vm7, %v16096_v0, %v3025_v13 }
 0x247   : > { %23300 = vst [vmem:[#allocation136_spill] sm:$0xff] %v16333_v27  ;;  %2304 = vrot.lane.b32.xlu0 %v16210_v7, %s14706_s22  ;;  %v16338_v18 = vsel %vm3060_vm7, %v3025_v13, %v3027_v5 }
 0x248   : > { %23301 = vst [vmem:[#allocation137_spill] sm:$0xff] %v16338_v18  ;;  %2306 = vrot.lane.b32.xlu1 %v16216_v39, %s14706_s22  ;;  %4245 = vmatprep.subr.bf16.mxu1 %v16338_v18 }
 0x249   : > { %4246 = vmatpush1.bf16.msra.mxu1 %v16333_v27  ;;  %v3029_v2 = vpop.permute.xlu0 %3028 }
 0x24a   : > { %v16344_v22 = vpop.permute.xlu1 %3030  ;;  %v16347_v0 = vsel %vm3060_vm7, %v3027_v5, %v3029_v2 }
 0x24b   : > { %23302 = vst [vmem:[#allocation138_spill] sm:$0xff] %v16347_v0  ;;  %2670 = vrot.lane.b32.xlu0 %v16189_v61, %s14707_s10  ;;  %v16353_v13 = vsel %vm3060_vm7, %v3029_v2, %v16344_v22 }
 0x24c   : > { %23303 = vst [vmem:[#allocation139_spill] sm:$0xff] %v16353_v13  ;;  %2672 = vrot.lane.b32.xlu1 %v16195_v53, %s14707_s10  ;;  %4288 = vmatprep.subr.bf16.mxu0 %v16353_v13 }
 0x24d   : > { %4289 = vmatpush1.bf16.msra.mxu0 %v16347_v0  ;;  %v3395_v27 = vpop.permute.xlu0 %3394 }
 0x24e   : > { %v3397_v18 = vpop.permute.xlu1 %3396  ;;  %v16361_v5 = vsel %vm3430_vm8, %v16125_v44, %v3395_v27 }
 0x24f   : > { %23304 = vst [vmem:[#allocation140_spill] sm:$0xff] %v16361_v5  ;;  %2674 = vrot.lane.b32.xlu0 %v16210_v7, %s14707_s10  ;;  %v16367_v2 = vsel %vm3430_vm8, %v3395_v27, %v3397_v18 }
 0x250   : > { %23305 = vst [vmem:[#allocation141_spill] sm:$0xff] %v16367_v2  ;;  %2676 = vrot.lane.b32.xlu1 %v16216_v39, %s14707_s10  ;;  %4247 = vmatprep.subr.bf16.mxu1 %v16367_v2 }
 0x251   : > { %4248 = vmatpush1.bf16.msra.mxu1 %v16361_v5  ;;  %v3399_v0 = vpop.permute.xlu0 %3398 }
 0x252   : > { %v16373_v13 = vpop.permute.xlu1 %3400  ;;  %4317 = vmatprep.subr.bf16.mxu1 %v14418_v57  ;;  %v16377_v44 = vsel %vm3430_vm8, %v3397_v18, %v3399_v0 }
 0x253   : > { %23306 = vst [vmem:[#allocation142_spill] sm:$0xff] %v16377_v44  ;;  %3040 = vrot.lane.b32.xlu0 %v16189_v61, %s14708_s19  ;;  %v16383_v27 = vsel %vm3430_vm8, %v3399_v0, %v16373_v13 }
 0x254   : > { %23307 = vst [vmem:[#allocation143_spill] sm:$0xff] %v16383_v27  ;;  %3042 = vrot.lane.b32.xlu1 %v16195_v53, %s14708_s19  ;;  %4290 = vmatprep.subr.bf16.mxu0 %v16383_v27 }
 0x255   : > { %4264 = vmatmul.mubr.bf16.vlgmr.msra.gmra.mrb[16].mxu1 %v16140_v10  ;;  %4291 = vmatpush1.bf16.msra.mxu0 %v16377_v44  ;;  %v813_v57 = vpop.permute.xlu0 %812 }
 0x256   : > { %4318 = vmatpush1.bf16.msra.mxu1 %v14416_v36  ;;  %v815_v18 = vpop.permute.xlu1 %814  ;;  %4360 = vmatprep.subr.bf16.mxu0 %v15962_v58  ;;  %v16398_v5 = vsel %vm840_vm1, %v16162_v19, %v813_v57 }
 0x257   : > { %3044 = vrot.lane.b32.xlu0 %v16210_v7, %s14708_s19  ;;  %v16394_v0 = vsel %vm840_vm1, %v813_v57, %v815_v18  ;;  %23309 = vst [vmem:[#allocation145_spill] sm:$0xff] %v16398_v5  ;;  %13765 = vmatprep.mubr.msk.bf16.mxu1 %vm3840_vm0, %v15904_v4 }
 0x258   : > { %23308 = vst [vmem:[#allocation144_spill] sm:$0xff] %v16394_v0  ;;  %3046 = vrot.lane.b32.xlu1 %v16216_v39, %s14708_s19  ;;  %4319 = vmatprep.subr.bf16.mxu1 %v16394_v0  ;;  %v16601_v0 = vld [vmem:[%s14932_s18 + $0x6c] ss:$148 sps:$4 sm:$0xff]  }
 0x259   : > { %4307 = vmatmul.mubr.bf16.vlgmr.msra.gmra.mrb[20].mxu0 %v16140_v10  ;;  %v817_v36 = vpop.permute.xlu0 %816  ;;  %23337 = vst [vmem:[#allocation173_spill] sm:$0xff] %v16601_v0 }
 0x25a   : > { %4320 = vmatpush1.bf16.msra.mxu1 %v16398_v5  ;;  %4361 = vmatpush1.bf16.msra.mxu0 %v15947_v47  ;;  %v16408_v58 = vpop.permute.xlu1 %818  ;;  %v16417_v57 = vsel %vm840_vm1, %v815_v18, %v817_v36 }
 0x25b   : > { %3410 = vrot.lane.b32.xlu0 %v16189_v61, %s14709_s11  ;;  %v16414_v19 = vsel %vm840_vm1, %v817_v36, %v16408_v58  ;;  %23311 = vst [vmem:[#allocation147_spill] sm:$0xff] %v16417_v57  ;;  %13766 = vmatprep.mubr.msk.bf16.mxu0 %vm3840_vm0, %v15904_v4  ;;  %v16435_v36 = vld [vmem:[%s14932_s18 + $0x7c] ss:$148 sps:$4 sm:$0xff]  }
 0x25c   : > { %23310 = vst [vmem:[#allocation146_spill] sm:$0xff] %v16414_v19  ;;  %3412 = vrot.lane.b32.xlu1 %v16195_v53, %s14709_s11  ;;  %4362 = vmatprep.subr.bf16.mxu0 %v16414_v19  ;;  %v16441_v19 = vld [vmem:[%s14932_s18 + $0x80] ss:$148 sps:$4 sm:$0xff]  }
 0x25d   : > { %v1183_v47 = vpop.permute.xlu0 %1182 }
 0x25e   : > { %4363 = vmatpush1.bf16.msra.mxu0 %v16417_v57  ;;  %v1185_v44 = vpop.permute.xlu1 %1184  ;;  %v16427_v61 = vsel %vm1210_vm2, %v16198_v54, %v1183_v47 }
 0x25f   : > { %23312 = vst [vmem:[#allocation148_spill] sm:$0xff] %v16427_v61  ;;  %3414 = vrot.lane.b32.xlu0 %v16210_v7, %s14709_s11  ;;  %v16432_v18 = vsel %vm1210_vm2, %v1183_v47, %v1185_v44 }
 0x260   : > { %23313 = vst [vmem:[#allocation149_spill] sm:$0xff] %v16432_v18  ;;  %3416 = vrot.lane.b32.xlu1 %v16216_v39, %s14709_s11  ;;  %4321 = vmatprep.subr.bf16.mxu1 %v16432_v18 }
 0x261   : > { %4322 = vmatpush1.bf16.msra.mxu1 %v16427_v61  ;;  %v1187_v57 = vpop.permute.xlu0 %1186 }
 0x262   : > { %v16444_v54 = vpop.permute.xlu1 %1188  ;;  %v16447_v27 = vsel %vm1210_vm2, %v1185_v44, %v1187_v57 }
 0x263   : > { %23314 = vst [vmem:[#allocation150_spill] sm:$0xff] %v16447_v27  ;;  %828 = vrot.lane.b32.xlu0 %v16435_v36, %s14702_s9  ;;  %v16453_v47 = vsel %vm1210_vm2, %v1187_v57, %v16444_v54 }
 0x264   : > { %23315 = vst [vmem:[#allocation151_spill] sm:$0xff] %v16453_v47  ;;  %830 = vrot.lane.b32.xlu1 %v16441_v19, %s14702_s9  ;;  %4364 = vmatprep.subr.bf16.mxu0 %v16453_v47 }
 0x265   : > { %4365 = vmatpush1.bf16.msra.mxu0 %v16447_v27  ;;  %v1553_v61 = vpop.permute.xlu0 %1552 }
 0x266   : > { %v1555_v18 = vpop.permute.xlu1 %1554  ;;  %v16461_v44 = vsel %vm1580_vm3, %v16232_v11, %v1553_v61 }
 0x267   : > { %23316 = vst [vmem:[#allocation152_spill] sm:$0xff] %v16461_v44  ;;  %1198 = vrot.lane.b32.xlu0 %v16435_v36, %s14703_s30  ;;  %v16466_v5 = vsel %vm1580_vm3, %v1553_v61, %v1555_v18 }
 0x268   : > { %23317 = vst [vmem:[#allocation153_spill] sm:$0xff] %v16466_v5  ;;  %1200 = vrot.lane.b32.xlu1 %v16441_v19, %s14703_s30  ;;  %4323 = vmatprep.subr.bf16.mxu1 %v16466_v5 }
 0x269   : > { %4324 = vmatpush1.bf16.msra.mxu1 %v16461_v44  ;;  %v1557_v57 = vpop.permute.xlu0 %1556 }
 0x26a   : > { %v16472_v27 = vpop.permute.xlu1 %1558  ;;  %v16475_v47 = vsel %vm1580_vm3, %v1555_v18, %v1557_v57 }
 0x26b   : > { %23318 = vst [vmem:[#allocation154_spill] sm:$0xff] %v16475_v47  ;;  %1568 = vrot.lane.b32.xlu0 %v16435_v36, %s14704_s23  ;;  %v16481_v11 = vsel %vm1580_vm3, %v1557_v57, %v16472_v27 }
 0x26c   : > { %23319 = vst [vmem:[#allocation155_spill] sm:$0xff] %v16481_v11  ;;  %1570 = vrot.lane.b32.xlu1 %v16441_v19, %s14704_s23  ;;  %4366 = vmatprep.subr.bf16.mxu0 %v16481_v11 }
 0x26d   : > { %4367 = vmatpush1.bf16.msra.mxu0 %v16475_v47  ;;  %v1923_v61 = vpop.permute.xlu0 %1922 }
 0x26e   : > { %v1925_v44 = vpop.permute.xlu1 %1924  ;;  %v16489_v18 = vsel %vm1950_vm4, %v16260_v9, %v1923_v61 }
 0x26f   : > { %23320 = vst [vmem:[#allocation156_spill] sm:$0xff] %v16489_v18  ;;  %1938 = vrot.lane.b32.xlu0 %v16435_v36, %s14705_s21  ;;  %v16494_v5 = vsel %vm1950_vm4, %v1923_v61, %v1925_v44 }
 0x270   : > { %23321 = vst [vmem:[#allocation157_spill] sm:$0xff] %v16494_v5  ;;  %1940 = vrot.lane.b32.xlu1 %v16441_v19, %s14705_s21  ;;  %4325 = vmatprep.subr.bf16.mxu1 %v16494_v5 }
 0x271   : > { %4326 = vmatpush1.bf16.msra.mxu1 %v16489_v18  ;;  %v1927_v57 = vpop.permute.xlu0 %1926 }
 0x272   : > { %v16500_v47 = vpop.permute.xlu1 %1928  ;;  %v16503_v11 = vsel %vm1950_vm4, %v1925_v44, %v1927_v57 }
 0x273   : > { %23322 = vst [vmem:[#allocation158_spill] sm:$0xff] %v16503_v11  ;;  %2308 = vrot.lane.b32.xlu0 %v16435_v36, %s14706_s22  ;;  %v16509_v9 = vsel %vm1950_vm4, %v1927_v57, %v16500_v47 }
 0x274   : > { %23323 = vst [vmem:[#allocation159_spill] sm:$0xff] %v16509_v9  ;;  %2310 = vrot.lane.b32.xlu1 %v16441_v19, %s14706_s22  ;;  %4368 = vmatprep.subr.bf16.mxu0 %v16509_v9 }
 0x275   : > { %4369 = vmatpush1.bf16.msra.mxu0 %v16503_v11  ;;  %v2293_v61 = vpop.permute.xlu0 %2292 }
 0x276   : > { %v2295_v18 = vpop.permute.xlu1 %2294  ;;  %v16517_v44 = vsel %vm2320_vm5, %v16288_v52, %v2293_v61 }
 0x277   : > { %23324 = vst [vmem:[#allocation160_spill] sm:$0xff] %v16517_v44  ;;  %2678 = vrot.lane.b32.xlu0 %v16435_v36, %s14707_s10  ;;  %v16522_v5 = vsel %vm2320_vm5, %v2293_v61, %v2295_v18 }
 0x278   : > { %23325 = vst [vmem:[#allocation161_spill] sm:$0xff] %v16522_v5  ;;  %2680 = vrot.lane.b32.xlu1 %v16441_v19, %s14707_s10  ;;  %4327 = vmatprep.subr.bf16.mxu1 %v16522_v5 }
 0x279   : > { %4328 = vmatpush1.bf16.msra.mxu1 %v16517_v44  ;;  %v2297_v57 = vpop.permute.xlu0 %2296 }
 0x27a   : > { %v16528_v11 = vpop.permute.xlu1 %2298  ;;  %v16531_v52 = vsel %vm2320_vm5, %v2295_v18, %v2297_v57 }
 0x27b   : > { %23326 = vst [vmem:[#allocation162_spill] sm:$0xff] %v16531_v52  ;;  %3048 = vrot.lane.b32.xlu0 %v16435_v36, %s14708_s19  ;;  %v16537_v61 = vsel %vm2320_vm5, %v2297_v57, %v16528_v11  ;;  %v16553_v57 = vld [vmem:[%s14932_s18 + $0x84] ss:$148 sps:$4 sm:$0xff]  }
 0x27c   : > { %23327 = vst [vmem:[#allocation163_spill] sm:$0xff] %v16537_v61  ;;  %3050 = vrot.lane.b32.xlu1 %v16441_v19, %s14708_s19  ;;  %4370 = vmatprep.subr.bf16.mxu0 %v16537_v61 }
 0x27d   : > { %4371 = vmatpush1.bf16.msra.mxu0 %v16531_v52  ;;  %v2663_v9 = vpop.permute.xlu0 %2662 }
 0x27e   : > { %v2665_v44 = vpop.permute.xlu1 %2664  ;;  %v16545_v18 = vsel %vm2690_vm6, %v16316_v45, %v2663_v9 }
 0x27f   : > { %23328 = vst [vmem:[#allocation164_spill] sm:$0xff] %v16545_v18  ;;  %3418 = vrot.lane.b32.xlu0 %v16435_v36, %s14709_s11  ;;  %v16550_v5 = vsel %vm2690_vm6, %v2663_v9, %v2665_v44 }
 0x280   : > { %23329 = vst [vmem:[#allocation165_spill] sm:$0xff] %v16550_v5  ;;  %3420 = vrot.lane.b32.xlu1 %v16441_v19, %s14709_s11  ;;  %4329 = vmatprep.subr.bf16.mxu1 %v16550_v5 }
 0x281   : > { %4330 = vmatpush1.bf16.msra.mxu1 %v16545_v18  ;;  %v2667_v52 = vpop.permute.xlu0 %2666 }
 0x282   : > { %v16559_v61 = vpop.permute.xlu1 %2668  ;;  %v16562_v45 = vsel %vm2690_vm6, %v2665_v44, %v2667_v52 }
 0x283   : > { %23330 = vst [vmem:[#allocation166_spill] sm:$0xff] %v16562_v45  ;;  %832 = vrot.lane.b32.xlu0 %v16553_v57, %s14702_s9  ;;  %v16568_v9 = vsel %vm2690_vm6, %v2667_v52, %v16559_v61 }
 0x284   : > { %23331 = vst [vmem:[#allocation167_spill] sm:$0xff] %v16568_v9  ;;  %4372 = vmatprep.subr.bf16.mxu0 %v16568_v9 }
 0x285   : > { %4373 = vmatpush1.bf16.msra.mxu0 %v16562_v45  ;;  %v3033_v19 = vpop.permute.xlu0 %3032 }
 0x286   : > { %v3035_v5 = vpop.permute.xlu1 %3034  ;;  %v16574_v18 = vsel %vm3060_vm7, %v16344_v22, %v3033_v19 }
 0x287   : > { %23332 = vst [vmem:[#allocation168_spill] sm:$0xff] %v16574_v18  ;;  %1202 = vrot.lane.b32.xlu0 %v16553_v57, %s14703_s30  ;;  %v16579_v44 = vsel %vm3060_vm7, %v3033_v19, %v3035_v5 }
 0x288   : > { %23333 = vst [vmem:[#allocation169_spill] sm:$0xff] %v16579_v44  ;;  %4331 = vmatprep.subr.bf16.mxu1 %v16579_v44 }
 0x289   : > { %4332 = vmatpush1.bf16.msra.mxu1 %v16574_v18  ;;  %v3037_v52 = vpop.permute.xlu0 %3036 }
 0x28a   : > { %v16583_v45 = vpop.permute.xlu1 %3038  ;;  %v16586_v9 = vsel %vm3060_vm7, %v3035_v5, %v3037_v52 }
 0x28b   : > { %23334 = vst [vmem:[#allocation170_spill] sm:$0xff] %v16586_v9  ;;  %1572 = vrot.lane.b32.xlu0 %v16553_v57, %s14704_s23  ;;  %v16592_v22 = vsel %vm3060_vm7, %v3037_v52, %v16583_v45 }
 0x28c   : > { %23335 = vst [vmem:[#allocation171_spill] sm:$0xff] %v16592_v22  ;;  %4374 = vmatprep.subr.bf16.mxu0 %v16592_v22 }
 0x28d   : > { %4375 = vmatpush1.bf16.msra.mxu0 %v16586_v9  ;;  %v3403_v19 = vpop.permute.xlu0 %3402  ;;  %v16611_v9 = vld [vmem:[%s14932_s18 + $0x68] ss:$148 sps:$4 sm:$0xff]  }
 0x28e   : > { %v3405_v18 = vpop.permute.xlu1 %3404  ;;  %v16598_v44 = vsel %vm3430_vm8, %v16373_v13, %v3403_v19 }
 0x28f   : > { %23336 = vst [vmem:[#allocation172_spill] sm:$0xff] %v16598_v44  ;;  %1942 = vrot.lane.b32.xlu0 %v16553_v57, %s14705_s21  ;;  %v16606_v5 = vsel %vm3430_vm8, %v3403_v19, %v3405_v18 }
 0x290   : > { %23338 = vst [vmem:[#allocation174_spill] sm:$0xff] %v16606_v5  ;;  %4333 = vmatprep.subr.bf16.mxu1 %v16606_v5 }
 0x291   : > { %4334 = vmatpush1.bf16.msra.mxu1 %v16598_v44  ;;  %v3407_v52 = vpop.permute.xlu0 %3406 }
 0x292   : > { %v16613_v22 = vpop.permute.xlu1 %3408  ;;  %4403 = vmatprep.subr.bf16.mxu1 %v16601_v0  ;;  %v16617_v13 = vsel %vm3430_vm8, %v3405_v18, %v3407_v52 }
 0x293   : > { %23339 = vst [vmem:[#allocation175_spill] sm:$0xff] %v16617_v13  ;;  %2312 = vrot.lane.b32.xlu0 %v16553_v57, %s14706_s22  ;;  %v16623_v19 = vsel %vm3430_vm8, %v3407_v52, %v16613_v22 }
 0x294   : > { %23340 = vst [vmem:[#allocation176_spill] sm:$0xff] %v16623_v19  ;;  %4376 = vmatprep.subr.bf16.mxu0 %v16623_v19  ;;  %4350 = vmatmul.mubr.bf16.vlgmr.msra.gmra.mrb[20].mxu1 %v16140_v10 }
 0x295   : > { %4377 = vmatpush1.bf16.msra.mxu0 %v16617_v13  ;;  %4404 = vmatpush1.bf16.msra.mxu1 %v16611_v9  ;;  %v821_v44 = vpop.permute.xlu0 %820 }
 0x296   : > { %v823_v0 = vpop.permute.xlu1 %822  ;;  %4446 = vmatprep.subr.bf16.mxu0 %v16210_v7  ;;  %v16632_v18 = vsel %vm840_vm1, %v16408_v58, %v821_v44  ;;  %13767 = vmatprep.mubr.msk.bf16.mxu1 %vm3840_vm0, %v15904_v4 }
 0x297   : > { %23341 = vst [vmem:[#allocation177_spill] sm:$0xff] %v16632_v18  ;;  %2682 = vrot.lane.b32.xlu0 %v16553_v57, %s14707_s10  ;;  %v16639_v52 = vsel %vm840_vm1, %v821_v44, %v823_v0 }
 0x298   : > { %23342 = vst [vmem:[#allocation178_spill] sm:$0xff] %v16639_v52  ;;  %4405 = vmatprep.subr.bf16.mxu1 %v16639_v52  ;;  %4393 = vmatmul.mubr.bf16.vlgmr.msra.gmra.mrb[24].mxu0 %v16140_v10 }
 0x299   : > { %4406 = vmatpush1.bf16.msra.mxu1 %v16632_v18  ;;  %4447 = vmatpush1.bf16.msra.mxu0 %v16195_v53  ;;  %v825_v7 = vpop.permute.xlu0 %824 }
 0x29a   : > { %v16645_v58 = vpop.permute.xlu1 %826  ;;  %v16648_v13 = vsel %vm840_vm1, %v823_v0, %v825_v7  ;;  %13768 = vmatprep.mubr.msk.bf16.mxu0 %vm3840_vm0, %v15904_v4 }
 0x29b   : > { %23343 = vst [vmem:[#allocation179_spill] sm:$0xff] %v16648_v13  ;;  %3052 = vrot.lane.b32.xlu0 %v16553_v57, %s14708_s19  ;;  %v16656_v44 = vsel %vm840_vm1, %v825_v7, %v16645_v58 }
 0x29c   : > { %23344 = vst [vmem:[#allocation180_spill] sm:$0xff] %v16656_v44  ;;  %4448 = vmatprep.subr.bf16.mxu0 %v16656_v44 }
 0x29d   : > { %4449 = vmatpush1.bf16.msra.mxu0 %v16648_v13  ;;  %v1191_v53 = vpop.permute.xlu0 %1190 }
 0x29e   : > { %v1193_v19 = vpop.permute.xlu1 %1192  ;;  %v16662_v0 = vsel %vm1210_vm2, %v16444_v54, %v1191_v53 }
 0x29f   : > { %23345 = vst [vmem:[#allocation181_spill] sm:$0xff] %v16662_v0  ;;  %3422 = vrot.lane.b32.xlu0 %v16553_v57, %s14709_s11  ;;  %v16667_v4 = vsel %vm1210_vm2, %v1191_v53, %v1193_v19 }
 0x2a0   : > { %23346 = vst [vmem:[#allocation182_spill] sm:$0xff] %v16667_v4  ;;  %4407 = vmatprep.subr.bf16.mxu1 %v16667_v4 }
 0x2a1   : > { %4408 = vmatpush1.bf16.msra.mxu1 %v16662_v0  ;;  %v1195_v7 = vpop.permute.xlu0 %1194 }
 0x2a2   : > { %v16671_v44 = vpop.permute.xlu1 %1196  ;;  %v16674_v13 = vsel %vm1210_vm2, %v1193_v19, %v1195_v7 }
 0x2a3   : > { %23347 = vst [vmem:[#allocation183_spill] sm:$0xff] %v16674_v13  ;;  %v16678_v54 = vsel %vm1210_vm2, %v1195_v7, %v16671_v44 }
 0x2a4   : > { %23348 = vst [vmem:[#allocation184_spill] sm:$0xff] %v16678_v54  ;;  %4450 = vmatprep.subr.bf16.mxu0 %v16678_v54 }
 0x2a5   : > { %4451 = vmatpush1.bf16.msra.mxu0 %v16674_v13  ;;  %v1561_v57 = vpop.permute.xlu0 %1560 }
 0x2a6   : > { %v1563_v53 = vpop.permute.xlu1 %1562  ;;  %v16684_v4 = vsel %vm1580_vm3, %v16472_v27, %v1561_v57 }
 0x2a7   : > { %23349 = vst [vmem:[#allocation185_spill] sm:$0xff] %v16684_v4  ;;  %v16687_v0 = vsel %vm1580_vm3, %v1561_v57, %v1563_v53 }
 0x2a8   : > { %23350 = vst [vmem:[#allocation186_spill] sm:$0xff] %v16687_v0  ;;  %4409 = vmatprep.subr.bf16.mxu1 %v16687_v0 }
 0x2a9   : > { %4410 = vmatpush1.bf16.msra.mxu1 %v16684_v4  ;;  %v1565_v19 = vpop.permute.xlu0 %1564 }
 0x2aa   : > { %v16691_v7 = vpop.permute.xlu1 %1566  ;;  %v16694_v54 = vsel %vm1580_vm3, %v1563_v53, %v1565_v19 }
 0x2ab   : > { %23351 = vst [vmem:[#allocation187_spill] sm:$0xff] %v16694_v54  ;;  %v16698_v13 = vsel %vm1580_vm3, %v1565_v19, %v16691_v7 }
 0x2ac   : > { %23352 = vst [vmem:[#allocation188_spill] sm:$0xff] %v16698_v13  ;;  %4452 = vmatprep.subr.bf16.mxu0 %v16698_v13 }
 0x2ad   : > { %4453 = vmatpush1.bf16.msra.mxu0 %v16694_v54  ;;  %v1931_v27 = vpop.permute.xlu0 %1930 }
 0x2ae   : > { %v1933_v57 = vpop.permute.xlu1 %1932  ;;  %v16704_v0 = vsel %vm1950_vm4, %v16500_v47, %v1931_v27 }
 0x2af   : > { %23353 = vst [vmem:[#allocation189_spill] sm:$0xff] %v16704_v0  ;;  %v16707_v4 = vsel %vm1950_vm4, %v1931_v27, %v1933_v57 }
 0x2b0   : > { %23354 = vst [vmem:[#allocation190_spill] sm:$0xff] %v16707_v4  ;;  %4411 = vmatprep.subr.bf16.mxu1 %v16707_v4 }
 0x2b1   : > { %4412 = vmatpush1.bf16.msra.mxu1 %v16704_v0  ;;  %v1935_v53 = vpop.permute.xlu0 %1934 }
 0x2b2   : > { %v16711_v19 = vpop.permute.xlu1 %1936  ;;  %v16714_v13 = vsel %vm1950_vm4, %v1933_v57, %v1935_v53 }
 0x2b3   : > { %23355 = vst [vmem:[#allocation191_spill] sm:$0xff] %v16714_v13  ;;  %v16718_v54 = vsel %vm1950_vm4, %v1935_v53, %v16711_v19 }
 0x2b4   : > { %23356 = vst [vmem:[#allocation192_spill] sm:$0xff] %v16718_v54  ;;  %4454 = vmatprep.subr.bf16.mxu0 %v16718_v54 }
 0x2b5   : > { %4455 = vmatpush1.bf16.msra.mxu0 %v16714_v13  ;;  %v2301_v47 = vpop.permute.xlu0 %2300 }
 0x2b6   : > { %v2303_v27 = vpop.permute.xlu1 %2302  ;;  %v16724_v4 = vsel %vm2320_vm5, %v16528_v11, %v2301_v47 }
 0x2b7   : > { %23357 = vst [vmem:[#allocation193_spill] sm:$0xff] %v16724_v4  ;;  %v16727_v0 = vsel %vm2320_vm5, %v2301_v47, %v2303_v27 }
 0x2b8   : > { %23358 = vst [vmem:[#allocation194_spill] sm:$0xff] %v16727_v0  ;;  %4413 = vmatprep.subr.bf16.mxu1 %v16727_v0 }
 0x2b9   : > { %4414 = vmatpush1.bf16.msra.mxu1 %v16724_v4  ;;  %v2305_v57 = vpop.permute.xlu0 %2304 }
 0x2ba   : > { %v16731_v53 = vpop.permute.xlu1 %2306  ;;  %v16734_v54 = vsel %vm2320_vm5, %v2303_v27, %v2305_v57 }
 0x2bb   : > { %23359 = vst [vmem:[#allocation195_spill] sm:$0xff] %v16734_v54  ;;  %v16738_v13 = vsel %vm2320_vm5, %v2305_v57, %v16731_v53 }
 0x2bc   : > { %23360 = vst [vmem:[#allocation196_spill] sm:$0xff] %v16738_v13  ;;  %4456 = vmatprep.subr.bf16.mxu0 %v16738_v13 }
 0x2bd   : > { %4457 = vmatpush1.bf16.msra.mxu0 %v16734_v54  ;;  %v2671_v11 = vpop.permute.xlu0 %2670 }
 0x2be   : > { %v2673_v47 = vpop.permute.xlu1 %2672  ;;  %v16744_v0 = vsel %vm2690_vm6, %v16559_v61, %v2671_v11 }
 0x2bf   : > { %23361 = vst [vmem:[#allocation197_spill] sm:$0xff] %v16744_v0  ;;  %v16747_v4 = vsel %vm2690_vm6, %v2671_v11, %v2673_v47 }
 0x2c0   : > { %23362 = vst [vmem:[#allocation198_spill] sm:$0xff] %v16747_v4  ;;  %4415 = vmatprep.subr.bf16.mxu1 %v16747_v4 }
 0x2c1   : > { %4416 = vmatpush1.bf16.msra.mxu1 %v16744_v0  ;;  %v2675_v27 = vpop.permute.xlu0 %2674 }
 0x2c2   : > { %v16751_v57 = vpop.permute.xlu1 %2676  ;;  %v16754_v13 = vsel %vm2690_vm6, %v2673_v47, %v2675_v27 }
 0x2c3   : > { %23363 = vst [vmem:[#allocation199_spill] sm:$0xff] %v16754_v13  ;;  %v16758_v54 = vsel %vm2690_vm6, %v2675_v27, %v16751_v57 }
 0x2c4   : > { %23364 = vst [vmem:[#allocation200_spill] sm:$0xff] %v16758_v54  ;;  %4458 = vmatprep.subr.bf16.mxu0 %v16758_v54 }
 0x2c5   : > { %4459 = vmatpush1.bf16.msra.mxu0 %v16754_v13  ;;  %v3041_v61 = vpop.permute.xlu0 %3040 }
 0x2c6   : > { %v3043_v11 = vpop.permute.xlu1 %3042  ;;  %v16764_v4 = vsel %vm3060_vm7, %v16583_v45, %v3041_v61 }
 0x2c7   : > { %23365 = vst [vmem:[#allocation201_spill] sm:$0xff] %v16764_v4  ;;  %v16767_v0 = vsel %vm3060_vm7, %v3041_v61, %v3043_v11 }
 0x2c8   : > { %23366 = vst [vmem:[#allocation202_spill] sm:$0xff] %v16767_v0  ;;  %4417 = vmatprep.subr.bf16.mxu1 %v16767_v0 }
 0x2c9   : > { %4418 = vmatpush1.bf16.msra.mxu1 %v16764_v4  ;;  %v3045_v47 = vpop.permute.xlu0 %3044 }
 0x2ca   : > { %v16771_v27 = vpop.permute.xlu1 %3046  ;;  %v16774_v54 = vsel %vm3060_vm7, %v3043_v11, %v3045_v47 }
 0x2cb   : > { %23367 = vst [vmem:[#allocation203_spill] sm:$0xff] %v16774_v54  ;;  %v16778_v13 = vsel %vm3060_vm7, %v3045_v47, %v16771_v27 }
 0x2cc   : > { %23368 = vst [vmem:[#allocation204_spill] sm:$0xff] %v16778_v13  ;;  %4460 = vmatprep.subr.bf16.mxu0 %v16778_v13  ;;  %v16802_v13 = vld [vmem:[%s14932_s18 + $0x88] ss:$148 sps:$4 sm:$0xff]  }
 0x2cd   : > { %4461 = vmatpush1.bf16.msra.mxu0 %v16774_v54  ;;  %v3411_v45 = vpop.permute.xlu0 %3410  ;;  %834 = vrot.lane.b32.xlu1 %v16802_v13, %s14702_s9 }
 0x2ce   : > { %v3413_v61 = vpop.permute.xlu1 %3412  ;;  %v16784_v4 = vsel %vm3430_vm8, %v16613_v22, %v3411_v45 }
 0x2cf   : > { %23369 = vst [vmem:[#allocation205_spill] sm:$0xff] %v16784_v4  ;;  %v16787_v0 = vsel %vm3430_vm8, %v3411_v45, %v3413_v61 }
 0x2d0   : > { %23370 = vst [vmem:[#allocation206_spill] sm:$0xff] %v16787_v0  ;;  %4419 = vmatprep.subr.bf16.mxu1 %v16787_v0 }
 0x2d1   : > { %4420 = vmatpush1.bf16.msra.mxu1 %v16784_v4  ;;  %v3415_v11 = vpop.permute.xlu0 %3414  ;;  %v14504_v4 = vld [vmem:[#allocation7 + $0x4] ss:$8 sps:$4 sm:$0xff]   ;;  %1204 = vrot.lane.b32.xlu1 %v16802_v13, %s14703_s30 }
 0x2d2   : > { %v16791_v47 = vpop.permute.xlu1 %3416  ;;  %4489 = vmatprep.subr.bf16.mxu1 %v16435_v36  ;;  %v16795_v54 = vsel %vm3430_vm8, %v3413_v61, %v3415_v11  ;;  %v14503_v61 = vld [vmem:[%s14932_s18 + $0xc] ss:$148 sps:$4 sm:$0xff]  }
 0x2d3   : > { %v16799_v22 = vsel %vm3430_vm8, %v3415_v11, %v16791_v47 }
 0x2d4   : > { %23371 = vst [vmem:[#allocation207_spill] sm:$0xff] %v16799_v22  ;;  %4462 = vmatprep.subr.bf16.mxu0 %v16799_v22  ;;  %4436 = vmatmul.mubr.bf16.vlgmr.msra.gmra.mrb[24].mxu1 %v16140_v10  ;;  %v16816_v22 = vld [vmem:[#allocation7 + $0x14] ss:$8 sps:$4 sm:$0xff]  }
 0x2d5   : > { %4463 = vmatpush1.bf16.msra.mxu0 %v16795_v54  ;;  %4490 = vmatpush1.bf16.msra.mxu1 %v16216_v39  ;;  %v829_v45 = vpop.permute.xlu0 %828  ;;  %v14505_v39 = vld [vmem:[%s14932_s18 + $0x8] ss:$148 sps:$4 sm:$0xff]  }
 0x2d6   : > { %v16808_v36 = vpop.permute.xlu1 %830  ;;  %4909 = vmatprep.subr.bf16.mxu0 %v14503_v61  ;;  %v16813_v11 = vsel %vm840_vm1, %v16645_v58, %v829_v45  ;;  %13769 = vmatprep.mubr.msk.bf16.mxu1 %vm3840_vm0, %v14504_v4 }
 0x2d7   : > { %23372 = vst [vmem:[#allocation208_spill] sm:$0xff] %v16813_v11  ;;  %v16820_v0 = vsel %vm840_vm1, %v829_v45, %v16808_v36  ;;  %1574 = vrot.lane.b32.xlu1 %v16802_v13, %s14704_s23 }
 0x2d8   : > { %23373 = vst [vmem:[#allocation209_spill] sm:$0xff] %v16820_v0  ;;  %4491 = vmatprep.subr.bf16.mxu1 %v16820_v0  ;;  %4479 = vmatmul.mubr.bf16.vlgmr.msra.gmra.mrb[28].mxu0 %v16140_v10 }
 0x2d9   : > { %4492 = vmatpush1.bf16.msra.mxu1 %v16813_v11  ;;  %4910 = vmatpush1.bf16.msra.mxu0 %v14505_v39  ;;  %v1199_v58 = vpop.permute.xlu0 %1198 }
 0x2da   : > { %v16828_v61 = vpop.permute.xlu1 %1200  ;;  %4911 = vmatprep.subr.bf16.mxu0 %v15166_v56  ;;  %v16833_v4 = vsel %vm1210_vm2, %v16671_v44, %v1199_v58  ;;  %13772 = vmatprep.mubr.msk.bf16.mxu0 %vm3840_vm0, %v16816_v22 }
 0x2db   : > { %23374 = vst [vmem:[#allocation210_spill] sm:$0xff] %v16828_v61  ;;  %23375 = vst [vmem:[#allocation211_spill] sm:$0xff] %v16833_v4  ;;  %v16839_v45 = vsel %vm1210_vm2, %v1199_v58, %v16828_v61  ;;  %1944 = vrot.lane.b32.xlu1 %v16802_v13, %s14705_s21 }
 0x2dc   : > { %23376 = vst [vmem:[#allocation212_spill] sm:$0xff] %v16839_v45  ;;  %4493 = vmatprep.subr.bf16.mxu1 %v16839_v45 }
 0x2dd   : > { %4494 = vmatpush1.bf16.msra.mxu1 %v16833_v4  ;;  %4912 = vmatpush1.bf16.msra.mxu0 %v15161_v55  ;;  %v1569_v56 = vpop.permute.xlu0 %1568 }
 0x2de   : > { %v16846_v39 = vpop.permute.xlu1 %1570  ;;  %4913 = vmatprep.subr.bf16.mxu0 %v15201_v1  ;;  %v16851_v44 = vsel %vm1580_vm3, %v16691_v7, %v1569_v56 }
 0x2df   : > { %23377 = vst [vmem:[#allocation213_spill] sm:$0xff] %v16851_v44  ;;  %v16855_v58 = vsel %vm1580_vm3, %v1569_v56, %v16846_v39  ;;  %2314 = vrot.lane.b32.xlu1 %v16802_v13, %s14706_s22 }
 0x2e0   : > { %23378 = vst [vmem:[#allocation214_spill] sm:$0xff] %v16855_v58  ;;  %4495 = vmatprep.subr.bf16.mxu1 %v16855_v58 }
 0x2e1   : > { %4496 = vmatpush1.bf16.msra.mxu1 %v16851_v44  ;;  %4914 = vmatpush1.bf16.msra.mxu0 %v15193_v63  ;;  %v1939_v55 = vpop.permute.xlu0 %1938 }
 0x2e2   : > { %v16862_v61 = vpop.permute.xlu1 %1940  ;;  %4915 = vmatprep.subr.bf16.mxu0 %v15238_v17  ;;  %v16867_v1 = vsel %vm1950_vm4, %v16711_v19, %v1939_v55 }
 0x2e3   : > { %23379 = vst [vmem:[#allocation215_spill] sm:$0xff] %v16867_v1  ;;  %v16871_v7 = vsel %vm1950_vm4, %v1939_v55, %v16862_v61  ;;  %2684 = vrot.lane.b32.xlu1 %v16802_v13, %s14707_s10 }
 0x2e4   : > { %23380 = vst [vmem:[#allocation216_spill] sm:$0xff] %v16871_v7  ;;  %4497 = vmatprep.subr.bf16.mxu1 %v16871_v7 }
 0x2e5   : > { %4498 = vmatpush1.bf16.msra.mxu1 %v16867_v1  ;;  %4916 = vmatpush1.bf16.msra.mxu0 %v15233_v16  ;;  %v2309_v63 = vpop.permute.xlu0 %2308 }
 0x2e6   : > { %v16878_v56 = vpop.permute.xlu1 %2310  ;;  %4917 = vmatprep.subr.bf16.mxu0 %v15266_v25  ;;  %v16883_v17 = vsel %vm2320_vm5, %v16731_v53, %v2309_v63 }
 0x2e7   : > { %23381 = vst [vmem:[#allocation217_spill] sm:$0xff] %v16883_v17  ;;  %v16887_v19 = vsel %vm2320_vm5, %v2309_v63, %v16878_v56  ;;  %3054 = vrot.lane.b32.xlu1 %v16802_v13, %s14708_s19 }
 0x2e8   : > { %23382 = vst [vmem:[#allocation218_spill] sm:$0xff] %v16887_v19  ;;  %4499 = vmatprep.subr.bf16.mxu1 %v16887_v19 }
 0x2e9   : > { %4500 = vmatpush1.bf16.msra.mxu1 %v16883_v17  ;;  %4918 = vmatpush1.bf16.msra.mxu0 %v15261_v24  ;;  %v2679_v16 = vpop.permute.xlu0 %2678 }
 0x2ea   : > { %v16894_v55 = vpop.permute.xlu1 %2680  ;;  %4919 = vmatprep.subr.bf16.mxu0 %v15294_v34  ;;  %v16899_v25 = vsel %vm2690_vm6, %v16751_v57, %v2679_v16 }
 0x2eb   : > { %23383 = vst [vmem:[#allocation219_spill] sm:$0xff] %v16899_v25  ;;  %v16903_v53 = vsel %vm2690_vm6, %v2679_v16, %v16894_v55  ;;  %v22678_v16 = vmov 0   ;;  %3424 = vrot.lane.b32.xlu1 %v16802_v13, %s14709_s11  ;;  %v16953_v13 = vld [vmem:[#allocation7 + $0x10] ss:$8 sps:$4 sm:$0xff]  }
 0x2ec   : > { %23384 = vst [vmem:[#allocation220_spill] sm:$0xff] %v16903_v53  ;;  %4501 = vmatprep.subr.bf16.mxu1 %v16903_v53  ;;  %14356 = vset.pattern.permute.xlu1 %v22678_v16 }
 0x2ed   : > { %4502 = vmatpush1.bf16.msra.mxu1 %v16899_v25  ;;  %4920 = vmatpush1.bf16.msra.mxu0 %v15289_v32  ;;  %v3049_v24 = vpop.permute.xlu0 %3048 }
 0x2ee   : > { %v16910_v63 = vpop.permute.xlu1 %3050  ;;  %4921 = vmatprep.subr.bf16.mxu0 %v15322_v42  ;;  %v16915_v34 = vsel %vm3060_vm7, %v16771_v27, %v3049_v24  ;;  %14355 = vset.pattern.permute.xlu0 %v22678_v16  ;;  %v23391_v16 = vld [vmem:[#allocation41_spill] sm:$0xff] }
 0x2ef   : > { %v16919_v57 = vsel %vm3060_vm7, %v3049_v24, %v16910_v63 }
 0x2f0   : > { %23385 = vst [vmem:[#allocation221_spill] sm:$0xff] %v16919_v57  ;;  %4503 = vmatprep.subr.bf16.mxu1 %v16919_v57 }
 0x2f1   : > { %4504 = vmatpush1.bf16.msra.mxu1 %v16915_v34  ;;  %4922 = vmatpush1.bf16.msra.mxu0 %v15317_v41  ;;  %v3419_v32 = vpop.permute.xlu0 %3418  ;;  %v3540_v41 = vld [vmem:[%s22309_s2 + $0x8] sm:$0xff] }
 0x2f2   : > { %v16926_v42 = vpop.permute.xlu1 %3420  ;;  %4923 = vmatprep.subr.bf16.mxu0 %v15350_v51  ;;  %v16931_v27 = vsel %vm3430_vm8, %v16791_v47, %v3419_v32  ;;  %v16949_v51 = vld [vmem:[%s14932_s18 + $0x14] ss:$148 sps:$4 sm:$0xff]   ;;  %4539 = vperm.xlu1 %14356, %v3540_v41   ;;  %v16957_v47 = vld [vmem:[%s14932_s18 + $0x10] ss:$148 sps:$4 sm:$0xff]  }
 0x2f3   : > { %23386 = vst [vmem:[#allocation222_spill] sm:$0xff] %v16931_v27  ;;  %v16936_v24 = vsel %vm3430_vm8, %v3419_v32, %v16926_v42  ;;  %v23389_v32 = vld [vmem:[#allocation36_spill] sm:$0xff] }
 0x2f4   : > { %23387 = vst [vmem:[#allocation223_spill] sm:$0xff] %v16936_v24  ;;  %4505 = vmatprep.subr.bf16.mxu1 %v16936_v24  ;;  %v23390_v41 = vld [vmem:[#allocation16_spill] sm:$0xff] }
 0x2f5   : > { %4506 = vmatpush1.bf16.msra.mxu1 %v16931_v27  ;;  %4924 = vmatpush1.bf16.msra.mxu0 %v15345_v50  ;;  %v16962_v50 = vld [vmem:[%s14932_s18 + $0x1c] ss:$148 sps:$4 sm:$0xff]  }
 0x2f6   : > { %4925 = vmatprep.subr.bf16.mxu0 %v15378_v14  ;;  %4952 = vmatprep.subr.bf16.mxu1 %v16949_v51  ;;  %v16970_v14 = vld [vmem:[%s14932_s18 + $0x18] ss:$148 sps:$4 sm:$0xff]  }
 0x2f8   : > { %4522 = vmatmul.mubr.bf16.vlgmr.msra.gmra.mrb[28].mxu1 %v16140_v10  ;;  %v23388_v10 = vld [vmem:[#allocation14_spill] sm:$0xff] }
 0x2f9   : > { %4926 = vmatpush1.bf16.msra.mxu0 %v15373_v3  ;;  %4953 = vmatpush1.bf16.msra.mxu1 %v16957_v47  ;;  %v14431_v3 = vld [vmem:[%s14932_s18 + $0x8c] ss:$148 sps:$4 sm:$0xff]  }
 0x2fa   : > { %4954 = vmatprep.subr.bf16.mxu1 %v15185_v60  ;;  %4995 = vmatprep.subr.bf16.mxu0 %v16962_v50 }
 0x2fb   : > { %13773 = vmatprep.mubr.msk.bf16.mxu1 %vm3840_vm0, %v16816_v22  ;;  %836 = vrot.lane.b32.xlu1 %v14431_v3, %s14702_s9 }
 0x2fc   : > { %4942 = vmatmul.mubr.bf16.vlgmr.msra.gmra.mrb[0].mxu0 %v16953_v13 }
 0x2fd   : > { %4955 = vmatpush1.bf16.msra.mxu1 %v15177_v59  ;;  %4996 = vmatpush1.bf16.msra.mxu0 %v16970_v14 }
 0x2fe   : > { %4956 = vmatprep.subr.bf16.mxu1 %v15219_v12  ;;  %4997 = vmatprep.subr.bf16.mxu0 %v15406_v26 }
 0x2ff   : > { %13774 = vmatprep.mubr.msk.bf16.mxu0 %vm3840_vm0, %v16816_v22  ;;  %1206 = vrot.lane.b32.xlu1 %v14431_v3, %s14703_s30 }
 0x301   : > { %4957 = vmatpush1.bf16.msra.mxu1 %v15213_v6  ;;  %4998 = vmatpush1.bf16.msra.mxu0 %v15410_v30  ;;  %v23413_v30 = vld [vmem:[#allocation35_spill] sm:$0xff] }
 0x302   : > { %4958 = vmatprep.subr.bf16.mxu1 %v15253_v21  ;;  %4999 = vmatprep.subr.bf16.mxu0 %v15447_v40  ;;  %v23408_v40 = vld [vmem:[#allocation52_spill] sm:$0xff] }
 0x303   : > { %1576 = vrot.lane.b32.xlu1 %v14431_v3, %s14704_s23 }
 0x305   : > { %4959 = vmatpush1.bf16.msra.mxu1 %v15247_v20  ;;  %5000 = vmatpush1.bf16.msra.mxu0 %v15439_v35  ;;  %v23404_v35 = vld [vmem:[#allocation49_spill] sm:$0xff] }
 0x306   : > { %4960 = vmatprep.subr.bf16.mxu1 %v15281_v28  ;;  %5001 = vmatprep.subr.bf16.mxu0 %v15484_v23  ;;  %v23402_v23 = vld [vmem:[#allocation48_spill] sm:$0xff] }
 0x307   : > { %1946 = vrot.lane.b32.xlu1 %v14431_v3, %s14705_s21 }
 0x309   : > { %4961 = vmatpush1.bf16.msra.mxu1 %v15275_v29  ;;  %5002 = vmatpush1.bf16.msra.mxu0 %v15479_v8  ;;  %v23401_v8 = vld [vmem:[#allocation23_spill] sm:$0xff] }
 0x30a   : > { %4962 = vmatprep.subr.bf16.mxu1 %v15309_v33  ;;  %5003 = vmatprep.subr.bf16.mxu0 %v15512_v49  ;;  %v23397_v49 = vld [vmem:[#allocation18_spill] sm:$0xff] }
 0x30b   : > { %2316 = vrot.lane.b32.xlu1 %v14431_v3, %s14706_s22 }
 0x30d   : > { %4963 = vmatpush1.bf16.msra.mxu1 %v15303_v37  ;;  %5004 = vmatpush1.bf16.msra.mxu0 %v15507_v15  ;;  %v23394_v15 = vld [vmem:[#allocation45_spill] sm:$0xff] }
 0x30e   : > { %4964 = vmatprep.subr.bf16.mxu1 %v15337_v38  ;;  %5005 = vmatprep.subr.bf16.mxu0 %v15540_v31  ;;  %v23392_v31 = vld [vmem:[#allocation15_spill] sm:$0xff] }
 0x30f   : > { %2686 = vrot.lane.b32.xlu1 %v14431_v3, %s14707_s10 }
 0x311   : > { %4965 = vmatpush1.bf16.msra.mxu1 %v15331_v46  ;;  %5006 = vmatpush1.bf16.msra.mxu0 %v15535_v62  ;;  %v23393_v62 = vld [vmem:[#allocation40_spill] sm:$0xff] }
 0x312   : > { %4966 = vmatprep.subr.bf16.mxu1 %v15365_v43  ;;  %5007 = vmatprep.subr.bf16.mxu0 %v15568_v48  ;;  %v17012_v48 = vld [vmem:[%s14932_s18 + $0x24] ss:$148 sps:$4 sm:$0xff]  }
 0x313   : > { %3056 = vrot.lane.b32.xlu1 %v14431_v3, %s14708_s19 }
 0x315   : > { %4967 = vmatpush1.bf16.msra.mxu1 %v23388_v10  ;;  %5008 = vmatpush1.bf16.msra.mxu0 %v23389_v32  ;;  %v23395_v32 = vld [vmem:[#allocation44_spill] sm:$0xff] }
 0x316   : > { %4968 = vmatprep.subr.bf16.mxu1 %v23390_v41  ;;  %5009 = vmatprep.subr.bf16.mxu0 %v23391_v16  ;;  %v17019_v16 = vld [vmem:[%s14932_s18 + $0x20] ss:$148 sps:$4 sm:$0xff]  }
 0x317   : > { %23396 = vst [vmem:[#allocation14_spill] sm:$0xff] %v17019_v16  ;;  %3426 = vrot.lane.b32.xlu1 %v14431_v3, %s14709_s11  ;;  %v23406_v3 = vld [vmem:[#allocation53_spill] sm:$0xff] }
 0x319   : > { %4969 = vmatpush1.bf16.msra.mxu1 %v23392_v31  ;;  %5010 = vmatpush1.bf16.msra.mxu0 %v23393_v62  ;;  %v17024_v62 = vld [vmem:[%s14932_s18 + $0x2c] ss:$148 sps:$4 sm:$0xff]  }
 0x31a   : > { %5011 = vmatprep.subr.bf16.mxu0 %v23394_v15  ;;  %5038 = vmatprep.subr.bf16.mxu1 %v17012_v48  ;;  %23398 = vst [vmem:[#allocation16_spill] sm:$0xff] %v17024_v62  ;;  %v23399_v15 = vld [vmem:[#allocation19_spill] sm:$0xff] }
 0x31c   : > { %4985 = vmatmul.mubr.bf16.vlgmr.msra.gmra.mrb[0].mxu1 %v16953_v13 }
 0x31d   : > { %5012 = vmatpush1.bf16.msra.mxu0 %v23395_v32  ;;  %5039 = vmatpush1.bf16.msra.mxu1 %v17019_v16  ;;  %v17033_v32 = vld [vmem:[%s14932_s18 + $0x28] ss:$148 sps:$4 sm:$0xff]  }
 0x31e   : > { %5040 = vmatprep.subr.bf16.mxu1 %v23397_v49  ;;  %5081 = vmatprep.subr.bf16.mxu0 %v17024_v62  ;;  %23400 = vst [vmem:[#allocation15_spill] sm:$0xff] %v17033_v32  ;;  %v23403_v62 = vld [vmem:[#allocation22_spill] sm:$0xff]  ;;  %v23405_v49 = vld [vmem:[#allocation27_spill] sm:$0xff]  ;;  %v23412_v16 = vld [vmem:[#allocation56_spill] sm:$0xff] }
 0x31f   : > { %13775 = vmatprep.mubr.msk.bf16.mxu1 %vm3840_vm0, %v16816_v22 }
 0x320   : > { %5028 = vmatmul.mubr.bf16.vlgmr.msra.gmra.mrb[4].mxu0 %v16953_v13 }
 0x321   : > { %5041 = vmatpush1.bf16.msra.mxu1 %v23399_v15  ;;  %5082 = vmatpush1.bf16.msra.mxu0 %v17033_v32  ;;  %v23407_v15 = vld [vmem:[#allocation26_spill] sm:$0xff]  ;;  %v23409_v32 = vld [vmem:[#allocation31_spill] sm:$0xff] }
 0x322   : > { %5042 = vmatprep.subr.bf16.mxu1 %v23401_v8  ;;  %5083 = vmatprep.subr.bf16.mxu0 %v23402_v23  ;;  %v23410_v8 = vld [vmem:[#allocation57_spill] sm:$0xff]  ;;  %v23411_v23 = vld [vmem:[#allocation30_spill] sm:$0xff] }
 0x323   : > { %13776 = vmatprep.mubr.msk.bf16.mxu0 %vm3840_vm0, %v16816_v22 }
 0x325   : > { %5043 = vmatpush1.bf16.msra.mxu1 %v23403_v62  ;;  %5084 = vmatpush1.bf16.msra.mxu0 %v23404_v35  ;;  %v23414_v62 = vld [vmem:[#allocation61_spill] sm:$0xff]  ;;  %v23415_v35 = vld [vmem:[#allocation34_spill] sm:$0xff] }
 0x326   : > { %5044 = vmatprep.subr.bf16.mxu1 %v23405_v49  ;;  %5085 = vmatprep.subr.bf16.mxu0 %v23406_v3  ;;  %v23416_v3 = vld [vmem:[#allocation60_spill] sm:$0xff]  ;;  %v23449_v49 = vld [vmem:[#allocation67_spill] sm:$0xff] }
 0x329   : > { %5045 = vmatpush1.bf16.msra.mxu1 %v23407_v15  ;;  %5086 = vmatpush1.bf16.msra.mxu0 %v23408_v40  ;;  %v23417_v15 = vld [vmem:[#allocation39_spill] sm:$0xff]  ;;  %v23418_v40 = vld [vmem:[#allocation65_spill] sm:$0xff] }
 0x32a   : > { %5046 = vmatprep.subr.bf16.mxu1 %v23409_v32  ;;  %5087 = vmatprep.subr.bf16.mxu0 %v23410_v8  ;;  %v23419_v32 = vld [vmem:[#allocation38_spill] sm:$0xff]  ;;  %v23420_v8 = vld [vmem:[#allocation64_spill] sm:$0xff] }
 0x32d   : > { %5047 = vmatpush1.bf16.msra.mxu1 %v23411_v23  ;;  %5088 = vmatpush1.bf16.msra.mxu0 %v23412_v16  ;;  %v23421_v23 = vld [vmem:[#allocation43_spill] sm:$0xff]  ;;  %v23422_v16 = vld [vmem:[#allocation69_spill] sm:$0xff] }
 0x32e   : > { %5048 = vmatprep.subr.bf16.mxu1 %v23413_v30  ;;  %5089 = vmatprep.subr.bf16.mxu0 %v23414_v62  ;;  %v23423_v62 = vld [vmem:[#allocation42_spill] sm:$0xff]  ;;  %v23424_v30 = vld [vmem:[#allocation68_spill] sm:$0xff] }
 0x331   : > { %5049 = vmatpush1.bf16.msra.mxu1 %v23415_v35  ;;  %5090 = vmatpush1.bf16.msra.mxu0 %v23416_v3  ;;  %v23425_v35 = vld [vmem:[#allocation47_spill] sm:$0xff]  ;;  %v23426_v3 = vld [vmem:[#allocation73_spill] sm:$0xff] }
 0x332   : > { %5050 = vmatprep.subr.bf16.mxu1 %v23417_v15  ;;  %5091 = vmatprep.subr.bf16.mxu0 %v23418_v40  ;;  %v23427_v15 = vld [vmem:[#allocation46_spill] sm:$0xff]  ;;  %v23428_v40 = vld [vmem:[#allocation72_spill] sm:$0xff] }
 0x335   : > { %5051 = vmatpush1.bf16.msra.mxu1 %v23419_v32  ;;  %5092 = vmatpush1.bf16.msra.mxu0 %v23420_v8  ;;  %v23429_v32 = vld [vmem:[#allocation77_spill] sm:$0xff] }
 0x336   : > { %5052 = vmatprep.subr.bf16.mxu1 %v23421_v23  ;;  %5093 = vmatprep.subr.bf16.mxu0 %v23422_v16  ;;  %v17068_v8 = vld [vmem:[%s14932_s18 + $0x34] ss:$148 sps:$4 sm:$0xff]   ;;  %v23431_v16 = vld [vmem:[#allocation76_spill] sm:$0xff] }
 0x337   : > { %23430 = vst [vmem:[#allocation224_spill] sm:$0xff] %v17068_v8  ;;  %v23448_v23 = vld [vmem:[#allocation88_spill] sm:$0xff] }
 0x339   : > { %5053 = vmatpush1.bf16.msra.mxu1 %v23423_v62  ;;  %5094 = vmatpush1.bf16.msra.mxu0 %v23424_v30  ;;  %v17074_v30 = vld [vmem:[%s14932_s18 + $0x30] ss:$148 sps:$4 sm:$0xff]  }
 0x33a   : > { %5054 = vmatprep.subr.bf16.mxu1 %v23425_v35  ;;  %5095 = vmatprep.subr.bf16.mxu0 %v23426_v3  ;;  %23432 = vst [vmem:[#allocation225_spill] sm:$0xff] %v17074_v30  ;;  %v23433_v3 = vld [vmem:[#allocation50_spill] sm:$0xff]  ;;  %v23444_v62 = vld [vmem:[#allocation84_spill] sm:$0xff] }
 0x33b   : > { %v17079_v35 = vld [vmem:[%s14932_s18 + $0x3c] ss:$148 sps:$4 sm:$0xff]  }
 0x33c   : > { %23434 = vst [vmem:[#allocation226_spill] sm:$0xff] %v17079_v35 }
 0x33d   : > { %5055 = vmatpush1.bf16.msra.mxu1 %v23427_v15  ;;  %5096 = vmatpush1.bf16.msra.mxu0 %v23428_v40  ;;  %v17087_v40 = vld [vmem:[%s14932_s18 + $0x38] ss:$148 sps:$4 sm:$0xff]  }
 0x33e   : > { %5097 = vmatprep.subr.bf16.mxu0 %v23429_v32  ;;  %5124 = vmatprep.subr.bf16.mxu1 %v17068_v8  ;;  %v23435_v32 = vld [vmem:[#allocation51_spill] sm:$0xff]  ;;  %23436 = vst [vmem:[#allocation227_spill] sm:$0xff] %v17087_v40  ;;  %v23442_v15 = vld [vmem:[#allocation85_spill] sm:$0xff] }
 0x33f   : > { %v23441_v8 = vld [vmem:[#allocation59_spill] sm:$0xff] }
 0x340   : > { %5071 = vmatmul.mubr.bf16.vlgmr.msra.gmra.mrb[4].mxu1 %v16953_v13 }
 0x341   : > { %5098 = vmatpush1.bf16.msra.mxu0 %v23431_v16  ;;  %5125 = vmatpush1.bf16.msra.mxu1 %v17074_v30  ;;  %v23437_v16 = vld [vmem:[#allocation55_spill] sm:$0xff]  ;;  %v23438_v30 = vld [vmem:[#allocation80_spill] sm:$0xff] }
 0x342   : > { %5126 = vmatprep.subr.bf16.mxu1 %v23433_v3  ;;  %5167 = vmatprep.subr.bf16.mxu0 %v17079_v35  ;;  %v23439_v3 = vld [vmem:[#allocation54_spill] sm:$0xff]  ;;  %v23440_v35 = vld [vmem:[#allocation81_spill] sm:$0xff] }
 0x343   : > { %13777 = vmatprep.mubr.msk.bf16.mxu1 %vm3840_vm0, %v16816_v22 }
 0x344   : > { %5114 = vmatmul.mubr.bf16.vlgmr.msra.gmra.mrb[8].mxu0 %v16953_v13 }
 0x345   : > { %5127 = vmatpush1.bf16.msra.mxu1 %v23435_v32  ;;  %5168 = vmatpush1.bf16.msra.mxu0 %v17087_v40  ;;  %v23443_v32 = vld [vmem:[#allocation58_spill] sm:$0xff]  ;;  %v23445_v40 = vld [vmem:[#allocation63_spill] sm:$0xff] }
 0x346   : > { %5128 = vmatprep.subr.bf16.mxu1 %v23437_v16  ;;  %5169 = vmatprep.subr.bf16.mxu0 %v23438_v30  ;;  %v23446_v16 = vld [vmem:[#allocation89_spill] sm:$0xff]  ;;  %v23447_v30 = vld [vmem:[#allocation62_spill] sm:$0xff] }
 0x347   : > { %13778 = vmatprep.mubr.msk.bf16.mxu0 %vm3840_vm0, %v16816_v22 }
 0x349   : > { %5129 = vmatpush1.bf16.msra.mxu1 %v23439_v3  ;;  %5170 = vmatpush1.bf16.msra.mxu0 %v23440_v35  ;;  %v23450_v3 = vld [vmem:[#allocation93_spill] sm:$0xff]  ;;  %v23451_v35 = vld [vmem:[#allocation66_spill] sm:$0xff] }
 0x34a   : > { %5130 = vmatprep.subr.bf16.mxu1 %v23441_v8  ;;  %5171 = vmatprep.subr.bf16.mxu0 %v23442_v15  ;;  %v23452_v15 = vld [vmem:[#allocation92_spill] sm:$0xff]  ;;  %v23485_v8 = vld [vmem:[#allocation99_spill] sm:$0xff] }
 0x34d   : > { %5131 = vmatpush1.bf16.msra.mxu1 %v23443_v32  ;;  %5172 = vmatpush1.bf16.msra.mxu0 %v23444_v62  ;;  %v23453_v32 = vld [vmem:[#allocation71_spill] sm:$0xff]  ;;  %v23454_v62 = vld [vmem:[#allocation97_spill] sm:$0xff] }
 0x34e   : > { %5132 = vmatprep.subr.bf16.mxu1 %v23445_v40  ;;  %5173 = vmatprep.subr.bf16.mxu0 %v23446_v16  ;;  %v23455_v40 = vld [vmem:[#allocation70_spill] sm:$0xff]  ;;  %v23456_v16 = vld [vmem:[#allocation96_spill] sm:$0xff] }
 0x351   : > { %5133 = vmatpush1.bf16.msra.mxu1 %v23447_v30  ;;  %5174 = vmatpush1.bf16.msra.mxu0 %v23448_v23  ;;  %v23457_v30 = vld [vmem:[#allocation75_spill] sm:$0xff]  ;;  %v23458_v23 = vld [vmem:[#allocation101_spill] sm:$0xff] }
 0x352   : > { %5134 = vmatprep.subr.bf16.mxu1 %v23449_v49  ;;  %5175 = vmatprep.subr.bf16.mxu0 %v23450_v3  ;;  %v23459_v3 = vld [vmem:[#allocation74_spill] sm:$0xff]  ;;  %v23460_v49 = vld [vmem:[#allocation100_spill] sm:$0xff] }
 0x355   : > { %5135 = vmatpush1.bf16.msra.mxu1 %v23451_v35  ;;  %5176 = vmatpush1.bf16.msra.mxu0 %v23452_v15  ;;  %v23461_v35 = vld [vmem:[#allocation79_spill] sm:$0xff]  ;;  %v23462_v15 = vld [vmem:[#allocation105_spill] sm:$0xff] }
 0x356   : > { %5136 = vmatprep.subr.bf16.mxu1 %v23453_v32  ;;  %5177 = vmatprep.subr.bf16.mxu0 %v23454_v62  ;;  %v23463_v32 = vld [vmem:[#allocation78_spill] sm:$0xff]  ;;  %v23464_v62 = vld [vmem:[#allocation104_spill] sm:$0xff] }
 0x359   : > { %5137 = vmatpush1.bf16.msra.mxu1 %v23455_v40  ;;  %5178 = vmatpush1.bf16.msra.mxu0 %v23456_v16  ;;  %v23465_v40 = vld [vmem:[#allocation109_spill] sm:$0xff] }
 0x35a   : > { %5138 = vmatprep.subr.bf16.mxu1 %v23457_v30  ;;  %5179 = vmatprep.subr.bf16.mxu0 %v23458_v23  ;;  %v17122_v16 = vld [vmem:[%s14932_s18 + $0x44] ss:$148 sps:$4 sm:$0xff]  }
 0x35b   : > { %23466 = vst [vmem:[#allocation228_spill] sm:$0xff] %v17122_v16  ;;  %v23467_v23 = vld [vmem:[#allocation108_spill] sm:$0xff] }
 0x35c   : > { %v23484_v30 = vld [vmem:[#allocation120_spill] sm:$0xff] }
 0x35d   : > { %5139 = vmatpush1.bf16.msra.mxu1 %v23459_v3  ;;  %5180 = vmatpush1.bf16.msra.mxu0 %v23460_v49  ;;  %v17128_v49 = vld [vmem:[%s14932_s18 + $0x40] ss:$148 sps:$4 sm:$0xff]  }
 0x35e   : > { %5140 = vmatprep.subr.bf16.mxu1 %v23461_v35  ;;  %5181 = vmatprep.subr.bf16.mxu0 %v23462_v15  ;;  %23468 = vst [vmem:[#allocation229_spill] sm:$0xff] %v17128_v49  ;;  %v23469_v15 = vld [vmem:[#allocation82_spill] sm:$0xff]  ;;  %v23480_v3 = vld [vmem:[#allocation116_spill] sm:$0xff] }
 0x35f   : > { %v17133_v35 = vld [vmem:[%s14932_s18 + $0x4c] ss:$148 sps:$4 sm:$0xff]  }
 0x360   : > { %23470 = vst [vmem:[#allocation230_spill] sm:$0xff] %v17133_v35 }
 0x361   : > { %5141 = vmatpush1.bf16.msra.mxu1 %v23463_v32  ;;  %5182 = vmatpush1.bf16.msra.mxu0 %v23464_v62  ;;  %v17141_v62 = vld [vmem:[%s14932_s18 + $0x48] ss:$148 sps:$4 sm:$0xff]  }
 0x362   : > { %5183 = vmatprep.subr.bf16.mxu0 %v23465_v40  ;;  %5210 = vmatprep.subr.bf16.mxu1 %v17122_v16  ;;  %v23471_v40 = vld [vmem:[#allocation83_spill] sm:$0xff]  ;;  %23472 = vst [vmem:[#allocation231_spill] sm:$0xff] %v17141_v62  ;;  %v23478_v32 = vld [vmem:[#allocation117_spill] sm:$0xff] }
 0x363   : > { %v23477_v16 = vld [vmem:[#allocation91_spill] sm:$0xff] }
 0x364   : > { %5157 = vmatmul.mubr.bf16.vlgmr.msra.gmra.mrb[8].mxu1 %v16953_v13 }
 0x365   : > { %5184 = vmatpush1.bf16.msra.mxu0 %v23467_v23  ;;  %5211 = vmatpush1.bf16.msra.mxu1 %v17128_v49  ;;  %v23473_v23 = vld [vmem:[#allocation87_spill] sm:$0xff]  ;;  %v23474_v49 = vld [vmem:[#allocation112_spill] sm:$0xff] }
 0x366   : > { %5212 = vmatprep.subr.bf16.mxu1 %v23469_v15  ;;  %5253 = vmatprep.subr.bf16.mxu0 %v17133_v35  ;;  %v23475_v15 = vld [vmem:[#allocation86_spill] sm:$0xff]  ;;  %v23476_v35 = vld [vmem:[#allocation113_spill] sm:$0xff] }
 0x367   : > { %13779 = vmatprep.mubr.msk.bf16.mxu1 %vm3840_vm0, %v16816_v22 }
 0x368   : > { %5200 = vmatmul.mubr.bf16.vlgmr.msra.gmra.mrb[12].mxu0 %v16953_v13 }
 0x369   : > { %5213 = vmatpush1.bf16.msra.mxu1 %v23471_v40  ;;  %5254 = vmatpush1.bf16.msra.mxu0 %v17141_v62  ;;  %v23479_v40 = vld [vmem:[#allocation90_spill] sm:$0xff]  ;;  %v23481_v62 = vld [vmem:[#allocation95_spill] sm:$0xff] }
 0x36a   : > { %5214 = vmatprep.subr.bf16.mxu1 %v23473_v23  ;;  %5255 = vmatprep.subr.bf16.mxu0 %v23474_v49  ;;  %v23482_v23 = vld [vmem:[#allocation121_spill] sm:$0xff]  ;;  %v23483_v49 = vld [vmem:[#allocation94_spill] sm:$0xff] }
 0x36b   : > { %13780 = vmatprep.mubr.msk.bf16.mxu0 %vm3840_vm0, %v16816_v22 }
 0x36d   : > { %5215 = vmatpush1.bf16.msra.mxu1 %v23475_v15  ;;  %5256 = vmatpush1.bf16.msra.mxu0 %v23476_v35  ;;  %v23486_v15 = vld [vmem:[#allocation125_spill] sm:$0xff]  ;;  %v23487_v35 = vld [vmem:[#allocation98_spill] sm:$0xff] }
 0x36e   : > { %5216 = vmatprep.subr.bf16.mxu1 %v23477_v16  ;;  %5257 = vmatprep.subr.bf16.mxu0 %v23478_v32  ;;  %v23488_v32 = vld [vmem:[#allocation124_spill] sm:$0xff] }
 0x371   : > { %5217 = vmatpush1.bf16.msra.mxu1 %v23479_v40  ;;  %5258 = vmatpush1.bf16.msra.mxu0 %v23480_v3  ;;  %v23489_v40 = vld [vmem:[#allocation103_spill] sm:$0xff]  ;;  %v23490_v3 = vld [vmem:[#allocation129_spill] sm:$0xff] }
 0x372   : > { %5218 = vmatprep.subr.bf16.mxu1 %v23481_v62  ;;  %5259 = vmatprep.subr.bf16.mxu0 %v23482_v23  ;;  %v23491_v62 = vld [vmem:[#allocation102_spill] sm:$0xff]  ;;  %v23492_v23 = vld [vmem:[#allocation128_spill] sm:$0xff] }
 0x375   : > { %5219 = vmatpush1.bf16.msra.mxu1 %v23483_v49  ;;  %5260 = vmatpush1.bf16.msra.mxu0 %v23484_v30  ;;  %v23493_v49 = vld [vmem:[#allocation107_spill] sm:$0xff]  ;;  %v23494_v30 = vld [vmem:[#allocation133_spill] sm:$0xff] }
 0x376   : > { %5220 = vmatprep.subr.bf16.mxu1 %v23485_v8  ;;  %5261 = vmatprep.subr.bf16.mxu0 %v23486_v15  ;;  %v23495_v15 = vld [vmem:[#allocation106_spill] sm:$0xff]  ;;  %v23496_v8 = vld [vmem:[#allocation132_spill] sm:$0xff] }
 0x379   : > { %5221 = vmatpush1.bf16.msra.mxu1 %v23487_v35  ;;  %5262 = vmatpush1.bf16.msra.mxu0 %v23488_v32  ;;  %v23497_v35 = vld [vmem:[#allocation111_spill] sm:$0xff]  ;;  %v23498_v32 = vld [vmem:[#allocation137_spill] sm:$0xff] }
 0x37a   : > { %5222 = vmatprep.subr.bf16.mxu1 %v23489_v40  ;;  %5263 = vmatprep.subr.bf16.mxu0 %v23490_v3  ;;  %v23499_v40 = vld [vmem:[#allocation110_spill] sm:$0xff]  ;;  %v23500_v3 = vld [vmem:[#allocation136_spill] sm:$0xff] }
 0x37d   : > { %5223 = vmatpush1.bf16.msra.mxu1 %v23491_v62  ;;  %5264 = vmatpush1.bf16.msra.mxu0 %v23492_v23  ;;  %v17176_v23 = vld [vmem:[%s14932_s18 + $0x54] ss:$148 sps:$4 sm:$0xff]  }
 0x37e   : > { %5224 = vmatprep.subr.bf16.mxu1 %v23493_v49  ;;  %5265 = vmatprep.subr.bf16.mxu0 %v23494_v30  ;;  %23501 = vst [vmem:[#allocation91_spill] sm:$0xff] %v17176_v23  ;;  %v23502_v30 = vld [vmem:[#allocation140_spill] sm:$0xff]  ;;  %v23520_v62 = vld [vmem:[#allocation131_spill] sm:$0xff] }
 0x37f   : > { %v23519_v49 = vld [vmem:[#allocation152_spill] sm:$0xff] }
 0x381   : > { %5225 = vmatpush1.bf16.msra.mxu1 %v23495_v15  ;;  %5266 = vmatpush1.bf16.msra.mxu0 %v23496_v8  ;;  %v17182_v8 = vld [vmem:[%s14932_s18 + $0x50] ss:$148 sps:$4 sm:$0xff]  }
 0x382   : > { %5226 = vmatprep.subr.bf16.mxu1 %v23497_v35  ;;  %5267 = vmatprep.subr.bf16.mxu0 %v23498_v32  ;;  %23503 = vst [vmem:[#allocation232_spill] sm:$0xff] %v17182_v8  ;;  %v23504_v32 = vld [vmem:[#allocation114_spill] sm:$0xff]  ;;  %v23515_v15 = vld [vmem:[#allocation148_spill] sm:$0xff] }
 0x383   : > { %v17187_v35 = vld [vmem:[%s14932_s18 + $0x5c] ss:$148 sps:$4 sm:$0xff]  }
 0x384   : > { %23505 = vst [vmem:[#allocation233_spill] sm:$0xff] %v17187_v35 }
 0x385   : > { %5227 = vmatpush1.bf16.msra.mxu1 %v23499_v40  ;;  %5268 = vmatpush1.bf16.msra.mxu0 %v23500_v3  ;;  %v17195_v3 = vld [vmem:[%s14932_s18 + $0x58] ss:$148 sps:$4 sm:$0xff]  }
 0x386   : > { %5269 = vmatprep.subr.bf16.mxu0 %v16367_v2  ;;  %5296 = vmatprep.subr.bf16.mxu1 %v17176_v23  ;;  %v23506_v2 = vld [vmem:[#allocation115_spill] sm:$0xff]  ;;  %23507 = vst [vmem:[#allocation234_spill] sm:$0xff] %v17195_v3  ;;  %v23513_v40 = vld [vmem:[#allocation149_spill] sm:$0xff] }
 0x387   : > { %v23512_v23 = vld [vmem:[#allocation123_spill] sm:$0xff] }
 0x388   : > { %5243 = vmatmul.mubr.bf16.vlgmr.msra.gmra.mrb[12].mxu1 %v16953_v13 }
 0x389   : > { %5270 = vmatpush1.bf16.msra.mxu0 %v23502_v30  ;;  %5297 = vmatpush1.bf16.msra.mxu1 %v17182_v8  ;;  %v23508_v30 = vld [vmem:[#allocation119_spill] sm:$0xff]  ;;  %v23509_v8 = vld [vmem:[#allocation144_spill] sm:$0xff] }
 0x38a   : > { %5298 = vmatprep.subr.bf16.mxu1 %v23504_v32  ;;  %5339 = vmatprep.subr.bf16.mxu0 %v17187_v35  ;;  %v23510_v32 = vld [vmem:[#allocation118_spill] sm:$0xff]  ;;  %v23511_v35 = vld [vmem:[#allocation145_spill] sm:$0xff] }
 0x38b   : > { %13781 = vmatprep.mubr.msk.bf16.mxu1 %vm3840_vm0, %v16816_v22 }
 0x38c   : > { %5286 = vmatmul.mubr.bf16.vlgmr.msra.gmra.mrb[16].mxu0 %v16953_v13 }
 0x38d   : > { %5299 = vmatpush1.bf16.msra.mxu1 %v23506_v2  ;;  %5340 = vmatpush1.bf16.msra.mxu0 %v17195_v3  ;;  %v23514_v2 = vld [vmem:[#allocation122_spill] sm:$0xff]  ;;  %v23516_v3 = vld [vmem:[#allocation127_spill] sm:$0xff] }
 0x38e   : > { %5300 = vmatprep.subr.bf16.mxu1 %v23508_v30  ;;  %5341 = vmatprep.subr.bf16.mxu0 %v23509_v8  ;;  %v23517_v30 = vld [vmem:[#allocation153_spill] sm:$0xff]  ;;  %v23518_v8 = vld [vmem:[#allocation126_spill] sm:$0xff] }
 0x38f   : > { %13782 = vmatprep.mubr.msk.bf16.mxu0 %vm3840_vm0, %v16816_v22 }
 0x391   : > { %5301 = vmatpush1.bf16.msra.mxu1 %v23510_v32  ;;  %5342 = vmatpush1.bf16.msra.mxu0 %v23511_v35  ;;  %v23521_v32 = vld [vmem:[#allocation157_spill] sm:$0xff]  ;;  %v23522_v35 = vld [vmem:[#allocation130_spill] sm:$0xff] }
 0x392   : > { %5302 = vmatprep.subr.bf16.mxu1 %v23512_v23  ;;  %5343 = vmatprep.subr.bf16.mxu0 %v23513_v40  ;;  %v23523_v40 = vld [vmem:[#allocation156_spill] sm:$0xff] }
 0x395   : > { %5303 = vmatpush1.bf16.msra.mxu1 %v23514_v2  ;;  %5344 = vmatpush1.bf16.msra.mxu0 %v23515_v15  ;;  %v23524_v2 = vld [vmem:[#allocation135_spill] sm:$0xff]  ;;  %v23525_v15 = vld [vmem:[#allocation161_spill] sm:$0xff] }
 0x396   : > { %5304 = vmatprep.subr.bf16.mxu1 %v23516_v3  ;;  %5345 = vmatprep.subr.bf16.mxu0 %v23517_v30  ;;  %v23526_v3 = vld [vmem:[#allocation134_spill] sm:$0xff]  ;;  %v23527_v30 = vld [vmem:[#allocation160_spill] sm:$0xff] }
 0x399   : > { %5305 = vmatpush1.bf16.msra.mxu1 %v23518_v8  ;;  %5346 = vmatpush1.bf16.msra.mxu0 %v23519_v49  ;;  %v23528_v8 = vld [vmem:[#allocation139_spill] sm:$0xff]  ;;  %v23529_v49 = vld [vmem:[#allocation165_spill] sm:$0xff] }
 0x39a   : > { %5306 = vmatprep.subr.bf16.mxu1 %v23520_v62  ;;  %5347 = vmatprep.subr.bf16.mxu0 %v23521_v32  ;;  %v23530_v62 = vld [vmem:[#allocation138_spill] sm:$0xff]  ;;  %v23531_v32 = vld [vmem:[#allocation164_spill] sm:$0xff] }
 0x39d   : > { %5307 = vmatpush1.bf16.msra.mxu1 %v23522_v35  ;;  %5348 = vmatpush1.bf16.msra.mxu0 %v23523_v40  ;;  %v23532_v35 = vld [vmem:[#allocation143_spill] sm:$0xff]  ;;  %v23533_v40 = vld [vmem:[#allocation169_spill] sm:$0xff] }
 0x39e   : > { %5308 = vmatprep.subr.bf16.mxu1 %v23524_v2  ;;  %5349 = vmatprep.subr.bf16.mxu0 %v23525_v15  ;;  %v23534_v2 = vld [vmem:[#allocation142_spill] sm:$0xff]  ;;  %v23535_v15 = vld [vmem:[#allocation168_spill] sm:$0xff] }
 0x3a1   : > { %5309 = vmatpush1.bf16.msra.mxu1 %v23526_v3  ;;  %5350 = vmatpush1.bf16.msra.mxu0 %v23527_v30  ;;  %v17230_v3 = vld [vmem:[%s14932_s18 + $0x64] ss:$148 sps:$4 sm:$0xff]   ;;  %v17236_v30 = vld [vmem:[%s14932_s18 + $0x60] ss:$148 sps:$4 sm:$0xff]  }
 0x3a2   : > { %5310 = vmatprep.subr.bf16.mxu1 %v23528_v8  ;;  %5351 = vmatprep.subr.bf16.mxu0 %v23529_v49  ;;  %23536 = vst [vmem:[#allocation123_spill] sm:$0xff] %v17230_v3  ;;  %v23537_v49 = vld [vmem:[#allocation172_spill] sm:$0xff]  ;;  %23538 = vst [vmem:[#allocation139_spill] sm:$0xff] %v17236_v30 }
 0x3a5   : > { %5311 = vmatpush1.bf16.msra.mxu1 %v23530_v62  ;;  %5352 = vmatpush1.bf16.msra.mxu0 %v23531_v32  ;;  %v23539_v32 = vld [vmem:[#allocation146_spill] sm:$0xff] }
 0x3a6   : > { %5312 = vmatprep.subr.bf16.mxu1 %v23532_v35  ;;  %5353 = vmatprep.subr.bf16.mxu0 %v23533_v40  ;;  %v23540_v40 = vld [vmem:[#allocation173_spill] sm:$0xff] }
 0x3a9   : > { %5313 = vmatpush1.bf16.msra.mxu1 %v23534_v2  ;;  %5354 = vmatpush1.bf16.msra.mxu0 %v23535_v15  ;;  %v23542_v15 = vld [vmem:[#allocation151_spill] sm:$0xff] }
 0x3aa   : > { %5355 = vmatprep.subr.bf16.mxu0 %v16606_v5  ;;  %5382 = vmatprep.subr.bf16.mxu1 %v17230_v3  ;;  %v23541_v5 = vld [vmem:[#allocation147_spill] sm:$0xff]  ;;  %v23551_v3 = vld [vmem:[#allocation185_spill] sm:$0xff] }
 0x3ab   : > { %v23552_v2 = vld [vmem:[#allocation163_spill] sm:$0xff] }
 0x3ac   : > { %5329 = vmatmul.mubr.bf16.vlgmr.msra.gmra.mrb[16].mxu1 %v16953_v13 }
 0x3ad   : > { %5356 = vmatpush1.bf16.msra.mxu0 %v23537_v49  ;;  %5383 = vmatpush1.bf16.msra.mxu1 %v17236_v30  ;;  %v23543_v49 = vld [vmem:[#allocation150_spill] sm:$0xff] }
 0x3ae   : > { %5384 = vmatprep.subr.bf16.mxu1 %v23539_v32  ;;  %5425 = vmatprep.subr.bf16.mxu0 %v23540_v40  ;;  %v23544_v40 = vld [vmem:[#allocation155_spill] sm:$0xff]  ;;  %v23545_v32 = vld [vmem:[#allocation182_spill] sm:$0xff] }
 0x3af   : > { %13783 = vmatprep.mubr.msk.bf16.mxu1 %vm3840_vm0, %v16816_v22  ;;  %v23546_v30 = vld [vmem:[#allocation154_spill] sm:$0xff] }
 0x3b0   : > { %5372 = vmatmul.mubr.bf16.vlgmr.msra.gmra.mrb[20].mxu0 %v16953_v13 }
 0x3b1   : > { %5385 = vmatpush1.bf16.msra.mxu1 %v23541_v5  ;;  %5426 = vmatpush1.bf16.msra.mxu0 %v16611_v9  ;;  %v23547_v5 = vld [vmem:[#allocation181_spill] sm:$0xff]  ;;  %v23548_v9 = vld [vmem:[#allocation159_spill] sm:$0xff] }
 0x3b2   : > { %5386 = vmatprep.subr.bf16.mxu1 %v23542_v15  ;;  %5427 = vmatprep.subr.bf16.mxu0 %v16639_v52  ;;  %v23549_v15 = vld [vmem:[#allocation186_spill] sm:$0xff] }
 0x3b3   : > { %13784 = vmatprep.mubr.msk.bf16.mxu0 %vm3840_vm0, %v16816_v22  ;;  %v23550_v52 = vld [vmem:[#allocation158_spill] sm:$0xff] }
 0x3b5   : > { %5387 = vmatpush1.bf16.msra.mxu1 %v23543_v49  ;;  %5428 = vmatpush1.bf16.msra.mxu0 %v16632_v18  ;;  %v23553_v49 = vld [vmem:[#allocation190_spill] sm:$0xff] }
 0x3b6   : > { %5388 = vmatprep.subr.bf16.mxu1 %v23544_v40  ;;  %5429 = vmatprep.subr.bf16.mxu0 %v23545_v32  ;;  %v23554_v18 = vld [vmem:[#allocation162_spill] sm:$0xff]  ;;  %v23555_v32 = vld [vmem:[#allocation189_spill] sm:$0xff] }
 0x3b9   : > { %5389 = vmatpush1.bf16.msra.mxu1 %v23546_v30  ;;  %5430 = vmatpush1.bf16.msra.mxu0 %v23547_v5  ;;  %v23556_v30 = vld [vmem:[#allocation167_spill] sm:$0xff]  ;;  %v23557_v5 = vld [vmem:[#allocation194_spill] sm:$0xff] }
 0x3ba   : > { %5390 = vmatprep.subr.bf16.mxu1 %v23548_v9  ;;  %5431 = vmatprep.subr.bf16.mxu0 %v23549_v15  ;;  %v23558_v9 = vld [vmem:[#allocation166_spill] sm:$0xff]  ;;  %v23559_v15 = vld [vmem:[#allocation193_spill] sm:$0xff] }
 0x3bd   : > { %5391 = vmatpush1.bf16.msra.mxu1 %v23550_v52  ;;  %5432 = vmatpush1.bf16.msra.mxu0 %v23551_v3  ;;  %v23560_v52 = vld [vmem:[#allocation171_spill] sm:$0xff]  ;;  %v23561_v3 = vld [vmem:[#allocation198_spill] sm:$0xff] }
 0x3be   : > { %5392 = vmatprep.subr.bf16.mxu1 %v23552_v2  ;;  %5433 = vmatprep.subr.bf16.mxu0 %v23553_v49  ;;  %v23562_v49 = vld [vmem:[#allocation170_spill] sm:$0xff]  ;;  %v23563_v2 = vld [vmem:[#allocation197_spill] sm:$0xff] }
 0x3c1   : > { %5393 = vmatpush1.bf16.msra.mxu1 %v23554_v18  ;;  %5434 = vmatpush1.bf16.msra.mxu0 %v23555_v32  ;;  %v23564_v18 = vld [vmem:[#allocation176_spill] sm:$0xff]  ;;  %v23565_v32 = vld [vmem:[#allocation202_spill] sm:$0xff] }
 0x3c2   : > { %5394 = vmatprep.subr.bf16.mxu1 %v23556_v30  ;;  %5435 = vmatprep.subr.bf16.mxu0 %v23557_v5  ;;  %v23566_v30 = vld [vmem:[#allocation175_spill] sm:$0xff]  ;;  %v23567_v5 = vld [vmem:[#allocation201_spill] sm:$0xff] }
 0x3c5   : > { %5395 = vmatpush1.bf16.msra.mxu1 %v23558_v9  ;;  %5436 = vmatpush1.bf16.msra.mxu0 %v23559_v15  ;;  %v23568_v9 = vld [vmem:[#allocation206_spill] sm:$0xff] }
 0x3c6   : > { %5396 = vmatprep.subr.bf16.mxu1 %v23560_v52  ;;  %5437 = vmatprep.subr.bf16.mxu0 %v23561_v3  ;;  %v17278_v15 = vld [vmem:[%s14932_s18 + $0x74] ss:$148 sps:$4 sm:$0xff]  }
 0x3c7   : > { %v23569_v3 = vld [vmem:[#allocation205_spill] sm:$0xff] }
 0x3c9   : > { %5397 = vmatpush1.bf16.msra.mxu1 %v23562_v49  ;;  %5438 = vmatpush1.bf16.msra.mxu0 %v23563_v2  ;;  %v17284_v2 = vld [vmem:[%s14932_s18 + $0x70] ss:$148 sps:$4 sm:$0xff]  }
 0x3ca   : > { %5398 = vmatprep.subr.bf16.mxu1 %v23564_v18  ;;  %5439 = vmatprep.subr.bf16.mxu0 %v23565_v32  ;;  %v23570_v32 = vld [vmem:[#allocation180_spill] sm:$0xff] }
 0x3cb   : > { %v17289_v18 = vld [vmem:[%s14932_s18 + $0x7c] ss:$148 sps:$4 sm:$0xff]  }
 0x3cc   : > { %23571 = vst [vmem:[#allocation138_spill] sm:$0xff] %v17289_v18 }
 0x3cd   : > { %5399 = vmatpush1.bf16.msra.mxu1 %v23566_v30  ;;  %5440 = vmatpush1.bf16.msra.mxu0 %v23567_v5  ;;  %v17297_v5 = vld [vmem:[%s14932_s18 + $0x78] ss:$148 sps:$4 sm:$0xff]  }
 0x3ce   : > { %5441 = vmatprep.subr.bf16.mxu0 %v23568_v9  ;;  %5468 = vmatprep.subr.bf16.mxu1 %v17278_v15  ;;  %v23572_v9 = vld [vmem:[#allocation179_spill] sm:$0xff]  ;;  %23573 = vst [vmem:[#allocation143_spill] sm:$0xff] %v17297_v5 }
 0x3d0   : > { %5415 = vmatmul.mubr.bf16.vlgmr.msra.gmra.mrb[20].mxu1 %v16953_v13 }
 0x3d1   : > { %5442 = vmatpush1.bf16.msra.mxu0 %v23569_v3  ;;  %5469 = vmatpush1.bf16.msra.mxu1 %v17284_v2  ;;  %v23574_v3 = vld [vmem:[#allocation184_spill] sm:$0xff] }
 0x3d2   : > { %5470 = vmatprep.subr.bf16.mxu1 %v23570_v32  ;;  %5511 = vmatprep.subr.bf16.mxu0 %v17289_v18  ;;  %v23575_v32 = vld [vmem:[#allocation183_spill] sm:$0xff]  ;;  %v23576_v18 = vld [vmem:[#allocation188_spill] sm:$0xff] }
 0x3d3   : > { %13785 = vmatprep.mubr.msk.bf16.mxu1 %vm3840_vm0, %v16816_v22 }
 0x3d4   : > { %5458 = vmatmul.mubr.bf16.vlgmr.msra.gmra.mrb[24].mxu0 %v16953_v13 }
 0x3d5   : > { %5471 = vmatpush1.bf16.msra.mxu1 %v23572_v9  ;;  %5512 = vmatpush1.bf16.msra.mxu0 %v17297_v5  ;;  %v23577_v9 = vld [vmem:[#allocation187_spill] sm:$0xff]  ;;  %v23578_v5 = vld [vmem:[#allocation192_spill] sm:$0xff] }
 0x3d6   : > { %5472 = vmatprep.subr.bf16.mxu1 %v23574_v3  ;;  %5513 = vmatprep.subr.bf16.mxu0 %v16820_v0  ;;  %v23579_v0 = vld [vmem:[#allocation191_spill] sm:$0xff]  ;;  %v23580_v3 = vld [vmem:[#allocation196_spill] sm:$0xff] }
 0x3d7   : > { %13786 = vmatprep.mubr.msk.bf16.mxu0 %vm3840_vm0, %v16816_v22 }
 0x3d9   : > { %5473 = vmatpush1.bf16.msra.mxu1 %v23575_v32  ;;  %5514 = vmatpush1.bf16.msra.mxu0 %v16813_v11  ;;  %v833_v11 = vpop.permute.xlu0 %832 }
 0x3da   : > { %5474 = vmatprep.subr.bf16.mxu1 %v23576_v18  ;;  %5515 = vmatprep.subr.bf16.mxu0 %v16839_v45  ;;  %v17316_v18 = vpop.permute.xlu1 %834  ;;  %v23582_v45 = vld [vmem:[#allocation195_spill] sm:$0xff] }
 0x3db   : > { %23581 = vst [vmem:[#allocation173_spill] sm:$0xff] %v17316_v18 }
 0x3dd   : > { %5475 = vmatpush1.bf16.msra.mxu1 %v23577_v9  ;;  %5516 = vmatpush1.bf16.msra.mxu0 %v16833_v4  ;;  %v23583_v4 = vld [vmem:[#allocation200_spill] sm:$0xff] }
 0x3de   : > { %5476 = vmatprep.subr.bf16.mxu1 %v23578_v5  ;;  %5517 = vmatprep.subr.bf16.mxu0 %v16855_v58  ;;  %v23584_v58 = vld [vmem:[#allocation199_spill] sm:$0xff] }
 0x3e1   : > { %5477 = vmatpush1.bf16.msra.mxu1 %v23579_v0  ;;  %5518 = vmatpush1.bf16.msra.mxu0 %v16851_v44  ;;  %v1203_v44 = vpop.permute.xlu0 %1202  ;;  %v23587_v0 = vld [vmem:[#allocation203_spill] sm:$0xff] }
 0x3e2   : > { %5478 = vmatprep.subr.bf16.mxu1 %v23580_v3  ;;  %5519 = vmatprep.subr.bf16.mxu0 %v16871_v7  ;;  %v17324_v3 = vpop.permute.xlu1 %1204  ;;  %v23586_v7 = vld [vmem:[#allocation204_spill] sm:$0xff] }
 0x3e3   : > { %23585 = vst [vmem:[#allocation155_spill] sm:$0xff] %v17324_v3 }
 0x3e5   : > { %5479 = vmatpush1.bf16.msra.mxu1 %v23582_v45  ;;  %5520 = vmatpush1.bf16.msra.mxu0 %v16867_v1  ;;  %v23588_v1 = vld [vmem:[#allocation207_spill] sm:$0xff] }
 0x3e6   : > { %5480 = vmatprep.subr.bf16.mxu1 %v23583_v4  ;;  %5521 = vmatprep.subr.bf16.mxu0 %v16887_v19  ;;  %v17333_v19 = vld [vmem:[%s14932_s18 + $0x84] ss:$148 sps:$4 sm:$0xff]   ;;  %v17338_v4 = vpop.permute.xlu1 %1574 }
 0x3e9   : > { %5481 = vmatpush1.bf16.msra.mxu1 %v23584_v58  ;;  %5522 = vmatpush1.bf16.msra.mxu0 %v16883_v17  ;;  %v3539_v17 = vld [vmem:[%s22309_s2] sm:$0xff]  ;;  %v1573_v58 = vpop.permute.xlu0 %1572 }
 0x3ea   : > { %5482 = vmatprep.subr.bf16.mxu1 %v23586_v7  ;;  %5523 = vmatprep.subr.bf16.mxu0 %v16903_v53  ;;  %v17343_v53 = vld [vmem:[%s14932_s18 + $0x80] ss:$148 sps:$4 sm:$0xff]  }
 0x3eb   : > { %4534 = vperm.xlu0 %14355, %v3539_v17  }
 0x3ed   : > { %5483 = vmatpush1.bf16.msra.mxu1 %v23587_v0  ;;  %5524 = vmatpush1.bf16.msra.mxu0 %v16899_v25  ;;  %v1943_v17 = vpop.permute.xlu0 %1942  ;;  %v17354_v25 = vpop.permute.xlu1 %1944 }
 0x3ee   : > { %5484 = vmatprep.subr.bf16.mxu1 %v23588_v1  ;;  %5525 = vmatprep.subr.bf16.mxu0 %v16919_v57  ;;  %v17349_v57 = vsel %vm840_vm1, %v833_v11, %v17316_v18  ;;  %v17364_v18 = vld [vmem:[#allocation7 + $0x24] ss:$8 sps:$4 sm:$0xff]  }
 0x3f1   : > { %5485 = vmatpush1.bf16.msra.mxu1 %v16795_v54  ;;  %5526 = vmatpush1.bf16.msra.mxu0 %v16915_v34 }
 0x3f2   : > { %5527 = vmatprep.subr.bf16.mxu0 %v16936_v24  ;;  %5554 = vmatprep.subr.bf16.mxu1 %v17333_v19  ;;  %v17360_v24 = vsel %vm1210_vm2, %v1203_v44, %v17324_v3  ;;  %v17381_v3 = vpop.permute.xlu1 %2314 }
 0x3f4   : > { %5501 = vmatmul.mubr.bf16.vlgmr.msra.gmra.mrb[24].mxu1 %v16953_v13 }
 0x3f5   : > { %5528 = vmatpush1.bf16.msra.mxu0 %v16931_v27  ;;  %5555 = vmatpush1.bf16.msra.mxu1 %v17343_v53  ;;  %v17369_v27 = vsel %vm840_vm1, %v16808_v36, %v833_v11  ;;  %v23589_v36 = vld [vmem:[#allocation210_spill] sm:$0xff] }
 0x3f6   : > { %5556 = vmatprep.subr.bf16.mxu1 %v17349_v57  ;;  %5964 = vmatprep.subr.bf16.mxu0 %v16949_v51  ;;  %v17377_v51 = vsel %vm1580_vm3, %v1573_v58, %v17338_v4  ;;  %v17385_v11 = vsel %vm1210_vm2, %v23589_v36, %v1203_v44  ;;  %v17401_v36 = vpop.permute.xlu1 %2684 }
 0x3f7   : > { %13787 = vmatprep.mubr.msk.bf16.mxu1 %vm3840_vm0, %v16816_v22  ;;  %v2313_v22 = vpop.permute.xlu0 %2312 }
 0x3f8   : > { %5544 = vmatmul.mubr.bf16.vlgmr.msra.gmra.mrb[28].mxu0 %v16953_v13 }
 0x3f9   : > { %5557 = vmatpush1.bf16.msra.mxu1 %v17369_v27  ;;  %5965 = vmatpush1.bf16.msra.mxu0 %v16957_v47  ;;  %v17397_v47 = vsel %vm1580_vm3, %v16846_v39, %v1573_v58  ;;  %v17425_v58 = vsel %vm2320_vm5, %v16878_v56, %v2313_v22 }
 0x3fa   : > { %5966 = vmatprep.subr.bf16.mxu0 %v15185_v60  ;;  %5558 = vmatprep.subr.bf16.mxu1 %v17360_v24  ;;  %v17393_v60 = vsel %vm1950_vm4, %v1943_v17, %v17354_v25  ;;  %v17421_v39 = vpop.permute.xlu1 %3054 }
 0x3fb   : > { %13790 = vmatprep.mubr.msk.bf16.mxu0 %vm3840_vm0, %v17364_v18  ;;  %v2683_v44 = vpop.permute.xlu0 %2682 }
 0x3fd   : > { %5559 = vmatpush1.bf16.msra.mxu1 %v17385_v11  ;;  %5967 = vmatpush1.bf16.msra.mxu0 %v15177_v59  ;;  %v17407_v59 = vsel %vm2320_vm5, %v2313_v22, %v17381_v3  ;;  %v23602_v22 = vld [vmem:[#allocation28_spill] sm:$0xff] }
 0x3fe   : > { %5968 = vmatprep.subr.bf16.mxu0 %v15219_v12  ;;  %5560 = vmatprep.subr.bf16.mxu1 %v17377_v51  ;;  %v17411_v12 = vsel %vm1950_vm4, %v16862_v61, %v1943_v17  ;;  %v17441_v56 = vpop.permute.xlu1 %3424  ;;  %v14439_v17 = vld [vmem:[%s14932_s18 + $0x90] ss:$148 sps:$4 sm:$0xff]  }
 0x401   : > { %5561 = vmatpush1.bf16.msra.mxu1 %v17397_v47  ;;  %5969 = vmatpush1.bf16.msra.mxu0 %v15213_v6  ;;  %v17419_v6 = vsel %vm2690_vm6, %v2683_v44, %v17401_v36 }
 0x402   : > { %5970 = vmatprep.subr.bf16.mxu0 %v15253_v21  ;;  %5562 = vmatprep.subr.bf16.mxu1 %v17393_v60  ;;  %v3053_v21 = vpop.permute.xlu0 %3052 }
 0x405   : > { %5563 = vmatpush1.bf16.msra.mxu1 %v17411_v12  ;;  %5971 = vmatpush1.bf16.msra.mxu0 %v15247_v20  ;;  %v17433_v20 = vsel %vm3060_vm7, %v3053_v21, %v17421_v39 }
 0x406   : > { %5972 = vmatprep.subr.bf16.mxu0 %v15281_v28  ;;  %5564 = vmatprep.subr.bf16.mxu1 %v17407_v59  ;;  %v17437_v28 = vsel %vm2690_vm6, %v16894_v55, %v2683_v44  ;;  %v3423_v61 = vpop.permute.xlu0 %3422  ;;  %v23592_v55 = vld [vmem:[#allocation21_spill] sm:$0xff]  ;;  %v23603_v44 = vld [vmem:[#allocation26_spill] sm:$0xff] }
 0x409   : > { %5565 = vmatpush1.bf16.msra.mxu1 %v17425_v58  ;;  %5973 = vmatpush1.bf16.msra.mxu0 %v15275_v29  ;;  %v17447_v29 = vsel %vm3430_vm8, %v3423_v61, %v17441_v56 }
 0x40a   : > { %5974 = vmatprep.subr.bf16.mxu0 %v15309_v33  ;;  %5566 = vmatprep.subr.bf16.mxu1 %v17419_v6  ;;  %v17451_v33 = vsel %vm3060_vm7, %v16910_v63, %v3053_v21  ;;  %v23593_v63 = vld [vmem:[#allocation18_spill] sm:$0xff]  ;;  %v23604_v21 = vld [vmem:[#allocation33_spill] sm:$0xff] }
 0x40d   : > { %5567 = vmatpush1.bf16.msra.mxu1 %v17437_v28  ;;  %5975 = vmatpush1.bf16.msra.mxu0 %v15303_v37  ;;  %v17459_v37 = vsel %vm3430_vm8, %v16926_v42, %v3423_v61  ;;  %v23597_v42 = vld [vmem:[#allocation23_spill] sm:$0xff] }
 0x40e   : > { %5976 = vmatprep.subr.bf16.mxu0 %v15337_v38  ;;  %5568 = vmatprep.subr.bf16.mxu1 %v17433_v20  ;;  %v17466_v38 = vld [vmem:[#allocation7 + $0x20] ss:$8 sps:$4 sm:$0xff]  }
 0x40f   : > { %v23605_v61 = vld [vmem:[#allocation31_spill] sm:$0xff] }
 0x411   : > { %5569 = vmatpush1.bf16.msra.mxu1 %v17451_v33  ;;  %5977 = vmatpush1.bf16.msra.mxu0 %v15331_v46  ;;  %v23590_v46 = vld [vmem:[#allocation17_spill] sm:$0xff] }
 0x412   : > { %5978 = vmatprep.subr.bf16.mxu0 %v15365_v43  ;;  %5570 = vmatprep.subr.bf16.mxu1 %v17447_v29  ;;  %v23591_v43 = vld [vmem:[#allocation14_spill] sm:$0xff] }
 0x415   : > { %5571 = vmatpush1.bf16.msra.mxu1 %v17459_v37  ;;  %5979 = vmatpush1.bf16.msra.mxu0 %v23388_v10  ;;  %v23600_v10 = vld [vmem:[#allocation29_spill] sm:$0xff] }
 0x416   : > { %5980 = vmatprep.subr.bf16.mxu0 %v23390_v41  ;;  %6007 = vmatprep.subr.bf16.mxu1 %v16962_v50  ;;  %v23598_v50 = vld [vmem:[#allocation24_spill] sm:$0xff]  ;;  %v23601_v41 = vld [vmem:[#allocation27_spill] sm:$0xff] }
 0x418   : > { %5587 = vmatmul.mubr.bf16.vlgmr.msra.gmra.mrb[28].mxu1 %v16953_v13  ;;  %v14438_v13 = vld [vmem:[%s14932_s18 + $0x90] ss:$148 sps:$4 sm:$0xff]  }
 0x419   : > { %5981 = vmatpush1.bf16.msra.mxu0 %v23392_v31  ;;  %6008 = vmatpush1.bf16.msra.mxu1 %v16970_v14  ;;  %v23596_v31 = vld [vmem:[#allocation25_spill] sm:$0xff]  ;;  %v23599_v14 = vld [vmem:[#allocation22_spill] sm:$0xff] }
 0x41a   : > { %6009 = vmatprep.subr.bf16.mxu1 %v15406_v26  ;;  %6050 = vmatprep.subr.bf16.mxu0 %v17012_v48  ;;  %v23594_v26 = vld [vmem:[#allocation20_spill] sm:$0xff]  ;;  %v23595_v48 = vld [vmem:[#allocation19_spill] sm:$0xff] }
 0x41b   : > { %13791 = vmatprep.mubr.msk.bf16.mxu1 %vm3840_vm0, %v17364_v18  ;;  %838 = vrot.lane.b32.xlu0 %v14438_v13, %s14702_s9  ;;  %v23612_v13 = vld [vmem:[#allocation41_spill] sm:$0xff] }
 0x41c   : > { %5997 = vmatmul.mubr.bf16.vlgmr.msra.gmra.mrb[0].mxu0 %v17466_v38 }
 0x41d   : > { %6010 = vmatpush1.bf16.msra.mxu1 %v23590_v46  ;;  %6051 = vmatpush1.bf16.msra.mxu0 %v23591_v43  ;;  %v14440_v46 = vld [vmem:[%s14932_s18 + $0x90] ss:$148 sps:$4 sm:$0xff]  }
 0x41e   : > { %6011 = vmatprep.subr.bf16.mxu1 %v23592_v55  ;;  %6052 = vmatprep.subr.bf16.mxu0 %v23593_v63  ;;  %v23606_v43 = vld [vmem:[#allocation32_spill] sm:$0xff]  ;;  %v23607_v55 = vld [vmem:[#allocation30_spill] sm:$0xff]  ;;  %v23608_v63 = vld [vmem:[#allocation37_spill] sm:$0xff] }
 0x41f   : > { %13792 = vmatprep.mubr.msk.bf16.mxu0 %vm3840_vm0, %v17364_v18  ;;  %1208 = vrot.lane.b32.xlu0 %v14439_v17, %s14703_s30  ;;  %v23616_v17 = vld [vmem:[#allocation45_spill] sm:$0xff] }
 0x421   : > { %6012 = vmatpush1.bf16.msra.mxu1 %v23594_v26  ;;  %6053 = vmatpush1.bf16.msra.mxu0 %v23595_v48  ;;  %v23609_v26 = vld [vmem:[#allocation35_spill] sm:$0xff] }
 0x422   : > { %6013 = vmatprep.subr.bf16.mxu1 %v23596_v31  ;;  %6054 = vmatprep.subr.bf16.mxu0 %v23597_v42  ;;  %v14441_v48 = vld [vmem:[%s14932_s18 + $0x90] ss:$148 sps:$4 sm:$0xff]  }
 0x423   : > { %1578 = vrot.lane.b32.xlu0 %v14440_v46, %s14704_s23  ;;  %v23610_v31 = vld [vmem:[#allocation36_spill] sm:$0xff]  ;;  %v23611_v42 = vld [vmem:[#allocation34_spill] sm:$0xff]  ;;  %v23620_v46 = vld [vmem:[#allocation47_spill] sm:$0xff] }
 0x425   : > { %6014 = vmatpush1.bf16.msra.mxu1 %v23598_v50  ;;  %6055 = vmatpush1.bf16.msra.mxu0 %v23599_v14  ;;  %v23613_v50 = vld [vmem:[#allocation39_spill] sm:$0xff] }
 0x426   : > { %6015 = vmatprep.subr.bf16.mxu1 %v23600_v10  ;;  %6056 = vmatprep.subr.bf16.mxu0 %v23601_v41  ;;  %v14442_v14 = vld [vmem:[%s14932_s18 + $0x90] ss:$148 sps:$4 sm:$0xff]  }
 0x427   : > { %1948 = vrot.lane.b32.xlu0 %v14441_v48, %s14705_s21  ;;  %v23614_v10 = vld [vmem:[#allocation40_spill] sm:$0xff]  ;;  %v23615_v41 = vld [vmem:[#allocation38_spill] sm:$0xff] }
 0x428   : > { %v23624_v48 = vld [vmem:[#allocation48_spill] sm:$0xff] }
 0x429   : > { %6016 = vmatpush1.bf16.msra.mxu1 %v23602_v22  ;;  %6057 = vmatpush1.bf16.msra.mxu0 %v23603_v44  ;;  %v23617_v22 = vld [vmem:[#allocation43_spill] sm:$0xff] }
 0x42a   : > { %6017 = vmatprep.subr.bf16.mxu1 %v23604_v21  ;;  %6058 = vmatprep.subr.bf16.mxu0 %v23605_v61  ;;  %v14443_v44 = vld [vmem:[%s14932_s18 + $0x90] ss:$148 sps:$4 sm:$0xff]  }
 0x42b   : > { %2318 = vrot.lane.b32.xlu0 %v14442_v14, %s14706_s22  ;;  %v23618_v21 = vld [vmem:[#allocation44_spill] sm:$0xff]  ;;  %v23619_v61 = vld [vmem:[#allocation42_spill] sm:$0xff]  ;;  %v23628_v14 = vld [vmem:[#allocation53_spill] sm:$0xff] }
 0x42d   : > { %6018 = vmatpush1.bf16.msra.mxu1 %v23606_v43  ;;  %6059 = vmatpush1.bf16.msra.mxu0 %v23607_v55  ;;  %v23621_v43 = vld [vmem:[#allocation16_spill] sm:$0xff] }
 0x42e   : > { %6019 = vmatprep.subr.bf16.mxu1 %v23608_v63  ;;  %6060 = vmatprep.subr.bf16.mxu0 %v23609_v26  ;;  %v14444_v55 = vld [vmem:[%s14932_s18 + $0x90] ss:$148 sps:$4 sm:$0xff]  }
 0x42f   : > { %2688 = vrot.lane.b32.xlu0 %v14443_v44, %s14707_s10  ;;  %v23622_v63 = vld [vmem:[#allocation46_spill] sm:$0xff]  ;;  %v23623_v26 = vld [vmem:[#allocation15_spill] sm:$0xff] }
 0x430   : > { %v23633_v44 = vld [vmem:[#allocation55_spill] sm:$0xff] }
 0x431   : > { %6020 = vmatpush1.bf16.msra.mxu1 %v23610_v31  ;;  %6061 = vmatpush1.bf16.msra.mxu0 %v23611_v42  ;;  %v23625_v31 = vld [vmem:[#allocation224_spill] sm:$0xff] }
 0x432   : > { %6021 = vmatprep.subr.bf16.mxu1 %v23612_v13  ;;  %6062 = vmatprep.subr.bf16.mxu0 %v23613_v50  ;;  %v14445_v42 = vld [vmem:[%s14932_s18 + $0x90] ss:$148 sps:$4 sm:$0xff]  }
 0x433   : > { %3058 = vrot.lane.b32.xlu0 %v14444_v55, %s14708_s19  ;;  %v23626_v13 = vld [vmem:[#allocation49_spill] sm:$0xff]  ;;  %v23638_v55 = vld [vmem:[#allocation60_spill] sm:$0xff] }
 0x434   : > { %v23627_v50 = vld [vmem:[#allocation225_spill] sm:$0xff] }
 0x435   : > { %6022 = vmatpush1.bf16.msra.mxu1 %v23614_v10  ;;  %6063 = vmatpush1.bf16.msra.mxu0 %v23615_v41  ;;  %v23629_v10 = vld [vmem:[#allocation50_spill] sm:$0xff]  ;;  %v23630_v41 = vld [vmem:[#allocation52_spill] sm:$0xff] }
 0x436   : > { %6023 = vmatprep.subr.bf16.mxu1 %v23616_v17  ;;  %6064 = vmatprep.subr.bf16.mxu0 %v23617_v22  ;;  %v23631_v17 = vld [vmem:[#allocation51_spill] sm:$0xff]  ;;  %v23632_v22 = vld [vmem:[#allocation57_spill] sm:$0xff] }
 0x437   : > { %3428 = vrot.lane.b32.xlu0 %v14445_v42, %s14709_s11  ;;  %v23643_v42 = vld [vmem:[#allocation62_spill] sm:$0xff] }
 0x439   : > { %6024 = vmatpush1.bf16.msra.mxu1 %v23618_v21  ;;  %6065 = vmatpush1.bf16.msra.mxu0 %v23619_v61  ;;  %v23634_v21 = vld [vmem:[#allocation56_spill] sm:$0xff]  ;;  %v23635_v61 = vld [vmem:[#allocation54_spill] sm:$0xff] }
 0x43a   : > { %6066 = vmatprep.subr.bf16.mxu0 %v23620_v46  ;;  %6093 = vmatprep.subr.bf16.mxu1 %v23621_v43  ;;  %v23636_v46 = vld [vmem:[#allocation61_spill] sm:$0xff]  ;;  %v23637_v43 = vld [vmem:[#allocation59_spill] sm:$0xff] }
 0x43c   : > { %6040 = vmatmul.mubr.bf16.vlgmr.msra.gmra.mrb[0].mxu1 %v17466_v38 }
 0x43d   : > { %6067 = vmatpush1.bf16.msra.mxu0 %v23622_v63  ;;  %6094 = vmatpush1.bf16.msra.mxu1 %v23623_v26  ;;  %v23639_v63 = vld [vmem:[#allocation58_spill] sm:$0xff]  ;;  %v23640_v26 = vld [vmem:[#allocation65_spill] sm:$0xff] }
 0x43e   : > { %6095 = vmatprep.subr.bf16.mxu1 %v23624_v48  ;;  %6136 = vmatprep.subr.bf16.mxu0 %v23625_v31  ;;  %v23641_v48 = vld [vmem:[#allocation63_spill] sm:$0xff]  ;;  %v23642_v31 = vld [vmem:[#allocation64_spill] sm:$0xff] }
 0x43f   : > { %13793 = vmatprep.mubr.msk.bf16.mxu1 %vm3840_vm0, %v17364_v18 }
 0x440   : > { %6083 = vmatmul.mubr.bf16.vlgmr.msra.gmra.mrb[4].mxu0 %v17466_v38 }
 0x441   : > { %6096 = vmatpush1.bf16.msra.mxu1 %v23626_v13  ;;  %6137 = vmatpush1.bf16.msra.mxu0 %v23627_v50  ;;  %v23644_v13 = vld [vmem:[#allocation69_spill] sm:$0xff]  ;;  %v23645_v50 = vld [vmem:[#allocation67_spill] sm:$0xff] }
 0x442   : > { %6097 = vmatprep.subr.bf16.mxu1 %v23628_v14  ;;  %6138 = vmatprep.subr.bf16.mxu0 %v23629_v10  ;;  %v23646_v14 = vld [vmem:[#allocation68_spill] sm:$0xff]  ;;  %v23647_v10 = vld [vmem:[#allocation66_spill] sm:$0xff] }
 0x443   : > { %13794 = vmatprep.mubr.msk.bf16.mxu0 %vm3840_vm0, %v17364_v18 }
 0x445   : > { %6098 = vmatpush1.bf16.msra.mxu1 %v23630_v41  ;;  %6139 = vmatpush1.bf16.msra.mxu0 %v23631_v17  ;;  %v23648_v41 = vld [vmem:[#allocation73_spill] sm:$0xff]  ;;  %v23649_v17 = vld [vmem:[#allocation71_spill] sm:$0xff] }
 0x446   : > { %6099 = vmatprep.subr.bf16.mxu1 %v23632_v22  ;;  %6140 = vmatprep.subr.bf16.mxu0 %v23633_v44  ;;  %v23650_v22 = vld [vmem:[#allocation72_spill] sm:$0xff]  ;;  %v23651_v44 = vld [vmem:[#allocation70_spill] sm:$0xff] }
 0x449   : > { %6100 = vmatpush1.bf16.msra.mxu1 %v23634_v21  ;;  %6141 = vmatpush1.bf16.msra.mxu0 %v23635_v61  ;;  %v23652_v21 = vld [vmem:[#allocation77_spill] sm:$0xff]  ;;  %v23653_v61 = vld [vmem:[#allocation75_spill] sm:$0xff] }
 0x44a   : > { %6101 = vmatprep.subr.bf16.mxu1 %v23636_v46  ;;  %6142 = vmatprep.subr.bf16.mxu0 %v23637_v43  ;;  %v23654_v46 = vld [vmem:[#allocation76_spill] sm:$0xff]  ;;  %v23655_v43 = vld [vmem:[#allocation74_spill] sm:$0xff] }
 0x44d   : > { %6102 = vmatpush1.bf16.msra.mxu1 %v23638_v55  ;;  %6143 = vmatpush1.bf16.msra.mxu0 %v23639_v63  ;;  %v23656_v55 = vld [vmem:[#allocation79_spill] sm:$0xff]  ;;  %v23657_v63 = vld [vmem:[#allocation226_spill] sm:$0xff] }
 0x44e   : > { %6103 = vmatprep.subr.bf16.mxu1 %v23640_v26  ;;  %6144 = vmatprep.subr.bf16.mxu0 %v23641_v48  ;;  %v23658_v26 = vld [vmem:[#allocation78_spill] sm:$0xff]  ;;  %v23659_v48 = vld [vmem:[#allocation227_spill] sm:$0xff] }
 0x451   : > { %6104 = vmatpush1.bf16.msra.mxu1 %v23642_v31  ;;  %6145 = vmatpush1.bf16.msra.mxu0 %v23643_v42  ;;  %v23660_v31 = vld [vmem:[#allocation80_spill] sm:$0xff] }
 0x452   : > { %6105 = vmatprep.subr.bf16.mxu1 %v23644_v13  ;;  %6146 = vmatprep.subr.bf16.mxu0 %v23645_v50  ;;  %v23661_v42 = vld [vmem:[#allocation228_spill] sm:$0xff]  ;;  %v23662_v13 = vld [vmem:[#allocation81_spill] sm:$0xff] }
 0x453   : > { %v23663_v50 = vld [vmem:[#allocation229_spill] sm:$0xff] }
 0x455   : > { %6106 = vmatpush1.bf16.msra.mxu1 %v23646_v14  ;;  %6147 = vmatpush1.bf16.msra.mxu0 %v23647_v10  ;;  %v23664_v14 = vld [vmem:[#allocation85_spill] sm:$0xff]  ;;  %v23665_v10 = vld [vmem:[#allocation82_spill] sm:$0xff] }
 0x456   : > { %6107 = vmatprep.subr.bf16.mxu1 %v23648_v41  ;;  %6148 = vmatprep.subr.bf16.mxu0 %v23649_v17  ;;  %v23666_v41 = vld [vmem:[#allocation84_spill] sm:$0xff]  ;;  %v23667_v17 = vld [vmem:[#allocation83_spill] sm:$0xff] }
 0x459   : > { %6108 = vmatpush1.bf16.msra.mxu1 %v23650_v22  ;;  %6149 = vmatpush1.bf16.msra.mxu0 %v23651_v44  ;;  %v23668_v22 = vld [vmem:[#allocation89_spill] sm:$0xff]  ;;  %v23669_v44 = vld [vmem:[#allocation87_spill] sm:$0xff] }
 0x45a   : > { %6109 = vmatprep.subr.bf16.mxu1 %v23652_v21  ;;  %6150 = vmatprep.subr.bf16.mxu0 %v23653_v61  ;;  %v23670_v21 = vld [vmem:[#allocation88_spill] sm:$0xff]  ;;  %v23671_v61 = vld [vmem:[#allocation86_spill] sm:$0xff] }
 0x45d   : > { %6110 = vmatpush1.bf16.msra.mxu1 %v23654_v46  ;;  %6151 = vmatpush1.bf16.msra.mxu0 %v23655_v43  ;;  %v23672_v46 = vld [vmem:[#allocation93_spill] sm:$0xff]  ;;  %v23673_v43 = vld [vmem:[#allocation92_spill] sm:$0xff] }
 0x45e   : > { %6152 = vmatprep.subr.bf16.mxu0 %v23656_v55  ;;  %6179 = vmatprep.subr.bf16.mxu1 %v23657_v63  ;;  %v23674_v55 = vld [vmem:[#allocation90_spill] sm:$0xff]  ;;  %v23675_v63 = vld [vmem:[#allocation97_spill] sm:$0xff] }
 0x460   : > { %6126 = vmatmul.mubr.bf16.vlgmr.msra.gmra.mrb[4].mxu1 %v17466_v38 }
 0x461   : > { %6153 = vmatpush1.bf16.msra.mxu0 %v23658_v26  ;;  %6180 = vmatpush1.bf16.msra.mxu1 %v23659_v48  ;;  %v23676_v26 = vld [vmem:[#allocation95_spill] sm:$0xff]  ;;  %v23677_v48 = vld [vmem:[#allocation96_spill] sm:$0xff] }
 0x462   : > { %6181 = vmatprep.subr.bf16.mxu1 %v23660_v31  ;;  %6222 = vmatprep.subr.bf16.mxu0 %v23661_v42  ;;  %v23678_v31 = vld [vmem:[#allocation94_spill] sm:$0xff]  ;;  %v23679_v42 = vld [vmem:[#allocation101_spill] sm:$0xff] }
 0x463   : > { %13795 = vmatprep.mubr.msk.bf16.mxu1 %vm3840_vm0, %v17364_v18 }
 0x464   : > { %6169 = vmatmul.mubr.bf16.vlgmr.msra.gmra.mrb[8].mxu0 %v17466_v38 }
 0x465   : > { %6182 = vmatpush1.bf16.msra.mxu1 %v23662_v13  ;;  %6223 = vmatpush1.bf16.msra.mxu0 %v23663_v50  ;;  %v23680_v13 = vld [vmem:[#allocation99_spill] sm:$0xff]  ;;  %v23681_v50 = vld [vmem:[#allocation100_spill] sm:$0xff] }
 0x466   : > { %6183 = vmatprep.subr.bf16.mxu1 %v23664_v14  ;;  %6224 = vmatprep.subr.bf16.mxu0 %v23665_v10  ;;  %v23682_v14 = vld [vmem:[#allocation98_spill] sm:$0xff]  ;;  %v23684_v10 = vld [vmem:[#allocation103_spill] sm:$0xff] }
 0x467   : > { %13796 = vmatprep.mubr.msk.bf16.mxu0 %vm3840_vm0, %v17364_v18 }
 0x469   : > { %6184 = vmatpush1.bf16.msra.mxu1 %v23666_v41  ;;  %6225 = vmatpush1.bf16.msra.mxu0 %v23667_v17  ;;  %v23685_v41 = vld [vmem:[#allocation104_spill] sm:$0xff]  ;;  %v23686_v17 = vld [vmem:[#allocation102_spill] sm:$0xff] }
 0x46a   : > { %6185 = vmatprep.subr.bf16.mxu1 %v23668_v22  ;;  %6226 = vmatprep.subr.bf16.mxu0 %v23669_v44  ;;  %v23687_v22 = vld [vmem:[#allocation109_spill] sm:$0xff]  ;;  %v23688_v44 = vld [vmem:[#allocation107_spill] sm:$0xff] }
 0x46d   : > { %6186 = vmatpush1.bf16.msra.mxu1 %v23670_v21  ;;  %6227 = vmatpush1.bf16.msra.mxu0 %v23671_v61  ;;  %v23689_v21 = vld [vmem:[#allocation108_spill] sm:$0xff]  ;;  %v23690_v61 = vld [vmem:[#allocation106_spill] sm:$0xff] }
 0x46e   : > { %6187 = vmatprep.subr.bf16.mxu1 %v23672_v46  ;;  %6228 = vmatprep.subr.bf16.mxu0 %v23477_v16  ;;  %v23683_v16 = vld [vmem:[#allocation105_spill] sm:$0xff]  ;;  %v23691_v46 = vld [vmem:[#allocation111_spill] sm:$0xff] }
 0x471   : > { %6188 = vmatpush1.bf16.msra.mxu1 %v23673_v43  ;;  %6229 = vmatpush1.bf16.msra.mxu0 %v23674_v55  ;;  %v23692_v43 = vld [vmem:[#allocation230_spill] sm:$0xff] }
 0x472   : > { %6189 = vmatprep.subr.bf16.mxu1 %v23675_v63  ;;  %6230 = vmatprep.subr.bf16.mxu0 %v23676_v26  ;;  %v23693_v55 = vld [vmem:[#allocation110_spill] sm:$0xff]  ;;  %v23694_v63 = vld [vmem:[#allocation231_spill] sm:$0xff]  ;;  %v23695_v26 = vld [vmem:[#allocation112_spill] sm:$0xff] }
 0x475   : > { %6190 = vmatpush1.bf16.msra.mxu1 %v23677_v48  ;;  %6231 = vmatpush1.bf16.msra.mxu0 %v23678_v31  ;;  %v23696_v48 = vld [vmem:[#allocation91_spill] sm:$0xff]  ;;  %v23697_v31 = vld [vmem:[#allocation113_spill] sm:$0xff] }
 0x476   : > { %6191 = vmatprep.subr.bf16.mxu1 %v23679_v42  ;;  %6232 = vmatprep.subr.bf16.mxu0 %v23680_v13  ;;  %v23698_v42 = vld [vmem:[#allocation232_spill] sm:$0xff]  ;;  %v23699_v13 = vld [vmem:[#allocation117_spill] sm:$0xff] }
 0x479   : > { %6192 = vmatpush1.bf16.msra.mxu1 %v23681_v50  ;;  %6233 = vmatpush1.bf16.msra.mxu0 %v23682_v14  ;;  %v23700_v50 = vld [vmem:[#allocation114_spill] sm:$0xff]  ;;  %v23701_v14 = vld [vmem:[#allocation116_spill] sm:$0xff] }
 0x47a   : > { %6193 = vmatprep.subr.bf16.mxu1 %v23683_v16  ;;  %6234 = vmatprep.subr.bf16.mxu0 %v23684_v10  ;;  %v23702_v16 = vld [vmem:[#allocation115_spill] sm:$0xff]  ;;  %v23703_v10 = vld [vmem:[#allocation121_spill] sm:$0xff] }
 0x47d   : > { %6194 = vmatpush1.bf16.msra.mxu1 %v23685_v41  ;;  %6235 = vmatpush1.bf16.msra.mxu0 %v23686_v17  ;;  %v23704_v41 = vld [vmem:[#allocation119_spill] sm:$0xff]  ;;  %v23705_v17 = vld [vmem:[#allocation120_spill] sm:$0xff] }
 0x47e   : > { %6195 = vmatprep.subr.bf16.mxu1 %v23687_v22  ;;  %6236 = vmatprep.subr.bf16.mxu0 %v23688_v44  ;;  %v23706_v22 = vld [vmem:[#allocation118_spill] sm:$0xff]  ;;  %v23707_v44 = vld [vmem:[#allocation125_spill] sm:$0xff] }
 0x481   : > { %6196 = vmatpush1.bf16.msra.mxu1 %v23689_v21  ;;  %6237 = vmatpush1.bf16.msra.mxu0 %v23690_v61  ;;  %v23708_v21 = vld [vmem:[#allocation124_spill] sm:$0xff]  ;;  %v23709_v61 = vld [vmem:[#allocation122_spill] sm:$0xff] }
 0x482   : > { %6238 = vmatprep.subr.bf16.mxu0 %v23691_v46  ;;  %6265 = vmatprep.subr.bf16.mxu1 %v23692_v43  ;;  %v23710_v46 = vld [vmem:[#allocation129_spill] sm:$0xff]  ;;  %v23711_v43 = vld [vmem:[#allocation127_spill] sm:$0xff] }
 0x484   : > { %6212 = vmatmul.mubr.bf16.vlgmr.msra.gmra.mrb[8].mxu1 %v17466_v38 }
 0x485   : > { %6239 = vmatpush1.bf16.msra.mxu0 %v23693_v55  ;;  %6266 = vmatpush1.bf16.msra.mxu1 %v23694_v63  ;;  %v23712_v55 = vld [vmem:[#allocation128_spill] sm:$0xff]  ;;  %v23713_v63 = vld [vmem:[#allocation126_spill] sm:$0xff] }
 0x486   : > { %6267 = vmatprep.subr.bf16.mxu1 %v23695_v26  ;;  %6308 = vmatprep.subr.bf16.mxu0 %v23696_v48  ;;  %v23714_v26 = vld [vmem:[#allocation133_spill] sm:$0xff]  ;;  %v23715_v48 = vld [vmem:[#allocation131_spill] sm:$0xff] }
 0x487   : > { %13797 = vmatprep.mubr.msk.bf16.mxu1 %vm3840_vm0, %v17364_v18 }
 0x488   : > { %6255 = vmatmul.mubr.bf16.vlgmr.msra.gmra.mrb[12].mxu0 %v17466_v38 }
 0x489   : > { %6268 = vmatpush1.bf16.msra.mxu1 %v23697_v31  ;;  %6309 = vmatpush1.bf16.msra.mxu0 %v23698_v42  ;;  %v23716_v31 = vld [vmem:[#allocation132_spill] sm:$0xff]  ;;  %v23717_v42 = vld [vmem:[#allocation130_spill] sm:$0xff] }
 0x48a   : > { %6269 = vmatprep.subr.bf16.mxu1 %v23699_v13  ;;  %6310 = vmatprep.subr.bf16.mxu0 %v23700_v50  ;;  %v23719_v13 = vld [vmem:[#allocation135_spill] sm:$0xff]  ;;  %v23720_v50 = vld [vmem:[#allocation136_spill] sm:$0xff] }
 0x48b   : > { %13798 = vmatprep.mubr.msk.bf16.mxu0 %vm3840_vm0, %v17364_v18 }
 0x48d   : > { %6270 = vmatpush1.bf16.msra.mxu1 %v23701_v14  ;;  %6311 = vmatpush1.bf16.msra.mxu0 %v23702_v16  ;;  %v23721_v14 = vld [vmem:[#allocation134_spill] sm:$0xff]  ;;  %v23722_v16 = vld [vmem:[#allocation141_spill] sm:$0xff] }
 0x48e   : > { %6271 = vmatprep.subr.bf16.mxu1 %v23703_v10  ;;  %6312 = vmatprep.subr.bf16.mxu0 %v23704_v41  ;;  %v23723_v10 = vld [vmem:[#allocation140_spill] sm:$0xff]  ;;  %v23724_v41 = vld [vmem:[#allocation233_spill] sm:$0xff] }
 0x491   : > { %6272 = vmatpush1.bf16.msra.mxu1 %v23705_v17  ;;  %6313 = vmatpush1.bf16.msra.mxu0 %v23706_v22  ;;  %v23725_v17 = vld [vmem:[#allocation142_spill] sm:$0xff] }
 0x492   : > { %6273 = vmatprep.subr.bf16.mxu1 %v23707_v44  ;;  %6314 = vmatprep.subr.bf16.mxu0 %v23512_v23  ;;  %v23718_v23 = vld [vmem:[#allocation137_spill] sm:$0xff]  ;;  %v23726_v22 = vld [vmem:[#allocation234_spill] sm:$0xff]  ;;  %v23727_v44 = vld [vmem:[#allocation144_spill] sm:$0xff] }
 0x495   : > { %6274 = vmatpush1.bf16.msra.mxu1 %v23708_v21  ;;  %6315 = vmatpush1.bf16.msra.mxu0 %v23709_v61  ;;  %v23728_v21 = vld [vmem:[#allocation123_spill] sm:$0xff]  ;;  %v23732_v61 = vld [vmem:[#allocation146_spill] sm:$0xff] }
 0x496   : > { %6275 = vmatprep.subr.bf16.mxu1 %v23710_v46  ;;  %6316 = vmatprep.subr.bf16.mxu0 %v23711_v43  ;;  %v23733_v46 = vld [vmem:[#allocation148_spill] sm:$0xff]  ;;  %v23734_v43 = vld [vmem:[#allocation147_spill] sm:$0xff] }
 0x499   : > { %6276 = vmatpush1.bf16.msra.mxu1 %v23712_v55  ;;  %6317 = vmatpush1.bf16.msra.mxu0 %v23713_v63  ;;  %v23735_v55 = vld [vmem:[#allocation153_spill] sm:$0xff]  ;;  %v23736_v63 = vld [vmem:[#allocation151_spill] sm:$0xff] }
 0x49a   : > { %6277 = vmatprep.subr.bf16.mxu1 %v23714_v26  ;;  %6318 = vmatprep.subr.bf16.mxu0 %v23715_v48  ;;  %v23737_v26 = vld [vmem:[#allocation152_spill] sm:$0xff]  ;;  %v23738_v48 = vld [vmem:[#allocation150_spill] sm:$0xff] }
 0x49d   : > { %6278 = vmatpush1.bf16.msra.mxu1 %v23716_v31  ;;  %6319 = vmatpush1.bf16.msra.mxu0 %v23717_v42  ;;  %v23739_v31 = vld [vmem:[#allocation157_spill] sm:$0xff]  ;;  %v23740_v42 = vld [vmem:[#allocation156_spill] sm:$0xff] }
 0x49e   : > { %6279 = vmatprep.subr.bf16.mxu1 %v23718_v23  ;;  %6320 = vmatprep.subr.bf16.mxu0 %v23719_v13  ;;  %v23741_v23 = vld [vmem:[#allocation154_spill] sm:$0xff]  ;;  %v23742_v13 = vld [vmem:[#allocation161_spill] sm:$0xff] }
 0x4a1   : > { %6280 = vmatpush1.bf16.msra.mxu1 %v23720_v50  ;;  %6321 = vmatpush1.bf16.msra.mxu0 %v23721_v14  ;;  %v23743_v50 = vld [vmem:[#allocation159_spill] sm:$0xff]  ;;  %v23744_v14 = vld [vmem:[#allocation160_spill] sm:$0xff] }
 0x4a2   : > { %6281 = vmatprep.subr.bf16.mxu1 %v23722_v16  ;;  %6322 = vmatprep.subr.bf16.mxu0 %v23528_v8  ;;  %v23729_v8 = vld [vmem:[#allocation145_spill] sm:$0xff]  ;;  %v23745_v16 = vld [vmem:[#allocation158_spill] sm:$0xff] }
 0x4a5   : > { %6282 = vmatpush1.bf16.msra.mxu1 %v23723_v10  ;;  %6323 = vmatpush1.bf16.msra.mxu0 %v23530_v62  ;;  %v23731_v62 = vld [vmem:[#allocation149_spill] sm:$0xff] }
 0x4a6   : > { %6324 = vmatprep.subr.bf16.mxu0 %v23532_v35  ;;  %6351 = vmatprep.subr.bf16.mxu1 %v23724_v41  ;;  %v23730_v35 = vld [vmem:[#allocation139_spill] sm:$0xff]  ;;  %v23746_v10 = vld [vmem:[#allocation165_spill] sm:$0xff] }
 0x4a7   : > { %v23747_v41 = vld [vmem:[#allocation163_spill] sm:$0xff] }
 0x4a8   : > { %6298 = vmatmul.mubr.bf16.vlgmr.msra.gmra.mrb[12].mxu1 %v17466_v38 }
 0x4a9   : > { %6325 = vmatpush1.bf16.msra.mxu0 %v23725_v17  ;;  %6352 = vmatpush1.bf16.msra.mxu1 %v23726_v22  ;;  %v23748_v17 = vld [vmem:[#allocation164_spill] sm:$0xff]  ;;  %v23750_v22 = vld [vmem:[#allocation169_spill] sm:$0xff] }
 0x4aa   : > { %6353 = vmatprep.subr.bf16.mxu1 %v23727_v44  ;;  %6394 = vmatprep.subr.bf16.mxu0 %v23728_v21  ;;  %v23751_v44 = vld [vmem:[#allocation167_spill] sm:$0xff]  ;;  %v23752_v21 = vld [vmem:[#allocation168_spill] sm:$0xff] }
 0x4ab   : > { %13799 = vmatprep.mubr.msk.bf16.mxu1 %vm3840_vm0, %v17364_v18 }
 0x4ac   : > { %6341 = vmatmul.mubr.bf16.vlgmr.msra.gmra.mrb[16].mxu0 %v17466_v38 }
 0x4ad   : > { %6354 = vmatpush1.bf16.msra.mxu1 %v23729_v8  ;;  %6395 = vmatpush1.bf16.msra.mxu0 %v23730_v35  ;;  %v23753_v8 = vld [vmem:[#allocation166_spill] sm:$0xff] }
 0x4ae   : > { %6355 = vmatprep.subr.bf16.mxu1 %v23731_v62  ;;  %6396 = vmatprep.subr.bf16.mxu0 %v23732_v61  ;;  %v23754_v35 = vld [vmem:[#allocation174_spill] sm:$0xff]  ;;  %v23755_v62 = vld [vmem:[#allocation172_spill] sm:$0xff] }
 0x4af   : > { %13800 = vmatprep.mubr.msk.bf16.mxu0 %vm3840_vm0, %v17364_v18  ;;  %v23756_v61 = vld [vmem:[#allocation176_spill] sm:$0xff] }
 0x4b1   : > { %6356 = vmatpush1.bf16.msra.mxu1 %v23733_v46  ;;  %6397 = vmatpush1.bf16.msra.mxu0 %v23734_v43  ;;  %v14532_v46 = vld [vmem:[%s14932_s18 + $0x6c] ss:$148 sps:$4 sm:$0xff]   ;;  %v14533_v43 = vld [vmem:[%s14932_s18 + $0x68] ss:$148 sps:$4 sm:$0xff]  }
 0x4b2   : > { %6357 = vmatprep.subr.bf16.mxu1 %v23735_v55  ;;  %6398 = vmatprep.subr.bf16.mxu0 %v23736_v63  ;;  %v23757_v55 = vld [vmem:[#allocation178_spill] sm:$0xff]  ;;  %v23760_v63 = vld [vmem:[#allocation180_spill] sm:$0xff] }
 0x4b5   : > { %6358 = vmatpush1.bf16.msra.mxu1 %v23737_v26  ;;  %6399 = vmatpush1.bf16.msra.mxu0 %v23738_v48  ;;  %v23762_v26 = vld [vmem:[#allocation179_spill] sm:$0xff]  ;;  %v23764_v48 = vld [vmem:[#allocation184_spill] sm:$0xff] }
 0x4b6   : > { %6359 = vmatprep.subr.bf16.mxu1 %v23739_v31  ;;  %6400 = vmatprep.subr.bf16.mxu0 %v23544_v40  ;;  %v23749_v40 = vld [vmem:[#allocation162_spill] sm:$0xff]  ;;  %v23765_v31 = vld [vmem:[#allocation185_spill] sm:$0xff] }
 0x4b9   : > { %6360 = vmatpush1.bf16.msra.mxu1 %v23740_v42  ;;  %6401 = vmatpush1.bf16.msra.mxu0 %v23741_v23  ;;  %v23767_v42 = vld [vmem:[#allocation188_spill] sm:$0xff]  ;;  %v23768_v23 = vld [vmem:[#allocation189_spill] sm:$0xff] }
 0x4ba   : > { %6361 = vmatprep.subr.bf16.mxu1 %v23742_v13  ;;  %6402 = vmatprep.subr.bf16.mxu0 %v23743_v50  ;;  %v23769_v13 = vld [vmem:[#allocation194_spill] sm:$0xff]  ;;  %v23770_v50 = vld [vmem:[#allocation193_spill] sm:$0xff] }
 0x4bd   : > { %6362 = vmatpush1.bf16.msra.mxu1 %v23744_v14  ;;  %6403 = vmatpush1.bf16.msra.mxu0 %v23745_v16  ;;  %v23771_v14 = vld [vmem:[#allocation191_spill] sm:$0xff]  ;;  %v23772_v16 = vld [vmem:[#allocation198_spill] sm:$0xff] }
 0x4be   : > { %6363 = vmatprep.subr.bf16.mxu1 %v23746_v10  ;;  %6404 = vmatprep.subr.bf16.mxu0 %v23747_v41  ;;  %v23773_v10 = vld [vmem:[#allocation196_spill] sm:$0xff]  ;;  %v23775_v41 = vld [vmem:[#allocation202_spill] sm:$0xff] }
 0x4c1   : > { %6364 = vmatpush1.bf16.msra.mxu1 %v23748_v17  ;;  %6405 = vmatpush1.bf16.msra.mxu0 %v23749_v40  ;;  %v23776_v17 = vld [vmem:[#allocation200_spill] sm:$0xff]  ;;  %v23778_v40 = vld [vmem:[#allocation199_spill] sm:$0xff] }
 0x4c2   : > { %6365 = vmatprep.subr.bf16.mxu1 %v23750_v22  ;;  %6406 = vmatprep.subr.bf16.mxu0 %v23751_v44  ;;  %v23780_v22 = vld [vmem:[#allocation205_spill] sm:$0xff]  ;;  %v17733_v44 = vpop.permute.xlu0 %4534 }
 0x4c5   : > { %6366 = vmatpush1.bf16.msra.mxu1 %v23752_v21  ;;  %6407 = vmatpush1.bf16.msra.mxu0 %v23753_v8 }
 0x4c6   : > { %6367 = vmatprep.subr.bf16.mxu1 %v23754_v35  ;;  %6408 = vmatprep.subr.bf16.mxu0 %v23560_v52  ;;  %v23759_v52 = vld [vmem:[#allocation182_spill] sm:$0xff] }
 0x4c9   : > { %6368 = vmatpush1.bf16.msra.mxu1 %v23755_v62  ;;  %6409 = vmatpush1.bf16.msra.mxu0 %v23562_v49  ;;  %v23758_v49 = vld [vmem:[#allocation177_spill] sm:$0xff]  ;;  %v17739_v62 = vpop.permute.xlu1 %4539 }
 0x4ca   : > { %6410 = vmatprep.subr.bf16.mxu0 %v23756_v61  ;;  %6437 = vmatprep.subr.bf16.mxu1 %v14532_v46 }
 0x4cc   : > { %6384 = vmatmul.mubr.bf16.vlgmr.msra.gmra.mrb[16].mxu1 %v17466_v38 }
 0x4cd   : > { %6411 = vmatpush1.bf16.msra.mxu0 %v23566_v30  ;;  %6438 = vmatpush1.bf16.msra.mxu1 %v14533_v43  ;;  %v23761_v30 = vld [vmem:[#allocation181_spill] sm:$0xff] }
 0x4ce   : > { %6439 = vmatprep.subr.bf16.mxu1 %v23757_v55  ;;  %6480 = vmatprep.subr.bf16.mxu0 %v17278_v15  ;;  %v23763_v15 = vld [vmem:[#allocation186_spill] sm:$0xff]  ;;  %v23783_v55 = vld [vmem:[#allocation209_spill] sm:$0xff] }
 0x4cf   : > { %13801 = vmatprep.mubr.msk.bf16.mxu1 %vm3840_vm0, %v17364_v18 }
 0x4d0   : > { %6427 = vmatmul.mubr.bf16.vlgmr.msra.gmra.mrb[20].mxu0 %v17466_v38 }
 0x4d1   : > { %6440 = vmatpush1.bf16.msra.mxu1 %v23758_v49  ;;  %6481 = vmatpush1.bf16.msra.mxu0 %v17284_v2  ;;  %v23766_v2 = vld [vmem:[#allocation190_spill] sm:$0xff] }
 0x4d2   : > { %6441 = vmatprep.subr.bf16.mxu1 %v23759_v52  ;;  %6482 = vmatprep.subr.bf16.mxu0 %v23760_v63 }
 0x4d3   : > { %13802 = vmatprep.mubr.msk.bf16.mxu0 %vm3840_vm0, %v17364_v18 }
 0x4d5   : > { %6442 = vmatpush1.bf16.msra.mxu1 %v23761_v30  ;;  %6483 = vmatpush1.bf16.msra.mxu0 %v23762_v26  ;;  %v23784_v30 = vld [vmem:[#allocation208_spill] sm:$0xff] }
 0x4d6   : > { %6443 = vmatprep.subr.bf16.mxu1 %v23763_v15  ;;  %6484 = vmatprep.subr.bf16.mxu0 %v23764_v48  ;;  %v23785_v48 = vld [vmem:[#allocation212_spill] sm:$0xff] }
 0x4d9   : > { %6444 = vmatpush1.bf16.msra.mxu1 %v23765_v31  ;;  %6485 = vmatpush1.bf16.msra.mxu0 %v23575_v32  ;;  %v23774_v32 = vld [vmem:[#allocation197_spill] sm:$0xff] }
 0x4da   : > { %6445 = vmatprep.subr.bf16.mxu1 %v23766_v2  ;;  %6486 = vmatprep.subr.bf16.mxu0 %v23767_v42 }
 0x4dd   : > { %6446 = vmatpush1.bf16.msra.mxu1 %v23768_v23  ;;  %6487 = vmatpush1.bf16.msra.mxu0 %v23577_v9  ;;  %v23777_v9 = vld [vmem:[#allocation201_spill] sm:$0xff]  ;;  %v23786_v23 = vld [vmem:[#allocation211_spill] sm:$0xff] }
 0x4de   : > { %6447 = vmatprep.subr.bf16.mxu1 %v23769_v13  ;;  %6488 = vmatprep.subr.bf16.mxu0 %v23578_v5  ;;  %v23779_v5 = vld [vmem:[#allocation206_spill] sm:$0xff]  ;;  %v23789_v13 = vld [vmem:[#allocation216_spill] sm:$0xff] }
 0x4e1   : > { %6448 = vmatpush1.bf16.msra.mxu1 %v23770_v50  ;;  %6489 = vmatpush1.bf16.msra.mxu0 %v23771_v14  ;;  %v23790_v50 = vld [vmem:[#allocation215_spill] sm:$0xff]  ;;  %v837_v14 = vpop.permute.xlu1 %836 }
 0x4e2   : > { %6449 = vmatprep.subr.bf16.mxu1 %v23772_v16  ;;  %6490 = vmatprep.subr.bf16.mxu0 %v23773_v10  ;;  %v23792_v16 = vld [vmem:[#allocation217_spill] sm:$0xff] }
 0x4e3   : > { %v23795_v10 = vld [vmem:[#allocation221_spill] sm:$0xff] }
 0x4e5   : > { %6450 = vmatpush1.bf16.msra.mxu1 %v23774_v32  ;;  %6491 = vmatpush1.bf16.msra.mxu0 %v23582_v45  ;;  %v23781_v45 = vld [vmem:[#allocation138_spill] sm:$0xff] }
 0x4e6   : > { %6451 = vmatprep.subr.bf16.mxu1 %v23775_v41  ;;  %6492 = vmatprep.subr.bf16.mxu0 %v23776_v17 }
 0x4e9   : > { %6452 = vmatpush1.bf16.msra.mxu1 %v23777_v9  ;;  %6493 = vmatpush1.bf16.msra.mxu0 %v23778_v40 }
 0x4ea   : > { %6453 = vmatprep.subr.bf16.mxu1 %v23779_v5  ;;  %6494 = vmatprep.subr.bf16.mxu0 %v23586_v7  ;;  %v23797_v5 = vld [vmem:[#allocation222_spill] sm:$0xff] }
 0x4ed   : > { %6454 = vmatpush1.bf16.msra.mxu1 %v23780_v22  ;;  %6495 = vmatpush1.bf16.msra.mxu0 %v23587_v0  ;;  %v23782_v0 = vld [vmem:[#allocation143_spill] sm:$0xff] }
 0x4ee   : > { %6496 = vmatprep.subr.bf16.mxu0 %v23588_v1  ;;  %6523 = vmatprep.subr.bf16.mxu1 %v23781_v45 }
 0x4ef   : > { %v5998_v21 = vpop.f32.mrb[0].mxu0 }
 0x4f0   : > { %v13908_v8 = vadd.f32 %v5998_v21, %v17733_v44  ;;  %v6000_v35 = vpop.f32.mrb[1].mxu0  ;;  %6470 = vmatmul.mubr.bf16.vlgmr.msra.gmra.mrb[20].mxu1 %v17466_v38 }
 0x4f1   : > { %v13909_v7 = vadd.f32 %v6000_v35, %v17733_v44  ;;  %v6002_v61 = vpop.f32.mrb[2].mxu0  ;;  %6497 = vmatpush1.bf16.msra.mxu0 %v16795_v54  ;;  %6524 = vmatpush1.bf16.msra.mxu1 %v23782_v0 }
 0x4f2   : > { %v6716_v46 = vmul.f32 0.2, %v13908_v8  ;;  %v13910_v1 = vadd.f32 %v6002_v61, %v17739_v62  ;;  %v6004_v43 = vpop.f32.mrb[3].mxu0  ;;  %6525 = vmatprep.subr.bf16.mxu1 %v23783_v55  ;;  %6566 = vmatprep.subr.bf16.mxu0 %v17333_v19 }
 0x4f3   : > { %v6717_v49 = vmul.f32 0.2, %v13909_v7  ;;  %v13911_v52 = vadd.f32 %v6004_v43, %v17739_v62  ;;  %13803 = vmatprep.mubr.msk.bf16.mxu1 %vm3840_vm0, %v17364_v18 }
 0x4f4   : > { %v6748_v63 = vmul.f32 0.2, %v13910_v1  ;;  %6513 = vmatmul.mubr.bf16.vlgmr.msra.gmra.mrb[24].mxu0 %v17466_v38  ;;  %v6780_v26 = vmax.f32 %v13908_v8, %v6716_v46 }
 0x4f5   : > { %v6749_v54 = vmul.f32 0.2, %v13911_v52  ;;  %6526 = vmatpush1.bf16.msra.mxu1 %v23784_v30  ;;  %6567 = vmatpush1.bf16.msra.mxu0 %v17343_v53  ;;  %v6781_v19 = vmax.f32 %v13909_v7, %v6717_v49  ;;  %v23787_v53 = vld [vmem:[#allocation214_spill] sm:$0xff] }
 0x4f6   : > { %v6812_v15 = vmax.f32 %v13910_v1, %v6748_v63  ;;  %6527 = vmatprep.subr.bf16.mxu1 %v23785_v48  ;;  %6568 = vmatprep.subr.bf16.mxu0 %v17349_v57  ;;  %v23788_v57 = vld [vmem:[#allocation213_spill] sm:$0xff] }
 0x4f7   : > { %v6813_v31 = vmax.f32 %v13911_v52, %v6749_v54  ;;  %13804 = vmatprep.mubr.msk.bf16.mxu0 %vm3840_vm0, %v17364_v18 }
 0x4f8   : > { %v17757_v2 = vpack.c.bf16 %v6812_v15, %v6780_v26 }
 0x4f9   : > { %v17759_v42 = vpack.c.bf16 %v6813_v31, %v6781_v19  ;;  %6528 = vmatpush1.bf16.msra.mxu1 %v23786_v23  ;;  %6569 = vmatpush1.bf16.msra.mxu0 %v17369_v27  ;;  %v23791_v27 = vld [vmem:[#allocation218_spill] sm:$0xff]  ;;  %v23798_v31 = vld [vmem:[#allocation173_spill] sm:$0xff] }
 0x4fa   : > { %6529 = vmatprep.subr.bf16.mxu1 %v23787_v53  ;;  %6570 = vmatprep.subr.bf16.mxu0 %v17360_v24  ;;  %v839_v24 = vpop.permute.xlu0 %838  ;;  %v875_v23 = vsel %vm840_vm1, %v23798_v31, %v837_v14 }
 0x4fb   : > { %7034 = vrot.lane.b32.xlu1 %v17757_v2, %s14702_s9  ;;  %v876_v35 = vsel %vm840_vm1, %v837_v14, %v839_v24 }
 0x4fd   : > { %6530 = vmatpush1.bf16.msra.mxu1 %v23788_v57  ;;  %6571 = vmatpush1.bf16.msra.mxu0 %v17385_v11  ;;  %v23793_v11 = vld [vmem:[#allocation220_spill] sm:$0xff] }
 0x4fe   : > { %6531 = vmatprep.subr.bf16.mxu1 %v23789_v13  ;;  %6572 = vmatprep.subr.bf16.mxu0 %v17377_v51  ;;  %v23794_v51 = vld [vmem:[#allocation219_spill] sm:$0xff] }
 0x501   : > { %6532 = vmatpush1.bf16.msra.mxu1 %v23790_v50  ;;  %6573 = vmatpush1.bf16.msra.mxu0 %v17397_v47  ;;  %v1209_v47 = vpop.permute.xlu0 %1208 }
 0x502   : > { %6533 = vmatprep.subr.bf16.mxu1 %v23791_v27  ;;  %6574 = vmatprep.subr.bf16.mxu0 %v17393_v60  ;;  %v17783_v60 = vpop.permute.xlu1 %1206 }
 0x503   : > { %v1246_v53 = vsel %vm1210_vm2, %v17783_v60, %v1209_v47 }
 0x505   : > { %6534 = vmatpush1.bf16.msra.mxu1 %v23792_v16  ;;  %6575 = vmatpush1.bf16.msra.mxu0 %v17411_v12  ;;  %v23796_v12 = vld [vmem:[#allocation223_spill] sm:$0xff]  ;;  %v1579_v41 = vpop.permute.xlu0 %1578 }
 0x506   : > { %6535 = vmatprep.subr.bf16.mxu1 %v23793_v11  ;;  %6576 = vmatprep.subr.bf16.mxu0 %v17407_v59  ;;  %v14448_v59 = vld [vmem:[%s14932_s18 + $0x8c] ss:$148 sps:$4 sm:$0xff]   ;;  %v17791_v9 = vpop.permute.xlu1 %1576  ;;  %v23799_v11 = vld [vmem:[#allocation155_spill] sm:$0xff] }
 0x507   : > { %v1616_v47 = vsel %vm1580_vm3, %v17791_v9, %v1579_v41 }
 0x509   : > { %6536 = vmatpush1.bf16.msra.mxu1 %v23794_v51  ;;  %6577 = vmatpush1.bf16.msra.mxu0 %v17425_v58  ;;  %v1245_v51 = vsel %vm1210_vm2, %v23799_v11, %v17783_v60  ;;  %v17920_v11 = vld [vmem:[#allocation9 + $0x4] ss:$8 sps:$4 sm:$0xff]  }
 0x50a   : > { %6537 = vmatprep.subr.bf16.mxu1 %v23795_v10  ;;  %6578 = vmatprep.subr.bf16.mxu0 %v17419_v6  ;;  %v1947_v54 = vpop.permute.xlu1 %1946 }
 0x50d   : > { %6538 = vmatpush1.bf16.msra.mxu1 %v16915_v34  ;;  %6579 = vmatpush1.bf16.msra.mxu0 %v17437_v28  ;;  %v14446_v34 = vld [vmem:[%s14932_s18 + $0x88] ss:$148 sps:$4 sm:$0xff]  }
 0x50e   : > { %6539 = vmatprep.subr.bf16.mxu1 %v23796_v12  ;;  %6580 = vmatprep.subr.bf16.mxu0 %v17433_v20  ;;  %v2317_v10 = vpop.permute.xlu1 %2316 }
 0x50f   : > { %v6041_v32 = vpop.f32.mrb[0].mxu1 }
 0x510   : > { %v13912_v58 = vadd.f32 %v6041_v32, %v17733_v44  ;;  %v6043_v17 = vpop.f32.mrb[1].mxu1 }
 0x511   : > { %v13913_v6 = vadd.f32 %v6043_v17, %v17733_v44  ;;  %v6045_v40 = vpop.f32.mrb[2].mxu1  ;;  %6540 = vmatpush1.bf16.msra.mxu1 %v23797_v5  ;;  %6581 = vmatpush1.bf16.msra.mxu0 %v17451_v33 }
 0x512   : > { %v6718_v28 = vmul.f32 0.2, %v13912_v58  ;;  %v13914_v22 = vadd.f32 %v6045_v40, %v17739_v62  ;;  %v6047_v20 = vpop.f32.mrb[3].mxu1  ;;  %6582 = vmatprep.subr.bf16.mxu0 %v17447_v29  ;;  %6609 = vmatprep.subr.bf16.mxu1 %v14448_v59  ;;  %v1949_v29 = vpop.permute.xlu0 %1948  ;;  %v1615_v59 = vsel %vm1580_vm3, %v17338_v4, %v17791_v9  ;;  %v2355_v9 = vsel %vm2320_vm5, %v17381_v3, %v2317_v10 }
 0x513   : > { %v6719_v45 = vmul.f32 0.2, %v13913_v6  ;;  %v13915_v21 = vadd.f32 %v6047_v20, %v17739_v62  ;;  %v6084_v8 = vpop.f32.mrb[4].mxu0  ;;  %v1986_v60 = vsel %vm1950_vm4, %v1947_v54, %v1949_v29  ;;  %v2687_v41 = vpop.permute.xlu1 %2686 }
 0x514   : > { %v6750_v7 = vmul.f32 0.2, %v13914_v22  ;;  %v13916_v61 = vadd.f32 %v6084_v8, %v17733_v44  ;;  %v6086_v0 = vpop.f32.mrb[5].mxu0  ;;  %6556 = vmatmul.mubr.bf16.vlgmr.msra.gmra.mrb[24].mxu1 %v17466_v38  ;;  %v6782_v43 = vmax.f32 %v13912_v58, %v6718_v28  ;;  %v1985_v58 = vsel %vm1950_vm4, %v17354_v25, %v1947_v54 }
 0x515   : > { %v6751_v33 = vmul.f32 0.2, %v13915_v21  ;;  %v13917_v46 = vadd.f32 %v6086_v0, %v17733_v44  ;;  %v6088_v1 = vpop.f32.mrb[6].mxu0  ;;  %6583 = vmatpush1.bf16.msra.mxu0 %v17459_v37  ;;  %6610 = vmatpush1.bf16.msra.mxu1 %v14446_v34  ;;  %v6783_v30 = vmax.f32 %v13913_v6, %v6719_v45  ;;  %v2725_v25 = vsel %vm2690_vm6, %v17401_v36, %v2687_v41 }
 0x516   : > { %v6814_v55 = vmax.f32 %v13914_v22, %v6750_v7  ;;  %v6720_v49 = vmul.f32 0.2, %v13916_v61  ;;  %v13918_v52 = vadd.f32 %v6088_v1, %v17739_v62  ;;  %v6090_v63 = vpop.f32.mrb[7].mxu0  ;;  %8997 = vmatprep.subr.bf16.mxu0 %v17759_v42  ;;  %6611 = vmatprep.subr.bf16.mxu1 %v876_v35  ;;  %v2319_v14 = vpop.permute.xlu0 %2318 }
 0x517   : > { %v6815_v26 = vmax.f32 %v13915_v21, %v6751_v33  ;;  %v6721_v15 = vmul.f32 0.2, %v13917_v46  ;;  %v13919_v48 = vadd.f32 %v6090_v63, %v17739_v62  ;;  %13805 = vmatprep.mubr.msk.bf16.mxu1 %vm3840_vm0, %v17364_v18  ;;  %v2356_v17 = vsel %vm2320_vm5, %v2317_v10, %v2319_v14  ;;  %v3057_v40 = vpop.permute.xlu1 %3056 }
 0x518   : > { %v17810_v37 = vpack.c.bf16 %v6814_v55, %v6782_v43  ;;  %v6752_v19 = vmul.f32 0.2, %v13918_v52  ;;  %6599 = vmatmul.mubr.bf16.vlgmr.msra.gmra.mrb[28].mxu0 %v17466_v38  ;;  %v6784_v50 = vmax.f32 %v13916_v61, %v6720_v49  ;;  %v3095_v28 = vsel %vm3060_vm7, %v17421_v39, %v3057_v40 }
 0x519   : > { %v17817_v57 = vpack.c.bf16 %v6815_v26, %v6783_v30  ;;  %v6753_v13 = vmul.f32 0.2, %v13919_v48  ;;  %6612 = vmatpush1.bf16.msra.mxu1 %v875_v23  ;;  %8998 = vmatpush1.bf16.msra.mxu0 %v17757_v2  ;;  %v6785_v18 = vmax.f32 %v13917_v46, %v6721_v15 }
 0x51a   : > { %v6816_v27 = vmax.f32 %v13918_v52, %v6752_v19  ;;  %7038 = vrot.lane.b32.xlu0 %v17810_v37, %s14702_s9  ;;  %7259 = vrot.lane.b32.xlu1 %v17810_v37, %s14703_s30  ;;  %v2689_v32 = vpop.permute.xlu0 %2688 }
 0x51b   : > { %v6817_v24 = vmax.f32 %v13919_v48, %v6753_v13  ;;  %6613 = vmatprep.subr.bf16.mxu1 %v1246_v53  ;;  %v2726_v6 = vsel %vm2690_vm6, %v2687_v41, %v2689_v32  ;;  %v3427_v3 = vpop.permute.xlu1 %3426  ;;  %13808 = vmatprep.mubr.msk.bf16.mxu0 %vm3840_vm0, %v17920_v11 }
 0x51c   : > { %v17824_v16 = vpack.c.bf16 %v6816_v27, %v6784_v50  ;;  %v3465_v21 = vsel %vm3430_vm8, %v17441_v56, %v3427_v3 }
 0x51d   : > { %v17831_v12 = vpack.c.bf16 %v6817_v24, %v6785_v18  ;;  %6614 = vmatpush1.bf16.msra.mxu1 %v1245_v51 }
 0x51e   : > { %7255 = vrot.lane.b32.xlu0 %v17757_v2, %s14703_s30  ;;  %7476 = vrot.lane.b32.xlu1 %v17757_v2, %s14704_s23  ;;  %v3059_v4 = vpop.permute.xlu0 %3058 }
 0x51f   : > { %6615 = vmatprep.subr.bf16.mxu1 %v1616_v47  ;;  %v3096_v5 = vsel %vm3060_vm7, %v3057_v40, %v3059_v4 }
 0x521   : > { %6616 = vmatpush1.bf16.msra.mxu1 %v1615_v59 }
 0x522   : > { %7480 = vrot.lane.b32.xlu0 %v17810_v37, %s14704_s23  ;;  %7701 = vrot.lane.b32.xlu1 %v17810_v37, %s14705_s21  ;;  %v3429_v34 = vpop.permute.xlu0 %3428 }
 0x523   : > { %6617 = vmatprep.subr.bf16.mxu1 %v1986_v60  ;;  %v3466_v22 = vsel %vm3430_vm8, %v3427_v3, %v3429_v34 }
 0x525   : > { %6618 = vmatpush1.bf16.msra.mxu1 %v1985_v58 }
 0x526   : > { %7697 = vrot.lane.b32.xlu0 %v17757_v2, %s14705_s21  ;;  %7918 = vrot.lane.b32.xlu1 %v17757_v2, %s14706_s22 }
 0x527   : > { %6619 = vmatprep.subr.bf16.mxu1 %v2356_v17 }
 0x529   : > { %6620 = vmatpush1.bf16.msra.mxu1 %v2355_v9 }
 0x52a   : > { %7922 = vrot.lane.b32.xlu0 %v17810_v37, %s14706_s22  ;;  %8143 = vrot.lane.b32.xlu1 %v17810_v37, %s14707_s10 }
 0x52b   : > { %6621 = vmatprep.subr.bf16.mxu1 %v2726_v6 }
 0x52d   : > { %6622 = vmatpush1.bf16.msra.mxu1 %v2725_v25 }
 0x52e   : > { %8139 = vrot.lane.b32.xlu0 %v17757_v2, %s14707_s10  ;;  %8360 = vrot.lane.b32.xlu1 %v17757_v2, %s14708_s19 }
 0x52f   : > { %6623 = vmatprep.subr.bf16.mxu1 %v3096_v5 }
 0x531   : > { %6624 = vmatpush1.bf16.msra.mxu1 %v3095_v28 }
 0x532   : > { %8364 = vrot.lane.b32.xlu0 %v17810_v37, %s14708_s19  ;;  %8585 = vrot.lane.b32.xlu1 %v17810_v37, %s14709_s11 }
 0x533   : > { %v6127_v36 = vpop.f32.mrb[4].mxu1  ;;  %6625 = vmatprep.subr.bf16.mxu1 %v3466_v22 }
 0x534   : > { %v13920_v20 = vadd.f32 %v6127_v36, %v17733_v44  ;;  %v6129_v45 = vpop.f32.mrb[5].mxu1 }
 0x535   : > { %v13921_v8 = vadd.f32 %v6129_v45, %v17733_v44  ;;  %v6131_v39 = vpop.f32.mrb[6].mxu1  ;;  %6626 = vmatpush1.bf16.msra.mxu1 %v3465_v21 }
 0x536   : > { %v6722_v35 = vmul.f32 0.2, %v13920_v20  ;;  %v13922_v7 = vadd.f32 %v6131_v39, %v17739_v62  ;;  %v6133_v61 = vpop.f32.mrb[7].mxu1  ;;  %9040 = vmatprep.subr.bf16.mxu1 %v17817_v57  ;;  %8581 = vrot.lane.b32.xlu0 %v17757_v2, %s14709_s11 }
 0x537   : > { %v6723_v0 = vmul.f32 0.2, %v13921_v8  ;;  %v13923_v33 = vadd.f32 %v6133_v61, %v17739_v62  ;;  %7036 = vrot.lane.b32.xlu1 %v17759_v42, %s14702_s9  ;;  %v6170_v56 = vpop.f32.mrb[8].mxu0 }
 0x538   : > { %v6754_v46 = vmul.f32 0.2, %v13922_v7  ;;  %v13924_v1 = vadd.f32 %v6170_v56, %v17733_v44  ;;  %v6172_v29 = vpop.f32.mrb[9].mxu0  ;;  %6642 = vmatmul.mubr.bf16.vlgmr.msra.gmra.mrb[28].mxu1 %v17466_v38  ;;  %v6786_v2 = vmax.f32 %v13920_v20, %v6722_v35 }
 0x539   : > { %v6755_v43 = vmul.f32 0.2, %v13923_v33  ;;  %v13925_v55 = vadd.f32 %v6172_v29, %v17733_v44  ;;  %v6174_v49 = vpop.f32.mrb[10].mxu0  ;;  %9041 = vmatpush1.bf16.msra.mxu1 %v17810_v37  ;;  %v6787_v26 = vmax.f32 %v13921_v8, %v6723_v0  ;;  %13809 = vmatprep.mubr.msk.bf16.mxu1 %vm3840_vm0, %v17920_v11 }
 0x53a   : > { %v6818_v52 = vmax.f32 %v13922_v7, %v6754_v46  ;;  %v6724_v63 = vmul.f32 0.2, %v13924_v1  ;;  %v13926_v54 = vadd.f32 %v6174_v49, %v17739_v62  ;;  %7040 = vrot.lane.b32.xlu0 %v17817_v57, %s14702_s9  ;;  %v6176_v30 = vpop.f32.mrb[11].mxu0 }
 0x53b   : > { %v6819_v15 = vmax.f32 %v13923_v33, %v6755_v43  ;;  %v6725_v48 = vmul.f32 0.2, %v13925_v55  ;;  %7261 = vrot.lane.b32.xlu1 %v17817_v57, %s14703_s30  ;;  %v13927_v38 = vadd.f32 %v6176_v30, %v17739_v62 }
 0x53c   : > { %v17894_v19 = vpack.c.bf16 %v6818_v52, %v6786_v2  ;;  %v6756_v31 = vmul.f32 0.2, %v13926_v54  ;;  %v6788_v13 = vmax.f32 %v13924_v1, %v6724_v63 }
 0x53d   : > { %v17896_v23 = vpack.c.bf16 %v6819_v15, %v6787_v26  ;;  %v6757_v53 = vmul.f32 0.2, %v13927_v38  ;;  %v6789_v27 = vmax.f32 %v13925_v55, %v6725_v48 }
 0x53e   : > { %23800 = vst [vmem:[#allocation171_spill] sm:$0xff] %v17894_v19  ;;  %v6820_v50 = vmax.f32 %v13926_v54, %v6756_v31  ;;  %7257 = vrot.lane.b32.xlu0 %v17759_v42, %s14703_s30 }
 0x53f   : > { %23801 = vst [vmem:[#allocation170_spill] sm:$0xff] %v17896_v23  ;;  %v6821_v18 = vmax.f32 %v13927_v38, %v6757_v53  ;;  %7478 = vrot.lane.b32.xlu1 %v17759_v42, %s14704_s23 }
 0x540   : > { %v17902_v24 = vpack.c.bf16 %v6820_v50, %v6788_v13 }
 0x541   : > { %v17904_v14 = vpack.c.bf16 %v6821_v18, %v6789_v27 }
 0x542   : > { %23802 = vst [vmem:[#allocation175_spill] sm:$0xff] %v17902_v24  ;;  %7482 = vrot.lane.b32.xlu0 %v17817_v57, %s14704_s23 }
 0x543   : > { %23803 = vst [vmem:[#allocation183_spill] sm:$0xff] %v17904_v14  ;;  %7703 = vrot.lane.b32.xlu1 %v17817_v57, %s14705_s21 }
 0x546   : > { %7699 = vrot.lane.b32.xlu0 %v17759_v42, %s14705_s21 }
 0x547   : > { %7920 = vrot.lane.b32.xlu1 %v17759_v42, %s14706_s22 }
 0x54a   : > { %7924 = vrot.lane.b32.xlu0 %v17817_v57, %s14706_s22 }
 0x54b   : > { %8145 = vrot.lane.b32.xlu1 %v17817_v57, %s14707_s10 }
 0x54e   : > { %8141 = vrot.lane.b32.xlu0 %v17759_v42, %s14707_s10 }
 0x54f   : > { %8362 = vrot.lane.b32.xlu1 %v17759_v42, %s14708_s19 }
 0x552   : > { %8366 = vrot.lane.b32.xlu0 %v17817_v57, %s14708_s19 }
 0x553   : > { %8587 = vrot.lane.b32.xlu1 %v17817_v57, %s14709_s11 }
 0x556   : > { %8583 = vrot.lane.b32.xlu0 %v17759_v42, %s14709_s11 }
 0x557   : > { %7042 = vrot.lane.b32.xlu1 %v17824_v16, %s14702_s9  ;;  %v6213_v51 = vpop.f32.mrb[8].mxu1 }
 0x558   : > { %v13928_v47 = vadd.f32 %v6213_v51, %v17733_v44  ;;  %v6215_v10 = vpop.f32.mrb[9].mxu1 }
 0x559   : > { %v13929_v59 = vadd.f32 %v6215_v10, %v17733_v44  ;;  %v6217_v60 = vpop.f32.mrb[10].mxu1 }
 0x55a   : > { %v6726_v32 = vmul.f32 0.2, %v13928_v47  ;;  %v13930_v41 = vadd.f32 %v6217_v60, %v17739_v62  ;;  %v6219_v58 = vpop.f32.mrb[11].mxu1  ;;  %7263 = vrot.lane.b32.xlu0 %v17824_v16, %s14703_s30 }
 0x55b   : > { %v6727_v17 = vmul.f32 0.2, %v13929_v59  ;;  %v13931_v42 = vadd.f32 %v6219_v58, %v17739_v62  ;;  %7484 = vrot.lane.b32.xlu1 %v17824_v16, %s14704_s23  ;;  %v6256_v4 = vpop.f32.mrb[12].mxu0 }
 0x55c   : > { %v6758_v9 = vmul.f32 0.2, %v13930_v41  ;;  %v13932_v6 = vadd.f32 %v6256_v4, %v17733_v44  ;;  %v6258_v40 = vpop.f32.mrb[13].mxu0  ;;  %v6790_v3 = vmax.f32 %v13928_v47, %v6726_v32 }
 0x55d   : > { %v6759_v25 = vmul.f32 0.2, %v13931_v42  ;;  %v13933_v5 = vadd.f32 %v6258_v40, %v17733_v44  ;;  %v6260_v34 = vpop.f32.mrb[14].mxu0  ;;  %v6791_v45 = vmax.f32 %v13929_v59, %v6727_v17 }
 0x55e   : > { %v6822_v28 = vmax.f32 %v13930_v41, %v6758_v9  ;;  %v6728_v22 = vmul.f32 0.2, %v13932_v6  ;;  %v13934_v36 = vadd.f32 %v6260_v34, %v17739_v62  ;;  %7705 = vrot.lane.b32.xlu0 %v17824_v16, %s14705_s21  ;;  %v6262_v20 = vpop.f32.mrb[15].mxu0 }
 0x55f   : > { %v6823_v21 = vmax.f32 %v13931_v42, %v6759_v25  ;;  %v6729_v8 = vmul.f32 0.2, %v13933_v5  ;;  %7926 = vrot.lane.b32.xlu1 %v17824_v16, %s14706_s22  ;;  %v13935_v39 = vadd.f32 %v6262_v20, %v17739_v62 }
 0x560   : > { %v17952_v35 = vpack.c.bf16 %v6822_v28, %v6790_v3  ;;  %v6760_v7 = vmul.f32 0.2, %v13934_v36  ;;  %v6792_v33 = vmax.f32 %v13932_v6, %v6728_v22 }
 0x561   : > { %v17954_v61 = vpack.c.bf16 %v6823_v21, %v6791_v45  ;;  %v6761_v0 = vmul.f32 0.2, %v13935_v39  ;;  %v6793_v46 = vmax.f32 %v13933_v5, %v6729_v8 }
 0x562   : > { %23804 = vst [vmem:[#allocation187_spill] sm:$0xff] %v17952_v35  ;;  %v6824_v56 = vmax.f32 %v13934_v36, %v6760_v7  ;;  %8147 = vrot.lane.b32.xlu0 %v17824_v16, %s14707_s10 }
 0x563   : > { %23805 = vst [vmem:[#allocation192_spill] sm:$0xff] %v17954_v61  ;;  %v6825_v1 = vmax.f32 %v13935_v39, %v6761_v0  ;;  %8368 = vrot.lane.b32.xlu1 %v17824_v16, %s14708_s19 }
 0x564   : > { %v17960_v29 = vpack.c.bf16 %v6824_v56, %v6792_v33 }
 0x565   : > { %v17962_v43 = vpack.c.bf16 %v6825_v1, %v6793_v46 }
 0x566   : > { %23806 = vst [vmem:[#allocation195_spill] sm:$0xff] %v17960_v29  ;;  %8589 = vrot.lane.b32.xlu0 %v17824_v16, %s14709_s11 }
 0x567   : > { %23807 = vst [vmem:[#allocation204_spill] sm:$0xff] %v17962_v43  ;;  %7044 = vrot.lane.b32.xlu1 %v17831_v12, %s14702_s9 }
 0x56a   : > { %7046 = vrot.lane.b32.xlu0 %v17894_v19, %s14702_s9 }
 0x56b   : > { %7048 = vrot.lane.b32.xlu1 %v17896_v23, %s14702_s9 }
 0x56d   : > { %v18012_v3 = vpop.permute.xlu1 %7034 }
 0x56e   : > { %7267 = vrot.lane.b32.xlu0 %v17894_v19, %s14703_s30 }
 0x56f   : > { %7265 = vrot.lane.b32.xlu1 %v17831_v12, %s14703_s30 }
 0x572   : > { %7488 = vrot.lane.b32.xlu0 %v17894_v19, %s14704_s23 }
 0x573   : > { %7269 = vrot.lane.b32.xlu1 %v17896_v23, %s14703_s30 }
 0x576   : > { %7709 = vrot.lane.b32.xlu0 %v17894_v19, %s14705_s21 }
 0x577   : > { %7486 = vrot.lane.b32.xlu1 %v17831_v12, %s14704_s23 }
 0x57a   : > { %7930 = vrot.lane.b32.xlu0 %v17894_v19, %s14706_s22 }
 0x57b   : > { %7490 = vrot.lane.b32.xlu1 %v17896_v23, %s14704_s23  ;;  %v6299_v55 = vpop.f32.mrb[12].mxu1 }
 0x57c   : > { %v13936_v49 = vadd.f32 %v6299_v55, %v17733_v44  ;;  %v6301_v2 = vpop.f32.mrb[13].mxu1 }
 0x57d   : > { %v13937_v52 = vadd.f32 %v6301_v2, %v17733_v44  ;;  %v6303_v63 = vpop.f32.mrb[14].mxu1 }
 0x57e   : > { %v6730_v54 = vmul.f32 0.2, %v13936_v49  ;;  %v13938_v30 = vadd.f32 %v6303_v63, %v17739_v62  ;;  %v6305_v26 = vpop.f32.mrb[15].mxu1  ;;  %8151 = vrot.lane.b32.xlu0 %v17894_v19, %s14707_s10 }
 0x57f   : > { %v6731_v15 = vmul.f32 0.2, %v13937_v52  ;;  %v13939_v48 = vadd.f32 %v6305_v26, %v17739_v62  ;;  %7707 = vrot.lane.b32.xlu1 %v17831_v12, %s14705_s21  ;;  %v6342_v38 = vpop.f32.mrb[16].mxu0 }
 0x580   : > { %v6762_v31 = vmul.f32 0.2, %v13938_v30  ;;  %v13940_v53 = vadd.f32 %v6342_v38, %v17733_v44  ;;  %v6344_v13 = vpop.f32.mrb[17].mxu0  ;;  %v6794_v51 = vmax.f32 %v13936_v49, %v6730_v54 }
 0x581   : > { %v6763_v50 = vmul.f32 0.2, %v13939_v48  ;;  %v13941_v27 = vadd.f32 %v6344_v13, %v17733_v44  ;;  %v6346_v18 = vpop.f32.mrb[18].mxu0  ;;  %v6795_v32 = vmax.f32 %v13937_v52, %v6731_v15 }
 0x582   : > { %v6826_v47 = vmax.f32 %v13938_v30, %v6762_v31  ;;  %v6732_v10 = vmul.f32 0.2, %v13940_v53  ;;  %v13942_v59 = vadd.f32 %v6346_v18, %v17739_v62  ;;  %8372 = vrot.lane.b32.xlu0 %v17894_v19, %s14708_s19  ;;  %v6348_v60 = vpop.f32.mrb[19].mxu0 }
 0x583   : > { %v6827_v41 = vmax.f32 %v13939_v48, %v6763_v50  ;;  %v6733_v58 = vmul.f32 0.2, %v13941_v27  ;;  %7711 = vrot.lane.b32.xlu1 %v17896_v23, %s14705_s21  ;;  %v13943_v17 = vadd.f32 %v6348_v60, %v17739_v62 }
 0x584   : > { %v18004_v42 = vpack.c.bf16 %v6826_v47, %v6794_v51  ;;  %v6764_v4 = vmul.f32 0.2, %v13942_v59  ;;  %v6796_v40 = vmax.f32 %v13940_v53, %v6732_v10 }
 0x585   : > { %v18006_v9 = vpack.c.bf16 %v6827_v41, %v6795_v32  ;;  %v6765_v6 = vmul.f32 0.2, %v13943_v17  ;;  %v6797_v5 = vmax.f32 %v13941_v27, %v6733_v58 }
 0x586   : > { %23808 = vst [vmem:[#allocation203_spill] sm:$0xff] %v18004_v42  ;;  %v6828_v25 = vmax.f32 %v13942_v59, %v6764_v4  ;;  %8593 = vrot.lane.b32.xlu0 %v17894_v19, %s14709_s11 }
 0x587   : > { %23809 = vst [vmem:[#allocation207_spill] sm:$0xff] %v18006_v9  ;;  %v6829_v34 = vmax.f32 %v13943_v17, %v6765_v6  ;;  %7928 = vrot.lane.b32.xlu1 %v17831_v12, %s14706_s22 }
 0x588   : > { %v18014_v28 = vpack.c.bf16 %v6828_v25, %v6796_v40 }
 0x589   : > { %v18016_v22 = vpack.c.bf16 %v6829_v34, %v6797_v5 }
 0x58a   : > { %23810 = vst [vmem:[#allocation210_spill] sm:$0xff] %v18014_v28  ;;  %7050 = vrot.lane.b32.xlu0 %v17902_v24, %s14702_s9 }
 0x58b   : > { %23811 = vst [vmem:[#allocation17_spill] sm:$0xff] %v18016_v22  ;;  %7932 = vrot.lane.b32.xlu1 %v17896_v23, %s14706_s22 }
 0x58c   : > { %v18022_v36 = vpop.permute.xlu0 %7038  ;;  %v18024_v20 = vpop.permute.xlu1 %7259 }
 0x58e   : > { %7271 = vrot.lane.b32.xlu0 %v17902_v24, %s14703_s30 }
 0x58f   : > { %8149 = vrot.lane.b32.xlu1 %v17831_v12, %s14707_s10 }
 0x590   : > { %v18030_v45 = vpop.permute.xlu0 %7255  ;;  %v18032_v21 = vpop.permute.xlu1 %7476 }
 0x592   : > { %7492 = vrot.lane.b32.xlu0 %v17902_v24, %s14704_s23 }
 0x593   : > { %8153 = vrot.lane.b32.xlu1 %v17896_v23, %s14707_s10 }
 0x594   : > { %v18038_v8 = vpop.permute.xlu0 %7480  ;;  %v18040_v39 = vpop.permute.xlu1 %7701 }
 0x596   : > { %7713 = vrot.lane.b32.xlu0 %v17902_v24, %s14705_s21 }
 0x597   : > { %8370 = vrot.lane.b32.xlu1 %v17831_v12, %s14708_s19 }
 0x598   : > { %v18046_v7 = vpop.permute.xlu0 %7697  ;;  %v18048_v0 = vpop.permute.xlu1 %7918 }
 0x59a   : > { %7934 = vrot.lane.b32.xlu0 %v17902_v24, %s14706_s22 }
 0x59b   : > { %8374 = vrot.lane.b32.xlu1 %v17896_v23, %s14708_s19 }
 0x59c   : > { %v18054_v33 = vpop.permute.xlu0 %7922  ;;  %v18056_v56 = vpop.permute.xlu1 %8143 }
 0x59e   : > { %8155 = vrot.lane.b32.xlu0 %v17902_v24, %s14707_s10 }
 0x59f   : > { %8591 = vrot.lane.b32.xlu1 %v17831_v12, %s14709_s11  ;;  %v6385_v46 = vpop.f32.mrb[16].mxu1 }
 0x5a0   : > { %v13944_v1 = vadd.f32 %v6385_v46, %v17733_v44  ;;  %v6387_v55 = vpop.f32.mrb[17].mxu1  ;;  %v18063_v49 = vpop.permute.xlu0 %8139 }
 0x5a1   : > { %v13945_v2 = vadd.f32 %v6387_v55, %v17733_v44  ;;  %v18066_v52 = vpop.permute.xlu1 %8360  ;;  %v6389_v63 = vpop.f32.mrb[18].mxu1 }
 0x5a2   : > { %v6734_v54 = vmul.f32 0.2, %v13944_v1  ;;  %v13946_v30 = vadd.f32 %v6389_v63, %v17739_v62  ;;  %v6391_v26 = vpop.f32.mrb[19].mxu1  ;;  %8376 = vrot.lane.b32.xlu0 %v17902_v24, %s14708_s19 }
 0x5a3   : > { %v6735_v15 = vmul.f32 0.2, %v13945_v2  ;;  %v13947_v48 = vadd.f32 %v6391_v26, %v17739_v62  ;;  %8595 = vrot.lane.b32.xlu1 %v17896_v23, %s14709_s11  ;;  %v6428_v38 = vpop.f32.mrb[20].mxu0 }
 0x5a4   : > { %v6766_v31 = vmul.f32 0.2, %v13946_v30  ;;  %v13948_v53 = vadd.f32 %v6428_v38, %v17733_v44  ;;  %v18075_v13 = vpop.permute.xlu0 %8364  ;;  %v6430_v50 = vpop.f32.mrb[21].mxu0  ;;  %v6798_v10 = vmax.f32 %v13944_v1, %v6734_v54 }
 0x5a5   : > { %v6767_v27 = vmul.f32 0.2, %v13947_v48  ;;  %v18077_v18 = vpop.permute.xlu1 %8585  ;;  %v13949_v51 = vadd.f32 %v6430_v50, %v17733_v44  ;;  %v6432_v47 = vpop.f32.mrb[22].mxu0  ;;  %v6799_v58 = vmax.f32 %v13945_v2, %v6735_v15 }
 0x5a6   : > { %v6830_v59 = vmax.f32 %v13946_v30, %v6766_v31  ;;  %v6736_v60 = vmul.f32 0.2, %v13948_v53  ;;  %v13950_v32 = vadd.f32 %v6432_v47, %v17739_v62  ;;  %8597 = vrot.lane.b32.xlu0 %v17902_v24, %s14709_s11  ;;  %v6434_v41 = vpop.f32.mrb[23].mxu0 }
 0x5a7   : > { %v6831_v17 = vmax.f32 %v13947_v48, %v6767_v27  ;;  %v6737_v4 = vmul.f32 0.2, %v13949_v51  ;;  %7052 = vrot.lane.b32.xlu1 %v17904_v14, %s14702_s9  ;;  %v13951_v6 = vadd.f32 %v6434_v41, %v17739_v62 }
 0x5a8   : > { %v18086_v40 = vpack.c.bf16 %v6830_v59, %v6798_v10  ;;  %v6768_v25 = vmul.f32 0.2, %v13950_v32  ;;  %v18088_v5 = vpop.permute.xlu0 %8581  ;;  %v6800_v55 = vmax.f32 %v13948_v53, %v6736_v60 }
 0x5a9   : > { %v18090_v34 = vpack.c.bf16 %v6831_v17, %v6799_v58  ;;  %v6769_v46 = vmul.f32 0.2, %v13951_v6  ;;  %v7037_v1 = vpop.permute.xlu1 %7036  ;;  %v6801_v30 = vmax.f32 %v13949_v51, %v6737_v4 }
 0x5aa   : > { %23812 = vst [vmem:[#allocation14_spill] sm:$0xff] %v18086_v40  ;;  %v6832_v63 = vmax.f32 %v13950_v32, %v6768_v25  ;;  %v7099_v2 = vsel %vm840_vm1, %v7037_v1, %v18022_v36  ;;  %7054 = vrot.lane.b32.xlu0 %v17952_v35, %s14702_s9  ;;  %v7098_v54 = vsel %vm840_vm1, %v18012_v3, %v7037_v1 }
 0x5ab   : > { %23813 = vst [vmem:[#allocation21_spill] sm:$0xff] %v18090_v34  ;;  %v6833_v26 = vmax.f32 %v13951_v6, %v6769_v46  ;;  %8999 = vmatprep.subr.bf16.mxu0 %v7099_v2  ;;  %7056 = vrot.lane.b32.xlu1 %v17954_v61, %s14702_s9 }
 0x5ac   : > { %v18100_v15 = vpack.c.bf16 %v6832_v63, %v6800_v55  ;;  %9000 = vmatpush1.bf16.msra.mxu0 %v7098_v54  ;;  %v18102_v48 = vpop.permute.xlu0 %7040 }
 0x5ad   : > { %v18104_v38 = vpack.c.bf16 %v6833_v26, %v6801_v30  ;;  %v18106_v31 = vpop.permute.xlu1 %7261 }
 0x5ae   : > { %23814 = vst [vmem:[#allocation18_spill] sm:$0xff] %v18100_v15  ;;  %7275 = vrot.lane.b32.xlu0 %v17952_v35, %s14703_s30 }
 0x5af   : > { %23815 = vst [vmem:[#allocation20_spill] sm:$0xff] %v18104_v38  ;;  %7273 = vrot.lane.b32.xlu1 %v17904_v14, %s14703_s30 }
 0x5b0   : > { %v7258_v3 = vpop.permute.xlu0 %7257 }
 0x5b1   : > { %v7479_v53 = vpop.permute.xlu1 %7478  ;;  %v7320_v50 = vsel %vm1210_vm2, %v7258_v3, %v18024_v20  ;;  %v7319_v27 = vsel %vm1210_vm2, %v18030_v45, %v7258_v3 }
 0x5b2   : > { %9001 = vmatprep.subr.bf16.mxu0 %v7320_v50  ;;  %7496 = vrot.lane.b32.xlu0 %v17952_v35, %s14704_s23  ;;  %v7541_v51 = vsel %vm1580_vm3, %v7479_v53, %v18038_v8  ;;  %v7540_v45 = vsel %vm1580_vm3, %v18032_v21, %v7479_v53 }
 0x5b3   : > { %7277 = vrot.lane.b32.xlu1 %v17954_v61, %s14703_s30  ;;  %9002 = vmatpush1.bf16.msra.mxu0 %v7319_v27 }
 0x5b4   : > { %v18122_v47 = vpop.permute.xlu0 %7482  ;;  %9003 = vmatprep.subr.bf16.mxu0 %v7541_v51 }
 0x5b5   : > { %v18124_v10 = vpop.permute.xlu1 %7703 }
 0x5b6   : > { %7717 = vrot.lane.b32.xlu0 %v17952_v35, %s14705_s21 }
 0x5b7   : > { %7494 = vrot.lane.b32.xlu1 %v17904_v14, %s14704_s23  ;;  %9004 = vmatpush1.bf16.msra.mxu0 %v7540_v45 }
 0x5b8   : > { %v7700_v59 = vpop.permute.xlu0 %7699 }
 0x5b9   : > { %v7921_v60 = vpop.permute.xlu1 %7920  ;;  %v7762_v32 = vsel %vm1950_vm4, %v7700_v59, %v18040_v39  ;;  %v7761_v41 = vsel %vm1950_vm4, %v18046_v7, %v7700_v59 }
 0x5ba   : > { %9005 = vmatprep.subr.bf16.mxu0 %v7762_v32  ;;  %7938 = vrot.lane.b32.xlu0 %v17952_v35, %s14706_s22  ;;  %v7983_v21 = vsel %vm2320_vm5, %v7921_v60, %v18054_v33  ;;  %v7982_v7 = vsel %vm2320_vm5, %v18048_v0, %v7921_v60 }
 0x5bb   : > { %7498 = vrot.lane.b32.xlu1 %v17954_v61, %s14704_s23  ;;  %9006 = vmatpush1.bf16.msra.mxu0 %v7761_v41 }
 0x5bc   : > { %v18142_v58 = vpop.permute.xlu0 %7924  ;;  %9007 = vmatprep.subr.bf16.mxu0 %v7983_v21 }
 0x5bd   : > { %v18144_v17 = vpop.permute.xlu1 %8145 }
 0x5be   : > { %8159 = vrot.lane.b32.xlu0 %v17952_v35, %s14707_s10 }
 0x5bf   : > { %7715 = vrot.lane.b32.xlu1 %v17904_v14, %s14705_s21  ;;  %9008 = vmatpush1.bf16.msra.mxu0 %v7982_v7  ;;  %v18180_v7 = vsel %vm840_vm1, %v18022_v36, %v18102_v48 }
 0x5c0   : > { %v8142_v4 = vpop.permute.xlu0 %8141 }
 0x5c1   : > { %v8363_v6 = vpop.permute.xlu1 %8362  ;;  %v8204_v25 = vsel %vm2690_vm6, %v8142_v4, %v18056_v56  ;;  %v8203_v46 = vsel %vm2690_vm6, %v18063_v49, %v8142_v4 }
 0x5c2   : > { %9009 = vmatprep.subr.bf16.mxu0 %v8204_v25  ;;  %8380 = vrot.lane.b32.xlu0 %v17952_v35, %s14708_s19  ;;  %v8425_v1 = vsel %vm3060_vm7, %v8363_v6, %v18075_v13  ;;  %v8424_v50 = vsel %vm3060_vm7, %v18066_v52, %v8363_v6 }
 0x5c3   : > { %7719 = vrot.lane.b32.xlu1 %v17954_v61, %s14705_s21  ;;  %v6471_v0 = vpop.f32.mrb[20].mxu1  ;;  %9010 = vmatpush1.bf16.msra.mxu0 %v8203_v46 }
 0x5c4   : > { %v13952_v55 = vadd.f32 %v6471_v0, %v17733_v44  ;;  %v6473_v63 = vpop.f32.mrb[21].mxu1  ;;  %v18163_v2 = vpop.permute.xlu0 %8366  ;;  %9011 = vmatprep.subr.bf16.mxu0 %v8425_v1 }
 0x5c5   : > { %v13953_v49 = vadd.f32 %v6473_v63, %v17733_v44  ;;  %v18166_v54 = vpop.permute.xlu1 %8587  ;;  %v6475_v30 = vpop.f32.mrb[22].mxu1 }
 0x5c6   : > { %v6738_v26 = vmul.f32 0.2, %v13952_v55  ;;  %v13954_v3 = vadd.f32 %v6475_v30, %v17739_v62  ;;  %v6477_v53 = vpop.f32.mrb[23].mxu1  ;;  %8601 = vrot.lane.b32.xlu0 %v17952_v35, %s14709_s11 }
 0x5c7   : > { %v6739_v27 = vmul.f32 0.2, %v13953_v49  ;;  %v13955_v51 = vadd.f32 %v6477_v53, %v17739_v62  ;;  %7936 = vrot.lane.b32.xlu1 %v17904_v14, %s14706_s22  ;;  %v6514_v45 = vpop.f32.mrb[24].mxu0  ;;  %9012 = vmatpush1.bf16.msra.mxu0 %v8424_v50  ;;  %v18201_v50 = vld [vmem:[#allocation9] ss:$8 sps:$4 sm:$0xff]  }
 0x5c8   : > { %v6802_v59 = vmax.f32 %v13952_v55, %v6738_v26  ;;  %v6770_v60 = vmul.f32 0.2, %v13954_v3  ;;  %v13956_v32 = vadd.f32 %v6514_v45, %v17733_v44  ;;  %v8584_v41 = vpop.permute.xlu0 %8583  ;;  %v6516_v21 = vpop.f32.mrb[25].mxu0 }
 0x5c9   : > { %v6803_v52 = vmax.f32 %v13953_v49, %v6739_v27  ;;  %v6771_v4 = vmul.f32 0.2, %v13955_v51  ;;  %v18182_v6 = vpop.permute.xlu1 %7042  ;;  %v13957_v25 = vadd.f32 %v6516_v21, %v17733_v44  ;;  %v6518_v46 = vpop.f32.mrb[26].mxu0  ;;  %v8646_v0 = vsel %vm3430_vm8, %v8584_v41, %v18077_v18 }
 0x5ca   : > { %v6834_v1 = vmax.f32 %v13954_v3, %v6770_v60  ;;  %v6740_v55 = vmul.f32 0.2, %v13956_v32  ;;  %v13958_v63 = vadd.f32 %v6518_v46, %v17739_v62  ;;  %9013 = vmatprep.subr.bf16.mxu0 %v8646_v0  ;;  %v18191_v36 = vsel %vm840_vm1, %v18102_v48, %v18182_v6  ;;  %7058 = vrot.lane.b32.xlu0 %v17960_v29, %s14702_s9  ;;  %v6520_v49 = vpop.f32.mrb[27].mxu0 }
 0x5cb   : > { %v6835_v30 = vmax.f32 %v13955_v51, %v6771_v4  ;;  %v6741_v26 = vmul.f32 0.2, %v13957_v25  ;;  %9042 = vmatprep.subr.bf16.mxu1 %v18191_v36  ;;  %7940 = vrot.lane.b32.xlu1 %v17954_v61, %s14706_s22  ;;  %v13959_v3 = vadd.f32 %v6520_v49, %v17739_v62  ;;  %v8645_v53 = vsel %vm3430_vm8, %v18088_v5, %v8584_v41 }
 0x5cc   : > { %v18203_v48 = vpack.c.bf16 %v6834_v1, %v6802_v59  ;;  %v6772_v27 = vmul.f32 0.2, %v13958_v63  ;;  %9014 = vmatpush1.bf16.msra.mxu0 %v8645_v53  ;;  %9043 = vmatpush1.bf16.msra.mxu1 %v18180_v7  ;;  %v18206_v51 = vpop.permute.xlu0 %7263  ;;  %v6804_v59 = vmax.f32 %v13956_v32, %v6740_v55  ;;  %v18227_v46 = vsel %vm1210_vm2, %v18024_v20, %v18106_v31 }
 0x5cd   : > { %v18208_v45 = vpack.c.bf16 %v6835_v30, %v6803_v52  ;;  %v6773_v60 = vmul.f32 0.2, %v13959_v3  ;;  %v18210_v21 = vpop.permute.xlu1 %7484  ;;  %9083 = vmatprep.subr.bf16.mxu0 %v17831_v12  ;;  %v18216_v5 = vsel %vm1210_vm2, %v18106_v31, %v18206_v51  ;;  %v6805_v4 = vmax.f32 %v13957_v25, %v6741_v26  ;;  %23819 = vst [vmem:[#allocation24_spill] sm:$0xff] %v18227_v46 }
 0x5ce   : > { %23816 = vst [vmem:[#allocation19_spill] sm:$0xff] %v18203_v48  ;;  %23818 = vst [vmem:[#allocation23_spill] sm:$0xff] %v18216_v5  ;;  %v6836_v41 = vmax.f32 %v13958_v63, %v6772_v27  ;;  %9044 = vmatprep.subr.bf16.mxu1 %v18216_v5  ;;  %7279 = vrot.lane.b32.xlu0 %v17960_v29, %s14703_s30  ;;  %v18238_v25 = vsel %vm1580_vm3, %v18122_v47, %v18210_v21 }
 0x5cf   : > { %23817 = vst [vmem:[#allocation25_spill] sm:$0xff] %v18208_v45  ;;  %v6837_v52 = vmax.f32 %v13959_v3, %v6773_v60  ;;  %8157 = vrot.lane.b32.xlu1 %v17904_v14, %s14707_s10  ;;  %9030 = vmatmul.mubr.bf16.vlgmr.msra.gmra.mrb[32].mxu0 %v18201_v50  ;;  %23821 = vst [vmem:[#allocation29_spill] sm:$0xff] %v18238_v25  ;;  %v18254_v20 = vsel %vm1580_vm3, %v18038_v8, %v18122_v47 }
 0x5d0   : > { %v18229_v0 = vpack.c.bf16 %v6836_v41, %v6804_v59  ;;  %9045 = vmatpush1.bf16.msra.mxu1 %v18227_v46  ;;  %9084 = vmatpush1.bf16.msra.mxu0 %v17824_v16  ;;  %v18233_v32 = vpop.permute.xlu0 %7705  ;;  %23823 = vst [vmem:[#allocation28_spill] sm:$0xff] %v18254_v20  ;;  %v18274_v8 = vsel %vm1950_vm4, %v18040_v39, %v18124_v10 }
 0x5d1   : > { %v18240_v1 = vpack.c.bf16 %v6837_v52, %v6805_v4  ;;  %9046 = vmatprep.subr.bf16.mxu1 %v18238_v25  ;;  %v18243_v55 = vpop.permute.xlu1 %7926  ;;  %13810 = vmatprep.mubr.msk.bf16.mxu0 %vm3840_vm0, %v17920_v11  ;;  %v18262_v63 = vsel %vm1950_vm4, %v18124_v10, %v18233_v32  ;;  %23825 = vst [vmem:[#allocation33_spill] sm:$0xff] %v18274_v8 }
 0x5d2   : > { %23820 = vst [vmem:[#allocation22_spill] sm:$0xff] %v18229_v0  ;;  %7500 = vrot.lane.b32.xlu0 %v17960_v29, %s14704_s23  ;;  %23824 = vst [vmem:[#allocation26_spill] sm:$0xff] %v18262_v63  ;;  %v18282_v30 = vsel %vm2320_vm5, %v18142_v58, %v18243_v55  ;;  %v18292_v39 = vsel %vm2320_vm5, %v18054_v33, %v18142_v58  ;;  %v18321_v58 = vsel %vm2690_vm6, %v18056_v56, %v18144_v17 }
 0x5d3   : > { %23822 = vst [vmem:[#allocation27_spill] sm:$0xff] %v18240_v1  ;;  %8161 = vrot.lane.b32.xlu1 %v17954_v61, %s14707_s10  ;;  %23826 = vst [vmem:[#allocation31_spill] sm:$0xff] %v18282_v30 }
 0x5d4   : > { %9047 = vmatpush1.bf16.msra.mxu1 %v18254_v20  ;;  %v18257_v31 = vpop.permute.xlu0 %8147  ;;  %23827 = vst [vmem:[#allocation32_spill] sm:$0xff] %v18292_v39  ;;  %23830 = vst [vmem:[#allocation35_spill] sm:$0xff] %v18321_v58 }
 0x5d5   : > { %9048 = vmatprep.subr.bf16.mxu1 %v18262_v63  ;;  %v18265_v49 = vpop.permute.xlu1 %8368  ;;  %v18300_v3 = vsel %vm2690_vm6, %v18144_v17, %v18257_v31  ;;  %v18349_v17 = vsel %vm3060_vm7, %v18075_v13, %v18163_v2 }
 0x5d6   : > { %7721 = vrot.lane.b32.xlu0 %v17960_v29, %s14705_s21  ;;  %23828 = vst [vmem:[#allocation30_spill] sm:$0xff] %v18300_v3  ;;  %v18330_v59 = vsel %vm3060_vm7, %v18163_v2, %v18265_v49  ;;  %23834 = vst [vmem:[#allocation39_spill] sm:$0xff] %v18349_v17  ;;  %v18370_v2 = vsel %vm3430_vm8, %v18077_v18, %v18166_v54 }
 0x5d7   : > { %8378 = vrot.lane.b32.xlu1 %v17904_v14, %s14708_s19  ;;  %23831 = vst [vmem:[#allocation36_spill] sm:$0xff] %v18330_v59  ;;  %23836 = vst [vmem:[#allocation38_spill] sm:$0xff] %v18370_v2 }
 0x5d8   : > { %9049 = vmatpush1.bf16.msra.mxu1 %v18274_v8  ;;  %v18277_v47 = vpop.permute.xlu0 %8589 }
 0x5d9   : > { %9050 = vmatprep.subr.bf16.mxu1 %v18282_v30  ;;  %v7045_v26 = vpop.permute.xlu1 %7044 }
 0x5da   : > { %7942 = vrot.lane.b32.xlu0 %v17960_v29, %s14706_s22  ;;  %v18314_v33 = vsel %vm840_vm1, %v18182_v6, %v7045_v26 }
 0x5db   : > { %8382 = vrot.lane.b32.xlu1 %v17954_v61, %s14708_s19  ;;  %23829 = vst [vmem:[#allocation37_spill] sm:$0xff] %v18314_v33 }
 0x5dc   : > { %9051 = vmatpush1.bf16.msra.mxu1 %v18292_v39  ;;  %v18295_v10 = vpop.permute.xlu0 %7046 }
 0x5dd   : > { %9052 = vmatprep.subr.bf16.mxu1 %v18300_v3  ;;  %v18303_v53 = vpop.permute.xlu1 %7048  ;;  %v18307_v27 = vsel %vm840_vm1, %v7045_v26, %v18295_v10 }
 0x5de   : > { %9085 = vmatprep.subr.bf16.mxu0 %v18307_v27  ;;  %8163 = vrot.lane.b32.xlu0 %v17960_v29, %s14707_s10 }
 0x5df   : > { %8599 = vrot.lane.b32.xlu1 %v17904_v14, %s14709_s11  ;;  %9086 = vmatpush1.bf16.msra.mxu0 %v18314_v33 }
 0x5e0   : > { %9053 = vmatpush1.bf16.msra.mxu1 %v18321_v58  ;;  %v18325_v60 = vpop.permute.xlu0 %7267 }
 0x5e1   : > { %9054 = vmatprep.subr.bf16.mxu1 %v18330_v59  ;;  %v7266_v6 = vpop.permute.xlu1 %7265 }
 0x5e2   : > { %v18335_v41 = vsel %vm1210_vm2, %v7266_v6, %v18325_v60  ;;  %8384 = vrot.lane.b32.xlu0 %v17960_v29, %s14708_s19  ;;  %v18341_v56 = vsel %vm1210_vm2, %v18206_v51, %v7266_v6  ;;  %v18358_v51 = vsel %vm3430_vm8, %v18166_v54, %v18277_v47 }
 0x5e3   : > { %23832 = vst [vmem:[#allocation34_spill] sm:$0xff] %v18335_v41  ;;  %23833 = vst [vmem:[#allocation41_spill] sm:$0xff] %v18341_v56  ;;  %9087 = vmatprep.subr.bf16.mxu0 %v18335_v41  ;;  %8603 = vrot.lane.b32.xlu1 %v17954_v61, %s14709_s11 }
 0x5e4   : > { %9055 = vmatpush1.bf16.msra.mxu1 %v18349_v17  ;;  %9088 = vmatpush1.bf16.msra.mxu0 %v18341_v56  ;;  %v18353_v4 = vpop.permute.xlu0 %7488  ;;  %23835 = vst [vmem:[#allocation40_spill] sm:$0xff] %v18358_v51 }
 0x5e5   : > { %9056 = vmatprep.subr.bf16.mxu1 %v18358_v51  ;;  %v18361_v52 = vpop.permute.xlu1 %7269 }
 0x5e6   : > { %8605 = vrot.lane.b32.xlu0 %v17960_v29, %s14709_s11 }
 0x5e7   : > { %7060 = vrot.lane.b32.xlu1 %v17962_v43, %s14702_s9  ;;  %v6557_v13 = vpop.f32.mrb[24].mxu1 }
 0x5e8   : > { %v13960_v26 = vadd.f32 %v6557_v13, %v17733_v44  ;;  %9057 = vmatpush1.bf16.msra.mxu1 %v18370_v2  ;;  %v6559_v6 = vpop.f32.mrb[25].mxu1  ;;  %v18374_v51 = vpop.permute.xlu0 %7709 }
 0x5e9   : > { %v13961_v17 = vadd.f32 %v6559_v6, %v17733_v44  ;;  %9126 = vmatprep.subr.bf16.mxu1 %v17896_v23  ;;  %v7487_v59 = vpop.permute.xlu1 %7486  ;;  %v6561_v58 = vpop.f32.mrb[26].mxu1 }
 0x5ea   : > { %v6742_v3 = vmul.f32 0.2, %v13960_v26  ;;  %v13962_v39 = vadd.f32 %v6561_v58, %v17739_v62  ;;  %v6563_v30 = vpop.f32.mrb[27].mxu1  ;;  %v18381_v18 = vsel %vm1580_vm3, %v7487_v59, %v18353_v4  ;;  %7062 = vrot.lane.b32.xlu0 %v18004_v42, %s14702_s9  ;;  %v18387_v54 = vsel %vm1580_vm3, %v18210_v21, %v7487_v59 }
 0x5eb   : > { %23837 = vst [vmem:[#allocation45_spill] sm:$0xff] %v18381_v18  ;;  %23838 = vst [vmem:[#allocation43_spill] sm:$0xff] %v18387_v54  ;;  %v6743_v13 = vmul.f32 0.2, %v13961_v17  ;;  %v13963_v6 = vadd.f32 %v6563_v30, %v17739_v62  ;;  %9089 = vmatprep.subr.bf16.mxu0 %v18381_v18  ;;  %7064 = vrot.lane.b32.xlu1 %v18006_v9, %s14702_s9  ;;  %v6600_v58 = vpop.f32.mrb[28].mxu0 }
 0x5ec   : > { %v6774_v23 = vmul.f32 0.2, %v13962_v39  ;;  %v13964_v2 = vadd.f32 %v6600_v58, %v17733_v44  ;;  %9073 = vmatmul.mubr.bf16.vlgmr.msra.gmra.mrb[32].mxu1 %v18201_v50  ;;  %9090 = vmatpush1.bf16.msra.mxu0 %v18387_v54  ;;  %v18396_v8 = vpop.permute.xlu0 %7930  ;;  %v6602_v21 = vpop.f32.mrb[29].mxu0  ;;  %v6806_v20 = vmax.f32 %v13960_v26, %v6742_v3 }
 0x5ed   : > { %v6775_v59 = vmul.f32 0.2, %v13963_v6  ;;  %9127 = vmatpush1.bf16.msra.mxu1 %v17894_v19  ;;  %v18399_v30 = vpop.permute.xlu1 %7490  ;;  %v13965_v63 = vadd.f32 %v6602_v21, %v17733_v44  ;;  %v6604_v18 = vpop.f32.mrb[30].mxu0  ;;  %13811 = vmatprep.mubr.msk.bf16.mxu1 %vm3840_vm0, %v17920_v11  ;;  %v6807_v41 = vmax.f32 %v13961_v17, %v6743_v13 }
 0x5ee   : > { %v6838_v58 = vmax.f32 %v13962_v39, %v6774_v23  ;;  %v6744_v56 = vmul.f32 0.2, %v13964_v2  ;;  %v13966_v25 = vadd.f32 %v6604_v18, %v17739_v62  ;;  %7283 = vrot.lane.b32.xlu0 %v18004_v42, %s14703_s30  ;;  %v6606_v54 = vpop.f32.mrb[31].mxu0 }
 0x5ef   : > { %v6839_v46 = vmax.f32 %v13963_v6, %v6775_v59  ;;  %v6745_v19 = vmul.f32 0.2, %v13965_v63  ;;  %7281 = vrot.lane.b32.xlu1 %v17962_v43, %s14703_s30  ;;  %v13967_v21 = vadd.f32 %v6606_v54, %v17739_v62 }
 0x5f0   : > { %v18410_v33 = vpack.c.bf16 %v6838_v58, %v6806_v20  ;;  %v6776_v11 = vmul.f32 0.2, %v13966_v25  ;;  %v18412_v3 = vpop.permute.xlu0 %8151  ;;  %v6808_v18 = vmax.f32 %v13964_v2, %v6744_v56 }
 0x5f1   : > { %v18414_v23 = vpack.c.bf16 %v6839_v46, %v6807_v41  ;;  %v6777_v39 = vmul.f32 0.2, %v13967_v21  ;;  %v7708_v26 = vpop.permute.xlu1 %7707  ;;  %v6809_v54 = vmax.f32 %v13965_v63, %v6745_v19 }
 0x5f2   : > { %23839 = vst [vmem:[#allocation44_spill] sm:$0xff] %v18410_v33  ;;  %v6840_v5 = vmax.f32 %v13966_v25, %v6776_v11  ;;  %v18418_v17 = vsel %vm1950_vm4, %v7708_v26, %v18374_v51  ;;  %7504 = vrot.lane.b32.xlu0 %v18004_v42, %s14704_s23  ;;  %v18424_v20 = vsel %vm1950_vm4, %v18233_v32, %v7708_v26 }
 0x5f3   : > { %23840 = vst [vmem:[#allocation42_spill] sm:$0xff] %v18414_v23  ;;  %23841 = vst [vmem:[#allocation47_spill] sm:$0xff] %v18418_v17  ;;  %v6841_v13 = vmax.f32 %v13967_v21, %v6777_v39  ;;  %9091 = vmatprep.subr.bf16.mxu0 %v18418_v17  ;;  %7285 = vrot.lane.b32.xlu1 %v18006_v9, %s14703_s30 }
 0x5f4   : > { %23842 = vst [vmem:[#allocation16_spill] sm:$0xff] %v18424_v20  ;;  %v18429_v46 = vpack.c.bf16 %v6840_v5, %v6808_v18  ;;  %9092 = vmatpush1.bf16.msra.mxu0 %v18424_v20  ;;  %v18432_v25 = vpop.permute.xlu0 %8372 }
 0x5f5   : > { %v18434_v41 = vpack.c.bf16 %v6841_v13, %v6809_v54  ;;  %v7712_v56 = vpop.permute.xlu1 %7711 }
 0x5f6   : > { %23843 = vst [vmem:[#allocation46_spill] sm:$0xff] %v18429_v46  ;;  %7725 = vrot.lane.b32.xlu0 %v18004_v42, %s14705_s21 }
 0x5f7   : > { %23844 = vst [vmem:[#allocation15_spill] sm:$0xff] %v18434_v41  ;;  %7502 = vrot.lane.b32.xlu1 %v17962_v43, %s14704_s23 }
 0x5f8   : > { %v18440_v19 = vpop.permute.xlu0 %8593 }
 0x5f9   : > { %v7929_v32 = vpop.permute.xlu1 %7928 }
 0x5fa   : > { %v18444_v5 = vsel %vm2320_vm5, %v7929_v32, %v18396_v8  ;;  %7946 = vrot.lane.b32.xlu0 %v18004_v42, %s14706_s22  ;;  %v18450_v63 = vsel %vm2320_vm5, %v18243_v55, %v7929_v32  ;;  %v18469_v55 = vsel %vm840_vm1, %v18295_v10, %v18303_v53 }
 0x5fb   : > { %23845 = vst [vmem:[#allocation48_spill] sm:$0xff] %v18444_v5  ;;  %23846 = vst [vmem:[#allocation224_spill] sm:$0xff] %v18450_v63  ;;  %9093 = vmatprep.subr.bf16.mxu0 %v18444_v5  ;;  %7506 = vrot.lane.b32.xlu1 %v18006_v9, %s14704_s23 }
 0x5fc   : > { %9094 = vmatpush1.bf16.msra.mxu0 %v18450_v63  ;;  %v18456_v2 = vpop.permute.xlu0 %7050  ;;  %23848 = vst [vmem:[#allocation225_spill] sm:$0xff] %v18469_v55 }
 0x5fd   : > { %v7933_v6 = vpop.permute.xlu1 %7932  ;;  %v18461_v59 = vsel %vm840_vm1, %v18303_v53, %v18456_v2  ;;  %v18498_v53 = vsel %vm1210_vm2, %v18325_v60, %v18361_v52  ;;  %v18517_v60 = vsel %vm1580_vm3, %v18353_v4, %v18399_v30 }
 0x5fe   : > { %23847 = vst [vmem:[#allocation49_spill] sm:$0xff] %v18461_v59  ;;  %9128 = vmatprep.subr.bf16.mxu1 %v18461_v59  ;;  %8167 = vrot.lane.b32.xlu0 %v18004_v42, %s14707_s10  ;;  %23852 = vst [vmem:[#allocation51_spill] sm:$0xff] %v18498_v53 }
 0x5ff   : > { %7723 = vrot.lane.b32.xlu1 %v17962_v43, %s14705_s21  ;;  %9129 = vmatpush1.bf16.msra.mxu1 %v18469_v55  ;;  %23854 = vst [vmem:[#allocation55_spill] sm:$0xff] %v18517_v60 }
 0x600   : > { %v18474_v58 = vpop.permute.xlu0 %7271 }
 0x601   : > { %v8150_v21 = vpop.permute.xlu1 %8149  ;;  %v18479_v11 = vsel %vm1210_vm2, %v18361_v52, %v18474_v58 }
 0x602   : > { %23849 = vst [vmem:[#allocation53_spill] sm:$0xff] %v18479_v11  ;;  %v18483_v39 = vsel %vm2690_vm6, %v8150_v21, %v18412_v3  ;;  %9130 = vmatprep.subr.bf16.mxu1 %v18479_v11  ;;  %8388 = vrot.lane.b32.xlu0 %v18004_v42, %s14708_s19  ;;  %v18490_v10 = vsel %vm2690_vm6, %v18257_v31, %v8150_v21 }
 0x603   : > { %23850 = vst [vmem:[#allocation50_spill] sm:$0xff] %v18483_v39  ;;  %23851 = vst [vmem:[#allocation52_spill] sm:$0xff] %v18490_v10  ;;  %9095 = vmatprep.subr.bf16.mxu0 %v18483_v39  ;;  %7727 = vrot.lane.b32.xlu1 %v18006_v9, %s14705_s21  ;;  %v18542_v21 = vsel %vm1950_vm4, %v18374_v51, %v7712_v56 }
 0x604   : > { %9096 = vmatpush1.bf16.msra.mxu0 %v18490_v10  ;;  %9131 = vmatpush1.bf16.msra.mxu1 %v18498_v53  ;;  %v18502_v26 = vpop.permute.xlu0 %7492  ;;  %23858 = vst [vmem:[#allocation59_spill] sm:$0xff] %v18542_v21 }
 0x605   : > { %v8154_v18 = vpop.permute.xlu1 %8153  ;;  %v18507_v31 = vsel %vm1580_vm3, %v18399_v30, %v18502_v26 }
 0x606   : > { %23853 = vst [vmem:[#allocation57_spill] sm:$0xff] %v18507_v31  ;;  %9132 = vmatprep.subr.bf16.mxu1 %v18507_v31  ;;  %8609 = vrot.lane.b32.xlu0 %v18004_v42, %s14709_s11 }
 0x607   : > { %7944 = vrot.lane.b32.xlu1 %v17962_v43, %s14706_s22 }
 0x608   : > { %9133 = vmatpush1.bf16.msra.mxu1 %v18517_v60  ;;  %v18520_v52 = vpop.permute.xlu0 %7713 }
 0x609   : > { %v8371_v54 = vpop.permute.xlu1 %8370  ;;  %v18524_v13 = vsel %vm1950_vm4, %v7712_v56, %v18520_v52 }
 0x60a   : > { %23855 = vst [vmem:[#allocation56_spill] sm:$0xff] %v18524_v13  ;;  %v18528_v32 = vsel %vm3060_vm7, %v8371_v54, %v18432_v25  ;;  %9134 = vmatprep.subr.bf16.mxu1 %v18524_v13  ;;  %7066 = vrot.lane.b32.xlu0 %v18014_v28, %s14702_s9  ;;  %v18535_v4 = vsel %vm3060_vm7, %v18265_v49, %v8371_v54 }
 0x60b   : > { %23856 = vst [vmem:[#allocation54_spill] sm:$0xff] %v18528_v32  ;;  %23857 = vst [vmem:[#allocation61_spill] sm:$0xff] %v18535_v4  ;;  %9097 = vmatprep.subr.bf16.mxu0 %v18528_v32  ;;  %7948 = vrot.lane.b32.xlu1 %v18006_v9, %s14706_s22  ;;  %v6643_v30 = vpop.f32.mrb[28].mxu1 }
 0x60c   : > { %v13968_v60 = vadd.f32 %v6643_v30, %v17733_v44  ;;  %9098 = vmatpush1.bf16.msra.mxu0 %v18535_v4  ;;  %9135 = vmatpush1.bf16.msra.mxu1 %v18542_v21  ;;  %v6645_v13 = vpop.f32.mrb[29].mxu1  ;;  %v18547_v31 = vpop.permute.xlu0 %7934 }
 0x60d   : > { %v13969_v49 = vadd.f32 %v6645_v13, %v17733_v44  ;;  %v8375_v54 = vpop.permute.xlu1 %8374  ;;  %v6647_v53 = vpop.f32.mrb[30].mxu1  ;;  %v18552_v11 = vsel %vm2320_vm5, %v7933_v6, %v18547_v31  ;;  %v18563_v44 = vsel %vm2320_vm5, %v18396_v8, %v7933_v6 }
 0x60e   : > { %23859 = vst [vmem:[#allocation60_spill] sm:$0xff] %v18552_v11  ;;  %v6746_v55 = vmul.f32 0.2, %v13968_v60  ;;  %v13970_v51 = vadd.f32 %v6647_v53, %v17739_v62  ;;  %v6649_v56 = vpop.f32.mrb[31].mxu1  ;;  %9136 = vmatprep.subr.bf16.mxu1 %v18552_v11  ;;  %7287 = vrot.lane.b32.xlu0 %v18014_v28, %s14703_s30  ;;  %23860 = vst [vmem:[#allocation58_spill] sm:$0xff] %v18563_v44 }
 0x60f   : > { %v6747_v30 = vmul.f32 0.2, %v13969_v49  ;;  %v13971_v21 = vadd.f32 %v6649_v56, %v17739_v62  ;;  %8165 = vrot.lane.b32.xlu1 %v17962_v43, %s14707_s10 }
 0x610   : > { %v6778_v13 = vmul.f32 0.2, %v13970_v51  ;;  %9137 = vmatpush1.bf16.msra.mxu1 %v18563_v44  ;;  %v18566_v53 = vpop.permute.xlu0 %8155  ;;  %v6810_v59 = vmax.f32 %v13968_v60, %v6746_v55  ;;  %v18588_v60 = vsel %vm2690_vm6, %v18412_v3, %v8154_v18  ;;  %v18611_v3 = vsel %vm3060_vm7, %v18432_v25, %v8375_v54 }
 0x611   : > { %v6779_v11 = vmul.f32 0.2, %v13971_v21  ;;  %v8592_v4 = vpop.permute.xlu1 %8591  ;;  %v18570_v32 = vsel %vm2690_vm6, %v8154_v18, %v18566_v53  ;;  %v6811_v6 = vmax.f32 %v13969_v49, %v6747_v30  ;;  %23864 = vst [vmem:[#allocation62_spill] sm:$0xff] %v18588_v60  ;;  %23867 = vst [vmem:[#allocation68_spill] sm:$0xff] %v18611_v3  ;;  %v18621_v49 = vld [vmem:[#allocation9 + $0x4] ss:$8 sps:$4 sm:$0xff]  }
 0x612   : > { %23861 = vst [vmem:[#allocation65_spill] sm:$0xff] %v18570_v32  ;;  %v6842_v62 = vmax.f32 %v13970_v51, %v6778_v13  ;;  %v18574_v56 = vsel %vm3430_vm8, %v8592_v4, %v18440_v19  ;;  %9138 = vmatprep.subr.bf16.mxu1 %v18570_v32  ;;  %7508 = vrot.lane.b32.xlu0 %v18014_v28, %s14704_s23 }
 0x613   : > { %23862 = vst [vmem:[#allocation63_spill] sm:$0xff] %v18574_v56  ;;  %v18581_v8 = vsel %vm3430_vm8, %v18277_v47, %v8592_v4  ;;  %v6843_v55 = vmax.f32 %v13971_v21, %v6779_v11  ;;  %9099 = vmatprep.subr.bf16.mxu0 %v18574_v56  ;;  %8169 = vrot.lane.b32.xlu1 %v18006_v9, %s14707_s10 }
 0x614   : > { %23863 = vst [vmem:[#allocation64_spill] sm:$0xff] %v18581_v8  ;;  %v18590_v51 = vpack.c.bf16 %v6842_v62, %v6810_v59  ;;  %9100 = vmatpush1.bf16.msra.mxu0 %v18581_v8  ;;  %9139 = vmatpush1.bf16.msra.mxu1 %v18588_v60  ;;  %v18594_v13 = vpop.permute.xlu0 %8376 }
 0x615   : > { %v18596_v47 = vpack.c.bf16 %v6843_v55, %v6811_v6  ;;  %v8596_v11 = vpop.permute.xlu1 %8595  ;;  %9169 = vmatprep.subr.bf16.mxu0 %v17904_v14  ;;  %v18601_v4 = vsel %vm3060_vm7, %v8375_v54, %v18594_v13 }
 0x616   : > { %23865 = vst [vmem:[#allocation69_spill] sm:$0xff] %v18590_v51  ;;  %23866 = vst [vmem:[#allocation67_spill] sm:$0xff] %v18601_v4  ;;  %9140 = vmatprep.subr.bf16.mxu1 %v18601_v4  ;;  %7729 = vrot.lane.b32.xlu0 %v18014_v28, %s14705_s21  ;;  %v18632_v25 = vsel %vm3430_vm8, %v18440_v19, %v8596_v11 }
 0x617   : > { %8386 = vrot.lane.b32.xlu1 %v17962_v43, %s14708_s19  ;;  %9116 = vmatmul.mubr.bf16.vlgmr.msra.gmra.mrb[36].mxu0 %v18201_v50  ;;  %23869 = vst [vmem:[#allocation73_spill] sm:$0xff] %v18632_v25 }
 0x618   : > { %9141 = vmatpush1.bf16.msra.mxu1 %v18611_v3  ;;  %9170 = vmatpush1.bf16.msra.mxu0 %v17902_v24  ;;  %v18615_v59 = vpop.permute.xlu0 %8597 }
 0x619   : > { %v7053_v18 = vpop.permute.xlu1 %7052  ;;  %v18619_v21 = vsel %vm3430_vm8, %v8596_v11, %v18615_v59  ;;  %13812 = vmatprep.mubr.msk.bf16.mxu0 %vm3840_vm0, %v18621_v49 }
 0x61a   : > { %23868 = vst [vmem:[#allocation66_spill] sm:$0xff] %v18619_v21  ;;  %9142 = vmatprep.subr.bf16.mxu1 %v18619_v21  ;;  %7950 = vrot.lane.b32.xlu0 %v18014_v28, %s14706_s22  ;;  %v18647_v19 = vsel %vm840_vm1, %v18456_v2, %v7053_v18 }
 0x61b   : > { %8390 = vrot.lane.b32.xlu1 %v18006_v9, %s14708_s19  ;;  %23871 = vst [vmem:[#allocation72_spill] sm:$0xff] %v18647_v19 }
 0x61c   : > { %9143 = vmatpush1.bf16.msra.mxu1 %v18632_v25  ;;  %v7055_v54 = vpop.permute.xlu0 %7054 }
 0x61d   : > { %9212 = vmatprep.subr.bf16.mxu1 %v17954_v61  ;;  %v7057_v30 = vpop.permute.xlu1 %7056  ;;  %v18637_v62 = vsel %vm840_vm1, %v7053_v18, %v7055_v54 }
 0x61e   : > { %23870 = vst [vmem:[#allocation71_spill] sm:$0xff] %v18637_v62  ;;  %9171 = vmatprep.subr.bf16.mxu0 %v18637_v62  ;;  %8171 = vrot.lane.b32.xlu0 %v18014_v28, %s14707_s10 }
 0x61f   : > { %8607 = vrot.lane.b32.xlu1 %v17962_v43, %s14709_s11  ;;  %9159 = vmatmul.mubr.bf16.vlgmr.msra.gmra.mrb[36].mxu1 %v18201_v50 }
 0x620   : > { %9172 = vmatpush1.bf16.msra.mxu0 %v18647_v19  ;;  %9213 = vmatpush1.bf16.msra.mxu1 %v17952_v35  ;;  %v18651_v6 = vpop.permute.xlu0 %7275 }
 0x621   : > { %v7274_v55 = vpop.permute.xlu1 %7273  ;;  %13813 = vmatprep.mubr.msk.bf16.mxu1 %vm3840_vm0, %v18621_v49 }
 0x622   : > { %v18657_v11 = vsel %vm1210_vm2, %v7274_v55, %v18651_v6  ;;  %8392 = vrot.lane.b32.xlu0 %v18014_v28, %s14708_s19  ;;  %v18663_v2 = vsel %vm1210_vm2, %v18474_v58, %v7274_v55 }
 0x623   : > { %23872 = vst [vmem:[#allocation70_spill] sm:$0xff] %v18657_v11  ;;  %23873 = vst [vmem:[#allocation77_spill] sm:$0xff] %v18663_v2  ;;  %9173 = vmatprep.subr.bf16.mxu0 %v18657_v11  ;;  %8611 = vrot.lane.b32.xlu1 %v18006_v9, %s14709_s11 }
 0x624   : > { %9174 = vmatpush1.bf16.msra.mxu0 %v18663_v2  ;;  %v18669_v18 = vpop.permute.xlu0 %7496 }
 0x625   : > { %v7278_v35 = vpop.permute.xlu1 %7277 }
 0x626   : > { %8613 = vrot.lane.b32.xlu0 %v18014_v28, %s14709_s11 }
 0x627   : > { %7068 = vrot.lane.b32.xlu1 %v18016_v22, %s14702_s9 }
 0x628   : > { %v18675_v61 = vpop.permute.xlu0 %7717 }
 0x629   : > { %v7495_v58 = vpop.permute.xlu1 %7494 }
 0x62a   : > { %v18679_v55 = vsel %vm1580_vm3, %v7495_v58, %v18669_v18  ;;  %7070 = vrot.lane.b32.xlu0 %v18086_v40, %s14702_s9  ;;  %v18685_v25 = vsel %vm1580_vm3, %v18502_v26, %v7495_v58 }
 0x62b   : > { %23874 = vst [vmem:[#allocation75_spill] sm:$0xff] %v18679_v55  ;;  %23875 = vst [vmem:[#allocation76_spill] sm:$0xff] %v18685_v25  ;;  %9175 = vmatprep.subr.bf16.mxu0 %v18679_v55  ;;  %7072 = vrot.lane.b32.xlu1 %v18090_v34, %s14702_s9 }
 0x62c   : > { %9176 = vmatpush1.bf16.msra.mxu0 %v18685_v25  ;;  %v18691_v21 = vpop.permute.xlu0 %7938 }
 0x62d   : > { %v7499_v3 = vpop.permute.xlu1 %7498 }
 0x62e   : > { %7291 = vrot.lane.b32.xlu0 %v18086_v40, %s14703_s30 }
 0x62f   : > { %7289 = vrot.lane.b32.xlu1 %v18016_v22, %s14703_s30 }
 0x630   : > { %v18697_v4 = vpop.permute.xlu0 %8159 }
 0x631   : > { %v7716_v26 = vpop.permute.xlu1 %7715 }
 0x632   : > { %v18701_v58 = vsel %vm1950_vm4, %v7716_v26, %v18675_v61  ;;  %7512 = vrot.lane.b32.xlu0 %v18086_v40, %s14704_s23  ;;  %v18707_v60 = vsel %vm1950_vm4, %v18520_v52, %v7716_v26 }
 0x633   : > { %23876 = vst [vmem:[#allocation74_spill] sm:$0xff] %v18701_v58  ;;  %23877 = vst [vmem:[#allocation79_spill] sm:$0xff] %v18707_v60  ;;  %9177 = vmatprep.subr.bf16.mxu0 %v18701_v58  ;;  %7293 = vrot.lane.b32.xlu1 %v18090_v34, %s14703_s30 }
 0x634   : > { %9178 = vmatpush1.bf16.msra.mxu0 %v18707_v60  ;;  %v18713_v32 = vpop.permute.xlu0 %8380 }
 0x635   : > { %v7720_v44 = vpop.permute.xlu1 %7719 }
 0x636   : > { %7733 = vrot.lane.b32.xlu0 %v18086_v40, %s14705_s21 }
 0x637   : > { %7510 = vrot.lane.b32.xlu1 %v18016_v22, %s14704_s23 }
 0x638   : > { %v18719_v25 = vpop.permute.xlu0 %8601 }
 0x639   : > { %v7937_v52 = vpop.permute.xlu1 %7936 }
 0x63a   : > { %v18723_v26 = vsel %vm2320_vm5, %v7937_v52, %v18691_v21  ;;  %7954 = vrot.lane.b32.xlu0 %v18086_v40, %s14706_s22  ;;  %v18729_v60 = vsel %vm2320_vm5, %v18547_v31, %v7937_v52  ;;  %v18745_v31 = vsel %vm840_vm1, %v7055_v54, %v7057_v30 }
 0x63b   : > { %23878 = vst [vmem:[#allocation226_spill] sm:$0xff] %v18723_v26  ;;  %23879 = vst [vmem:[#allocation78_spill] sm:$0xff] %v18729_v60  ;;  %9179 = vmatprep.subr.bf16.mxu0 %v18723_v26  ;;  %7514 = vrot.lane.b32.xlu1 %v18090_v34, %s14704_s23 }
 0x63c   : > { %9180 = vmatpush1.bf16.msra.mxu0 %v18729_v60  ;;  %v18735_v58 = vpop.permute.xlu0 %7058  ;;  %23881 = vst [vmem:[#allocation80_spill] sm:$0xff] %v18745_v31 }
 0x63d   : > { %v7941_v55 = vpop.permute.xlu1 %7940  ;;  %v18739_v2 = vsel %vm840_vm1, %v7057_v30, %v18735_v58  ;;  %v18772_v30 = vsel %vm1210_vm2, %v18651_v6, %v7278_v35 }
 0x63e   : > { %23880 = vst [vmem:[#allocation227_spill] sm:$0xff] %v18739_v2  ;;  %9214 = vmatprep.subr.bf16.mxu1 %v18739_v2  ;;  %8175 = vrot.lane.b32.xlu0 %v18086_v40, %s14707_s10  ;;  %23885 = vst [vmem:[#allocation85_spill] sm:$0xff] %v18772_v30 }
 0x63f   : > { %7731 = vrot.lane.b32.xlu1 %v18016_v22, %s14705_s21  ;;  %9215 = vmatpush1.bf16.msra.mxu1 %v18745_v31 }
 0x640   : > { %v18750_v52 = vpop.permute.xlu0 %7279 }
 0x641   : > { %v8158_v60 = vpop.permute.xlu1 %8157  ;;  %v18754_v26 = vsel %vm1210_vm2, %v7278_v35, %v18750_v52  ;;  %v18789_v35 = vsel %vm1580_vm3, %v18669_v18, %v7499_v3  ;;  %v18814_v18 = vsel %vm1950_vm4, %v18675_v61, %v7720_v44  ;;  %v18831_v61 = vsel %vm2320_vm5, %v18691_v21, %v7941_v55 }
 0x642   : > { %23882 = vst [vmem:[#allocation228_spill] sm:$0xff] %v18754_v26  ;;  %v18758_v2 = vsel %vm2690_vm6, %v8158_v60, %v18697_v4  ;;  %9216 = vmatprep.subr.bf16.mxu1 %v18754_v26  ;;  %8396 = vrot.lane.b32.xlu0 %v18086_v40, %s14708_s19  ;;  %v18765_v54 = vsel %vm2690_vm6, %v18566_v53, %v8158_v60  ;;  %23887 = vst [vmem:[#allocation84_spill] sm:$0xff] %v18789_v35 }
 0x643   : > { %23883 = vst [vmem:[#allocation81_spill] sm:$0xff] %v18758_v2  ;;  %23884 = vst [vmem:[#allocation229_spill] sm:$0xff] %v18765_v54  ;;  %9181 = vmatprep.subr.bf16.mxu0 %v18758_v2  ;;  %7735 = vrot.lane.b32.xlu1 %v18090_v34, %s14705_s21 }
 0x644   : > { %9182 = vmatpush1.bf16.msra.mxu0 %v18765_v54  ;;  %9217 = vmatpush1.bf16.msra.mxu1 %v18772_v30  ;;  %v18776_v26 = vpop.permute.xlu0 %7500  ;;  %23891 = vst [vmem:[#allocation88_spill] sm:$0xff] %v18814_v18  ;;  %23893 = vst [vmem:[#allocation93_spill] sm:$0xff] %v18831_v61 }
 0x645   : > { %v8162_v31 = vpop.permute.xlu1 %8161  ;;  %v18780_v53 = vsel %vm1580_vm3, %v7499_v3, %v18776_v26 }
 0x646   : > { %23886 = vst [vmem:[#allocation82_spill] sm:$0xff] %v18780_v53  ;;  %9218 = vmatprep.subr.bf16.mxu1 %v18780_v53  ;;  %8617 = vrot.lane.b32.xlu0 %v18086_v40, %s14709_s11 }
 0x647   : > { %7952 = vrot.lane.b32.xlu1 %v18016_v22, %s14706_s22 }
 0x648   : > { %9219 = vmatpush1.bf16.msra.mxu1 %v18789_v35  ;;  %v18792_v60 = vpop.permute.xlu0 %7721 }
 0x649   : > { %v8379_v6 = vpop.permute.xlu1 %8378  ;;  %v18796_v30 = vsel %vm1950_vm4, %v7720_v44, %v18792_v60 }
 0x64a   : > { %23888 = vst [vmem:[#allocation83_spill] sm:$0xff] %v18796_v30  ;;  %v18800_v53 = vsel %vm3060_vm7, %v8379_v6, %v18713_v32  ;;  %9220 = vmatprep.subr.bf16.mxu1 %v18796_v30  ;;  %7074 = vrot.lane.b32.xlu0 %v18100_v15, %s14702_s9  ;;  %v18807_v3 = vsel %vm3060_vm7, %v18594_v13, %v8379_v6 }
 0x64b   : > { %23889 = vst [vmem:[#allocation89_spill] sm:$0xff] %v18800_v53  ;;  %23890 = vst [vmem:[#allocation87_spill] sm:$0xff] %v18807_v3  ;;  %9183 = vmatprep.subr.bf16.mxu0 %v18800_v53  ;;  %7956 = vrot.lane.b32.xlu1 %v18090_v34, %s14706_s22 }
 0x64c   : > { %9184 = vmatpush1.bf16.msra.mxu0 %v18807_v3  ;;  %9221 = vmatpush1.bf16.msra.mxu1 %v18814_v18  ;;  %v18818_v30 = vpop.permute.xlu0 %7942 }
 0x64d   : > { %v8383_v35 = vpop.permute.xlu1 %8382  ;;  %v18822_v13 = vsel %vm2320_vm5, %v7941_v55, %v18818_v30  ;;  %v18856_v55 = vsel %vm2690_vm6, %v18697_v4, %v8162_v31 }
 0x64e   : > { %23892 = vst [vmem:[#allocation86_spill] sm:$0xff] %v18822_v13  ;;  %9222 = vmatprep.subr.bf16.mxu1 %v18822_v13  ;;  %7295 = vrot.lane.b32.xlu0 %v18100_v15, %s14703_s30  ;;  %23897 = vst [vmem:[#allocation95_spill] sm:$0xff] %v18856_v55  ;;  %v18875_v4 = vsel %vm3060_vm7, %v18713_v32, %v8383_v35 }
 0x64f   : > { %8173 = vrot.lane.b32.xlu1 %v18016_v22, %s14707_s10  ;;  %23899 = vst [vmem:[#allocation94_spill] sm:$0xff] %v18875_v4 }
 0x650   : > { %9223 = vmatpush1.bf16.msra.mxu1 %v18831_v61  ;;  %v18834_v44 = vpop.permute.xlu0 %8163 }
 0x651   : > { %v8600_v6 = vpop.permute.xlu1 %8599  ;;  %v18838_v18 = vsel %vm2690_vm6, %v8162_v31, %v18834_v44 }
 0x652   : > { %23894 = vst [vmem:[#allocation92_spill] sm:$0xff] %v18838_v18  ;;  %v18842_v13 = vsel %vm3430_vm8, %v8600_v6, %v18719_v25  ;;  %9224 = vmatprep.subr.bf16.mxu1 %v18838_v18  ;;  %7516 = vrot.lane.b32.xlu0 %v18100_v15, %s14704_s23  ;;  %v18849_v21 = vsel %vm3430_vm8, %v18615_v59, %v8600_v6 }
 0x653   : > { %23895 = vst [vmem:[#allocation90_spill] sm:$0xff] %v18842_v13  ;;  %23896 = vst [vmem:[#allocation97_spill] sm:$0xff] %v18849_v21  ;;  %9185 = vmatprep.subr.bf16.mxu0 %v18842_v13  ;;  %8177 = vrot.lane.b32.xlu1 %v18090_v34, %s14707_s10 }
 0x654   : > { %9186 = vmatpush1.bf16.msra.mxu0 %v18849_v21  ;;  %9225 = vmatpush1.bf16.msra.mxu1 %v18856_v55  ;;  %v18860_v18 = vpop.permute.xlu0 %8384 }
 0x655   : > { %v8604_v61 = vpop.permute.xlu1 %8603  ;;  %9255 = vmatprep.subr.bf16.mxu0 %v17962_v43  ;;  %v18865_v59 = vsel %vm3060_vm7, %v8383_v35, %v18860_v18 }
 0x656   : > { %23898 = vst [vmem:[#allocation96_spill] sm:$0xff] %v18865_v59  ;;  %9226 = vmatprep.subr.bf16.mxu1 %v18865_v59  ;;  %7737 = vrot.lane.b32.xlu0 %v18100_v15, %s14705_s21  ;;  %v18894_v32 = vsel %vm3430_vm8, %v18719_v25, %v8604_v61 }
 0x657   : > { %8394 = vrot.lane.b32.xlu1 %v18016_v22, %s14708_s19  ;;  %9202 = vmatmul.mubr.bf16.vlgmr.msra.gmra.mrb[40].mxu0 %v18201_v50  ;;  %23901 = vst [vmem:[#allocation99_spill] sm:$0xff] %v18894_v32 }
 0x658   : > { %9227 = vmatpush1.bf16.msra.mxu1 %v18875_v4  ;;  %9256 = vmatpush1.bf16.msra.mxu0 %v17960_v29  ;;  %v18879_v31 = vpop.permute.xlu0 %8605 }
 0x659   : > { %v7061_v6 = vpop.permute.xlu1 %7060  ;;  %v18883_v59 = vsel %vm3430_vm8, %v8604_v61, %v18879_v31  ;;  %13814 = vmatprep.mubr.msk.bf16.mxu0 %vm3840_vm0, %v18621_v49 }
 0x65a   : > { %23900 = vst [vmem:[#allocation101_spill] sm:$0xff] %v18883_v59  ;;  %9228 = vmatprep.subr.bf16.mxu1 %v18883_v59  ;;  %7958 = vrot.lane.b32.xlu0 %v18100_v15, %s14706_s22  ;;  %v18909_v25 = vsel %vm840_vm1, %v18735_v58, %v7061_v6 }
 0x65b   : > { %8398 = vrot.lane.b32.xlu1 %v18090_v34, %s14708_s19  ;;  %23903 = vst [vmem:[#allocation98_spill] sm:$0xff] %v18909_v25 }
 0x65c   : > { %9229 = vmatpush1.bf16.msra.mxu1 %v18894_v32  ;;  %v7063_v35 = vpop.permute.xlu0 %7062 }
 0x65d   : > { %9298 = vmatprep.subr.bf16.mxu1 %v18006_v9  ;;  %v7065_v4 = vpop.permute.xlu1 %7064  ;;  %v18899_v55 = vsel %vm840_vm1, %v7061_v6, %v7063_v35 }
 0x65e   : > { %23902 = vst [vmem:[#allocation100_spill] sm:$0xff] %v18899_v55  ;;  %9257 = vmatprep.subr.bf16.mxu0 %v18899_v55  ;;  %8179 = vrot.lane.b32.xlu0 %v18100_v15, %s14707_s10 }
 0x65f   : > { %8615 = vrot.lane.b32.xlu1 %v18016_v22, %s14709_s11  ;;  %9245 = vmatmul.mubr.bf16.vlgmr.msra.gmra.mrb[40].mxu1 %v18201_v50 }
 0x660   : > { %9258 = vmatpush1.bf16.msra.mxu0 %v18909_v25  ;;  %9299 = vmatpush1.bf16.msra.mxu1 %v18004_v42  ;;  %v18913_v61 = vpop.permute.xlu0 %7283 }
 0x661   : > { %v7282_v9 = vpop.permute.xlu1 %7281  ;;  %13815 = vmatprep.mubr.msk.bf16.mxu1 %vm3840_vm0, %v18621_v49 }
 0x662   : > { %v18919_v32 = vsel %vm1210_vm2, %v7282_v9, %v18913_v61  ;;  %8400 = vrot.lane.b32.xlu0 %v18100_v15, %s14708_s19  ;;  %v18925_v58 = vsel %vm1210_vm2, %v18750_v52, %v7282_v9 }
 0x663   : > { %23904 = vst [vmem:[#allocation105_spill] sm:$0xff] %v18919_v32  ;;  %23905 = vst [vmem:[#allocation103_spill] sm:$0xff] %v18925_v58  ;;  %9259 = vmatprep.subr.bf16.mxu0 %v18919_v32  ;;  %8619 = vrot.lane.b32.xlu1 %v18090_v34, %s14709_s11 }
 0x664   : > { %9260 = vmatpush1.bf16.msra.mxu0 %v18925_v58  ;;  %v18931_v6 = vpop.permute.xlu0 %7504 }
 0x665   : > { %v7286_v42 = vpop.permute.xlu1 %7285 }
 0x666   : > { %8621 = vrot.lane.b32.xlu0 %v18100_v15, %s14709_s11 }
 0x667   : > { %7076 = vrot.lane.b32.xlu1 %v18104_v38, %s14702_s9 }
 0x668   : > { %v18937_v59 = vpop.permute.xlu0 %7725 }
 0x669   : > { %v7503_v9 = vpop.permute.xlu1 %7502 }
 0x66a   : > { %v18941_v52 = vsel %vm1580_vm3, %v7503_v9, %v18931_v6  ;;  %7078 = vrot.lane.b32.xlu0 %v18203_v48, %s14702_s9  ;;  %v18947_v58 = vsel %vm1580_vm3, %v18776_v26, %v7503_v9 }
 0x66b   : > { %23906 = vst [vmem:[#allocation104_spill] sm:$0xff] %v18941_v52  ;;  %23907 = vst [vmem:[#allocation102_spill] sm:$0xff] %v18947_v58  ;;  %9261 = vmatprep.subr.bf16.mxu0 %v18941_v52  ;;  %7080 = vrot.lane.b32.xlu1 %v18208_v45, %s14702_s9 }
 0x66c   : > { %9262 = vmatpush1.bf16.msra.mxu0 %v18947_v58  ;;  %v18953_v32 = vpop.permute.xlu0 %7946 }
 0x66d   : > { %v7507_v25 = vpop.permute.xlu1 %7506 }
 0x66e   : > { %7299 = vrot.lane.b32.xlu0 %v18203_v48, %s14703_s30 }
 0x66f   : > { %7297 = vrot.lane.b32.xlu1 %v18104_v38, %s14703_s30 }
 0x670   : > { %v18959_v55 = vpop.permute.xlu0 %8167 }
 0x671   : > { %v7724_v26 = vpop.permute.xlu1 %7723 }
 0x672   : > { %v18963_v9 = vsel %vm1950_vm4, %v7724_v26, %v18937_v59  ;;  %7520 = vrot.lane.b32.xlu0 %v18203_v48, %s14704_s23  ;;  %v18969_v58 = vsel %vm1950_vm4, %v18792_v60, %v7724_v26 }
 0x673   : > { %23908 = vst [vmem:[#allocation109_spill] sm:$0xff] %v18963_v9  ;;  %23909 = vst [vmem:[#allocation107_spill] sm:$0xff] %v18969_v58  ;;  %9263 = vmatprep.subr.bf16.mxu0 %v18963_v9  ;;  %7301 = vrot.lane.b32.xlu1 %v18208_v45, %s14703_s30 }
 0x674   : > { %9264 = vmatpush1.bf16.msra.mxu0 %v18969_v58  ;;  %v18975_v52 = vpop.permute.xlu0 %8388 }
 0x675   : > { %v7728_v29 = vpop.permute.xlu1 %7727 }
 0x676   : > { %7741 = vrot.lane.b32.xlu0 %v18203_v48, %s14705_s21 }
 0x677   : > { %7518 = vrot.lane.b32.xlu1 %v18104_v38, %s14704_s23 }
 0x678   : > { %v18981_v43 = vpop.permute.xlu0 %8609 }
 0x679   : > { %v7945_v60 = vpop.permute.xlu1 %7944 }
 0x67a   : > { %v18985_v26 = vsel %vm2320_vm5, %v7945_v60, %v18953_v32  ;;  %7962 = vrot.lane.b32.xlu0 %v18203_v48, %s14706_s22  ;;  %v18991_v58 = vsel %vm2320_vm5, %v18818_v30, %v7945_v60  ;;  %v19007_v30 = vsel %vm840_vm1, %v7063_v35, %v7065_v4  ;;  %v19034_v35 = vsel %vm1210_vm2, %v18913_v61, %v7286_v42 }
 0x67b   : > { %23910 = vst [vmem:[#allocation108_spill] sm:$0xff] %v18985_v26  ;;  %23911 = vst [vmem:[#allocation106_spill] sm:$0xff] %v18991_v58  ;;  %9265 = vmatprep.subr.bf16.mxu0 %v18985_v26  ;;  %7522 = vrot.lane.b32.xlu1 %v18208_v45, %s14704_s23 }
 0x67c   : > { %9266 = vmatpush1.bf16.msra.mxu0 %v18991_v58  ;;  %v18997_v9 = vpop.permute.xlu0 %7066  ;;  %23913 = vst [vmem:[#allocation230_spill] sm:$0xff] %v19007_v30  ;;  %23917 = vst [vmem:[#allocation91_spill] sm:$0xff] %v19034_v35 }
 0x67d   : > { %v7949_v21 = vpop.permute.xlu1 %7948  ;;  %v19001_v13 = vsel %vm840_vm1, %v7065_v4, %v18997_v9 }
 0x67e   : > { %23912 = vst [vmem:[#allocation111_spill] sm:$0xff] %v19001_v13  ;;  %9300 = vmatprep.subr.bf16.mxu1 %v19001_v13  ;;  %8183 = vrot.lane.b32.xlu0 %v18203_v48, %s14707_s10 }
 0x67f   : > { %7739 = vrot.lane.b32.xlu1 %v18104_v38, %s14705_s21  ;;  %9301 = vmatpush1.bf16.msra.mxu1 %v19007_v30 }
 0x680   : > { %v19012_v60 = vpop.permute.xlu0 %7287 }
 0x681   : > { %v8166_v58 = vpop.permute.xlu1 %8165  ;;  %v19016_v26 = vsel %vm1210_vm2, %v7286_v42, %v19012_v60  ;;  %v19051_v42 = vsel %vm1580_vm3, %v18931_v6, %v7507_v25  ;;  %v19076_v6 = vsel %vm1950_vm4, %v18937_v59, %v7728_v29 }
 0x682   : > { %23914 = vst [vmem:[#allocation110_spill] sm:$0xff] %v19016_v26  ;;  %v19020_v13 = vsel %vm2690_vm6, %v8166_v58, %v18959_v55  ;;  %9302 = vmatprep.subr.bf16.mxu1 %v19016_v26  ;;  %8404 = vrot.lane.b32.xlu0 %v18203_v48, %s14708_s19  ;;  %v19027_v4 = vsel %vm2690_vm6, %v18834_v44, %v8166_v58  ;;  %23919 = vst [vmem:[#allocation232_spill] sm:$0xff] %v19051_v42 }
 0x683   : > { %23915 = vst [vmem:[#allocation231_spill] sm:$0xff] %v19020_v13  ;;  %23916 = vst [vmem:[#allocation112_spill] sm:$0xff] %v19027_v4  ;;  %9267 = vmatprep.subr.bf16.mxu0 %v19020_v13  ;;  %7743 = vrot.lane.b32.xlu1 %v18208_v45, %s14705_s21 }
 0x684   : > { %9268 = vmatpush1.bf16.msra.mxu0 %v19027_v4  ;;  %9303 = vmatpush1.bf16.msra.mxu1 %v19034_v35  ;;  %v19038_v26 = vpop.permute.xlu0 %7508  ;;  %23923 = vst [vmem:[#allocation115_spill] sm:$0xff] %v19076_v6 }
 0x685   : > { %v8170_v30 = vpop.permute.xlu1 %8169  ;;  %v19042_v44 = vsel %vm1580_vm3, %v7507_v25, %v19038_v26 }
 0x686   : > { %23918 = vst [vmem:[#allocation113_spill] sm:$0xff] %v19042_v44  ;;  %9304 = vmatprep.subr.bf16.mxu1 %v19042_v44  ;;  %8625 = vrot.lane.b32.xlu0 %v18203_v48, %s14709_s11 }
 0x687   : > { %7960 = vrot.lane.b32.xlu1 %v18104_v38, %s14706_s22 }
 0x688   : > { %9305 = vmatpush1.bf16.msra.mxu1 %v19051_v42  ;;  %v19054_v61 = vpop.permute.xlu0 %7729 }
 0x689   : > { %v8387_v58 = vpop.permute.xlu1 %8386  ;;  %v19058_v35 = vsel %vm1950_vm4, %v7728_v29, %v19054_v61  ;;  %v19093_v29 = vsel %vm2320_vm5, %v18953_v32, %v7949_v21  ;;  %v19118_v32 = vsel %vm2690_vm6, %v18959_v55, %v8170_v30 }
 0x68a   : > { %23920 = vst [vmem:[#allocation117_spill] sm:$0xff] %v19058_v35  ;;  %v19062_v44 = vsel %vm3060_vm7, %v8387_v58, %v18975_v52  ;;  %9306 = vmatprep.subr.bf16.mxu1 %v19058_v35  ;;  %7082 = vrot.lane.b32.xlu0 %v18229_v0, %s14702_s9  ;;  %v19069_v25 = vsel %vm3060_vm7, %v18860_v18, %v8387_v58  ;;  %23925 = vst [vmem:[#allocation119_spill] sm:$0xff] %v19093_v29 }
 0x68b   : > { %23921 = vst [vmem:[#allocation114_spill] sm:$0xff] %v19062_v44  ;;  %23922 = vst [vmem:[#allocation116_spill] sm:$0xff] %v19069_v25  ;;  %9269 = vmatprep.subr.bf16.mxu0 %v19062_v44  ;;  %7964 = vrot.lane.b32.xlu1 %v18208_v45, %s14706_s22 }
 0x68c   : > { %9270 = vmatpush1.bf16.msra.mxu0 %v19069_v25  ;;  %9307 = vmatpush1.bf16.msra.mxu1 %v19076_v6  ;;  %v19080_v35 = vpop.permute.xlu0 %7950  ;;  %23929 = vst [vmem:[#allocation124_spill] sm:$0xff] %v19118_v32 }
 0x68d   : > { %v8391_v42 = vpop.permute.xlu1 %8390  ;;  %v19084_v18 = vsel %vm2320_vm5, %v7949_v21, %v19080_v35 }
 0x68e   : > { %23924 = vst [vmem:[#allocation121_spill] sm:$0xff] %v19084_v18  ;;  %9308 = vmatprep.subr.bf16.mxu1 %v19084_v18  ;;  %7303 = vrot.lane.b32.xlu0 %v18229_v0, %s14703_s30  ;;  %v19137_v55 = vsel %vm3060_vm7, %v18975_v52, %v8391_v42 }
 0x68f   : > { %8181 = vrot.lane.b32.xlu1 %v18104_v38, %s14707_s10  ;;  %23931 = vst [vmem:[#allocation129_spill] sm:$0xff] %v19137_v55 }
 0x690   : > { %9309 = vmatpush1.bf16.msra.mxu1 %v19093_v29  ;;  %v19096_v59 = vpop.permute.xlu0 %8171 }
 0x691   : > { %v8608_v58 = vpop.permute.xlu1 %8607  ;;  %v19100_v6 = vsel %vm2690_vm6, %v8170_v30, %v19096_v59 }
 0x692   : > { %23926 = vst [vmem:[#allocation120_spill] sm:$0xff] %v19100_v6  ;;  %v19104_v18 = vsel %vm3430_vm8, %v8608_v58, %v18981_v43  ;;  %9310 = vmatprep.subr.bf16.mxu1 %v19100_v6  ;;  %7524 = vrot.lane.b32.xlu0 %v18229_v0, %s14704_s23  ;;  %v19111_v21 = vsel %vm3430_vm8, %v18879_v31, %v8608_v58 }
 0x693   : > { %23927 = vst [vmem:[#allocation118_spill] sm:$0xff] %v19104_v18  ;;  %23928 = vst [vmem:[#allocation125_spill] sm:$0xff] %v19111_v21  ;;  %9271 = vmatprep.subr.bf16.mxu0 %v19104_v18  ;;  %8185 = vrot.lane.b32.xlu1 %v18208_v45, %s14707_s10 }
 0x694   : > { %9272 = vmatpush1.bf16.msra.mxu0 %v19111_v21  ;;  %9311 = vmatpush1.bf16.msra.mxu1 %v19118_v32  ;;  %v19122_v6 = vpop.permute.xlu0 %8392 }
 0x695   : > { %v8612_v29 = vpop.permute.xlu1 %8611  ;;  %9341 = vmatprep.subr.bf16.mxu0 %v18016_v22  ;;  %v19127_v31 = vsel %vm3060_vm7, %v8391_v42, %v19122_v6 }
 0x696   : > { %23930 = vst [vmem:[#allocation122_spill] sm:$0xff] %v19127_v31  ;;  %9312 = vmatprep.subr.bf16.mxu1 %v19127_v31  ;;  %7745 = vrot.lane.b32.xlu0 %v18229_v0, %s14705_s21 }
 0x697   : > { %8402 = vrot.lane.b32.xlu1 %v18104_v38, %s14708_s19  ;;  %9288 = vmatmul.mubr.bf16.vlgmr.msra.gmra.mrb[44].mxu0 %v18201_v50  ;;  %v19156_v50 = vsel %vm3430_vm8, %v18981_v43, %v8612_v29  ;;  %v19171_v43 = vld [vmem:[#allocation9] ss:$8 sps:$4 sm:$0xff]  }
 0x698   : > { %9313 = vmatpush1.bf16.msra.mxu1 %v19137_v55  ;;  %9342 = vmatpush1.bf16.msra.mxu0 %v18014_v28  ;;  %v19141_v30 = vpop.permute.xlu0 %8613  ;;  %23933 = vst [vmem:[#allocation128_spill] sm:$0xff] %v19156_v50 }
 0x699   : > { %v7069_v58 = vpop.permute.xlu1 %7068  ;;  %v19145_v31 = vsel %vm3430_vm8, %v8612_v29, %v19141_v30  ;;  %13816 = vmatprep.mubr.msk.bf16.mxu0 %vm3840_vm0, %v18621_v49 }
 0x69a   : > { %23932 = vst [vmem:[#allocation127_spill] sm:$0xff] %v19145_v31  ;;  %9314 = vmatprep.subr.bf16.mxu1 %v19145_v31  ;;  %7966 = vrot.lane.b32.xlu0 %v18229_v0, %s14706_s22  ;;  %v19176_v29 = vsel %vm840_vm1, %v18997_v9, %v7069_v58 }
 0x69b   : > { %8406 = vrot.lane.b32.xlu1 %v18208_v45, %s14708_s19  ;;  %23935 = vst [vmem:[#allocation133_spill] sm:$0xff] %v19176_v29 }
 0x69c   : > { %9315 = vmatpush1.bf16.msra.mxu1 %v19156_v50  ;;  %v19159_v52 = vpop.permute.xlu0 %7070 }
 0x69d   : > { %9384 = vmatprep.subr.bf16.mxu1 %v18090_v34  ;;  %v7073_v42 = vpop.permute.xlu1 %7072  ;;  %v19164_v31 = vsel %vm840_vm1, %v7069_v58, %v19159_v52 }
 0x69e   : > { %23934 = vst [vmem:[#allocation126_spill] sm:$0xff] %v19164_v31  ;;  %9343 = vmatprep.subr.bf16.mxu0 %v19164_v31  ;;  %8187 = vrot.lane.b32.xlu0 %v18229_v0, %s14707_s10 }
 0x69f   : > { %8623 = vrot.lane.b32.xlu1 %v18104_v38, %s14709_s11  ;;  %9331 = vmatmul.mubr.bf16.vlgmr.msra.gmra.mrb[44].mxu1 %v19171_v43 }
 0x6a0   : > { %9344 = vmatpush1.bf16.msra.mxu0 %v19176_v29  ;;  %9385 = vmatpush1.bf16.msra.mxu1 %v18086_v40  ;;  %v19180_v34 = vpop.permute.xlu0 %7291 }
 0x6a1   : > { %v7290_v50 = vpop.permute.xlu1 %7289  ;;  %13817 = vmatprep.mubr.msk.bf16.mxu1 %vm3840_vm0, %v18621_v49 }
 0x6a2   : > { %v19186_v55 = vsel %vm1210_vm2, %v7290_v50, %v19180_v34  ;;  %8408 = vrot.lane.b32.xlu0 %v18229_v0, %s14708_s19  ;;  %v19192_v9 = vsel %vm1210_vm2, %v19012_v60, %v7290_v50 }
 0x6a3   : > { %23936 = vst [vmem:[#allocation131_spill] sm:$0xff] %v19186_v55  ;;  %23937 = vst [vmem:[#allocation132_spill] sm:$0xff] %v19192_v9  ;;  %9345 = vmatprep.subr.bf16.mxu0 %v19186_v55  ;;  %8627 = vrot.lane.b32.xlu1 %v18208_v45, %s14709_s11 }
 0x6a4   : > { %9346 = vmatpush1.bf16.msra.mxu0 %v19192_v9  ;;  %v19198_v58 = vpop.permute.xlu0 %7512 }
 0x6a5   : > { %v7294_v40 = vpop.permute.xlu1 %7293 }
 0x6a6   : > { %8629 = vrot.lane.b32.xlu0 %v18229_v0, %s14709_s11 }
 0x6a7   : > { %7307 = vrot.lane.b32.xlu1 %v18410_v33, %s14703_s30 }
 0x6a8   : > { %v19204_v32 = vpop.permute.xlu0 %7733 }
 0x6a9   : > { %v7511_v60 = vpop.permute.xlu1 %7510 }
 0x6aa   : > { %v19208_v50 = vsel %vm1580_vm3, %v7511_v60, %v19198_v58  ;;  %7086 = vrot.lane.b32.xlu0 %v18410_v33, %s14702_s9  ;;  %v19214_v9 = vsel %vm1580_vm3, %v19038_v26, %v7511_v60 }
 0x6ab   : > { %23938 = vst [vmem:[#allocation130_spill] sm:$0xff] %v19208_v50  ;;  %23939 = vst [vmem:[#allocation137_spill] sm:$0xff] %v19214_v9  ;;  %9347 = vmatprep.subr.bf16.mxu0 %v19208_v50  ;;  %7749 = vrot.lane.b32.xlu1 %v18410_v33, %s14705_s21 }
 0x6ac   : > { %9348 = vmatpush1.bf16.msra.mxu0 %v19214_v9  ;;  %v19220_v55 = vpop.permute.xlu0 %7954 }
 0x6ad   : > { %v7515_v29 = vpop.permute.xlu1 %7514 }
 0x6ae   : > { %7528 = vrot.lane.b32.xlu0 %v18410_v33, %s14704_s23 }
 0x6af   : > { %8191 = vrot.lane.b32.xlu1 %v18410_v33, %s14707_s10 }
 0x6b0   : > { %v19226_v31 = vpop.permute.xlu0 %8175 }
 0x6b1   : > { %v7732_v26 = vpop.permute.xlu1 %7731 }
 0x6b2   : > { %v19230_v60 = vsel %vm1950_vm4, %v7732_v26, %v19204_v32  ;;  %7970 = vrot.lane.b32.xlu0 %v18410_v33, %s14706_s22  ;;  %v19236_v9 = vsel %vm1950_vm4, %v19054_v61, %v7732_v26 }
 0x6b3   : > { %23940 = vst [vmem:[#allocation135_spill] sm:$0xff] %v19230_v60  ;;  %23941 = vst [vmem:[#allocation136_spill] sm:$0xff] %v19236_v9  ;;  %9349 = vmatprep.subr.bf16.mxu0 %v19230_v60  ;;  %7084 = vrot.lane.b32.xlu1 %v18240_v1, %s14702_s9 }
 0x6b4   : > { %9350 = vmatpush1.bf16.msra.mxu0 %v19236_v9  ;;  %v19242_v50 = vpop.permute.xlu0 %8396 }
 0x6b5   : > { %v7736_v28 = vpop.permute.xlu1 %7735 }
 0x6b6   : > { %8412 = vrot.lane.b32.xlu0 %v18410_v33, %s14708_s19 }
 0x6b7   : > { %7088 = vrot.lane.b32.xlu1 %v18414_v23, %s14702_s9 }
 0x6b8   : > { %v19248_v22 = vpop.permute.xlu0 %8617 }
 0x6b9   : > { %v7953_v61 = vpop.permute.xlu1 %7952 }
 0x6ba   : > { %v19252_v26 = vsel %vm2320_vm5, %v7953_v61, %v19220_v55  ;;  %7305 = vrot.lane.b32.xlu0 %v18240_v1, %s14703_s30  ;;  %v19258_v9 = vsel %vm2320_vm5, %v19080_v35, %v7953_v61  ;;  %v19275_v35 = vsel %vm840_vm1, %v19159_v52, %v7073_v42 }
 0x6bb   : > { %23942 = vst [vmem:[#allocation134_spill] sm:$0xff] %v19252_v26  ;;  %23943 = vst [vmem:[#allocation141_spill] sm:$0xff] %v19258_v9  ;;  %9351 = vmatprep.subr.bf16.mxu0 %v19252_v26  ;;  %7526 = vrot.lane.b32.xlu1 %v18240_v1, %s14704_s23 }
 0x6bc   : > { %9352 = vmatpush1.bf16.msra.mxu0 %v19258_v9  ;;  %v19264_v60 = vpop.permute.xlu0 %7074  ;;  %23945 = vst [vmem:[#allocation233_spill] sm:$0xff] %v19275_v35 }
 0x6bd   : > { %v7957_v21 = vpop.permute.xlu1 %7956  ;;  %v19268_v18 = vsel %vm840_vm1, %v7073_v42, %v19264_v60  ;;  %v19302_v42 = vsel %vm1210_vm2, %v19180_v34, %v7294_v40 }
 0x6be   : > { %23944 = vst [vmem:[#allocation140_spill] sm:$0xff] %v19268_v18  ;;  %9386 = vmatprep.subr.bf16.mxu1 %v19268_v18  ;;  %7309 = vrot.lane.b32.xlu0 %v18414_v23, %s14703_s30  ;;  %23949 = vst [vmem:[#allocation123_spill] sm:$0xff] %v19302_v42 }
 0x6bf   : > { %7530 = vrot.lane.b32.xlu1 %v18414_v23, %s14704_s23  ;;  %9387 = vmatpush1.bf16.msra.mxu1 %v19275_v35 }
 0x6c0   : > { %v19280_v61 = vpop.permute.xlu0 %7295 }
 0x6c1   : > { %v8174_v9 = vpop.permute.xlu1 %8173  ;;  %v19284_v26 = vsel %vm1210_vm2, %v7294_v40, %v19280_v61  ;;  %v19319_v40 = vsel %vm1580_vm3, %v19198_v58, %v7515_v29  ;;  %v19344_v58 = vsel %vm1950_vm4, %v19204_v32, %v7736_v28 }
 0x6c2   : > { %23946 = vst [vmem:[#allocation142_spill] sm:$0xff] %v19284_v26  ;;  %v19288_v18 = vsel %vm2690_vm6, %v8174_v9, %v19226_v31  ;;  %9388 = vmatprep.subr.bf16.mxu1 %v19284_v26  ;;  %7747 = vrot.lane.b32.xlu0 %v18240_v1, %s14705_s21  ;;  %v19295_v52 = vsel %vm2690_vm6, %v19096_v59, %v8174_v9  ;;  %23951 = vst [vmem:[#allocation139_spill] sm:$0xff] %v19319_v40 }
 0x6c3   : > { %23947 = vst [vmem:[#allocation234_spill] sm:$0xff] %v19288_v18  ;;  %23948 = vst [vmem:[#allocation144_spill] sm:$0xff] %v19295_v52  ;;  %9353 = vmatprep.subr.bf16.mxu0 %v19288_v18  ;;  %7968 = vrot.lane.b32.xlu1 %v18240_v1, %s14706_s22 }
 0x6c4   : > { %9354 = vmatpush1.bf16.msra.mxu0 %v19295_v52  ;;  %9389 = vmatpush1.bf16.msra.mxu1 %v19302_v42  ;;  %v19306_v26 = vpop.permute.xlu0 %7516  ;;  %23955 = vst [vmem:[#allocation147_spill] sm:$0xff] %v19344_v58 }
 0x6c5   : > { %v8178_v35 = vpop.permute.xlu1 %8177  ;;  %v19310_v59 = vsel %vm1580_vm3, %v7515_v29, %v19306_v26 }
 0x6c6   : > { %23950 = vst [vmem:[#allocation145_spill] sm:$0xff] %v19310_v59  ;;  %9390 = vmatprep.subr.bf16.mxu1 %v19310_v59  ;;  %7751 = vrot.lane.b32.xlu0 %v18414_v23, %s14705_s21 }
 0x6c7   : > { %7972 = vrot.lane.b32.xlu1 %v18414_v23, %s14706_s22 }
 0x6c8   : > { %9391 = vmatpush1.bf16.msra.mxu1 %v19319_v40  ;;  %v19322_v34 = vpop.permute.xlu0 %7737 }
 0x6c9   : > { %v8395_v9 = vpop.permute.xlu1 %8394  ;;  %v19326_v42 = vsel %vm1950_vm4, %v7736_v28, %v19322_v34  ;;  %v19361_v28 = vsel %vm2320_vm5, %v19220_v55, %v7957_v21  ;;  %v19386_v55 = vsel %vm2690_vm6, %v19226_v31, %v8178_v35 }
 0x6ca   : > { %23952 = vst [vmem:[#allocation149_spill] sm:$0xff] %v19326_v42  ;;  %v19330_v59 = vsel %vm3060_vm7, %v8395_v9, %v19242_v50  ;;  %9392 = vmatprep.subr.bf16.mxu1 %v19326_v42  ;;  %8189 = vrot.lane.b32.xlu0 %v18240_v1, %s14707_s10  ;;  %v19337_v29 = vsel %vm3060_vm7, %v19122_v6, %v8395_v9  ;;  %23957 = vst [vmem:[#allocation151_spill] sm:$0xff] %v19361_v28 }
 0x6cb   : > { %23953 = vst [vmem:[#allocation146_spill] sm:$0xff] %v19330_v59  ;;  %23954 = vst [vmem:[#allocation148_spill] sm:$0xff] %v19337_v29  ;;  %9355 = vmatprep.subr.bf16.mxu0 %v19330_v59  ;;  %8410 = vrot.lane.b32.xlu1 %v18240_v1, %s14708_s19 }
 0x6cc   : > { %9356 = vmatpush1.bf16.msra.mxu0 %v19337_v29  ;;  %9393 = vmatpush1.bf16.msra.mxu1 %v19344_v58  ;;  %v19348_v42 = vpop.permute.xlu0 %7958  ;;  %23961 = vst [vmem:[#allocation156_spill] sm:$0xff] %v19386_v55 }
 0x6cd   : > { %v8399_v40 = vpop.permute.xlu1 %8398  ;;  %v19352_v6 = vsel %vm2320_vm5, %v7957_v21, %v19348_v42 }
 0x6ce   : > { %23956 = vst [vmem:[#allocation153_spill] sm:$0xff] %v19352_v6  ;;  %9394 = vmatprep.subr.bf16.mxu1 %v19352_v6  ;;  %8193 = vrot.lane.b32.xlu0 %v18414_v23, %s14707_s10  ;;  %v19405_v31 = vsel %vm3060_vm7, %v19242_v50, %v8399_v40 }
 0x6cf   : > { %8414 = vrot.lane.b32.xlu1 %v18414_v23, %s14708_s19  ;;  %23963 = vst [vmem:[#allocation161_spill] sm:$0xff] %v19405_v31 }
 0x6d0   : > { %9395 = vmatpush1.bf16.msra.mxu1 %v19361_v28  ;;  %v19364_v32 = vpop.permute.xlu0 %8179 }
 0x6d1   : > { %v8616_v9 = vpop.permute.xlu1 %8615  ;;  %v19368_v58 = vsel %vm2690_vm6, %v8178_v35, %v19364_v32 }
 0x6d2   : > { %23958 = vst [vmem:[#allocation152_spill] sm:$0xff] %v19368_v58  ;;  %v19372_v6 = vsel %vm3430_vm8, %v8616_v9, %v19248_v22  ;;  %9396 = vmatprep.subr.bf16.mxu1 %v19368_v58  ;;  %8631 = vrot.lane.b32.xlu0 %v18240_v1, %s14709_s11  ;;  %v19379_v21 = vsel %vm3430_vm8, %v19141_v30, %v8616_v9 }
 0x6d3   : > { %23959 = vst [vmem:[#allocation150_spill] sm:$0xff] %v19372_v6  ;;  %23960 = vst [vmem:[#allocation157_spill] sm:$0xff] %v19379_v21  ;;  %9357 = vmatprep.subr.bf16.mxu0 %v19372_v6  ;;  %8633 = vrot.lane.b32.xlu1 %v18410_v33, %s14709_s11 }
 0x6d4   : > { %9358 = vmatpush1.bf16.msra.mxu0 %v19379_v21  ;;  %9397 = vmatpush1.bf16.msra.mxu1 %v19386_v55  ;;  %v19390_v58 = vpop.permute.xlu0 %8400 }
 0x6d5   : > { %v8620_v28 = vpop.permute.xlu1 %8619  ;;  %9427 = vmatprep.subr.bf16.mxu0 %v18104_v38  ;;  %v19395_v30 = vsel %vm3060_vm7, %v8399_v40, %v19390_v58 }
 0x6d6   : > { %23962 = vst [vmem:[#allocation154_spill] sm:$0xff] %v19395_v30  ;;  %9398 = vmatprep.subr.bf16.mxu1 %v19395_v30  ;;  %8635 = vrot.lane.b32.xlu0 %v18414_v23, %s14709_s11  ;;  %v19424_v50 = vsel %vm3430_vm8, %v19248_v22, %v8620_v28 }
 0x6d7   : > { %7090 = vrot.lane.b32.xlu1 %v18429_v46, %s14702_s9  ;;  %9374 = vmatmul.mubr.bf16.vlgmr.msra.gmra.mrb[48].mxu0 %v19171_v43  ;;  %23965 = vst [vmem:[#allocation160_spill] sm:$0xff] %v19424_v50 }
 0x6d8   : > { %9399 = vmatpush1.bf16.msra.mxu1 %v19405_v31  ;;  %9428 = vmatpush1.bf16.msra.mxu0 %v18100_v15  ;;  %v19409_v35 = vpop.permute.xlu0 %8621 }
 0x6d9   : > { %v7077_v9 = vpop.permute.xlu1 %7076  ;;  %v19413_v30 = vsel %vm3430_vm8, %v8620_v28, %v19409_v35  ;;  %13818 = vmatprep.mubr.msk.bf16.mxu0 %vm3840_vm0, %v18621_v49 }
 0x6da   : > { %23964 = vst [vmem:[#allocation159_spill] sm:$0xff] %v19413_v30  ;;  %9400 = vmatprep.subr.bf16.mxu1 %v19413_v30  ;;  %7092 = vrot.lane.b32.xlu0 %v18434_v41, %s14702_s9  ;;  %v19439_v22 = vsel %vm840_vm1, %v19264_v60, %v7077_v9 }
 0x6db   : > { %7311 = vrot.lane.b32.xlu1 %v18429_v46, %s14703_s30  ;;  %23967 = vst [vmem:[#allocation165_spill] sm:$0xff] %v19439_v22 }
 0x6dc   : > { %9401 = vmatpush1.bf16.msra.mxu1 %v19424_v50  ;;  %v7079_v40 = vpop.permute.xlu0 %7078 }
 0x6dd   : > { %9470 = vmatprep.subr.bf16.mxu1 %v18208_v45  ;;  %v7081_v23 = vpop.permute.xlu1 %7080  ;;  %v19429_v31 = vsel %vm840_vm1, %v7077_v9, %v7079_v40 }
 0x6de   : > { %23966 = vst [vmem:[#allocation158_spill] sm:$0xff] %v19429_v31  ;;  %9429 = vmatprep.subr.bf16.mxu0 %v19429_v31  ;;  %7313 = vrot.lane.b32.xlu0 %v18434_v41, %s14703_s30 }
 0x6df   : > { %7532 = vrot.lane.b32.xlu1 %v18429_v46, %s14704_s23  ;;  %9417 = vmatmul.mubr.bf16.vlgmr.msra.gmra.mrb[48].mxu1 %v19171_v43 }
 0x6e0   : > { %9430 = vmatpush1.bf16.msra.mxu0 %v19439_v22  ;;  %9471 = vmatpush1.bf16.msra.mxu1 %v18203_v48  ;;  %v19443_v28 = vpop.permute.xlu0 %7299 }
 0x6e1   : > { %v7298_v45 = vpop.permute.xlu1 %7297  ;;  %13819 = vmatprep.mubr.msk.bf16.mxu1 %vm3840_vm0, %v18621_v49 }
 0x6e2   : > { %v19449_v50 = vsel %vm1210_vm2, %v7298_v45, %v19443_v28  ;;  %7534 = vrot.lane.b32.xlu0 %v18434_v41, %s14704_s23  ;;  %v19455_v60 = vsel %vm1210_vm2, %v19280_v61, %v7298_v45 }
 0x6e3   : > { %23968 = vst [vmem:[#allocation163_spill] sm:$0xff] %v19449_v50  ;;  %23969 = vst [vmem:[#allocation164_spill] sm:$0xff] %v19455_v60  ;;  %9431 = vmatprep.subr.bf16.mxu0 %v19449_v50  ;;  %7753 = vrot.lane.b32.xlu1 %v18429_v46, %s14705_s21 }
 0x6e4   : > { %9432 = vmatpush1.bf16.msra.mxu0 %v19455_v60  ;;  %v19461_v9 = vpop.permute.xlu0 %7520 }
 0x6e5   : > { %v7302_v49 = vpop.permute.xlu1 %7301 }
 0x6e6   : > { %7755 = vrot.lane.b32.xlu0 %v18434_v41, %s14705_s21 }
 0x6e7   : > { %7974 = vrot.lane.b32.xlu1 %v18429_v46, %s14706_s22 }
 0x6e8   : > { %v19467_v48 = vpop.permute.xlu0 %7741 }
 0x6e9   : > { %v7519_v45 = vpop.permute.xlu1 %7518 }
 0x6ea   : > { %v19471_v61 = vsel %vm1580_vm3, %v7519_v45, %v19461_v9  ;;  %7976 = vrot.lane.b32.xlu0 %v18434_v41, %s14706_s22  ;;  %v19477_v30 = vsel %vm1580_vm3, %v19306_v26, %v7519_v45 }
 0x6eb   : > { %23970 = vst [vmem:[#allocation162_spill] sm:$0xff] %v19471_v61  ;;  %23971 = vst [vmem:[#allocation169_spill] sm:$0xff] %v19477_v30  ;;  %9433 = vmatprep.subr.bf16.mxu0 %v19471_v61  ;;  %8195 = vrot.lane.b32.xlu1 %v18429_v46, %s14707_s10 }
 0x6ec   : > { %9434 = vmatpush1.bf16.msra.mxu0 %v19477_v30  ;;  %v19483_v55 = vpop.permute.xlu0 %7962 }
 0x6ed   : > { %v7523_v60 = vpop.permute.xlu1 %7522 }
 0x6ee   : > { %8197 = vrot.lane.b32.xlu0 %v18434_v41, %s14707_s10 }
 0x6ef   : > { %8416 = vrot.lane.b32.xlu1 %v18429_v46, %s14708_s19 }
 0x6f0   : > { %v19489_v50 = vpop.permute.xlu0 %8183 }
 0x6f1   : > { %v7740_v26 = vpop.permute.xlu1 %7739 }
 0x6f2   : > { %v19493_v45 = vsel %vm1950_vm4, %v7740_v26, %v19467_v48  ;;  %8418 = vrot.lane.b32.xlu0 %v18434_v41, %s14708_s19  ;;  %v19499_v30 = vsel %vm1950_vm4, %v19322_v34, %v7740_v26 }
 0x6f3   : > { %23972 = vst [vmem:[#allocation167_spill] sm:$0xff] %v19493_v45  ;;  %23973 = vst [vmem:[#allocation168_spill] sm:$0xff] %v19499_v30  ;;  %9435 = vmatprep.subr.bf16.mxu0 %v19493_v45  ;;  %8637 = vrot.lane.b32.xlu1 %v18429_v46, %s14709_s11 }
 0x6f4   : > { %9436 = vmatpush1.bf16.msra.mxu0 %v19499_v30  ;;  %v19505_v61 = vpop.permute.xlu0 %8404 }
 0x6f5   : > { %v7744_v22 = vpop.permute.xlu1 %7743 }
 0x6f6   : > { %8639 = vrot.lane.b32.xlu0 %v18434_v41, %s14709_s11 }
 0x6f7   : > { %7094 = vrot.lane.b32.xlu1 %v18590_v51, %s14702_s9 }
 0x6f8   : > { %v19511_v31 = vpop.permute.xlu0 %8625 }
 0x6f9   : > { %v7961_v34 = vpop.permute.xlu1 %7960 }
 0x6fa   : > { %v19515_v26 = vsel %vm2320_vm5, %v7961_v34, %v19483_v55  ;;  %7096 = vrot.lane.b32.xlu0 %v18596_v47, %s14702_s9  ;;  %v19521_v46 = vsel %vm2320_vm5, %v19348_v42, %v7961_v34  ;;  %v19537_v42 = vsel %vm840_vm1, %v7079_v40, %v7081_v23  ;;  %v19564_v40 = vsel %vm1210_vm2, %v19443_v28, %v7302_v49 }
 0x6fb   : > { %23974 = vst [vmem:[#allocation166_spill] sm:$0xff] %v19515_v26  ;;  %23975 = vst [vmem:[#allocation174_spill] sm:$0xff] %v19521_v46  ;;  %9437 = vmatprep.subr.bf16.mxu0 %v19515_v26  ;;  %7315 = vrot.lane.b32.xlu1 %v18590_v51, %s14703_s30 }
 0x6fc   : > { %9438 = vmatpush1.bf16.msra.mxu0 %v19521_v46  ;;  %v19527_v41 = vpop.permute.xlu0 %7082  ;;  %23977 = vst [vmem:[#allocation176_spill] sm:$0xff] %v19537_v42  ;;  %23981 = vst [vmem:[#allocation180_spill] sm:$0xff] %v19564_v40 }
 0x6fd   : > { %v7965_v30 = vpop.permute.xlu1 %7964  ;;  %v19531_v45 = vsel %vm840_vm1, %v7081_v23, %v19527_v41 }
 0x6fe   : > { %23976 = vst [vmem:[#allocation172_spill] sm:$0xff] %v19531_v45  ;;  %9472 = vmatprep.subr.bf16.mxu1 %v19531_v45  ;;  %7317 = vrot.lane.b32.xlu0 %v18596_v47, %s14703_s30 }
 0x6ff   : > { %7536 = vrot.lane.b32.xlu1 %v18590_v51, %s14704_s23  ;;  %9473 = vmatpush1.bf16.msra.mxu1 %v19537_v42 }
 0x700   : > { %v19542_v34 = vpop.permute.xlu0 %7303 }
 0x701   : > { %v8182_v46 = vpop.permute.xlu1 %8181  ;;  %v19546_v26 = vsel %vm1210_vm2, %v7302_v49, %v19542_v34 }
 0x702   : > { %23978 = vst [vmem:[#allocation178_spill] sm:$0xff] %v19546_v26  ;;  %v19550_v45 = vsel %vm2690_vm6, %v8182_v46, %v19489_v50  ;;  %9474 = vmatprep.subr.bf16.mxu1 %v19546_v26  ;;  %7538 = vrot.lane.b32.xlu0 %v18596_v47, %s14704_s23  ;;  %v19557_v23 = vsel %vm2690_vm6, %v19364_v32, %v8182_v46 }
 0x703   : > { %23979 = vst [vmem:[#allocation177_spill] sm:$0xff] %v19550_v45  ;;  %23980 = vst [vmem:[#allocation182_spill] sm:$0xff] %v19557_v23  ;;  %9439 = vmatprep.subr.bf16.mxu0 %v19550_v45  ;;  %7757 = vrot.lane.b32.xlu1 %v18590_v51, %s14705_s21  ;;  %v19581_v32 = vsel %vm1580_vm3, %v19461_v9, %v7523_v60  ;;  %v19606_v9 = vsel %vm1950_vm4, %v19467_v48, %v7744_v22 }
 0x704   : > { %9440 = vmatpush1.bf16.msra.mxu0 %v19557_v23  ;;  %9475 = vmatpush1.bf16.msra.mxu1 %v19564_v40  ;;  %v19568_v26 = vpop.permute.xlu0 %7524  ;;  %23983 = vst [vmem:[#allocation179_spill] sm:$0xff] %v19581_v32  ;;  %23987 = vst [vmem:[#allocation190_spill] sm:$0xff] %v19606_v9  ;;  %v19623_v48 = vsel %vm2320_vm5, %v19483_v55, %v7965_v30 }
 0x705   : > { %v8186_v42 = vpop.permute.xlu1 %8185  ;;  %v19572_v46 = vsel %vm1580_vm3, %v7523_v60, %v19568_v26  ;;  %23989 = vst [vmem:[#allocation189_spill] sm:$0xff] %v19623_v48 }
 0x706   : > { %23982 = vst [vmem:[#allocation181_spill] sm:$0xff] %v19572_v46  ;;  %9476 = vmatprep.subr.bf16.mxu1 %v19572_v46  ;;  %7759 = vrot.lane.b32.xlu0 %v18596_v47, %s14705_s21  ;;  %s22259_s21 = scalar_lea.hbm %s22314_s7, %s14270_s15 }
 0x707   : > { %7978 = vrot.lane.b32.xlu1 %v18590_v51, %s14706_s22 }
 0x708   : > { %9477 = vmatpush1.bf16.msra.mxu1 %v19581_v32  ;;  %v19584_v28 = vpop.permute.xlu0 %7745 }
 0x709   : > { %v8403_v49 = vpop.permute.xlu1 %8402  ;;  %v19588_v40 = vsel %vm1950_vm4, %v7744_v22, %v19584_v28 }
 0x70a   : > { %23984 = vst [vmem:[#allocation186_spill] sm:$0xff] %v19588_v40  ;;  %v19592_v46 = vsel %vm3060_vm7, %v8403_v49, %v19505_v61  ;;  %9478 = vmatprep.subr.bf16.mxu1 %v19588_v40  ;;  %7980 = vrot.lane.b32.xlu0 %v18596_v47, %s14706_s22  ;;  %v19599_v60 = vsel %vm3060_vm7, %v19390_v58, %v8403_v49 }
 0x70b   : > { %23985 = vst [vmem:[#allocation184_spill] sm:$0xff] %v19592_v46  ;;  %23986 = vst [vmem:[#allocation185_spill] sm:$0xff] %v19599_v60  ;;  %9441 = vmatprep.subr.bf16.mxu0 %v19592_v46  ;;  %8199 = vrot.lane.b32.xlu1 %v18590_v51, %s14707_s10 }
 0x70c   : > { %9442 = vmatpush1.bf16.msra.mxu0 %v19599_v60  ;;  %9479 = vmatpush1.bf16.msra.mxu1 %v19606_v9  ;;  %v19610_v40 = vpop.permute.xlu0 %7966 }
 0x70d   : > { %v8407_v32 = vpop.permute.xlu1 %8406  ;;  %v19614_v58 = vsel %vm2320_vm5, %v7965_v30, %v19610_v40  ;;  %v19648_v30 = vsel %vm2690_vm6, %v19489_v50, %v8186_v42  ;;  %v14455_v50 = vld [vmem:[%s14932_s18 + $0x18] ss:$148 sps:$4 sm:$0xff]  }
 0x70e   : > { %23988 = vst [vmem:[#allocation188_spill] sm:$0xff] %v19614_v58  ;;  %9480 = vmatprep.subr.bf16.mxu1 %v19614_v58  ;;  %8201 = vrot.lane.b32.xlu0 %v18596_v47, %s14707_s10  ;;  %23993 = vst [vmem:[#allocation198_spill] sm:$0xff] %v19648_v30 }
 0x70f   : > { %8420 = vrot.lane.b32.xlu1 %v18590_v51, %s14708_s19 }
 0x710   : > { %9481 = vmatpush1.bf16.msra.mxu1 %v19623_v48  ;;  %v19626_v22 = vpop.permute.xlu0 %8187  ;;  %v14452_v48 = vld [vmem:[%s14932_s18 + $0x14] ss:$148 sps:$4 sm:$0xff]  }
 0x711   : > { %v8624_v49 = vpop.permute.xlu1 %8623  ;;  %v19630_v9 = vsel %vm2690_vm6, %v8186_v42, %v19626_v22  ;;  %v19668_v42 = vsel %vm3060_vm7, %v19505_v61, %v8407_v32  ;;  %v14459_v61 = vld [vmem:[%s14932_s18 + $0x1c] ss:$148 sps:$4 sm:$0xff]  }
 0x712   : > { %23990 = vst [vmem:[#allocation194_spill] sm:$0xff] %v19630_v9  ;;  %v19634_v58 = vsel %vm3430_vm8, %v8624_v49, %v19511_v31  ;;  %9482 = vmatprep.subr.bf16.mxu1 %v19630_v9  ;;  %8422 = vrot.lane.b32.xlu0 %v18596_v47, %s14708_s19  ;;  %v19641_v55 = vsel %vm3430_vm8, %v19409_v35, %v8624_v49  ;;  %23995 = vst [vmem:[#allocation197_spill] sm:$0xff] %v19668_v42  ;;  %v14454_v49 = vld [vmem:[%s14932_s18 + $0x10] ss:$148 sps:$4 sm:$0xff]  }
 0x713   : > { %23991 = vst [vmem:[#allocation193_spill] sm:$0xff] %v19634_v58  ;;  %23992 = vst [vmem:[#allocation191_spill] sm:$0xff] %v19641_v55  ;;  %9443 = vmatprep.subr.bf16.mxu0 %v19634_v58  ;;  %8641 = vrot.lane.b32.xlu1 %v18590_v51, %s14709_s11 }
 0x714   : > { %9444 = vmatpush1.bf16.msra.mxu0 %v19641_v55  ;;  %9483 = vmatpush1.bf16.msra.mxu1 %v19648_v30  ;;  %v19653_v9 = vpop.permute.xlu0 %8408  ;;  %v14468_v55 = vld [vmem:[%s14932_s18 + $0x34] ss:$148 sps:$4 sm:$0xff]  }
 0x715   : > { %v8628_v60 = vpop.permute.xlu1 %8627  ;;  %9513 = vmatprep.subr.bf16.mxu0 %v18240_v1  ;;  %v19658_v35 = vsel %vm3060_vm7, %v8407_v32, %v19653_v9  ;;  %v23998_v1 = vmov 0  }
 0x716   : > { %23994 = vst [vmem:[#allocation196_spill] sm:$0xff] %v19658_v35  ;;  %9484 = vmatprep.subr.bf16.mxu1 %v19658_v35  ;;  %8643 = vrot.lane.b32.xlu0 %v18596_v47, %s14709_s11  ;;  %v19686_v32 = vsel %vm3430_vm8, %v19511_v31, %v8628_v60  ;;  %v14460_v31 = vld [vmem:[%s14932_s18 + $0x28] ss:$148 sps:$4 sm:$0xff]  }
 0x717   : > { %11754 = vrot.lane.b32.xlu1 %v14452_v48, %s14709_s11  ;;  %9460 = vmatmul.mubr.bf16.vlgmr.msra.gmra.mrb[52].mxu0 %v19171_v43  ;;  %v14536_v48 = vld [vmem:[#allocation9 + $0x4] ss:$8 sps:$4 sm:$0xff]   ;;  %23997 = vst [vmem:[#allocation200_spill] sm:$0xff] %v19686_v32 }
 0x718   : > { %9485 = vmatpush1.bf16.msra.mxu1 %v19668_v42  ;;  %9514 = vmatpush1.bf16.msra.mxu0 %v18229_v0  ;;  %v19673_v51 = vpop.permute.xlu0 %8629  ;;  %v14457_v42 = vld [vmem:[%s14932_s18 + $0x20] ss:$148 sps:$4 sm:$0xff]  }
 0x719   : > { %v7308_v35 = vpop.permute.xlu1 %7307  ;;  %v19677_v47 = vsel %vm3430_vm8, %v8628_v60, %v19673_v51  ;;  %13820 = vmatprep.mubr.msk.bf16.mxu0 %vm3840_vm0, %v14536_v48 }
 0x71a   : > { %23996 = vst [vmem:[#allocation202_spill] sm:$0xff] %v19677_v47  ;;  %9486 = vmatprep.subr.bf16.mxu1 %v19677_v47  ;;  %11756 = vrot.lane.b32.xlu0 %v14455_v50, %s14709_s11  ;;  %v14462_v50 = vld [vmem:[%s14932_s18 + $0x24] ss:$148 sps:$4 sm:$0xff]  }
 0x71b   : > { %11752 = vrot.lane.b32.xlu1 %v14454_v49, %s14709_s11 }
 0x71c   : > { %9487 = vmatpush1.bf16.msra.mxu1 %v19686_v32  ;;  %v7087_v30 = vpop.permute.xlu0 %7086 }
 0x71d   : > { %v19690_v0 = vpop.permute.xlu1 %7749  ;;  %9556 = vmatprep.subr.bf16.mxu1 %v23998_v1 }
 0x71e   : > { %11758 = vrot.lane.b32.xlu0 %v14459_v61, %s14709_s11  ;;  %v14465_v61 = vld [vmem:[%s14932_s18 + $0x2c] ss:$148 sps:$4 sm:$0xff]  }
 0x71f   : > { %11760 = vrot.lane.b32.xlu1 %v14457_v42, %s14709_s11  ;;  %9503 = vmatmul.mubr.bf16.vlgmr.msra.gmra.mrb[52].mxu1 %v19171_v43  ;;  %v14463_v42 = vld [vmem:[%s14932_s18 + $0x30] ss:$148 sps:$4 sm:$0xff]  }
 0x720   : > { %9557 = vmatpush1.bf16.msra.mxu1 %v18410_v33  ;;  %v7529_v60 = vpop.permute.xlu0 %7528  ;;  %13821 = vmatprep.mubr.msk.bf16.mxu1 %vm3840_vm0, %v14536_v48 }
 0x721   : > { %v19700_v49 = vpop.permute.xlu1 %8191  ;;  %9558 = vmatprep.subr.bf16.mxu1 %v23998_v1 }
 0x722   : > { %11762 = vrot.lane.b32.xlu0 %v14462_v50, %s14709_s11  ;;  %v14466_v50 = vld [vmem:[%s14932_s18 + $0x38] ss:$148 sps:$4 sm:$0xff]  }
 0x723   : > { %11764 = vrot.lane.b32.xlu1 %v14460_v31, %s14709_s11 }
 0x724   : > { %v19707_v32 = vpop.permute.xlu0 %7970 }
 0x725   : > { %v7085_v47 = vpop.permute.xlu1 %7084 }
 0x726   : > { %v19710_v33 = vsel %vm840_vm1, %v7085_v47, %v7087_v30  ;;  %11766 = vrot.lane.b32.xlu0 %v14465_v61, %s14709_s11  ;;  %v19715_v48 = vsel %vm840_vm1, %v19527_v41, %v7085_v47  ;;  %v14471_v41 = vld [vmem:[%s14932_s18 + $0x3c] ss:$148 sps:$4 sm:$0xff]   ;;  %v14469_v47 = vld [vmem:[%s14932_s18 + $0x40] ss:$148 sps:$4 sm:$0xff]  }
 0x727   : > { %23999 = vst [vmem:[#allocation201_spill] sm:$0xff] %v19710_v33  ;;  %24000 = vst [vmem:[#allocation199_spill] sm:$0xff] %v19715_v48  ;;  %9515 = vmatprep.subr.bf16.mxu0 %v19710_v33  ;;  %11768 = vrot.lane.b32.xlu1 %v14463_v42, %s14709_s11 }
 0x728   : > { %9516 = vmatpush1.bf16.msra.mxu0 %v19715_v48  ;;  %v19722_v31 = vpop.permute.xlu0 %8412 }
 0x729   : > { %v19724_v58 = vpop.permute.xlu1 %7088 }
 0x72a   : > { %24001 = vst [vmem:[#allocation206_spill] sm:$0xff] %v19724_v58  ;;  %v19728_v61 = vsel %vm840_vm1, %v7087_v30, %v19724_v58  ;;  %11770 = vrot.lane.b32.xlu0 %v14468_v55, %s14709_s11  ;;  %v14474_v55 = vld [vmem:[%s14932_s18 + $0x44] ss:$148 sps:$4 sm:$0xff]  }
 0x72b   : > { %24002 = vst [vmem:[#allocation205_spill] sm:$0xff] %v19728_v61  ;;  %9559 = vmatpush1.bf16.msra.mxu1 %v19728_v61  ;;  %11772 = vrot.lane.b32.xlu1 %v14466_v50, %s14709_s11  ;;  %v14472_v61 = vld [vmem:[%s14932_s18 + $0x48] ss:$148 sps:$4 sm:$0xff]  }
 0x72c   : > { %v7306_v42 = vpop.permute.xlu0 %7305  ;;  %9560 = vmatprep.subr.bf16.mxu1 %v23998_v1 }
 0x72d   : > { %v7527_v48 = vpop.permute.xlu1 %7526  ;;  %v19737_v33 = vsel %vm1210_vm2, %v7306_v42, %v7308_v35  ;;  %v19741_v30 = vsel %vm1210_vm2, %v19542_v34, %v7306_v42 }
 0x72e   : > { %24003 = vst [vmem:[#allocation138_spill] sm:$0xff] %v19737_v33  ;;  %24004 = vst [vmem:[#allocation143_spill] sm:$0xff] %v19741_v30  ;;  %9517 = vmatprep.subr.bf16.mxu0 %v19737_v33  ;;  %11774 = vrot.lane.b32.xlu0 %v14471_v41, %s14709_s11  ;;  %v19749_v50 = vsel %vm1580_vm3, %v7527_v48, %v7529_v60  ;;  %v19765_v41 = vsel %vm1580_vm3, %v19568_v26, %v7527_v48  ;;  %v14478_v48 = vld [vmem:[%s14932_s18 + $0x58] ss:$148 sps:$4 sm:$0xff]  }
 0x72f   : > { %11776 = vrot.lane.b32.xlu1 %v14469_v47, %s14709_s11  ;;  %9518 = vmatpush1.bf16.msra.mxu0 %v19741_v30  ;;  %24005 = vst [vmem:[#allocation209_spill] sm:$0xff] %v19749_v50  ;;  %24009 = vst [vmem:[#allocation214_spill] sm:$0xff] %v19765_v41  ;;  %v14475_v47 = vld [vmem:[%s14932_s18 + $0x50] ss:$148 sps:$4 sm:$0xff]  }
 0x730   : > { %v19752_v58 = vpop.permute.xlu0 %7309  ;;  %9519 = vmatprep.subr.bf16.mxu0 %v19749_v50  ;;  %v14477_v50 = vld [vmem:[%s14932_s18 + $0x4c] ss:$148 sps:$4 sm:$0xff]  }
 0x731   : > { %24006 = vst [vmem:[#allocation208_spill] sm:$0xff] %v19752_v58  ;;  %v19755_v34 = vpop.permute.xlu1 %7530  ;;  %v19759_v42 = vsel %vm1210_vm2, %v7308_v35, %v19752_v58 }
 0x732   : > { %24007 = vst [vmem:[#allocation212_spill] sm:$0xff] %v19755_v34  ;;  %24008 = vst [vmem:[#allocation211_spill] sm:$0xff] %v19759_v42  ;;  %9561 = vmatpush1.bf16.msra.mxu1 %v19759_v42  ;;  %11778 = vrot.lane.b32.xlu0 %v14474_v55, %s14709_s11  ;;  %v19778_v55 = vsel %vm1580_vm3, %v7529_v60, %v19755_v34  ;;  %v14483_v34 = vld [vmem:[%s14932_s18 + $0x5c] ss:$148 sps:$4 sm:$0xff]  }
 0x733   : > { %11780 = vrot.lane.b32.xlu1 %v14472_v61, %s14709_s11  ;;  %9520 = vmatpush1.bf16.msra.mxu0 %v19765_v41  ;;  %24011 = vst [vmem:[#allocation216_spill] sm:$0xff] %v19778_v55  ;;  %v14480_v61 = vld [vmem:[%s14932_s18 + $0x54] ss:$148 sps:$4 sm:$0xff]  }
 0x734   : > { %v7748_v30 = vpop.permute.xlu0 %7747  ;;  %9562 = vmatprep.subr.bf16.mxu1 %v23998_v1 }
 0x735   : > { %v7969_v35 = vpop.permute.xlu1 %7968  ;;  %v19774_v42 = vsel %vm1950_vm4, %v7748_v30, %v19690_v0  ;;  %v19782_v26 = vsel %vm1950_vm4, %v19584_v28, %v7748_v30 }
 0x736   : > { %24010 = vst [vmem:[#allocation213_spill] sm:$0xff] %v19774_v42  ;;  %24012 = vst [vmem:[#allocation215_spill] sm:$0xff] %v19782_v26  ;;  %9521 = vmatprep.subr.bf16.mxu0 %v19774_v42  ;;  %9563 = vmatpush1.bf16.msra.mxu1 %v19778_v55  ;;  %v19795_v28 = vsel %vm2320_vm5, %v7969_v35, %v19707_v32  ;;  %v14481_v55 = vld [vmem:[%s14932_s18 + $0x60] ss:$148 sps:$4 sm:$0xff]  }
 0x737   : > { %11784 = vrot.lane.b32.xlu1 %v14475_v47, %s14709_s11  ;;  %11782 = vrot.lane.b32.xlu0 %v14477_v50, %s14709_s11  ;;  %24013 = vst [vmem:[#allocation218_spill] sm:$0xff] %v19795_v28  ;;  %v19811_v47 = vsel %vm2320_vm5, %v19610_v40, %v7969_v35  ;;  %v14484_v35 = vld [vmem:[%s14932_s18 + $0x68] ss:$148 sps:$4 sm:$0xff]  }
 0x738   : > { %9522 = vmatpush1.bf16.msra.mxu0 %v19782_v26  ;;  %v19791_v60 = vpop.permute.xlu0 %7751  ;;  %9564 = vmatprep.subr.bf16.mxu1 %v23998_v1  ;;  %24016 = vst [vmem:[#allocation219_spill] sm:$0xff] %v19811_v47 }
 0x739   : > { %v19798_v30 = vpop.permute.xlu1 %7972  ;;  %9523 = vmatprep.subr.bf16.mxu0 %v19795_v28  ;;  %v19804_v50 = vsel %vm1950_vm4, %v19690_v0, %v19791_v60 }
 0x73a   : > { %24014 = vst [vmem:[#allocation217_spill] sm:$0xff] %v19798_v30  ;;  %24015 = vst [vmem:[#allocation220_spill] sm:$0xff] %v19804_v50  ;;  %9565 = vmatpush1.bf16.msra.mxu1 %v19804_v50 }
 0x73b   : > { %11788 = vrot.lane.b32.xlu1 %v14478_v48, %s14709_s11  ;;  %11786 = vrot.lane.b32.xlu0 %v14480_v61, %s14709_s11  ;;  %v19824_v48 = vsel %vm2320_vm5, %v19707_v32, %v19798_v30  ;;  %v14486_v61 = vld [vmem:[%s14932_s18 + $0x64] ss:$148 sps:$4 sm:$0xff]  }
 0x73c   : > { %9524 = vmatpush1.bf16.msra.mxu0 %v19811_v47  ;;  %v8190_v58 = vpop.permute.xlu0 %8189  ;;  %9566 = vmatprep.subr.bf16.mxu1 %v23998_v1  ;;  %24018 = vst [vmem:[#allocation223_spill] sm:$0xff] %v19824_v48 }
 0x73d   : > { %v8411_v0 = vpop.permute.xlu1 %8410  ;;  %v19819_v50 = vsel %vm2690_vm6, %v8190_v58, %v19700_v49  ;;  %v19828_v40 = vsel %vm2690_vm6, %v19626_v22, %v8190_v58 }
 0x73e   : > { %24017 = vst [vmem:[#allocation221_spill] sm:$0xff] %v19819_v50  ;;  %24019 = vst [vmem:[#allocation222_spill] sm:$0xff] %v19828_v40  ;;  %9525 = vmatprep.subr.bf16.mxu0 %v19819_v50  ;;  %9567 = vmatpush1.bf16.msra.mxu1 %v19824_v48  ;;  %v19841_v58 = vsel %vm3060_vm7, %v8411_v0, %v19722_v31  ;;  %v14487_v48 = vld [vmem:[%s14932_s18 + $0x70] ss:$148 sps:$4 sm:$0xff]  }
 0x73f   : > { %11792 = vrot.lane.b32.xlu1 %v14481_v55, %s14709_s11  ;;  %11790 = vrot.lane.b32.xlu0 %v14483_v34, %s14709_s11  ;;  %24021 = vst [vmem:[#allocation155_spill] sm:$0xff] %v19841_v58  ;;  %v19857_v55 = vsel %vm3060_vm7, %v19653_v9, %v8411_v0  ;;  %v14490_v0 = vld [vmem:[%s14932_s18 + $0x78] ss:$148 sps:$4 sm:$0xff]  }
 0x740   : > { %9526 = vmatpush1.bf16.msra.mxu0 %v19828_v40  ;;  %v19837_v32 = vpop.permute.xlu0 %8193  ;;  %9568 = vmatprep.subr.bf16.mxu1 %v23998_v1  ;;  %24023 = vst [vmem:[#allocation236_spill] sm:$0xff] %v19857_v55 }
 0x741   : > { %24020 = vst [vmem:[#allocation173_spill] sm:$0xff] %v19837_v32  ;;  %v19844_v22 = vpop.permute.xlu1 %8414  ;;  %9527 = vmatprep.subr.bf16.mxu0 %v19841_v58  ;;  %v19850_v34 = vsel %vm2690_vm6, %v19700_v49, %v19837_v32  ;;  %v14489_v49 = vld [vmem:[%s14932_s18 + $0x6c] ss:$148 sps:$4 sm:$0xff]  }
 0x742   : > { %24022 = vst [vmem:[#allocation235_spill] sm:$0xff] %v19850_v34  ;;  %9569 = vmatpush1.bf16.msra.mxu1 %v19850_v34  ;;  %v19866_v34 = vsel %vm3060_vm7, %v19722_v31, %v19844_v22 }
 0x743   : > { %11796 = vrot.lane.b32.xlu1 %v14484_v35, %s14709_s11  ;;  %11794 = vrot.lane.b32.xlu0 %v14486_v61, %s14709_s11  ;;  %v14492_v61 = vld [vmem:[%s14932_s18 + $0x74] ss:$148 sps:$4 sm:$0xff]  }
 0x744   : > { %9528 = vmatpush1.bf16.msra.mxu0 %v19857_v55  ;;  %v8632_v30 = vpop.permute.xlu0 %8631  ;;  %9570 = vmatprep.subr.bf16.mxu1 %v23998_v1 }
 0x745   : > { %v8634_v32 = vpop.permute.xlu1 %8633  ;;  %v19870_v35 = vsel %vm3430_vm8, %v19673_v51, %v8632_v30 }
 0x746   : > { %24024 = vst [vmem:[#allocation237_spill] sm:$0xff] %v19870_v35  ;;  %v19873_v9 = vsel %vm3430_vm8, %v8632_v30, %v8634_v32  ;;  %9571 = vmatpush1.bf16.msra.mxu1 %v19866_v34  ;;  %v19891_v30 = vld [vmem:[#allocation9 + $0x14] ss:$8 sps:$4 sm:$0xff]  }
 0x747   : > { %24025 = vst [vmem:[#allocation238_spill] sm:$0xff] %v19873_v9  ;;  %9529 = vmatprep.subr.bf16.mxu0 %v19873_v9  ;;  %11800 = vrot.lane.b32.xlu1 %v14487_v48, %s14709_s11  ;;  %v14493_v48 = vld [vmem:[%s14932_s18 + $0x7c] ss:$148 sps:$4 sm:$0xff]   ;;  %s14713_s18 = smov [#allocation10]  }
 0x748   : > { %11798 = vrot.lane.b32.xlu0 %v14489_v49, %s14709_s11  ;;  %9530 = vmatpush1.bf16.msra.mxu0 %v19870_v35  ;;  %v19881_v31 = vpop.permute.xlu0 %8635  ;;  %v24029_v49 = vld [vmem:[#allocation34_spill] sm:$0xff]  ;;  %s14627_s10 = sshll.u32 %s14713_s18, 4  ;;  %s14628_s10 = int_to_ptr.vmem [resolvable:$false] %s14627_s10 }
 0x749   : > { %9919 = vmatprep.subr.bf16.mxu0 %v17817_v57  ;;  %9572 = vmatprep.subr.bf16.mxu1 %v23998_v1  ;;  %v19888_v51 = vsel %vm3430_vm8, %v8634_v32, %v19881_v31  ;;  %v8738_v57 = vld [vmem:[%s22311_s4] sm:$0xff]  ;;  %v24026_v32 = vld [vmem:[#allocation23_spill] sm:$0xff]  ;;  %s14629_s19 = scalar_lea.vmem %s14628_s10, 12288 }
 0x74a   : > { %9573 = vmatpush1.bf16.msra.mxu1 %v19888_v51 }
 0x74b   : > { %11804 = vrot.lane.b32.xlu1 %v14490_v0, %s14709_s11  ;;  %9546 = vmatmul.mubr.bf16.vlgmr.msra.gmra.mrb[56].mxu0 %v19171_v43  ;;  %v24030_v0 = vld [vmem:[#allocation29_spill] sm:$0xff] }
 0x74c   : > { %11802 = vrot.lane.b32.xlu0 %v14492_v61, %s14709_s11  ;;  %9920 = vmatpush1.bf16.msra.mxu0 %v17810_v37  ;;  %v11623_v37 = vld [vmem:[%s22313_s6] sm:$0xff]  ;;  %v11624_v61 = vld [vmem:[%s22313_s6 + $0x8] sm:$0xff] }
 0x74d   : > { %9962 = vmatprep.subr.bf16.mxu1 %v17831_v12  ;;  %9921 = vmatprep.subr.bf16.mxu0 %v18191_v36  ;;  %v8739_v36 = vld [vmem:[%s22311_s4 + $0x8] sm:$0xff] }
 0x74e   : > { %9589 = vmatmul.mubr.bf16.vlgmr.msra.gmra.mrb[56].mxu1 %v19171_v43  ;;  %13824 = vmatprep.mubr.msk.bf16.mxu0 %vm3840_vm0, %v19891_v30  ;;  %v24027_v43 = vld [vmem:[#allocation37_spill] sm:$0xff] }
 0x74f   : > { %9963 = vmatpush1.bf16.msra.mxu1 %v17824_v16  ;;  %9599 = vperm.xlu1 %14356, %v8738_v57   ;;  %v24031_v57 = vld [vmem:[#allocation41_spill] sm:$0xff] }
 0x750   : > { %11806 = vrot.lane.b32.xlu0 %v14493_v48, %s14709_s11  ;;  %9922 = vmatpush1.bf16.msra.mxu0 %v18180_v7  ;;  %v24028_v7 = vld [vmem:[#allocation24_spill] sm:$0xff] }
 0x751   : > { %9964 = vmatprep.subr.bf16.mxu1 %v18307_v27  ;;  %9923 = vmatprep.subr.bf16.mxu0 %v24026_v32  ;;  %v24032_v48 = vld [vmem:[#allocation28_spill] sm:$0xff]  ;;  %v24033_v32 = vld [vmem:[#allocation45_spill] sm:$0xff] }
 0x752   : > { %13825 = vmatprep.mubr.msk.bf16.mxu1 %vm3840_vm0, %v19891_v30 }
 0x753   : > { %9965 = vmatpush1.bf16.msra.mxu1 %v24027_v43  ;;  %11627 = vperm.xlu1 %14356, %v11623_v37   ;;  %v24034_v43 = vld [vmem:[#allocation26_spill] sm:$0xff]  ;;  %v24035_v37 = vld [vmem:[#allocation43_spill] sm:$0xff] }
 0x754   : > { %9604 = vperm.xlu0 %14355, %v8739_v36   ;;  %9924 = vmatpush1.bf16.msra.mxu0 %v24028_v7  ;;  %v24036_v36 = vld [vmem:[#allocation33_spill] sm:$0xff]  ;;  %v24037_v7 = vld [vmem:[#allocation31_spill] sm:$0xff] }
 0x755   : > { %9966 = vmatprep.subr.bf16.mxu1 %v24029_v49  ;;  %9925 = vmatprep.subr.bf16.mxu0 %v24030_v0  ;;  %v24038_v0 = vld [vmem:[#allocation32_spill] sm:$0xff] }
 0x757   : > { %9967 = vmatpush1.bf16.msra.mxu1 %v24031_v57 }
 0x758   : > { %11632 = vperm.xlu0 %14355, %v11624_v61   ;;  %9926 = vmatpush1.bf16.msra.mxu0 %v24032_v48  ;;  %v24039_v61 = vld [vmem:[#allocation30_spill] sm:$0xff]  ;;  %v24040_v48 = vld [vmem:[#allocation35_spill] sm:$0xff] }
 0x759   : > { %9968 = vmatprep.subr.bf16.mxu1 %v24033_v32  ;;  %9927 = vmatprep.subr.bf16.mxu0 %v24034_v43  ;;  %v24041_v43 = vld [vmem:[#allocation36_spill] sm:$0xff] }
 0x75b   : > { %9969 = vmatpush1.bf16.msra.mxu1 %v24035_v37 }
 0x75c   : > { %9928 = vmatpush1.bf16.msra.mxu0 %v24036_v36  ;;  %9970 = vmatprep.subr.bf16.mxu1 %v18418_v17  ;;  %v24042_v36 = vld [vmem:[#allocation39_spill] sm:$0xff]  ;;  %v24064_v17 = vld [vmem:[#allocation226_spill] sm:$0xff] }
 0x75d   : > { %9929 = vmatprep.subr.bf16.mxu0 %v24037_v7  ;;  %v24043_v7 = vld [vmem:[#allocation54_spill] sm:$0xff] }
 0x75f   : > { %9971 = vmatpush1.bf16.msra.mxu1 %v18424_v20  ;;  %v24044_v20 = vld [vmem:[#allocation40_spill] sm:$0xff] }
 0x760   : > { %9930 = vmatpush1.bf16.msra.mxu0 %v24038_v0  ;;  %9972 = vmatprep.subr.bf16.mxu1 %v18444_v5  ;;  %v24045_v0 = vld [vmem:[#allocation61_spill] sm:$0xff]  ;;  %v19947_v5 = vld [vmem:[#allocation9 + $0x10] ss:$8 sps:$4 sm:$0xff]  }
 0x761   : > { %9931 = vmatprep.subr.bf16.mxu0 %v24039_v61  ;;  %v24046_v61 = vld [vmem:[#allocation38_spill] sm:$0xff] }
 0x763   : > { %9973 = vmatpush1.bf16.msra.mxu1 %v18450_v63  ;;  %v24062_v63 = vld [vmem:[#allocation79_spill] sm:$0xff] }
 0x764   : > { %9932 = vmatpush1.bf16.msra.mxu0 %v24040_v48  ;;  %9974 = vmatprep.subr.bf16.mxu1 %v18483_v39  ;;  %v24047_v48 = vld [vmem:[#allocation170_spill] sm:$0xff] }
 0x765   : > { %9933 = vmatprep.subr.bf16.mxu0 %v24041_v43  ;;  %v24048_v43 = vld [vmem:[#allocation171_spill] sm:$0xff]  ;;  %v24060_v39 = vld [vmem:[#allocation74_spill] sm:$0xff] }
 0x767   : > { %9975 = vmatpush1.bf16.msra.mxu1 %v18490_v10  ;;  %v24058_v10 = vld [vmem:[#allocation76_spill] sm:$0xff] }
 0x768   : > { %9934 = vmatpush1.bf16.msra.mxu0 %v24042_v36  ;;  %9976 = vmatprep.subr.bf16.mxu1 %v24043_v7  ;;  %v24049_v36 = vld [vmem:[#allocation49_spill] sm:$0xff]  ;;  %v24057_v7 = vld [vmem:[#allocation56_spill] sm:$0xff] }
 0x769   : > { %9935 = vmatprep.subr.bf16.mxu0 %v24044_v20  ;;  %v24050_v20 = vld [vmem:[#allocation225_spill] sm:$0xff] }
 0x76b   : > { %9977 = vmatpush1.bf16.msra.mxu1 %v24045_v0  ;;  %v24056_v0 = vld [vmem:[#allocation75_spill] sm:$0xff] }
 0x76c   : > { %9936 = vmatpush1.bf16.msra.mxu0 %v24046_v61  ;;  %9978 = vmatprep.subr.bf16.mxu1 %v18574_v56  ;;  %v24051_v61 = vld [vmem:[#allocation53_spill] sm:$0xff] }
 0x76d   : > { %10005 = vmatprep.subr.bf16.mxu0 %v24047_v48  ;;  %v24054_v56 = vld [vmem:[#allocation77_spill] sm:$0xff] }
 0x76f   : > { %9979 = vmatpush1.bf16.msra.mxu1 %v18581_v8  ;;  %9952 = vmatmul.mubr.bf16.vlgmr.msra.gmra.mrb[32].mxu0 %v19947_v5  ;;  %v24053_v8 = vld [vmem:[#allocation57_spill] sm:$0xff] }
 0x770   : > { %10006 = vmatpush1.bf16.msra.mxu0 %v24048_v43  ;;  %10048 = vmatprep.subr.bf16.mxu1 %v17904_v14  ;;  %v24052_v14 = vld [vmem:[#allocation51_spill] sm:$0xff] }
 0x771   : > { %10007 = vmatprep.subr.bf16.mxu0 %v24049_v36  ;;  %13826 = vmatprep.mubr.msk.bf16.mxu0 %vm3840_vm0, %v19891_v30 }
 0x772   : > { %9995 = vmatmul.mubr.bf16.vlgmr.msra.gmra.mrb[32].mxu1 %v19947_v5 }
 0x773   : > { %10049 = vmatpush1.bf16.msra.mxu1 %v17902_v24  ;;  %13827 = vmatprep.mubr.msk.bf16.mxu1 %vm3840_vm0, %v19891_v30  ;;  %v24055_v24 = vld [vmem:[#allocation55_spill] sm:$0xff] }
 0x774   : > { %10008 = vmatpush1.bf16.msra.mxu0 %v24050_v20  ;;  %10050 = vmatprep.subr.bf16.mxu1 %v18637_v62  ;;  %v24059_v62 = vld [vmem:[#allocation59_spill] sm:$0xff] }
 0x775   : > { %10009 = vmatprep.subr.bf16.mxu0 %v24051_v61 }
 0x777   : > { %10051 = vmatpush1.bf16.msra.mxu1 %v18647_v19  ;;  %v24061_v19 = vld [vmem:[#allocation60_spill] sm:$0xff] }
 0x778   : > { %10010 = vmatpush1.bf16.msra.mxu0 %v24052_v14  ;;  %10052 = vmatprep.subr.bf16.mxu1 %v18657_v11  ;;  %v24063_v11 = vld [vmem:[#allocation58_spill] sm:$0xff] }
 0x779   : > { %10011 = vmatprep.subr.bf16.mxu0 %v24053_v8 }
 0x77b   : > { %10053 = vmatpush1.bf16.msra.mxu1 %v24054_v56  ;;  %v24065_v56 = vld [vmem:[#allocation65_spill] sm:$0xff] }
 0x77c   : > { %10012 = vmatpush1.bf16.msra.mxu0 %v24055_v24  ;;  %10054 = vmatprep.subr.bf16.mxu1 %v24056_v0  ;;  %v24066_v24 = vld [vmem:[#allocation78_spill] sm:$0xff] }
 0x77d   : > { %10013 = vmatprep.subr.bf16.mxu0 %v24057_v7  ;;  %v24067_v0 = vld [vmem:[#allocation62_spill] sm:$0xff] }
 0x77f   : > { %10055 = vmatpush1.bf16.msra.mxu1 %v24058_v10  ;;  %v24068_v10 = vld [vmem:[#allocation67_spill] sm:$0xff] }
 0x780   : > { %10014 = vmatpush1.bf16.msra.mxu0 %v24059_v62  ;;  %10056 = vmatprep.subr.bf16.mxu1 %v24060_v39  ;;  %v24069_v39 = vld [vmem:[#allocation68_spill] sm:$0xff] }
 0x781   : > { %10015 = vmatprep.subr.bf16.mxu0 %v24061_v19 }
 0x783   : > { %10057 = vmatpush1.bf16.msra.mxu1 %v24062_v63  ;;  %v24070_v63 = vld [vmem:[#allocation66_spill] sm:$0xff] }
 0x784   : > { %10016 = vmatpush1.bf16.msra.mxu0 %v24063_v11  ;;  %10058 = vmatprep.subr.bf16.mxu1 %v24064_v17  ;;  %v24071_v17 = vld [vmem:[#allocation73_spill] sm:$0xff] }
 0x785   : > { %10017 = vmatprep.subr.bf16.mxu0 %v24065_v56  ;;  %v24072_v56 = vld [vmem:[#allocation90_spill] sm:$0xff] }
 0x787   : > { %10059 = vmatpush1.bf16.msra.mxu1 %v24066_v24  ;;  %v24073_v24 = vld [vmem:[#allocation192_spill] sm:$0xff] }
 0x788   : > { %10018 = vmatpush1.bf16.msra.mxu0 %v24067_v0  ;;  %10060 = vmatprep.subr.bf16.mxu1 %v18758_v2  ;;  %v24074_v0 = vld [vmem:[#allocation97_spill] sm:$0xff]  ;;  %v24075_v2 = vld [vmem:[#allocation187_spill] sm:$0xff] }
 0x789   : > { %10019 = vmatprep.subr.bf16.mxu0 %v24068_v10  ;;  %v24089_v10 = vld [vmem:[#allocation83_spill] sm:$0xff] }
 0x78b   : > { %10061 = vmatpush1.bf16.msra.mxu1 %v18765_v54  ;;  %v24076_v54 = vld [vmem:[#allocation204_spill] sm:$0xff] }
 0x78c   : > { %10020 = vmatpush1.bf16.msra.mxu0 %v24069_v39  ;;  %10062 = vmatprep.subr.bf16.mxu1 %v18800_v53  ;;  %v24077_v39 = vld [vmem:[#allocation227_spill] sm:$0xff]  ;;  %v24081_v53 = vld [vmem:[#allocation228_spill] sm:$0xff] }
 0x78d   : > { %10021 = vmatprep.subr.bf16.mxu0 %v24070_v63  ;;  %v24088_v63 = vld [vmem:[#allocation104_spill] sm:$0xff] }
 0x78f   : > { %10063 = vmatpush1.bf16.msra.mxu1 %v18807_v3  ;;  %v24078_v3 = vld [vmem:[#allocation195_spill] sm:$0xff] }
 0x790   : > { %10022 = vmatpush1.bf16.msra.mxu0 %v24071_v17  ;;  %10064 = vmatprep.subr.bf16.mxu1 %v24072_v56  ;;  %v24079_v56 = vld [vmem:[#allocation80_spill] sm:$0xff]  ;;  %v24086_v17 = vld [vmem:[#allocation103_spill] sm:$0xff] }
 0x791   : > { %10091 = vmatprep.subr.bf16.mxu0 %v24073_v24  ;;  %v24085_v24 = vld [vmem:[#allocation82_spill] sm:$0xff] }
 0x793   : > { %10065 = vmatpush1.bf16.msra.mxu1 %v24074_v0  ;;  %10038 = vmatmul.mubr.bf16.vlgmr.msra.gmra.mrb[36].mxu0 %v19947_v5  ;;  %v24080_v0 = vld [vmem:[#allocation100_spill] sm:$0xff] }
 0x794   : > { %10092 = vmatpush1.bf16.msra.mxu0 %v24075_v2  ;;  %10134 = vmatprep.subr.bf16.mxu1 %v24076_v54  ;;  %v24082_v2 = vld [vmem:[#allocation98_spill] sm:$0xff]  ;;  %v24083_v54 = vld [vmem:[#allocation85_spill] sm:$0xff] }
 0x795   : > { %10093 = vmatprep.subr.bf16.mxu0 %v24077_v39  ;;  %13828 = vmatprep.mubr.msk.bf16.mxu0 %vm3840_vm0, %v19891_v30  ;;  %v24084_v39 = vld [vmem:[#allocation105_spill] sm:$0xff] }
 0x796   : > { %10081 = vmatmul.mubr.bf16.vlgmr.msra.gmra.mrb[36].mxu1 %v19947_v5 }
 0x797   : > { %10135 = vmatpush1.bf16.msra.mxu1 %v24078_v3  ;;  %13829 = vmatprep.mubr.msk.bf16.mxu1 %vm3840_vm0, %v19891_v30  ;;  %v24087_v3 = vld [vmem:[#allocation84_spill] sm:$0xff] }
 0x798   : > { %10094 = vmatpush1.bf16.msra.mxu0 %v24079_v56  ;;  %10136 = vmatprep.subr.bf16.mxu1 %v24080_v0  ;;  %v24090_v56 = vld [vmem:[#allocation102_spill] sm:$0xff]  ;;  %v24091_v0 = vld [vmem:[#allocation88_spill] sm:$0xff] }
 0x799   : > { %10095 = vmatprep.subr.bf16.mxu0 %v24081_v53  ;;  %v24092_v53 = vld [vmem:[#allocation109_spill] sm:$0xff] }
 0x79b   : > { %10137 = vmatpush1.bf16.msra.mxu1 %v24082_v2  ;;  %v24093_v2 = vld [vmem:[#allocation86_spill] sm:$0xff] }
 0x79c   : > { %10096 = vmatpush1.bf16.msra.mxu0 %v24083_v54  ;;  %10138 = vmatprep.subr.bf16.mxu1 %v24084_v39  ;;  %v24094_v54 = vld [vmem:[#allocation107_spill] sm:$0xff]  ;;  %v24095_v39 = vld [vmem:[#allocation93_spill] sm:$0xff] }
 0x79d   : > { %10097 = vmatprep.subr.bf16.mxu0 %v24085_v24  ;;  %v24096_v24 = vld [vmem:[#allocation108_spill] sm:$0xff] }
 0x79f   : > { %10139 = vmatpush1.bf16.msra.mxu1 %v24086_v17  ;;  %v24097_v17 = vld [vmem:[#allocation92_spill] sm:$0xff] }
 0x7a0   : > { %10098 = vmatpush1.bf16.msra.mxu0 %v24087_v3  ;;  %10140 = vmatprep.subr.bf16.mxu1 %v24088_v63  ;;  %v24098_v3 = vld [vmem:[#allocation106_spill] sm:$0xff]  ;;  %v24099_v63 = vld [vmem:[#allocation95_spill] sm:$0xff] }
 0x7a1   : > { %10099 = vmatprep.subr.bf16.mxu0 %v24089_v10 }
 0x7a3   : > { %10141 = vmatpush1.bf16.msra.mxu1 %v24090_v56  ;;  %v24100_v56 = vld [vmem:[#allocation96_spill] sm:$0xff] }
 0x7a4   : > { %10100 = vmatpush1.bf16.msra.mxu0 %v24091_v0  ;;  %10142 = vmatprep.subr.bf16.mxu1 %v24092_v53  ;;  %v24101_v53 = vld [vmem:[#allocation94_spill] sm:$0xff] }
 0x7a5   : > { %10101 = vmatprep.subr.bf16.mxu0 %v24093_v2 }
 0x7a7   : > { %10143 = vmatpush1.bf16.msra.mxu1 %v24094_v54  ;;  %v24102_v54 = vld [vmem:[#allocation101_spill] sm:$0xff] }
 0x7a8   : > { %10102 = vmatpush1.bf16.msra.mxu0 %v24095_v39  ;;  %10144 = vmatprep.subr.bf16.mxu1 %v24096_v24  ;;  %v24103_v24 = vld [vmem:[#allocation99_spill] sm:$0xff] }
 0x7a9   : > { %10103 = vmatprep.subr.bf16.mxu0 %v24097_v17  ;;  %v24104_v17 = vld [vmem:[#allocation118_spill] sm:$0xff] }
 0x7ab   : > { %10145 = vmatpush1.bf16.msra.mxu1 %v24098_v3  ;;  %v24105_v3 = vld [vmem:[#allocation207_spill] sm:$0xff] }
 0x7ac   : > { %10104 = vmatpush1.bf16.msra.mxu0 %v24099_v63  ;;  %10146 = vmatprep.subr.bf16.mxu1 %v19020_v13  ;;  %v24106_v63 = vld [vmem:[#allocation125_spill] sm:$0xff]  ;;  %v24107_v13 = vld [vmem:[#allocation203_spill] sm:$0xff] }
 0x7ad   : > { %10105 = vmatprep.subr.bf16.mxu0 %v24100_v56  ;;  %v24121_v56 = vld [vmem:[#allocation117_spill] sm:$0xff] }
 0x7af   : > { %10147 = vmatpush1.bf16.msra.mxu1 %v19027_v4  ;;  %v24108_v4 = vld [vmem:[#allocation17_spill] sm:$0xff] }
 0x7b0   : > { %10106 = vmatpush1.bf16.msra.mxu0 %v24101_v53  ;;  %10148 = vmatprep.subr.bf16.mxu1 %v19062_v44  ;;  %v24109_v53 = vld [vmem:[#allocation111_spill] sm:$0xff]  ;;  %v24113_v44 = vld [vmem:[#allocation110_spill] sm:$0xff] }
 0x7b1   : > { %10107 = vmatprep.subr.bf16.mxu0 %v24102_v54  ;;  %v24120_v54 = vld [vmem:[#allocation130_spill] sm:$0xff] }
 0x7b3   : > { %10149 = vmatpush1.bf16.msra.mxu1 %v19069_v25  ;;  %v24110_v25 = vld [vmem:[#allocation210_spill] sm:$0xff] }
 0x7b4   : > { %10108 = vmatpush1.bf16.msra.mxu0 %v24103_v24  ;;  %10150 = vmatprep.subr.bf16.mxu1 %v24104_v17  ;;  %v24111_v17 = vld [vmem:[#allocation230_spill] sm:$0xff]  ;;  %v24118_v24 = vld [vmem:[#allocation132_spill] sm:$0xff] }
 0x7b5   : > { %10177 = vmatprep.subr.bf16.mxu0 %v24105_v3  ;;  %v24117_v3 = vld [vmem:[#allocation113_spill] sm:$0xff] }
 0x7b7   : > { %10151 = vmatpush1.bf16.msra.mxu1 %v24106_v63  ;;  %10124 = vmatmul.mubr.bf16.vlgmr.msra.gmra.mrb[40].mxu0 %v19947_v5  ;;  %v24112_v63 = vld [vmem:[#allocation126_spill] sm:$0xff] }
 0x7b8   : > { %10178 = vmatpush1.bf16.msra.mxu0 %v24107_v13  ;;  %10220 = vmatprep.subr.bf16.mxu1 %v24108_v4  ;;  %v24114_v13 = vld [vmem:[#allocation133_spill] sm:$0xff]  ;;  %v24115_v4 = vld [vmem:[#allocation91_spill] sm:$0xff] }
 0x7b9   : > { %10179 = vmatprep.subr.bf16.mxu0 %v24109_v53  ;;  %13830 = vmatprep.mubr.msk.bf16.mxu0 %vm3840_vm0, %v19891_v30  ;;  %v24116_v53 = vld [vmem:[#allocation131_spill] sm:$0xff] }
 0x7ba   : > { %10167 = vmatmul.mubr.bf16.vlgmr.msra.gmra.mrb[40].mxu1 %v19947_v5 }
 0x7bb   : > { %10221 = vmatpush1.bf16.msra.mxu1 %v24110_v25  ;;  %13831 = vmatprep.mubr.msk.bf16.mxu1 %vm3840_vm0, %v19891_v30  ;;  %v24119_v25 = vld [vmem:[#allocation232_spill] sm:$0xff] }
 0x7bc   : > { %10180 = vmatpush1.bf16.msra.mxu0 %v24111_v17  ;;  %10222 = vmatprep.subr.bf16.mxu1 %v24112_v63  ;;  %v24122_v17 = vld [vmem:[#allocation137_spill] sm:$0xff]  ;;  %v24123_v63 = vld [vmem:[#allocation115_spill] sm:$0xff] }
 0x7bd   : > { %10181 = vmatprep.subr.bf16.mxu0 %v24113_v44  ;;  %v24124_v44 = vld [vmem:[#allocation135_spill] sm:$0xff] }
 0x7bf   : > { %10223 = vmatpush1.bf16.msra.mxu1 %v24114_v13  ;;  %v24125_v13 = vld [vmem:[#allocation121_spill] sm:$0xff] }
 0x7c0   : > { %10182 = vmatpush1.bf16.msra.mxu0 %v24115_v4  ;;  %10224 = vmatprep.subr.bf16.mxu1 %v24116_v53  ;;  %v24126_v4 = vld [vmem:[#allocation136_spill] sm:$0xff]  ;;  %v24127_v53 = vld [vmem:[#allocation119_spill] sm:$0xff] }
 0x7c1   : > { %10183 = vmatprep.subr.bf16.mxu0 %v24117_v3  ;;  %v24128_v3 = vld [vmem:[#allocation134_spill] sm:$0xff] }
 0x7c3   : > { %10225 = vmatpush1.bf16.msra.mxu1 %v24118_v24  ;;  %v24129_v24 = vld [vmem:[#allocation120_spill] sm:$0xff] }
 0x7c4   : > { %10184 = vmatpush1.bf16.msra.mxu0 %v24119_v25  ;;  %10226 = vmatprep.subr.bf16.mxu1 %v24120_v54  ;;  %v24130_v25 = vld [vmem:[#allocation141_spill] sm:$0xff]  ;;  %v24131_v54 = vld [vmem:[#allocation124_spill] sm:$0xff] }
 0x7c5   : > { %10185 = vmatprep.subr.bf16.mxu0 %v24121_v56 }
 0x7c7   : > { %10227 = vmatpush1.bf16.msra.mxu1 %v24122_v17  ;;  %v24132_v17 = vld [vmem:[#allocation122_spill] sm:$0xff] }
 0x7c8   : > { %10186 = vmatpush1.bf16.msra.mxu0 %v24123_v63  ;;  %10228 = vmatprep.subr.bf16.mxu1 %v24124_v44  ;;  %v24133_v44 = vld [vmem:[#allocation129_spill] sm:$0xff] }
 0x7c9   : > { %10187 = vmatprep.subr.bf16.mxu0 %v24125_v13 }
 0x7cb   : > { %10229 = vmatpush1.bf16.msra.mxu1 %v24126_v4  ;;  %v24134_v4 = vld [vmem:[#allocation127_spill] sm:$0xff] }
 0x7cc   : > { %10188 = vmatpush1.bf16.msra.mxu0 %v24127_v53  ;;  %10230 = vmatprep.subr.bf16.mxu1 %v24128_v3  ;;  %v24135_v3 = vld [vmem:[#allocation128_spill] sm:$0xff] }
 0x7cd   : > { %10189 = vmatprep.subr.bf16.mxu0 %v24129_v24 }
 0x7cf   : > { %10231 = vmatpush1.bf16.msra.mxu1 %v24130_v25  ;;  %v24136_v25 = vld [vmem:[#allocation21_spill] sm:$0xff] }
 0x7d0   : > { %10190 = vmatpush1.bf16.msra.mxu0 %v24131_v54  ;;  %10232 = vmatprep.subr.bf16.mxu1 %v19288_v18  ;;  %v24137_v18 = vld [vmem:[#allocation14_spill] sm:$0xff] }
 0x7d1   : > { %10191 = vmatprep.subr.bf16.mxu0 %v24132_v17 }
 0x7d3   : > { %10233 = vmatpush1.bf16.msra.mxu1 %v19295_v52  ;;  %v24138_v52 = vld [vmem:[#allocation140_spill] sm:$0xff] }
 0x7d4   : > { %10192 = vmatpush1.bf16.msra.mxu0 %v24133_v44  ;;  %10234 = vmatprep.subr.bf16.mxu1 %v19330_v59  ;;  %v24142_v59 = vld [vmem:[#allocation165_spill] sm:$0xff] }
 0x7d5   : > { %10193 = vmatprep.subr.bf16.mxu0 %v24134_v4  ;;  %v24149_v4 = vld [vmem:[#allocation149_spill] sm:$0xff] }
 0x7d7   : > { %10235 = vmatpush1.bf16.msra.mxu1 %v19337_v29  ;;  %v24141_v29 = vld [vmem:[#allocation142_spill] sm:$0xff] }
 0x7d8   : > { %10194 = vmatpush1.bf16.msra.mxu0 %v24135_v3  ;;  %10236 = vmatprep.subr.bf16.mxu1 %v19372_v6  ;;  %v24139_v6 = vld [vmem:[#allocation233_spill] sm:$0xff]  ;;  %v24148_v3 = vld [vmem:[#allocation162_spill] sm:$0xff] }
 0x7d9   : > { %10263 = vmatprep.subr.bf16.mxu0 %v24136_v25  ;;  %v24146_v25 = vld [vmem:[#allocation164_spill] sm:$0xff] }
 0x7db   : > { %10237 = vmatpush1.bf16.msra.mxu1 %v19379_v21  ;;  %10210 = vmatmul.mubr.bf16.vlgmr.msra.gmra.mrb[44].mxu0 %v19947_v5  ;;  %v24140_v21 = vld [vmem:[#allocation158_spill] sm:$0xff] }
 0x7dc   : > { %10264 = vmatpush1.bf16.msra.mxu0 %v24137_v18  ;;  %10306 = vmatprep.subr.bf16.mxu1 %v18104_v38  ;;  %v24143_v38 = vld [vmem:[#allocation123_spill] sm:$0xff]  ;;  %v24145_v18 = vld [vmem:[#allocation145_spill] sm:$0xff] }
 0x7dd   : > { %10265 = vmatprep.subr.bf16.mxu0 %v24138_v52  ;;  %13832 = vmatprep.mubr.msk.bf16.mxu0 %vm3840_vm0, %v19891_v30  ;;  %v24144_v52 = vld [vmem:[#allocation163_spill] sm:$0xff] }
 0x7de   : > { %10253 = vmatmul.mubr.bf16.vlgmr.msra.gmra.mrb[44].mxu1 %v19947_v5 }
 0x7df   : > { %10307 = vmatpush1.bf16.msra.mxu1 %v18100_v15  ;;  %13833 = vmatprep.mubr.msk.bf16.mxu1 %vm3840_vm0, %v19891_v30  ;;  %v24147_v15 = vld [vmem:[#allocation139_spill] sm:$0xff] }
 0x7e0   : > { %10266 = vmatpush1.bf16.msra.mxu0 %v24139_v6  ;;  %10308 = vmatprep.subr.bf16.mxu1 %v24140_v21  ;;  %v24150_v6 = vld [vmem:[#allocation169_spill] sm:$0xff]  ;;  %v24151_v21 = vld [vmem:[#allocation147_spill] sm:$0xff] }
 0x7e1   : > { %10267 = vmatprep.subr.bf16.mxu0 %v24141_v29  ;;  %v24152_v29 = vld [vmem:[#allocation167_spill] sm:$0xff] }
 0x7e3   : > { %10309 = vmatpush1.bf16.msra.mxu1 %v24142_v59  ;;  %v24153_v59 = vld [vmem:[#allocation153_spill] sm:$0xff] }
 0x7e4   : > { %10268 = vmatpush1.bf16.msra.mxu0 %v24143_v38  ;;  %10310 = vmatprep.subr.bf16.mxu1 %v24144_v52  ;;  %v24154_v38 = vld [vmem:[#allocation168_spill] sm:$0xff]  ;;  %v24155_v52 = vld [vmem:[#allocation151_spill] sm:$0xff] }
 0x7e5   : > { %10269 = vmatprep.subr.bf16.mxu0 %v24145_v18  ;;  %v24156_v18 = vld [vmem:[#allocation166_spill] sm:$0xff] }
 0x7e7   : > { %10311 = vmatpush1.bf16.msra.mxu1 %v24146_v25  ;;  %v24157_v25 = vld [vmem:[#allocation152_spill] sm:$0xff] }
 0x7e8   : > { %10270 = vmatpush1.bf16.msra.mxu0 %v24147_v15  ;;  %10312 = vmatprep.subr.bf16.mxu1 %v24148_v3  ;;  %v24158_v15 = vld [vmem:[#allocation174_spill] sm:$0xff]  ;;  %v24159_v3 = vld [vmem:[#allocation156_spill] sm:$0xff] }
 0x7e9   : > { %10271 = vmatprep.subr.bf16.mxu0 %v24149_v4 }
 0x7eb   : > { %10313 = vmatpush1.bf16.msra.mxu1 %v24150_v6  ;;  %v24160_v6 = vld [vmem:[#allocation154_spill] sm:$0xff] }
 0x7ec   : > { %10272 = vmatpush1.bf16.msra.mxu0 %v24151_v21  ;;  %10314 = vmatprep.subr.bf16.mxu1 %v24152_v29  ;;  %v24161_v29 = vld [vmem:[#allocation161_spill] sm:$0xff] }
 0x7ed   : > { %10273 = vmatprep.subr.bf16.mxu0 %v24153_v59 }
 0x7ef   : > { %10315 = vmatpush1.bf16.msra.mxu1 %v24154_v38  ;;  %v24162_v38 = vld [vmem:[#allocation159_spill] sm:$0xff] }
 0x7f0   : > { %10274 = vmatpush1.bf16.msra.mxu0 %v24155_v52  ;;  %10316 = vmatprep.subr.bf16.mxu1 %v24156_v18  ;;  %v24163_v52 = vld [vmem:[#allocation185_spill] sm:$0xff]  ;;  %v24164_v18 = vld [vmem:[#allocation160_spill] sm:$0xff] }
 0x7f1   : > { %10275 = vmatprep.subr.bf16.mxu0 %v24157_v25  ;;  %v24165_v25 = vld [vmem:[#allocation193_spill] sm:$0xff] }
 0x7f3   : > { %10317 = vmatpush1.bf16.msra.mxu1 %v24158_v15  ;;  %v24166_v15 = vld [vmem:[#allocation25_spill] sm:$0xff] }
 0x7f4   : > { %10276 = vmatpush1.bf16.msra.mxu0 %v24159_v3  ;;  %10318 = vmatprep.subr.bf16.mxu1 %v19550_v45  ;;  %v24167_v3 = vld [vmem:[#allocation191_spill] sm:$0xff] }
 0x7f5   : > { %10277 = vmatprep.subr.bf16.mxu0 %v24160_v6  ;;  %v24168_v45 = vld [vmem:[#allocation19_spill] sm:$0xff] }
 0x7f7   : > { %10319 = vmatpush1.bf16.msra.mxu1 %v19557_v23  ;;  %v24169_v23 = vld [vmem:[#allocation27_spill] sm:$0xff] }
 0x7f8   : > { %10278 = vmatpush1.bf16.msra.mxu0 %v24161_v29  ;;  %10320 = vmatprep.subr.bf16.mxu1 %v19592_v46  ;;  %v24170_v29 = vld [vmem:[#allocation172_spill] sm:$0xff]  ;;  %v24174_v46 = vld [vmem:[#allocation178_spill] sm:$0xff] }
 0x7f9   : > { %10279 = vmatprep.subr.bf16.mxu0 %v24162_v38  ;;  %v24181_v38 = vld [vmem:[#allocation186_spill] sm:$0xff] }
 0x7fb   : > { %10321 = vmatpush1.bf16.msra.mxu1 %v24163_v52  ;;  %v24171_v52 = vld [vmem:[#allocation22_spill] sm:$0xff] }
 0x7fc   : > { %10280 = vmatpush1.bf16.msra.mxu0 %v24164_v18  ;;  %10322 = vmatprep.subr.bf16.mxu1 %v24165_v25  ;;  %v24172_v25 = vld [vmem:[#allocation176_spill] sm:$0xff]  ;;  %v24180_v18 = vld [vmem:[#allocation209_spill] sm:$0xff] }
 0x7fd   : > { %10349 = vmatprep.subr.bf16.mxu0 %v24166_v15  ;;  %v24178_v15 = vld [vmem:[#allocation143_spill] sm:$0xff] }
 0x7ff   : > { %10323 = vmatpush1.bf16.msra.mxu1 %v24167_v3  ;;  %10296 = vmatmul.mubr.bf16.vlgmr.msra.gmra.mrb[48].mxu0 %v19947_v5  ;;  %v24173_v3 = vld [vmem:[#allocation201_spill] sm:$0xff] }
 0x800   : > { %10350 = vmatpush1.bf16.msra.mxu0 %v24168_v45  ;;  %10392 = vmatprep.subr.bf16.mxu1 %v24169_v23  ;;  %v24175_v45 = vld [vmem:[#allocation199_spill] sm:$0xff]  ;;  %v24176_v23 = vld [vmem:[#allocation180_spill] sm:$0xff] }
 0x801   : > { %10351 = vmatprep.subr.bf16.mxu0 %v24170_v29  ;;  %13834 = vmatprep.mubr.msk.bf16.mxu0 %vm3840_vm0, %v19891_v30  ;;  %v24177_v29 = vld [vmem:[#allocation181_spill] sm:$0xff] }
 0x802   : > { %10339 = vmatmul.mubr.bf16.vlgmr.msra.gmra.mrb[48].mxu1 %v19947_v5 }
 0x803   : > { %10393 = vmatpush1.bf16.msra.mxu1 %v24171_v52  ;;  %13835 = vmatprep.mubr.msk.bf16.mxu1 %vm3840_vm0, %v19891_v30  ;;  %v24179_v52 = vld [vmem:[#allocation179_spill] sm:$0xff] }
 0x804   : > { %10352 = vmatpush1.bf16.msra.mxu0 %v24172_v25  ;;  %10394 = vmatprep.subr.bf16.mxu1 %v24173_v3  ;;  %v24182_v3 = vld [vmem:[#allocation190_spill] sm:$0xff] }
 0x805   : > { %10353 = vmatprep.subr.bf16.mxu0 %v24174_v46 }
 0x807   : > { %10395 = vmatpush1.bf16.msra.mxu1 %v24175_v45  ;;  %v24183_v45 = vld [vmem:[#allocation188_spill] sm:$0xff] }
 0x808   : > { %10354 = vmatpush1.bf16.msra.mxu0 %v24176_v23  ;;  %10396 = vmatprep.subr.bf16.mxu1 %v19737_v33  ;;  %v7091_v23 = vpop.permute.xlu1 %7090  ;;  %v24184_v33 = vld [vmem:[#allocation189_spill] sm:$0xff] }
 0x809   : > { %10355 = vmatprep.subr.bf16.mxu0 %v24177_v29 }
 0x80b   : > { %10397 = vmatpush1.bf16.msra.mxu1 %v24178_v15  ;;  %v24185_v15 = vld [vmem:[#allocation194_spill] sm:$0xff] }
 0x80c   : > { %10356 = vmatpush1.bf16.msra.mxu0 %v24179_v52  ;;  %10398 = vmatprep.subr.bf16.mxu1 %v24180_v18  ;;  %v24186_v18 = vld [vmem:[#allocation198_spill] sm:$0xff] }
 0x80d   : > { %10357 = vmatprep.subr.bf16.mxu0 %v24181_v38 }
 0x80f   : > { %10399 = vmatpush1.bf16.msra.mxu1 %v19765_v41  ;;  %v7312_v41 = vpop.permute.xlu1 %7311 }
 0x810   : > { %10358 = vmatpush1.bf16.msra.mxu0 %v24182_v3  ;;  %10400 = vmatprep.subr.bf16.mxu1 %v19774_v42  ;;  %v20153_v3 = vpop.permute.xlu0 %7092  ;;  %v24188_v42 = vld [vmem:[#allocation196_spill] sm:$0xff] }
 0x811   : > { %10359 = vmatprep.subr.bf16.mxu0 %v24183_v45  ;;  %24187 = vst [vmem:[#allocation23_spill] sm:$0xff] %v20153_v3 }
 0x813   : > { %10401 = vmatpush1.bf16.msra.mxu1 %v19782_v26  ;;  %v24189_v26 = vld [vmem:[#allocation197_spill] sm:$0xff] }
 0x814   : > { %10360 = vmatpush1.bf16.msra.mxu0 %v24184_v33  ;;  %10402 = vmatprep.subr.bf16.mxu1 %v19795_v28  ;;  %v24190_v28 = vld [vmem:[#allocation202_spill] sm:$0xff]  ;;  %v20160_v33 = vpop.permute.xlu0 %7313 }
 0x815   : > { %10361 = vmatprep.subr.bf16.mxu0 %v24185_v15  ;;  %v7533_v15 = vpop.permute.xlu1 %7532  ;;  %24191 = vst [vmem:[#allocation24_spill] sm:$0xff] %v20160_v33 }
 0x817   : > { %10403 = vmatpush1.bf16.msra.mxu1 %v19811_v47  ;;  %v24192_v47 = vld [vmem:[#allocation200_spill] sm:$0xff] }
 0x818   : > { %10362 = vmatpush1.bf16.msra.mxu0 %v24186_v18  ;;  %10404 = vmatprep.subr.bf16.mxu1 %v19819_v50  ;;  %v24193_v50 = vld [vmem:[#allocation42_spill] sm:$0xff] }
 0x819   : > { %10363 = vmatprep.subr.bf16.mxu0 %v24188_v42 }
 0x81b   : > { %10405 = vmatpush1.bf16.msra.mxu1 %v19828_v40  ;;  %v24194_v40 = vld [vmem:[#allocation44_spill] sm:$0xff] }
 0x81c   : > { %10364 = vmatpush1.bf16.msra.mxu0 %v24189_v26  ;;  %10406 = vmatprep.subr.bf16.mxu1 %v19841_v58  ;;  %v24195_v58 = vld [vmem:[#allocation206_spill] sm:$0xff]  ;;  %v7754_v26 = vpop.permute.xlu1 %7753 }
 0x81d   : > { %10365 = vmatprep.subr.bf16.mxu0 %v24190_v28  ;;  %v20171_v28 = vsel %vm840_vm1, %v24195_v58, %v7091_v23  ;;  %v24200_v58 = vld [vmem:[#allocation208_spill] sm:$0xff] }
 0x81e   : > { %24196 = vst [vmem:[#allocation34_spill] sm:$0xff] %v20171_v28 }
 0x81f   : > { %10407 = vmatpush1.bf16.msra.mxu1 %v19857_v55  ;;  %v20174_v55 = vpop.permute.xlu0 %7534 }
 0x820   : > { %10366 = vmatpush1.bf16.msra.mxu0 %v24192_v47  ;;  %10408 = vmatprep.subr.bf16.mxu1 %v19873_v9  ;;  %24197 = vst [vmem:[#allocation29_spill] sm:$0xff] %v20174_v55  ;;  %v24199_v9 = vld [vmem:[#allocation205_spill] sm:$0xff] }
 0x821   : > { %10435 = vmatprep.subr.bf16.mxu0 %v24193_v50  ;;  %v7975_v50 = vpop.permute.xlu1 %7974 }
 0x823   : > { %10409 = vmatpush1.bf16.msra.mxu1 %v19870_v35  ;;  %10382 = vmatmul.mubr.bf16.vlgmr.msra.gmra.mrb[52].mxu0 %v19947_v5  ;;  %v24198_v35 = vld [vmem:[#allocation46_spill] sm:$0xff]  ;;  %v20194_v47 = vpop.permute.xlu0 %7755 }
 0x824   : > { %10436 = vmatpush1.bf16.msra.mxu0 %v24194_v40  ;;  %10478 = vmatprep.subr.bf16.mxu1 %v23998_v1  ;;  %v20186_v40 = vsel %vm1210_vm2, %v24200_v58, %v7312_v41  ;;  %24202 = vst [vmem:[#allocation28_spill] sm:$0xff] %v20194_v47  ;;  %v20206_v58 = vsel %vm1210_vm2, %v7312_v41, %v20160_v33  ;;  %v24210_v41 = vld [vmem:[#allocation220_spill] sm:$0xff] }
 0x825   : > { %10437 = vmatprep.subr.bf16.mxu0 %v20171_v28  ;;  %13836 = vmatprep.mubr.msk.bf16.mxu0 %vm3840_vm0, %v19891_v30  ;;  %v20192_v28 = vsel %vm840_vm1, %v7091_v23, %v20153_v3  ;;  %24206 = vst [vmem:[#allocation26_spill] sm:$0xff] %v20206_v58  ;;  %v24207_v23 = vld [vmem:[#allocation216_spill] sm:$0xff] }
 0x826   : > { %10425 = vmatmul.mubr.bf16.vlgmr.msra.gmra.mrb[52].mxu1 %v19947_v5  ;;  %24201 = vst [vmem:[#allocation41_spill] sm:$0xff] %v20192_v28 }
 0x827   : > { %10479 = vmatpush1.bf16.msra.mxu1 %v24198_v35  ;;  %13837 = vmatprep.mubr.msk.bf16.mxu1 %vm3840_vm0, %v19891_v30  ;;  %v24203_v30 = vld [vmem:[#allocation211_spill] sm:$0xff]  ;;  %v24204_v35 = vld [vmem:[#allocation212_spill] sm:$0xff]  ;;  %v20215_v3 = vpop.permute.xlu0 %7976 }
 0x828   : > { %10438 = vmatpush1.bf16.msra.mxu0 %v24199_v9  ;;  %10480 = vmatprep.subr.bf16.mxu1 %v23998_v1  ;;  %v20200_v9 = vsel %vm1580_vm3, %v24204_v35, %v7533_v15  ;;  %v8196_v35 = vpop.permute.xlu1 %8195 }
 0x829   : > { %10439 = vmatprep.subr.bf16.mxu0 %v20186_v40  ;;  %24205 = vst [vmem:[#allocation45_spill] sm:$0xff] %v20200_v9 }
 0x82b   : > { %10481 = vmatpush1.bf16.msra.mxu1 %v20192_v28  ;;  %v20212_v28 = vsel %vm1950_vm4, %v19791_v60, %v7754_v26  ;;  %v20232_v60 = vsel %vm1950_vm4, %v7754_v26, %v20194_v47  ;;  %v24217_v26 = vld [vmem:[#allocation235_spill] sm:$0xff] }
 0x82c   : > { %10440 = vmatpush1.bf16.msra.mxu0 %v24203_v30  ;;  %10482 = vmatprep.subr.bf16.mxu1 %v23998_v1  ;;  %24208 = vst [vmem:[#allocation43_spill] sm:$0xff] %v20212_v28  ;;  %24212 = vst [vmem:[#allocation31_spill] sm:$0xff] %v20232_v60 }
 0x82d   : > { %10441 = vmatprep.subr.bf16.mxu0 %v20200_v9  ;;  %v20220_v9 = vsel %vm1580_vm3, %v7533_v15, %v20174_v55  ;;  %v24213_v15 = vld [vmem:[#allocation223_spill] sm:$0xff] }
 0x82e   : > { %24209 = vst [vmem:[#allocation33_spill] sm:$0xff] %v20220_v9 }
 0x82f   : > { %10483 = vmatpush1.bf16.msra.mxu1 %v20206_v58  ;;  %v24211_v58 = vld [vmem:[#allocation217_spill] sm:$0xff] }
 0x830   : > { %10442 = vmatpush1.bf16.msra.mxu0 %v24207_v23  ;;  %10484 = vmatprep.subr.bf16.mxu1 %v23998_v1  ;;  %v20226_v33 = vsel %vm2320_vm5, %v24211_v58, %v7975_v50  ;;  %v20234_v23 = vpop.permute.xlu0 %8197  ;;  %v20246_v58 = vsel %vm2320_vm5, %v7975_v50, %v20215_v3 }
 0x831   : > { %10443 = vmatprep.subr.bf16.mxu0 %v20212_v28  ;;  %v8417_v28 = vpop.permute.xlu1 %8416  ;;  %24216 = vst [vmem:[#allocation30_spill] sm:$0xff] %v20246_v58 }
 0x833   : > { %10485 = vmatpush1.bf16.msra.mxu1 %v20220_v9  ;;  %v24214_v9 = vld [vmem:[#allocation173_spill] sm:$0xff] }
 0x834   : > { %10444 = vmatpush1.bf16.msra.mxu0 %v24210_v41  ;;  %10486 = vmatprep.subr.bf16.mxu1 %v23998_v1  ;;  %v20240_v55 = vsel %vm2690_vm6, %v24214_v9, %v8196_v35  ;;  %v20255_v47 = vpop.permute.xlu0 %8418 }
 0x835   : > { %10445 = vmatprep.subr.bf16.mxu0 %v20226_v33  ;;  %24215 = vst [vmem:[#allocation32_spill] sm:$0xff] %v20240_v55  ;;  %v8638_v9 = vpop.permute.xlu1 %8637 }
 0x836   : > { %v20266_v50 = vsel %vm3430_vm8, %v19881_v31, %v8638_v9  ;;  %v20280_v31 = vld [vmem:[#allocation9 + $0x24] ss:$8 sps:$4 sm:$0xff]  }
 0x837   : > { %10487 = vmatpush1.bf16.msra.mxu1 %v20232_v60  ;;  %v20252_v60 = vsel %vm3060_vm7, %v19844_v22, %v8417_v28  ;;  %v20272_v22 = vsel %vm3060_vm7, %v8417_v28, %v20255_v47  ;;  %v24222_v28 = vld [vmem:[#allocation48_spill] sm:$0xff] }
 0x838   : > { %10446 = vmatpush1.bf16.msra.mxu0 %v24213_v15  ;;  %10488 = vmatprep.subr.bf16.mxu1 %v23998_v1 }
 0x839   : > { %10447 = vmatprep.subr.bf16.mxu0 %v20240_v55  ;;  %v20260_v55 = vsel %vm2690_vm6, %v8196_v35, %v20234_v23 }
 0x83b   : > { %10489 = vmatpush1.bf16.msra.mxu1 %v20246_v58  ;;  %v20274_v58 = vpop.permute.xlu0 %8639 }
 0x83c   : > { %10448 = vmatpush1.bf16.msra.mxu0 %v24217_v26  ;;  %10490 = vmatprep.subr.bf16.mxu1 %v23998_v1  ;;  %v20284_v35 = vsel %vm3430_vm8, %v8638_v9, %v20274_v58  ;;  %v24237_v9 = vld [vmem:[#allocation175_spill] sm:$0xff] }
 0x83d   : > { %10449 = vmatprep.subr.bf16.mxu0 %v20252_v60 }
 0x83f   : > { %10491 = vmatpush1.bf16.msra.mxu1 %v20260_v55 }
 0x840   : > { %10450 = vmatpush1.bf16.msra.mxu0 %v19866_v34  ;;  %10492 = vmatprep.subr.bf16.mxu1 %v23998_v1 }
 0x841   : > { %10451 = vmatprep.subr.bf16.mxu0 %v20266_v50 }
 0x843   : > { %10493 = vmatpush1.bf16.msra.mxu1 %v20272_v22 }
 0x844   : > { %10452 = vmatpush1.bf16.msra.mxu0 %v19888_v51  ;;  %10494 = vmatprep.subr.bf16.mxu1 %v23998_v1 }
 0x845   : > { %10831 = vmatprep.subr.bf16.mxu0 %v17831_v12  ;;  %v24218_v12 = vld [vmem:[#allocation37_spill] sm:$0xff] }
 0x847   : > { %10495 = vmatpush1.bf16.msra.mxu1 %v20284_v35  ;;  %10468 = vmatmul.mubr.bf16.vlgmr.msra.gmra.mrb[56].mxu0 %v19947_v5 }
 0x848   : > { %10832 = vmatpush1.bf16.msra.mxu0 %v17824_v16  ;;  %10874 = vmatprep.subr.bf16.mxu1 %v24047_v48  ;;  %v24219_v16 = vld [vmem:[#allocation47_spill] sm:$0xff] }
 0x849   : > { %10833 = vmatprep.subr.bf16.mxu0 %v18307_v27  ;;  %13840 = vmatprep.mubr.msk.bf16.mxu0 %vm3840_vm0, %v20280_v31  ;;  %v24220_v27 = vld [vmem:[#allocation55_spill] sm:$0xff] }
 0x84a   : > { %10511 = vmatmul.mubr.bf16.vlgmr.msra.gmra.mrb[56].mxu1 %v19947_v5  ;;  %v24221_v5 = vld [vmem:[#allocation16_spill] sm:$0xff]  ;;  %v24230_v48 = vld [vmem:[#allocation67_spill] sm:$0xff] }
 0x84b   : > { %10875 = vmatpush1.bf16.msra.mxu1 %v24048_v43  ;;  %13841 = vmatprep.mubr.msk.bf16.mxu1 %vm3840_vm0, %v20280_v31  ;;  %v24232_v43 = vld [vmem:[#allocation68_spill] sm:$0xff] }
 0x84c   : > { %10834 = vmatpush1.bf16.msra.mxu0 %v24218_v12  ;;  %10876 = vmatprep.subr.bf16.mxu1 %v24049_v36  ;;  %v24233_v36 = vld [vmem:[#allocation64_spill] sm:$0xff] }
 0x84d   : > { %10835 = vmatprep.subr.bf16.mxu0 %v24029_v49  ;;  %v24223_v49 = vld [vmem:[#allocation224_spill] sm:$0xff] }
 0x84e   : > { %v24238_v12 = vld [vmem:[#allocation192_spill] sm:$0xff] }
 0x84f   : > { %10877 = vmatpush1.bf16.msra.mxu1 %v24050_v20  ;;  %v24235_v20 = vld [vmem:[#allocation183_spill] sm:$0xff] }
 0x850   : > { %10836 = vmatpush1.bf16.msra.mxu0 %v24031_v57  ;;  %10878 = vmatprep.subr.bf16.mxu1 %v24051_v61  ;;  %v24226_v57 = vld [vmem:[#allocation65_spill] sm:$0xff] }
 0x851   : > { %10837 = vmatprep.subr.bf16.mxu0 %v24033_v32  ;;  %v24227_v32 = vld [vmem:[#allocation54_spill] sm:$0xff]  ;;  %v24236_v61 = vld [vmem:[#allocation73_spill] sm:$0xff] }
 0x853   : > { %10879 = vmatpush1.bf16.msra.mxu1 %v24052_v14  ;;  %v24224_v14 = vld [vmem:[#allocation50_spill] sm:$0xff] }
 0x854   : > { %10838 = vmatpush1.bf16.msra.mxu0 %v24035_v37  ;;  %10880 = vmatprep.subr.bf16.mxu1 %v24053_v8  ;;  %v24225_v8 = vld [vmem:[#allocation52_spill] sm:$0xff]  ;;  %v24228_v37 = vld [vmem:[#allocation62_spill] sm:$0xff] }
 0x855   : > { %10839 = vmatprep.subr.bf16.mxu0 %v24219_v16  ;;  %v24239_v16 = vld [vmem:[#allocation71_spill] sm:$0xff] }
 0x857   : > { %10881 = vmatpush1.bf16.msra.mxu1 %v24220_v27  ;;  %v24240_v27 = vld [vmem:[#allocation187_spill] sm:$0xff] }
 0x858   : > { %10840 = vmatpush1.bf16.msra.mxu0 %v24221_v5  ;;  %10882 = vmatprep.subr.bf16.mxu1 %v24057_v7  ;;  %v24229_v7 = vld [vmem:[#allocation61_spill] sm:$0xff]  ;;  %v24241_v5 = vld [vmem:[#allocation72_spill] sm:$0xff] }
 0x859   : > { %10841 = vmatprep.subr.bf16.mxu0 %v24222_v28  ;;  %v24242_v28 = vld [vmem:[#allocation227_spill] sm:$0xff] }
 0x85b   : > { %10883 = vmatpush1.bf16.msra.mxu1 %v24059_v62  ;;  %v24231_v62 = vld [vmem:[#allocation63_spill] sm:$0xff] }
 0x85c   : > { %10842 = vmatpush1.bf16.msra.mxu0 %v24223_v49  ;;  %10884 = vmatprep.subr.bf16.mxu1 %v24061_v19  ;;  %v20325_v19 = vld [vmem:[#allocation9 + $0x20] ss:$8 sps:$4 sm:$0xff]   ;;  %v24243_v49 = vld [vmem:[#allocation70_spill] sm:$0xff] }
 0x85d   : > { %10843 = vmatprep.subr.bf16.mxu0 %v24224_v14  ;;  %v24244_v14 = vld [vmem:[#allocation80_spill] sm:$0xff] }
 0x85f   : > { %10885 = vmatpush1.bf16.msra.mxu1 %v24063_v11  ;;  %v24234_v11 = vld [vmem:[#allocation66_spill] sm:$0xff] }
 0x860   : > { %10844 = vmatpush1.bf16.msra.mxu0 %v24225_v8  ;;  %10886 = vmatprep.subr.bf16.mxu1 %v24226_v57  ;;  %v24245_v8 = vld [vmem:[#allocation77_spill] sm:$0xff]  ;;  %v24246_v57 = vld [vmem:[#allocation228_spill] sm:$0xff] }
 0x861   : > { %10845 = vmatprep.subr.bf16.mxu0 %v24227_v32  ;;  %v24247_v32 = vld [vmem:[#allocation75_spill] sm:$0xff] }
 0x863   : > { %10887 = vmatpush1.bf16.msra.mxu1 %v24228_v37  ;;  %v24248_v37 = vld [vmem:[#allocation85_spill] sm:$0xff] }
 0x864   : > { %10846 = vmatpush1.bf16.msra.mxu0 %v24229_v7  ;;  %10888 = vmatprep.subr.bf16.mxu1 %v24230_v48  ;;  %v24249_v7 = vld [vmem:[#allocation76_spill] sm:$0xff]  ;;  %v24250_v48 = vld [vmem:[#allocation82_spill] sm:$0xff] }
 0x865   : > { %10847 = vmatprep.subr.bf16.mxu0 %v24231_v62  ;;  %v24251_v62 = vld [vmem:[#allocation74_spill] sm:$0xff] }
 0x867   : > { %10889 = vmatpush1.bf16.msra.mxu1 %v24232_v43  ;;  %v24252_v43 = vld [vmem:[#allocation84_spill] sm:$0xff] }
 0x868   : > { %10848 = vmatpush1.bf16.msra.mxu0 %v24233_v36  ;;  %10890 = vmatprep.subr.bf16.mxu1 %v24234_v11  ;;  %v24253_v36 = vld [vmem:[#allocation79_spill] sm:$0xff]  ;;  %v24254_v11 = vld [vmem:[#allocation226_spill] sm:$0xff] }
 0x869   : > { %10917 = vmatprep.subr.bf16.mxu0 %v24235_v20  ;;  %v24255_v20 = vld [vmem:[#allocation78_spill] sm:$0xff] }
 0x86b   : > { %10864 = vmatmul.mubr.bf16.vlgmr.msra.gmra.mrb[32].mxu0 %v20325_v19  ;;  %10891 = vmatpush1.bf16.msra.mxu1 %v24236_v61  ;;  %v24256_v61 = vld [vmem:[#allocation81_spill] sm:$0xff] }
 0x86c   : > { %10918 = vmatpush1.bf16.msra.mxu0 %v24237_v9  ;;  %10960 = vmatprep.subr.bf16.mxu1 %v24238_v12  ;;  %v24257_v9 = vld [vmem:[#allocation229_spill] sm:$0xff]  ;;  %v24258_v12 = vld [vmem:[#allocation92_spill] sm:$0xff] }
 0x86d   : > { %10919 = vmatprep.subr.bf16.mxu0 %v24239_v16  ;;  %13842 = vmatprep.mubr.msk.bf16.mxu0 %vm3840_vm0, %v20280_v31  ;;  %v24259_v16 = vld [vmem:[#allocation89_spill] sm:$0xff] }
 0x86e   : > { %10907 = vmatmul.mubr.bf16.vlgmr.msra.gmra.mrb[32].mxu1 %v20325_v19 }
 0x86f   : > { %10961 = vmatpush1.bf16.msra.mxu1 %v24240_v27  ;;  %13843 = vmatprep.mubr.msk.bf16.mxu1 %vm3840_vm0, %v20280_v31  ;;  %v24260_v27 = vld [vmem:[#allocation95_spill] sm:$0xff] }
 0x870   : > { %10920 = vmatpush1.bf16.msra.mxu0 %v24241_v5  ;;  %10962 = vmatprep.subr.bf16.mxu1 %v24242_v28  ;;  %v24262_v5 = vld [vmem:[#allocation96_spill] sm:$0xff]  ;;  %v24264_v28 = vld [vmem:[#allocation94_spill] sm:$0xff] }
 0x871   : > { %10921 = vmatprep.subr.bf16.mxu0 %v24243_v49  ;;  %v24266_v49 = vld [vmem:[#allocation101_spill] sm:$0xff] }
 0x873   : > { %10963 = vmatpush1.bf16.msra.mxu1 %v24244_v14  ;;  %v24268_v14 = vld [vmem:[#allocation99_spill] sm:$0xff] }
 0x874   : > { %10922 = vmatpush1.bf16.msra.mxu0 %v24245_v8  ;;  %10964 = vmatprep.subr.bf16.mxu1 %v24246_v57  ;;  %v24269_v8 = vld [vmem:[#allocation195_spill] sm:$0xff] }
 0x875   : > { %10923 = vmatprep.subr.bf16.mxu0 %v24247_v32  ;;  %v24270_v57 = vld [vmem:[#allocation207_spill] sm:$0xff]  ;;  %v24271_v32 = vld [vmem:[#allocation100_spill] sm:$0xff] }
 0x877   : > { %10965 = vmatpush1.bf16.msra.mxu1 %v24248_v37  ;;  %v24272_v37 = vld [vmem:[#allocation203_spill] sm:$0xff] }
 0x878   : > { %10924 = vmatpush1.bf16.msra.mxu0 %v24249_v7  ;;  %10966 = vmatprep.subr.bf16.mxu1 %v24250_v48  ;;  %v24273_v7 = vld [vmem:[#allocation98_spill] sm:$0xff]  ;;  %v24274_v48 = vld [vmem:[#allocation111_spill] sm:$0xff] }
 0x879   : > { %10925 = vmatprep.subr.bf16.mxu0 %v24251_v62  ;;  %v24275_v62 = vld [vmem:[#allocation105_spill] sm:$0xff] }
 0x87b   : > { %10967 = vmatpush1.bf16.msra.mxu1 %v24252_v43  ;;  %v24276_v43 = vld [vmem:[#allocation230_spill] sm:$0xff] }
 0x87c   : > { %10926 = vmatpush1.bf16.msra.mxu0 %v24253_v36  ;;  %10968 = vmatprep.subr.bf16.mxu1 %v24089_v10  ;;  %v24261_v10 = vld [vmem:[#allocation87_spill] sm:$0xff] }
 0x87d   : > { %10927 = vmatprep.subr.bf16.mxu0 %v24254_v11  ;;  %v24277_v36 = vld [vmem:[#allocation103_spill] sm:$0xff]  ;;  %v24278_v11 = vld [vmem:[#allocation110_spill] sm:$0xff] }
 0x87f   : > { %10969 = vmatpush1.bf16.msra.mxu1 %v24091_v0  ;;  %v24263_v0 = vld [vmem:[#allocation90_spill] sm:$0xff] }
 0x880   : > { %10928 = vmatpush1.bf16.msra.mxu0 %v24255_v20  ;;  %10970 = vmatprep.subr.bf16.mxu1 %v24093_v2  ;;  %v24265_v2 = vld [vmem:[#allocation97_spill] sm:$0xff]  ;;  %v24279_v20 = vld [vmem:[#allocation104_spill] sm:$0xff] }
 0x881   : > { %10929 = vmatprep.subr.bf16.mxu0 %v24256_v61  ;;  %v24280_v61 = vld [vmem:[#allocation91_spill] sm:$0xff] }
 0x883   : > { %10971 = vmatpush1.bf16.msra.mxu1 %v24095_v39  ;;  %v24267_v39 = vld [vmem:[#allocation204_spill] sm:$0xff] }
 0x884   : > { %10930 = vmatpush1.bf16.msra.mxu0 %v24257_v9  ;;  %10972 = vmatprep.subr.bf16.mxu1 %v24258_v12  ;;  %v24281_v9 = vld [vmem:[#allocation102_spill] sm:$0xff]  ;;  %v24282_v12 = vld [vmem:[#allocation113_spill] sm:$0xff] }
 0x885   : > { %10931 = vmatprep.subr.bf16.mxu0 %v24259_v16  ;;  %v24283_v16 = vld [vmem:[#allocation109_spill] sm:$0xff] }
 0x887   : > { %10973 = vmatpush1.bf16.msra.mxu1 %v24260_v27  ;;  %v24284_v27 = vld [vmem:[#allocation232_spill] sm:$0xff] }
 0x888   : > { %10932 = vmatpush1.bf16.msra.mxu0 %v24261_v10  ;;  %10974 = vmatprep.subr.bf16.mxu1 %v24262_v5  ;;  %v24285_v10 = vld [vmem:[#allocation107_spill] sm:$0xff]  ;;  %v24286_v5 = vld [vmem:[#allocation108_spill] sm:$0xff] }
 0x889   : > { %10933 = vmatprep.subr.bf16.mxu0 %v24263_v0  ;;  %v24287_v0 = vld [vmem:[#allocation106_spill] sm:$0xff] }
 0x88b   : > { %10975 = vmatpush1.bf16.msra.mxu1 %v24264_v28  ;;  %v24288_v28 = vld [vmem:[#allocation231_spill] sm:$0xff] }
 0x88c   : > { %10934 = vmatpush1.bf16.msra.mxu0 %v24265_v2  ;;  %10976 = vmatprep.subr.bf16.mxu1 %v24266_v49  ;;  %v24289_v2 = vld [vmem:[#allocation112_spill] sm:$0xff]  ;;  %v24290_v49 = vld [vmem:[#allocation114_spill] sm:$0xff] }
 0x88d   : > { %11003 = vmatprep.subr.bf16.mxu0 %v24267_v39  ;;  %v24294_v39 = vld [vmem:[#allocation127_spill] sm:$0xff] }
 0x88f   : > { %10950 = vmatmul.mubr.bf16.vlgmr.msra.gmra.mrb[36].mxu0 %v20325_v19  ;;  %10977 = vmatpush1.bf16.msra.mxu1 %v24268_v14  ;;  %v24297_v14 = vld [vmem:[#allocation210_spill] sm:$0xff] }
 0x890   : > { %11004 = vmatpush1.bf16.msra.mxu0 %v24269_v8  ;;  %11046 = vmatprep.subr.bf16.mxu1 %v24270_v57  ;;  %v24299_v8 = vld [vmem:[#allocation126_spill] sm:$0xff]  ;;  %v24302_v57 = vld [vmem:[#allocation140_spill] sm:$0xff] }
 0x891   : > { %11005 = vmatprep.subr.bf16.mxu0 %v24271_v32  ;;  %13844 = vmatprep.mubr.msk.bf16.mxu0 %vm3840_vm0, %v20280_v31  ;;  %v24303_v32 = vld [vmem:[#allocation131_spill] sm:$0xff] }
 0x892   : > { %10993 = vmatmul.mubr.bf16.vlgmr.msra.gmra.mrb[36].mxu1 %v20325_v19 }
 0x893   : > { %11047 = vmatpush1.bf16.msra.mxu1 %v24272_v37  ;;  %13845 = vmatprep.mubr.msk.bf16.mxu1 %vm3840_vm0, %v20280_v31  ;;  %v24304_v37 = vld [vmem:[#allocation233_spill] sm:$0xff] }
 0x894   : > { %11006 = vmatpush1.bf16.msra.mxu0 %v24273_v7  ;;  %11048 = vmatprep.subr.bf16.mxu1 %v24274_v48  ;;  %v24305_v7 = vld [vmem:[#allocation132_spill] sm:$0xff]  ;;  %v24306_v48 = vld [vmem:[#allocation142_spill] sm:$0xff] }
 0x895   : > { %11007 = vmatprep.subr.bf16.mxu0 %v24275_v62  ;;  %v24307_v62 = vld [vmem:[#allocation130_spill] sm:$0xff] }
 0x897   : > { %11049 = vmatpush1.bf16.msra.mxu1 %v24276_v43  ;;  %v24308_v43 = vld [vmem:[#allocation123_spill] sm:$0xff] }
 0x898   : > { %11008 = vmatpush1.bf16.msra.mxu0 %v24277_v36  ;;  %11050 = vmatprep.subr.bf16.mxu1 %v24278_v11  ;;  %v24309_v36 = vld [vmem:[#allocation137_spill] sm:$0xff] }
 0x899   : > { %11009 = vmatprep.subr.bf16.mxu0 %v24279_v20  ;;  %v24310_v11 = vld [vmem:[#allocation145_spill] sm:$0xff]  ;;  %v24311_v20 = vld [vmem:[#allocation135_spill] sm:$0xff] }
 0x89b   : > { %11051 = vmatpush1.bf16.msra.mxu1 %v24280_v61  ;;  %v24312_v61 = vld [vmem:[#allocation139_spill] sm:$0xff] }
 0x89c   : > { %11010 = vmatpush1.bf16.msra.mxu0 %v24281_v9  ;;  %11052 = vmatprep.subr.bf16.mxu1 %v24282_v12  ;;  %v24313_v9 = vld [vmem:[#allocation136_spill] sm:$0xff]  ;;  %v24314_v12 = vld [vmem:[#allocation134_spill] sm:$0xff] }
 0x89d   : > { %11011 = vmatprep.subr.bf16.mxu0 %v24283_v16  ;;  %v24315_v16 = vld [vmem:[#allocation141_spill] sm:$0xff] }
 0x89f   : > { %11053 = vmatpush1.bf16.msra.mxu1 %v24284_v27  ;;  %v24316_v27 = vld [vmem:[#allocation234_spill] sm:$0xff] }
 0x8a0   : > { %11012 = vmatpush1.bf16.msra.mxu0 %v24285_v10  ;;  %11054 = vmatprep.subr.bf16.mxu1 %v24121_v56  ;;  %v24291_v56 = vld [vmem:[#allocation116_spill] sm:$0xff]  ;;  %v24317_v10 = vld [vmem:[#allocation151_spill] sm:$0xff] }
 0x8a1   : > { %11013 = vmatprep.subr.bf16.mxu0 %v24286_v5  ;;  %v24318_v5 = vld [vmem:[#allocation144_spill] sm:$0xff] }
 0x8a3   : > { %11055 = vmatpush1.bf16.msra.mxu1 %v24123_v63  ;;  %v24292_v63 = vld [vmem:[#allocation118_spill] sm:$0xff] }
 0x8a4   : > { %11014 = vmatpush1.bf16.msra.mxu0 %v24287_v0  ;;  %11056 = vmatprep.subr.bf16.mxu1 %v24125_v13  ;;  %v24293_v13 = vld [vmem:[#allocation125_spill] sm:$0xff]  ;;  %v24319_v0 = vld [vmem:[#allocation152_spill] sm:$0xff] }
 0x8a5   : > { %11015 = vmatprep.subr.bf16.mxu0 %v24288_v28  ;;  %v24320_v28 = vld [vmem:[#allocation146_spill] sm:$0xff] }
 0x8a7   : > { %11057 = vmatpush1.bf16.msra.mxu1 %v24127_v53  ;;  %v24295_v53 = vld [vmem:[#allocation17_spill] sm:$0xff] }
 0x8a8   : > { %11016 = vmatpush1.bf16.msra.mxu0 %v24289_v2  ;;  %11058 = vmatprep.subr.bf16.mxu1 %v24129_v24  ;;  %v24296_v24 = vld [vmem:[#allocation128_spill] sm:$0xff] }
 0x8a9   : > { %11017 = vmatprep.subr.bf16.mxu0 %v24290_v49  ;;  %v24321_v2 = vld [vmem:[#allocation156_spill] sm:$0xff]  ;;  %v24324_v49 = vld [vmem:[#allocation161_spill] sm:$0xff] }
 0x8ab   : > { %11059 = vmatpush1.bf16.msra.mxu1 %v24131_v54  ;;  %v24298_v54 = vld [vmem:[#allocation21_spill] sm:$0xff] }
 0x8ac   : > { %11018 = vmatpush1.bf16.msra.mxu0 %v24291_v56  ;;  %11060 = vmatprep.subr.bf16.mxu1 %v24132_v17  ;;  %v24300_v17 = vld [vmem:[#allocation14_spill] sm:$0xff]  ;;  %v24326_v56 = vld [vmem:[#allocation159_spill] sm:$0xff] }
 0x8ad   : > { %11019 = vmatprep.subr.bf16.mxu0 %v24292_v63  ;;  %v24327_v63 = vld [vmem:[#allocation20_spill] sm:$0xff] }
 0x8af   : > { %11061 = vmatpush1.bf16.msra.mxu1 %v24133_v44  ;;  %v24301_v44 = vld [vmem:[#allocation133_spill] sm:$0xff] }
 0x8b0   : > { %11020 = vmatpush1.bf16.msra.mxu0 %v24293_v13  ;;  %11062 = vmatprep.subr.bf16.mxu1 %v24294_v39  ;;  %v24328_v13 = vld [vmem:[#allocation160_spill] sm:$0xff]  ;;  %v24329_v39 = vld [vmem:[#allocation18_spill] sm:$0xff] }
 0x8b1   : > { %11089 = vmatprep.subr.bf16.mxu0 %v24295_v53  ;;  %v24330_v53 = vld [vmem:[#allocation25_spill] sm:$0xff] }
 0x8b3   : > { %11036 = vmatmul.mubr.bf16.vlgmr.msra.gmra.mrb[40].mxu0 %v20325_v19  ;;  %11063 = vmatpush1.bf16.msra.mxu1 %v24296_v24  ;;  %v24331_v24 = vld [vmem:[#allocation158_spill] sm:$0xff] }
 0x8b4   : > { %11090 = vmatpush1.bf16.msra.mxu0 %v24297_v14  ;;  %11132 = vmatprep.subr.bf16.mxu1 %v24298_v54  ;;  %v24333_v14 = vld [vmem:[#allocation165_spill] sm:$0xff]  ;;  %v24334_v54 = vld [vmem:[#allocation172_spill] sm:$0xff] }
 0x8b5   : > { %11091 = vmatprep.subr.bf16.mxu0 %v24299_v8  ;;  %13846 = vmatprep.mubr.msk.bf16.mxu0 %vm3840_vm0, %v20280_v31  ;;  %v24335_v8 = vld [vmem:[#allocation163_spill] sm:$0xff] }
 0x8b6   : > { %11079 = vmatmul.mubr.bf16.vlgmr.msra.gmra.mrb[40].mxu1 %v20325_v19 }
 0x8b7   : > { %11133 = vmatpush1.bf16.msra.mxu1 %v24300_v17  ;;  %13847 = vmatprep.mubr.msk.bf16.mxu1 %vm3840_vm0, %v20280_v31  ;;  %v24336_v17 = vld [vmem:[#allocation164_spill] sm:$0xff] }
 0x8b8   : > { %11092 = vmatpush1.bf16.msra.mxu0 %v24301_v44  ;;  %11134 = vmatprep.subr.bf16.mxu1 %v24302_v57  ;;  %v24337_v44 = vld [vmem:[#allocation162_spill] sm:$0xff]  ;;  %v24338_v57 = vld [vmem:[#allocation180_spill] sm:$0xff] }
 0x8b9   : > { %11093 = vmatprep.subr.bf16.mxu0 %v24303_v32  ;;  %v24339_v32 = vld [vmem:[#allocation169_spill] sm:$0xff] }
 0x8bb   : > { %11135 = vmatpush1.bf16.msra.mxu1 %v24304_v37  ;;  %v24340_v37 = vld [vmem:[#allocation167_spill] sm:$0xff] }
 0x8bc   : > { %11094 = vmatpush1.bf16.msra.mxu0 %v24305_v7  ;;  %11136 = vmatprep.subr.bf16.mxu1 %v24306_v48  ;;  %v24341_v7 = vld [vmem:[#allocation168_spill] sm:$0xff]  ;;  %v24343_v48 = vld [vmem:[#allocation190_spill] sm:$0xff] }
 0x8bd   : > { %11095 = vmatprep.subr.bf16.mxu0 %v24307_v62  ;;  %v24344_v62 = vld [vmem:[#allocation174_spill] sm:$0xff] }
 0x8bf   : > { %11137 = vmatpush1.bf16.msra.mxu1 %v24308_v43  ;;  %v24345_v43 = vld [vmem:[#allocation177_spill] sm:$0xff] }
 0x8c0   : > { %11096 = vmatpush1.bf16.msra.mxu0 %v24309_v36  ;;  %11138 = vmatprep.subr.bf16.mxu1 %v24310_v11  ;;  %v24347_v36 = vld [vmem:[#allocation182_spill] sm:$0xff]  ;;  %v24349_v11 = vld [vmem:[#allocation184_spill] sm:$0xff] }
 0x8c1   : > { %11097 = vmatprep.subr.bf16.mxu0 %v24311_v20  ;;  %v20494_v20 = vpop.permute.xlu0 %7096 }
 0x8c3   : > { %11139 = vmatpush1.bf16.msra.mxu1 %v24312_v61  ;;  %v24350_v61 = vld [vmem:[#allocation185_spill] sm:$0xff] }
 0x8c4   : > { %11098 = vmatpush1.bf16.msra.mxu0 %v24313_v9  ;;  %11140 = vmatprep.subr.bf16.mxu1 %v24149_v4  ;;  %v24322_v4 = vld [vmem:[#allocation148_spill] sm:$0xff]  ;;  %v24352_v9 = vld [vmem:[#allocation197_spill] sm:$0xff] }
 0x8c5   : > { %11099 = vmatprep.subr.bf16.mxu0 %v24314_v12 }
 0x8c7   : > { %11141 = vmatpush1.bf16.msra.mxu1 %v24151_v21  ;;  %v24323_v21 = vld [vmem:[#allocation150_spill] sm:$0xff] }
 0x8c8   : > { %11100 = vmatpush1.bf16.msra.mxu0 %v24315_v16  ;;  %11142 = vmatprep.subr.bf16.mxu1 %v24153_v59  ;;  %v24325_v59 = vld [vmem:[#allocation157_spill] sm:$0xff]  ;;  %v24353_v16 = vld [vmem:[#allocation191_spill] sm:$0xff] }
 0x8c9   : > { %11101 = vmatprep.subr.bf16.mxu0 %v24316_v27  ;;  %v24354_v27 = vld [vmem:[#allocation202_spill] sm:$0xff] }
 0x8cb   : > { %11143 = vmatpush1.bf16.msra.mxu1 %v24317_v10  ;;  %v20505_v10 = vpop.permute.xlu0 %7317 }
 0x8cc   : > { %11102 = vmatpush1.bf16.msra.mxu0 %v24318_v5  ;;  %11144 = vmatprep.subr.bf16.mxu1 %v24319_v0  ;;  %v24355_v5 = vld [vmem:[#allocation27_spill] sm:$0xff]  ;;  %v24357_v0 = vld [vmem:[#allocation22_spill] sm:$0xff] }
 0x8cd   : > { %11103 = vmatprep.subr.bf16.mxu0 %v24320_v28  ;;  %v24359_v28 = vld [vmem:[#allocation201_spill] sm:$0xff] }
 0x8cf   : > { %11145 = vmatpush1.bf16.msra.mxu1 %v24321_v2 }
 0x8d0   : > { %11104 = vmatpush1.bf16.msra.mxu0 %v24322_v4  ;;  %11146 = vmatprep.subr.bf16.mxu1 %v24160_v6  ;;  %v24332_v6 = vld [vmem:[#allocation19_spill] sm:$0xff]  ;;  %v20518_v4 = vpop.permute.xlu0 %7538 }
 0x8d1   : > { %11105 = vmatprep.subr.bf16.mxu0 %v24323_v21  ;;  %v24360_v21 = vld [vmem:[#allocation44_spill] sm:$0xff] }
 0x8d3   : > { %11147 = vmatpush1.bf16.msra.mxu1 %v24324_v49  ;;  %v24361_v49 = vld [vmem:[#allocation199_spill] sm:$0xff] }
 0x8d4   : > { %11106 = vmatpush1.bf16.msra.mxu0 %v24325_v59  ;;  %11148 = vmatprep.subr.bf16.mxu1 %v24326_v56  ;;  %v24362_v59 = vld [vmem:[#allocation34_spill] sm:$0xff] }
 0x8d5   : > { %11175 = vmatprep.subr.bf16.mxu0 %v24327_v63  ;;  %v24363_v56 = vld [vmem:[#allocation138_spill] sm:$0xff]  ;;  %v24364_v63 = vld [vmem:[#allocation205_spill] sm:$0xff] }
 0x8d7   : > { %11122 = vmatmul.mubr.bf16.vlgmr.msra.gmra.mrb[44].mxu0 %v20325_v19  ;;  %11149 = vmatpush1.bf16.msra.mxu1 %v24328_v13 }
 0x8d8   : > { %11176 = vmatpush1.bf16.msra.mxu0 %v24329_v39  ;;  %11218 = vmatprep.subr.bf16.mxu1 %v24330_v53  ;;  %v24365_v39 = vld [vmem:[#allocation143_spill] sm:$0xff]  ;;  %v20531_v53 = vpop.permute.xlu0 %7759 }
 0x8d9   : > { %11177 = vmatprep.subr.bf16.mxu0 %v24331_v24  ;;  %13848 = vmatprep.mubr.msk.bf16.mxu0 %vm3840_vm0, %v20280_v31  ;;  %v24366_v24 = vld [vmem:[#allocation209_spill] sm:$0xff] }
 0x8da   : > { %11165 = vmatmul.mubr.bf16.vlgmr.msra.gmra.mrb[44].mxu1 %v20325_v19 }
 0x8db   : > { %11219 = vmatpush1.bf16.msra.mxu1 %v24332_v6  ;;  %13849 = vmatprep.mubr.msk.bf16.mxu1 %vm3840_vm0, %v20280_v31  ;;  %v24367_v6 = vld [vmem:[#allocation214_spill] sm:$0xff] }
 0x8dc   : > { %11178 = vmatpush1.bf16.msra.mxu0 %v24333_v14  ;;  %11220 = vmatprep.subr.bf16.mxu1 %v24334_v54  ;;  %v24368_v14 = vld [vmem:[#allocation45_spill] sm:$0xff] }
 0x8dd   : > { %11179 = vmatprep.subr.bf16.mxu0 %v24335_v8  ;;  %v24369_v54 = vld [vmem:[#allocation213_spill] sm:$0xff] }
 0x8df   : > { %11221 = vmatpush1.bf16.msra.mxu1 %v24172_v25  ;;  %v24342_v25 = vld [vmem:[#allocation166_spill] sm:$0xff] }
 0x8e0   : > { %11180 = vmatpush1.bf16.msra.mxu0 %v24336_v17  ;;  %11222 = vmatprep.subr.bf16.mxu1 %v24174_v46  ;;  %v20483_v46 = vpop.permute.xlu1 %7094  ;;  %v20540_v17 = vpop.permute.xlu0 %7980 }
 0x8e1   : > { %11181 = vmatprep.subr.bf16.mxu0 %v24337_v44  ;;  %v24370_v44 = vld [vmem:[#allocation216_spill] sm:$0xff] }
 0x8e3   : > { %11223 = vmatpush1.bf16.msra.mxu1 %v24338_v57  ;;  %v24371_v57 = vld [vmem:[#allocation215_spill] sm:$0xff] }
 0x8e4   : > { %11182 = vmatpush1.bf16.msra.mxu0 %v24339_v32  ;;  %11224 = vmatprep.subr.bf16.mxu1 %v24177_v29  ;;  %v24346_v29 = vld [vmem:[#allocation189_spill] sm:$0xff]  ;;  %v24373_v32 = vld [vmem:[#allocation218_spill] sm:$0xff] }
 0x8e5   : > { %11183 = vmatprep.subr.bf16.mxu0 %v24340_v37  ;;  %v24374_v37 = vld [vmem:[#allocation219_spill] sm:$0xff] }
 0x8e7   : > { %11225 = vmatpush1.bf16.msra.mxu1 %v24179_v52  ;;  %v24348_v52 = vld [vmem:[#allocation194_spill] sm:$0xff] }
 0x8e8   : > { %11184 = vmatpush1.bf16.msra.mxu0 %v24341_v7  ;;  %11226 = vmatprep.subr.bf16.mxu1 %v24181_v38  ;;  %v20492_v38 = vpop.permute.xlu1 %7315  ;;  %v20551_v7 = vpop.permute.xlu0 %8201 }
 0x8e9   : > { %11185 = vmatprep.subr.bf16.mxu0 %v24342_v25  ;;  %v24375_v25 = vld [vmem:[#allocation221_spill] sm:$0xff] }
 0x8eb   : > { %11227 = vmatpush1.bf16.msra.mxu1 %v24343_v48  ;;  %v24376_v48 = vld [vmem:[#allocation222_spill] sm:$0xff] }
 0x8ec   : > { %11186 = vmatpush1.bf16.msra.mxu0 %v24344_v62  ;;  %11228 = vmatprep.subr.bf16.mxu1 %v24183_v45  ;;  %v24351_v45 = vld [vmem:[#allocation193_spill] sm:$0xff]  ;;  %v20501_v12 = vpop.permute.xlu1 %7536  ;;  %v24377_v62 = vld [vmem:[#allocation32_spill] sm:$0xff] }
 0x8ed   : > { %11187 = vmatprep.subr.bf16.mxu0 %v24345_v43  ;;  %v24378_v43 = vld [vmem:[#allocation155_spill] sm:$0xff] }
 0x8ef   : > { %11229 = vmatpush1.bf16.msra.mxu1 %v24346_v29 }
 0x8f0   : > { %11188 = vmatpush1.bf16.msra.mxu0 %v24347_v36  ;;  %11230 = vmatprep.subr.bf16.mxu1 %v24348_v52  ;;  %v20515_v2 = vpop.permute.xlu1 %7757  ;;  %v24379_v36 = vld [vmem:[#allocation236_spill] sm:$0xff] }
 0x8f1   : > { %11189 = vmatprep.subr.bf16.mxu0 %v24349_v11 }
 0x8f3   : > { %11231 = vmatpush1.bf16.msra.mxu1 %v24186_v18  ;;  %v24356_v18 = vld [vmem:[#allocation200_spill] sm:$0xff] }
 0x8f4   : > { %11190 = vmatpush1.bf16.msra.mxu0 %v24350_v61  ;;  %11232 = vmatprep.subr.bf16.mxu1 %v24188_v42  ;;  %v24358_v42 = vld [vmem:[#allocation42_spill] sm:$0xff]  ;;  %v20527_v13 = vpop.permute.xlu1 %7978  ;;  %v24382_v61 = vld [vmem:[#allocation15_spill] sm:$0xff] }
 0x8f5   : > { %11191 = vmatprep.subr.bf16.mxu0 %v24351_v45  ;;  %v24384_v45 = vld [vmem:[#allocation23_spill] sm:$0xff] }
 0x8f7   : > { %11233 = vmatpush1.bf16.msra.mxu1 %v24352_v9 }
 0x8f8   : > { %11192 = vmatpush1.bf16.msra.mxu0 %v24353_v16  ;;  %11234 = vmatprep.subr.bf16.mxu1 %v24354_v27  ;;  %v20538_v8 = vpop.permute.xlu1 %8199  ;;  %v24387_v16 = vld [vmem:[#allocation24_spill] sm:$0xff] }
 0x8f9   : > { %11261 = vmatprep.subr.bf16.mxu0 %v24355_v5  ;;  %v7348_v27 = vsel %vm1210_vm2, %v24387_v16, %v20492_v38  ;;  %v7128_v5 = vsel %vm840_vm1, %v20483_v46, %v20494_v20  ;;  %v24390_v20 = vld [vmem:[#allocation33_spill] sm:$0xff] }
 0x8fb   : > { %11208 = vmatmul.mubr.bf16.vlgmr.msra.gmra.mrb[48].mxu0 %v20325_v19  ;;  %11235 = vmatpush1.bf16.msra.mxu1 %v24356_v18 }
 0x8fc   : > { %11262 = vmatpush1.bf16.msra.mxu0 %v24357_v0  ;;  %11304 = vmatprep.subr.bf16.mxu1 %v24358_v42  ;;  %v24388_v42 = vld [vmem:[#allocation26_spill] sm:$0xff] }
 0x8fd   : > { %11263 = vmatprep.subr.bf16.mxu0 %v24359_v28  ;;  %13850 = vmatprep.mubr.msk.bf16.mxu0 %vm3840_vm0, %v20280_v31 }
 0x8fe   : > { %11251 = vmatmul.mubr.bf16.vlgmr.msra.gmra.mrb[48].mxu1 %v20325_v19 }
 0x8ff   : > { %11305 = vmatpush1.bf16.msra.mxu1 %v24360_v21  ;;  %13851 = vmatprep.mubr.msk.bf16.mxu1 %vm3840_vm0, %v20280_v31  ;;  %v7349_v21 = vsel %vm1210_vm2, %v20492_v38, %v20505_v10  ;;  %v24392_v38 = vld [vmem:[#allocation31_spill] sm:$0xff]  ;;  %v8011_v10 = vsel %vm2320_vm5, %v20215_v3, %v20527_v13  ;;  %v8012_v3 = vsel %vm2320_vm5, %v20527_v13, %v20540_v17 }
 0x900   : > { %11264 = vmatpush1.bf16.msra.mxu0 %v24361_v49  ;;  %11306 = vmatprep.subr.bf16.mxu1 %v24362_v59  ;;  %v24391_v49 = vld [vmem:[#allocation28_spill] sm:$0xff] }
 0x901   : > { %11265 = vmatprep.subr.bf16.mxu0 %v24363_v56  ;;  %v7790_v59 = vsel %vm1950_vm4, %v24391_v49, %v20515_v2 }
 0x903   : > { %11307 = vmatpush1.bf16.msra.mxu1 %v24364_v63  ;;  %v7570_v63 = vsel %vm1580_vm3, %v20501_v12, %v20518_v4 }
 0x904   : > { %11266 = vmatpush1.bf16.msra.mxu0 %v24365_v39  ;;  %11308 = vmatprep.subr.bf16.mxu1 %v20186_v40  ;;  %v24372_v40 = vld [vmem:[#allocation43_spill] sm:$0xff]  ;;  %v7791_v39 = vsel %vm1950_vm4, %v20515_v2, %v20531_v53 }
 0x905   : > { %11267 = vmatprep.subr.bf16.mxu0 %v24366_v24 }
 0x907   : > { %11309 = vmatpush1.bf16.msra.mxu1 %v24203_v30  ;;  %v20547_v30 = vpop.permute.xlu1 %8420 }
 0x908   : > { %11268 = vmatpush1.bf16.msra.mxu0 %v24367_v6  ;;  %11310 = vmatprep.subr.bf16.mxu1 %v24368_v14  ;;  %v24393_v14 = vld [vmem:[#allocation30_spill] sm:$0xff]  ;;  %v8453_v2 = vsel %vm3060_vm7, %v20255_v47, %v20547_v30 }
 0x909   : > { %11269 = vmatprep.subr.bf16.mxu0 %v24369_v54 }
 0x90b   : > { %11311 = vmatpush1.bf16.msra.mxu1 %v24370_v44  ;;  %v20558_v29 = vpop.permute.xlu1 %8641 }
 0x90c   : > { %11270 = vmatpush1.bf16.msra.mxu0 %v24371_v57  ;;  %11312 = vmatprep.subr.bf16.mxu1 %v24372_v40  ;;  %v8674_v13 = vsel %vm3430_vm8, %v20274_v58, %v20558_v29 }
 0x90d   : > { %11271 = vmatprep.subr.bf16.mxu0 %v24373_v32 }
 0x90f   : > { %11313 = vmatpush1.bf16.msra.mxu1 %v24210_v41  ;;  %v20560_v41 = vpop.permute.xlu0 %8422  ;;  %v20566_v52 = vpop.permute.xlu1 %11754 }
 0x910   : > { %11272 = vmatpush1.bf16.msra.mxu0 %v24374_v37  ;;  %11314 = vmatprep.subr.bf16.mxu1 %v20226_v33  ;;  %v24380_v33 = vld [vmem:[#allocation238_spill] sm:$0xff]  ;;  %v8454_v47 = vsel %vm3060_vm7, %v20547_v30, %v20560_v41  ;;  %v20705_v41 = vld [vmem:[%s22312_s5] sm:$0xff]  }
 0x911   : > { %11273 = vmatprep.subr.bf16.mxu0 %v24375_v25 }
 0x913   : > { %11315 = vmatpush1.bf16.msra.mxu1 %v24213_v15  ;;  %v24381_v15 = vld [vmem:[#allocation237_spill] sm:$0xff]  ;;  %v20571_v11 = vpop.permute.xlu0 %8643 }
 0x914   : > { %11274 = vmatpush1.bf16.msra.mxu0 %v24376_v48  ;;  %11316 = vmatprep.subr.bf16.mxu1 %v24377_v62  ;;  %v8675_v30 = vsel %vm3430_vm8, %v20558_v29, %v20571_v11 }
 0x915   : > { %11275 = vmatprep.subr.bf16.mxu0 %v24378_v43 }
 0x917   : > { %11317 = vmatpush1.bf16.msra.mxu1 %v24217_v26  ;;  %v20576_v26 = vpop.permute.xlu1 %11752  ;;  %v20583_v9 = vpop.permute.xlu0 %11756 }
 0x918   : > { %11276 = vmatpush1.bf16.msra.mxu0 %v24379_v36  ;;  %11318 = vmatprep.subr.bf16.mxu1 %v20252_v60  ;;  %v24383_v60 = vld [vmem:[#allocation46_spill] sm:$0xff]  ;;  %v11808_v44 = vsel %vm3430_vm8, %v20576_v26, %v20566_v52 }
 0x919   : > { %11277 = vmatprep.subr.bf16.mxu0 %v24380_v33 }
 0x91b   : > { %11319 = vmatpush1.bf16.msra.mxu1 %v19866_v34  ;;  %v7127_v34 = vsel %vm840_vm1, %v24384_v45, %v20483_v46  ;;  %v20599_v18 = vpop.permute.xlu1 %11760  ;;  %v20601_v0 = vpop.permute.xlu0 %11758 }
 0x91c   : > { %11278 = vmatpush1.bf16.msra.mxu0 %v24381_v15  ;;  %11320 = vmatprep.subr.bf16.mxu1 %v20266_v50  ;;  %v24385_v50 = vld [vmem:[#allocation69_spill] sm:$0xff]  ;;  %v11811_v32 = vsel %vm3430_vm8, %v20601_v0, %v20599_v18  ;;  %v11810_v62 = vsel %vm3430_vm8, %v20583_v9, %v20601_v0 }
 0x91d   : > { %11347 = vmatprep.subr.bf16.mxu0 %v24382_v61 }
 0x91f   : > { %11294 = vmatmul.mubr.bf16.vlgmr.msra.gmra.mrb[52].mxu0 %v20325_v19  ;;  %11321 = vmatpush1.bf16.msra.mxu1 %v19888_v51  ;;  %v24386_v51 = vld [vmem:[#allocation41_spill] sm:$0xff]  ;;  %v20611_v46 = vpop.permute.xlu1 %11764  ;;  %v20618_v56 = vpop.permute.xlu0 %11762 }
 0x920   : > { %11348 = vmatpush1.bf16.msra.mxu0 %v24383_v60  ;;  %11390 = vmatprep.subr.bf16.mxu1 %v23998_v1  ;;  %v11813_v37 = vsel %vm3430_vm8, %v20618_v56, %v20611_v46  ;;  %v11812_v36 = vsel %vm3430_vm8, %v20599_v18, %v20618_v56 }
 0x921   : > { %11349 = vmatprep.subr.bf16.mxu0 %v7127_v34  ;;  %13852 = vmatprep.mubr.msk.bf16.mxu0 %vm3840_vm0, %v20280_v31 }
 0x922   : > { %11337 = vmatmul.mubr.bf16.vlgmr.msra.gmra.mrb[52].mxu1 %v20325_v19 }
 0x923   : > { %11391 = vmatpush1.bf16.msra.mxu1 %v24385_v50  ;;  %13853 = vmatprep.mubr.msk.bf16.mxu1 %vm3840_vm0, %v20280_v31  ;;  %v24389_v31 = vld [vmem:[#allocation29_spill] sm:$0xff]  ;;  %v20631_v24 = vpop.permute.xlu1 %11768  ;;  %v11767_v6 = vpop.permute.xlu0 %11766 }
 0x924   : > { %11350 = vmatpush1.bf16.msra.mxu0 %v24386_v51  ;;  %11392 = vmatprep.subr.bf16.mxu1 %v23998_v1  ;;  %v7569_v28 = vsel %vm1580_vm3, %v24389_v31, %v20501_v12  ;;  %v8232_v12 = vsel %vm2690_vm6, %v20234_v23, %v20538_v8  ;;  %v8233_v23 = vsel %vm2690_vm6, %v20538_v8, %v20551_v7 }
 0x925   : > { %11351 = vmatprep.subr.bf16.mxu0 %v7348_v27  ;;  %v11809_v8 = vsel %vm3430_vm8, %v20566_v52, %v20583_v9  ;;  %v11815_v29 = vsel %vm3430_vm8, %v11767_v6, %v20631_v24 }
 0x927   : > { %11393 = vmatpush1.bf16.msra.mxu1 %v7128_v5  ;;  %v20641_v4 = vpop.permute.xlu1 %11772  ;;  %v11771_v53 = vpop.permute.xlu0 %11770 }
 0x928   : > { %11352 = vmatpush1.bf16.msra.mxu0 %v24388_v42  ;;  %11394 = vmatprep.subr.bf16.mxu1 %v23998_v1  ;;  %v11817_v52 = vsel %vm3430_vm8, %v11771_v53, %v20641_v4  ;;  %v11816_v60 = vsel %vm3430_vm8, %v20631_v24, %v11771_v53  ;;  %v14711_v53 = vmov 0.0  }
 0x929   : > { %11353 = vmatprep.subr.bf16.mxu0 %v7569_v28 }
 0x92b   : > { %11395 = vmatpush1.bf16.msra.mxu1 %v7349_v21 }
 0x92c   : > { %11354 = vmatpush1.bf16.msra.mxu0 %v24390_v20  ;;  %11396 = vmatprep.subr.bf16.mxu1 %v23998_v1 }
 0x92d   : > { %11355 = vmatprep.subr.bf16.mxu0 %v7790_v59 }
 0x92f   : > { %11397 = vmatpush1.bf16.msra.mxu1 %v7570_v63 }
 0x930   : > { %11356 = vmatpush1.bf16.msra.mxu0 %v24392_v38  ;;  %11398 = vmatprep.subr.bf16.mxu1 %v23998_v1 }
 0x931   : > { %11357 = vmatprep.subr.bf16.mxu0 %v8011_v10 }
 0x933   : > { %11399 = vmatpush1.bf16.msra.mxu1 %v7791_v39 }
 0x934   : > { %11358 = vmatpush1.bf16.msra.mxu0 %v24393_v14  ;;  %11400 = vmatprep.subr.bf16.mxu1 %v23998_v1 }
 0x935   : > { %11359 = vmatprep.subr.bf16.mxu0 %v8232_v12 }
 0x937   : > { %11401 = vmatpush1.bf16.msra.mxu1 %v8012_v3 }
 0x938   : > { %11360 = vmatpush1.bf16.msra.mxu0 %v20260_v55  ;;  %11402 = vmatprep.subr.bf16.mxu1 %v23998_v1  ;;  %v20659_v55 = vpop.permute.xlu1 %11776 }
 0x939   : > { %11361 = vmatprep.subr.bf16.mxu0 %v8453_v2 }
 0x93b   : > { %11403 = vmatpush1.bf16.msra.mxu1 %v8233_v23 }
 0x93c   : > { %11362 = vmatpush1.bf16.msra.mxu0 %v20272_v22  ;;  %11404 = vmatprep.subr.bf16.mxu1 %v23998_v1  ;;  %v11775_v22 = vpop.permute.xlu0 %11774  ;;  %v11781_v25 = vpop.permute.xlu1 %11780 }
 0x93d   : > { %11363 = vmatprep.subr.bf16.mxu0 %v8674_v13  ;;  %v11819_v11 = vsel %vm3430_vm8, %v11775_v22, %v20659_v55  ;;  %v11818_v34 = vsel %vm3430_vm8, %v20641_v4, %v11775_v22 }
 0x93e   : > { %v20661_v54 = vpop.f32.mrb[32].mxu0 }
 0x93f   : > { %v20666_v17 = vpop.f32.mrb[33].mxu0  ;;  %11405 = vmatpush1.bf16.msra.mxu1 %v8454_v47 }
 0x940   : > { %v20668_v58 = vpop.f32.mrb[34].mxu0  ;;  %11364 = vmatpush1.bf16.msra.mxu0 %v20284_v35  ;;  %11406 = vmatprep.subr.bf16.mxu1 %v23998_v1  ;;  %v11779_v43 = vpop.permute.xlu0 %11778 }
 0x941   : > { %v20675_v57 = vpop.f32.mrb[35].mxu0  ;;  %v20677_v40 = vpop.f32.mrb[32].mxu1  ;;  %11865 = vmatprep.subr.bf16.mxu0 %v11809_v8  ;;  %v11821_v45 = vsel %vm3430_vm8, %v11779_v43, %v11781_v25  ;;  %v11820_v16 = vsel %vm3430_vm8, %v20659_v55, %v11779_v43 }
 0x942   : > { %v20685_v35 = vpop.f32.mrb[33].mxu1  ;;  %v11785_v33 = vpop.permute.xlu1 %11784 }
 0x943   : > { %v20690_v7 = vpop.f32.mrb[34].mxu1  ;;  %11380 = vmatmul.mubr.bf16.vlgmr.msra.gmra.mrb[56].mxu0 %v20325_v19  ;;  %11407 = vmatpush1.bf16.msra.mxu1 %v8675_v30 }
 0x944   : > { %v20693_v48 = vpop.f32.mrb[35].mxu1  ;;  %11866 = vmatpush1.bf16.msra.mxu0 %v11808_v44  ;;  %11908 = vmatprep.subr.bf16.mxu1 %v11811_v32  ;;  %v11783_v15 = vpop.permute.xlu0 %11782 }
 0x945   : > { %11897 = vmatprep.mubr.bf16.mxu0 %v23998_v1  ;;  %11951 = vmatprep.subr.bf16.mxu0 %v11813_v37  ;;  %v11823_v9 = vsel %vm3430_vm8, %v11783_v15, %v11785_v33  ;;  %v11822_v18 = vsel %vm3430_vm8, %v11781_v25, %v11783_v15 }
 0x946   : > { %11423 = vmatmul.mubr.bf16.vlgmr.msra.gmra.mrb[56].mxu1 %v20325_v19  ;;  %v11814_v19 = vsel %vm3430_vm8, %v20611_v46, %v11767_v6  ;;  %v11789_v61 = vpop.permute.xlu1 %11788 }
 0x947   : > { %11909 = vmatpush1.bf16.msra.mxu1 %v11810_v62  ;;  %11940 = vmatprep.mubr.bf16.mxu1 %v23998_v1 }
 0x948   : > { %11994 = vmatprep.subr.bf16.mxu1 %v11815_v29  ;;  %v11787_v26 = vpop.permute.xlu0 %11786 }
 0x949   : > { %v11825_v27 = vsel %vm3430_vm8, %v11787_v26, %v11789_v61  ;;  %v11824_v31 = vsel %vm3430_vm8, %v11785_v33, %v11787_v26 }
 0x94a   : > { %v11793_v50 = vpop.permute.xlu1 %11792 }
 0x94b   : > { %13883 = vmatmul.mubr.msk.bf16.vlgmr.msra.gmra.mrb[60].mxu0 %vm3840_vm0, %v20705_v41 }
 0x94c   : > { %11952 = vmatpush1.bf16.msra.mxu0 %v11812_v36  ;;  %11983 = vmatprep.mubr.bf16.mxu0 %v23998_v1  ;;  %v11791_v51 = vpop.permute.xlu0 %11790 }
 0x94d   : > { %12037 = vmatprep.subr.bf16.mxu0 %v11817_v52  ;;  %v11827_v42 = vsel %vm3430_vm8, %v11791_v51, %v11793_v50  ;;  %v11826_v56 = vsel %vm3430_vm8, %v11789_v61, %v11791_v51 }
 0x94e   : > { %13884 = vmatmul.mubr.msk.bf16.vlgmr.msra.gmra.mrb[60].mxu1 %vm3840_vm0, %v20705_v41  ;;  %v11797_v5 = vpop.permute.xlu1 %11796 }
 0x94f   : > { %11995 = vmatpush1.bf16.msra.mxu1 %v11814_v19  ;;  %12026 = vmatprep.mubr.bf16.mxu1 %v23998_v1 }
 0x950   : > { %12080 = vmatprep.subr.bf16.mxu1 %v11819_v11  ;;  %v11795_v0 = vpop.permute.xlu0 %11794 }
 0x951   : > { %v11829_v46 = vsel %vm3430_vm8, %v11795_v0, %v11797_v5  ;;  %v11828_v3 = vsel %vm3430_vm8, %v11793_v50, %v11795_v0 }
 0x952   : > { %v11801_v28 = vpop.permute.xlu1 %11800 }
 0x953   : > { %13885 = vmatmul.mubr.msk.bf16.vlgmr.msra.gmra.mrb[64].mxu0 %vm3840_vm0, %v20705_v41 }
 0x954   : > { %12038 = vmatpush1.bf16.msra.mxu0 %v11816_v60  ;;  %12069 = vmatprep.mubr.bf16.mxu0 %v23998_v1  ;;  %v11799_v20 = vpop.permute.xlu0 %11798 }
 0x955   : > { %12123 = vmatprep.subr.bf16.mxu0 %v11821_v45  ;;  %v11831_v10 = vsel %vm3430_vm8, %v11799_v20, %v11801_v28  ;;  %v11830_v2 = vsel %vm3430_vm8, %v11797_v5, %v11799_v20 }
 0x956   : > { %13886 = vmatmul.mubr.msk.bf16.vlgmr.msra.gmra.mrb[64].mxu1 %vm3840_vm0, %v20705_v41  ;;  %v11805_v14 = vpop.permute.xlu1 %11804 }
 0x957   : > { %12081 = vmatpush1.bf16.msra.mxu1 %v11818_v34  ;;  %12112 = vmatprep.mubr.bf16.mxu1 %v23998_v1 }
 0x958   : > { %12166 = vmatprep.subr.bf16.mxu1 %v11823_v9  ;;  %v11803_v12 = vpop.permute.xlu0 %11802 }
 0x959   : > { %v11833_v4 = vsel %vm3430_vm8, %v11803_v12, %v11805_v14  ;;  %v11832_v23 = vsel %vm3430_vm8, %v11801_v28, %v11803_v12 }
 0x95b   : > { %13887 = vmatmul.mubr.msk.bf16.vlgmr.msra.gmra.mrb[68].mxu0 %vm3840_vm0, %v20705_v41 }
 0x95c   : > { %12124 = vmatpush1.bf16.msra.mxu0 %v11820_v16  ;;  %12155 = vmatprep.mubr.bf16.mxu0 %v23998_v1  ;;  %v11807_v13 = vpop.permute.xlu0 %11806 }
 0x95d   : > { %12209 = vmatprep.subr.bf16.mxu0 %v11825_v27  ;;  %v11834_v47 = vsel %vm3430_vm8, %v11805_v14, %v11807_v13 }
 0x95e   : > { %13888 = vmatmul.mubr.msk.bf16.vlgmr.msra.gmra.mrb[68].mxu1 %vm3840_vm0, %v20705_v41 }
 0x95f   : > { %12167 = vmatpush1.bf16.msra.mxu1 %v11822_v18  ;;  %12198 = vmatprep.mubr.bf16.mxu1 %v23998_v1 }
 0x960   : > { %12252 = vmatprep.subr.bf16.mxu1 %v11827_v42  ;;  %v20854_v42 = vpop.permute.xlu1 %9599 }
 0x961   : > { %v20862_v28 = vadd.f32 %v20666_v17, %v20854_v42  ;;  %v20882_v17 = vadd.f32 %v20677_v40, %v20854_v42  ;;  %v20886_v14 = vadd.f32 %v20685_v35, %v20854_v42 }
 0x962   : > { %v20747_v21 = vpop.f32.mrb[36].mxu0 }
 0x963   : > { %v20750_v49 = vpop.f32.mrb[37].mxu0  ;;  %13889 = vmatmul.mubr.msk.bf16.vlgmr.msra.gmra.mrb[72].mxu0 %vm3840_vm0, %v20705_v41 }
 0x964   : > { %12210 = vmatpush1.bf16.msra.mxu0 %v11824_v31  ;;  %v20754_v59 = vpop.f32.mrb[38].mxu0  ;;  %12241 = vmatprep.mubr.bf16.mxu0 %v23998_v1  ;;  %v20858_v31 = vadd.f32 %v20661_v54, %v20854_v42 }
 0x965   : > { %v20758_v63 = vpop.f32.mrb[39].mxu0  ;;  %v20760_v38 = vpop.f32.mrb[36].mxu1  ;;  %12295 = vmatprep.subr.bf16.mxu0 %v11829_v46 }
 0x966   : > { %v20763_v39 = vpop.f32.mrb[37].mxu1  ;;  %13890 = vmatmul.mubr.msk.bf16.vlgmr.msra.gmra.mrb[72].mxu1 %vm3840_vm0, %v20705_v41  ;;  %v20864_v46 = vpop.permute.xlu0 %9604  ;;  %v20867_v20 = vmul.f32 0.2, %v20858_v31 }
 0x967   : > { %12253 = vmatpush1.bf16.msra.mxu1 %v11826_v56  ;;  %v20767_v24 = vpop.f32.mrb[38].mxu1  ;;  %12284 = vmatprep.mubr.bf16.mxu1 %v23998_v1  ;;  %v20870_v56 = vmul.f32 0.2, %v20862_v28  ;;  %v20878_v54 = vadd.f32 %v20675_v57, %v20864_v46  ;;  %v20890_v12 = vadd.f32 %v20690_v7, %v20864_v46  ;;  %v20900_v57 = vadd.f32 %v20747_v21, %v20854_v42 }
 0x968   : > { %v20770_v6 = vpop.f32.mrb[39].mxu1  ;;  %12338 = vmatprep.subr.bf16.mxu1 %v11831_v10  ;;  %v20874_v10 = vadd.f32 %v20668_v58, %v20864_v46  ;;  %v20909_v7 = vadd.f32 %v20750_v49, %v20854_v42  ;;  %v20919_v21 = vmul.f32 0.2, %v20882_v17  ;;  %v20930_v49 = vmul.f32 0.2, %v20886_v14 }
 0x969   : > { %v20941_v13 = vadd.f32 %v20767_v24, %v20864_v46 }
 0x96a   : > { %v20905_v35 = vmul.f32 0.2, %v20874_v10  ;;  %v20961_v24 = vmul.f32 0.2, %v20909_v7 }
 0x96b   : > { %13891 = vmatmul.mubr.msk.bf16.vlgmr.msra.gmra.mrb[76].mxu0 %vm3840_vm0, %v20705_v41 }
 0x96c   : > { %12296 = vmatpush1.bf16.msra.mxu0 %v11828_v3  ;;  %12327 = vmatprep.mubr.bf16.mxu0 %v23998_v1  ;;  %v20896_v3 = vadd.f32 %v20693_v48, %v20864_v46  ;;  %v20916_v48 = vmul.f32 0.2, %v20878_v54 }
 0x96d   : > { %12381 = vmatprep.subr.bf16.mxu0 %v11833_v4  ;;  %v20913_v4 = vadd.f32 %v20754_v59, %v20864_v46  ;;  %v20933_v59 = vmul.f32 0.2, %v20890_v12 }
 0x96e   : > { %13892 = vmatmul.mubr.msk.bf16.vlgmr.msra.gmra.mrb[76].mxu1 %vm3840_vm0, %v20705_v41 }
 0x96f   : > { %12339 = vmatpush1.bf16.msra.mxu1 %v11830_v2  ;;  %12370 = vmatprep.mubr.bf16.mxu1 %v23998_v1  ;;  %v20923_v2 = vadd.f32 %v20758_v63, %v20864_v46  ;;  %v20944_v63 = vmul.f32 0.2, %v20896_v3 }
 0x970   : > { %13902 = vmatprep.subr.bf16.mxu1 %v14711_v53 }
 0x973   : > { %13893 = vmatmul.mubr.msk.bf16.vlgmr.msra.gmra.mrb[80].mxu0 %vm3840_vm0, %v20705_v41 }
 0x974   : > { %12382 = vmatpush1.bf16.msra.mxu0 %v11832_v23  ;;  %12413 = vmatprep.mubr.bf16.mxu0 %v23998_v1  ;;  %v20937_v23 = vadd.f32 %v20763_v39, %v20854_v42 }
 0x976   : > { %13894 = vmatmul.mubr.msk.bf16.vlgmr.msra.gmra.mrb[80].mxu1 %vm3840_vm0, %v20705_v41 }
 0x977   : > { %13903 = vmatpush3.bf16.msra.mxu1 %v11834_v47  ;;  %13904 = vmatprep.mubr.msk.bf16.mxu1 %vm14712_vm9, %v14711_v53  ;;  %v20927_v53 = vadd.f32 %v20760_v38, %v20854_v42  ;;  %v20947_v38 = vmul.f32 0.2, %v20900_v57  ;;  %v20951_v47 = vadd.f32 %v20770_v6, %v20864_v46 }
 0x979   : > { %v20978_v39 = vmul.f32 0.2, %v20927_v53 }
 0x97b   : > { %13895 = vmatmul.mubr.msk.bf16.vlgmr.msra.gmra.mrb[84].mxu0 %vm3840_vm0, %v20705_v41 }
 0x97e   : > { %13905 = vmatmul.mubr.msk.bf16.vlgmr.msra.gmra.mrb[84].mxu1 %vm3840_vm0, %v20705_v41 }
 0x986   : > { %v11037_v55 = vpop.f32.mrb[40].mxu0 }
 0x987   : > { %v20792_v8 = vpop.f32.mrb[41].mxu0  ;;  %v20954_v40 = vadd.f32 %v11037_v55, %v20854_v42  ;;  %v20992_v55 = vmul.f32 0.2, %v20941_v13 }
 0x988   : > { %v20794_v22 = vpop.f32.mrb[42].mxu0 }
 0x989   : > { %v20796_v44 = vpop.f32.mrb[43].mxu0  ;;  %v20798_v1 = vpop.f32.mrb[40].mxu1  ;;  %24407 = vst [vmem:[#allocation59_spill] sm:$0xff] %v20954_v40 }
 0x98a   : > { %v20800_v32 = vpop.f32.mrb[41].mxu1 }
 0x98b   : > { %v20802_v30 = vpop.f32.mrb[42].mxu1 }
 0x98c   : > { %v20804_v37 = vpop.f32.mrb[43].mxu1 }
 0x9aa   : > { %v20806_v25 = vpop.f32.mrb[44].mxu0 }
 0x9ab   : > { %v20808_v62 = vpop.f32.mrb[45].mxu0 }
 0x9ac   : > { %v20810_v43 = vpop.f32.mrb[46].mxu0 }
 0x9ad   : > { %v20812_v29 = vpop.f32.mrb[47].mxu0  ;;  %v20814_v41 = vpop.f32.mrb[44].mxu1 }
 0x9ae   : > { %v20816_v36 = vpop.f32.mrb[45].mxu1 }
 0x9af   : > { %v20818_v33 = vpop.f32.mrb[46].mxu1 }
 0x9b0   : > { %v20820_v52 = vpop.f32.mrb[47].mxu1 }
 0x9ce   : > { %v20822_v15 = vpop.f32.mrb[48].mxu0 }
 0x9cf   : > { %v20824_v19 = vpop.f32.mrb[49].mxu0 }
 0x9d0   : > { %v20826_v11 = vpop.f32.mrb[50].mxu0 }
 0x9d1   : > { %v20828_v61 = vpop.f32.mrb[51].mxu0  ;;  %v20830_v26 = vpop.f32.mrb[48].mxu1 }
 0x9d2   : > { %24394 = vst [vmem:[#allocation35_spill] sm:$0xff] %v20828_v61  ;;  %24395 = vst [vmem:[#allocation36_spill] sm:$0xff] %v20830_v26  ;;  %v20832_v60 = vpop.f32.mrb[49].mxu1  ;;  %v21061_v26 = vadd.f32 %v20804_v37, %v20864_v46 }
 0x9d3   : > { %24396 = vst [vmem:[#allocation39_spill] sm:$0xff] %v20832_v60  ;;  %v20834_v45 = vpop.f32.mrb[50].mxu1  ;;  %v21045_v60 = vpop.permute.xlu1 %11627 }
 0x9d4   : > { %24397 = vst [vmem:[#allocation40_spill] sm:$0xff] %v20834_v45  ;;  %v20836_v34 = vpop.f32.mrb[51].mxu1 }
 0x9d5   : > { %24398 = vst [vmem:[#allocation38_spill] sm:$0xff] %v20836_v34 }
 0x9f2   : > { %v20838_v9 = vpop.f32.mrb[52].mxu0 }
 0x9f3   : > { %24399 = vst [vmem:[#allocation170_spill] sm:$0xff] %v20838_v9  ;;  %v20840_v50 = vpop.f32.mrb[53].mxu0 }
 0x9f4   : > { %24400 = vst [vmem:[#allocation171_spill] sm:$0xff] %v20840_v50  ;;  %v20842_v51 = vpop.f32.mrb[54].mxu0 }
 0x9f5   : > { %24401 = vst [vmem:[#allocation49_spill] sm:$0xff] %v20842_v51  ;;  %v20844_v16 = vpop.f32.mrb[55].mxu0  ;;  %v20846_v27 = vpop.f32.mrb[52].mxu1 }
 0x9f6   : > { %24402 = vst [vmem:[#allocation225_spill] sm:$0xff] %v20844_v16  ;;  %24403 = vst [vmem:[#allocation53_spill] sm:$0xff] %v20846_v27  ;;  %v20848_v5 = vpop.f32.mrb[53].mxu1  ;;  %v20996_v16 = vadd.f32 %v20796_v44, %v20864_v46 }
 0x9f7   : > { %24404 = vst [vmem:[#allocation51_spill] sm:$0xff] %v20848_v5  ;;  %v20850_v18 = vpop.f32.mrb[54].mxu1  ;;  %v20982_v5 = vadd.f32 %v20794_v22, %v20864_v46  ;;  %v11542_v22 = vmax.f32 %v20886_v14, %v20930_v49 }
 0x9f8   : > { %24405 = vst [vmem:[#allocation57_spill] sm:$0xff] %v20850_v18  ;;  %v20852_v0 = vpop.f32.mrb[55].mxu1  ;;  %v20968_v18 = vadd.f32 %v20792_v8, %v20854_v42  ;;  %v11541_v8 = vmax.f32 %v20882_v17, %v20919_v21  ;;  %24413 = vst [vmem:[#allocation93_spill] sm:$0xff] %v20996_v16  ;;  %v21007_v21 = vmul.f32 0.2, %v20951_v47 }
 0x9f9   : > { %24406 = vst [vmem:[#allocation56_spill] sm:$0xff] %v20852_v0  ;;  %v20964_v0 = vmul.f32 0.2, %v20913_v4  ;;  %24411 = vst [vmem:[#allocation88_spill] sm:$0xff] %v20982_v5  ;;  %v21026_v34 = vmul.f32 0.2, %v20982_v5 }
 0x9fa   : > { %24409 = vst [vmem:[#allocation58_spill] sm:$0xff] %v20968_v18  ;;  %24416 = vst [vmem:[#allocation121_spill] sm:$0xff] %v21007_v21  ;;  %v21019_v14 = vmul.f32 0.2, %v20968_v18  ;;  %v21043_v45 = vmul.f32 0.2, %v20996_v16  ;;  %v24422_v18 = vmax.f32 %v20858_v31, %v20867_v20  ;;  %v24425_v20 = vmax.f32 %v20874_v10, %v20905_v35 }
 0x9fb   : > { %24420 = vst [vmem:[#allocation122_spill] sm:$0xff] %v21026_v34 }
 0x9fc   : > { %24418 = vst [vmem:[#allocation120_spill] sm:$0xff] %v21019_v14  ;;  %24421 = vst [vmem:[#allocation129_spill] sm:$0xff] %v21043_v45 }
 0xa16   : > { %v20956_v58 = vpop.f32.mrb[56].mxu0 }
 0xa17   : > { %24408 = vst [vmem:[#allocation60_spill] sm:$0xff] %v20956_v58  ;;  %v20970_v6 = vpop.f32.mrb[57].mxu0  ;;  %v20975_v58 = vmul.f32 0.2, %v20923_v2 }
 0xa18   : > { %24410 = vst [vmem:[#allocation83_spill] sm:$0xff] %v20970_v6  ;;  %v20984_v27 = vpop.f32.mrb[58].mxu0  ;;  %v20989_v6 = vmul.f32 0.2, %v20937_v23 }
 0xa19   : > { %24412 = vst [vmem:[#allocation86_spill] sm:$0xff] %v20984_v27  ;;  %v20998_v51 = vpop.f32.mrb[59].mxu0  ;;  %v21000_v50 = vpop.f32.mrb[56].mxu1  ;;  %v21010_v27 = vmul.f32 0.2, %v20954_v40 }
 0xa1a   : > { %24414 = vst [vmem:[#allocation117_spill] sm:$0xff] %v20998_v51  ;;  %24415 = vst [vmem:[#allocation115_spill] sm:$0xff] %v21000_v50  ;;  %v11426_v9 = vpop.f32.mrb[57].mxu1  ;;  %v21034_v51 = vadd.f32 %v20800_v32, %v20854_v42 }
 0xa1b   : > { %24417 = vst [vmem:[#allocation119_spill] sm:$0xff] %v21010_v27  ;;  %v21021_v49 = vpop.f32.mrb[58].mxu1  ;;  %v21030_v9 = vadd.f32 %v20798_v1, %v20854_v42  ;;  %v21065_v1 = vadd.f32 %v20806_v25, %v20854_v42 }
 0xa1c   : > { %24419 = vst [vmem:[#allocation124_spill] sm:$0xff] %v21021_v49  ;;  %v11429_v50 = vpop.f32.mrb[59].mxu1  ;;  %v21055_v49 = vadd.f32 %v20802_v30, %v20864_v46  ;;  %v21076_v17 = vmul.f32 0.2, %v21034_v51 }
 0xa1d   : > { %v21068_v50 = vpop.permute.xlu0 %11632  ;;  %v21073_v27 = vmul.f32 0.2, %v21030_v9  ;;  %v21105_v31 = vmul.f32 0.2, %v21065_v1 }
 0xa1e   : > { %v11899_v44 = vpop.f32.mrb[60].mxu0  ;;  %v21092_v21 = vmul.f32 0.2, %v21055_v49 }
 0xa1f   : > { %v11900_v32 = vadd.f32 %v11899_v44, %v21045_v60  ;;  %v11901_v61 = vpop.f32.mrb[61].mxu0  ;;  %v21083_v44 = vadd.f32 %v20808_v62, %v20854_v42 }
 0xa20   : > { %v11902_v37 = vadd.f32 %v11901_v61, %v21045_v60  ;;  %v11903_v14 = vpop.f32.mrb[62].mxu0  ;;  %v24423_v61 = vmax.f32 %v20862_v28, %v20870_v56 }
 0xa21   : > { %v21088_v30 = vadd.f32 %v11900_v32, %v24422_v18  ;;  %v11904_v34 = vadd.f32 %v11903_v14, %v21068_v50  ;;  %v11905_v5 = vpop.f32.mrb[63].mxu0  ;;  %v11942_v40 = vpop.f32.mrb[60].mxu1  ;;  %v21102_v18 = vmul.f32 0.2, %v21061_v26 }
 0xa22   : > { %v21097_v25 = vadd.f32 %v11902_v37, %v24423_v61  ;;  %v11906_v62 = vadd.f32 %v11905_v5, %v21068_v50  ;;  %v11943_v45 = vadd.f32 %v11942_v40, %v21045_v60  ;;  %v11944_v16 = vpop.f32.mrb[61].mxu1  ;;  %v21117_v5 = vadd.f32 %v20810_v43, %v20864_v46 }
 0xa23   : > { %v21110_v14 = vadd.f32 %v11904_v34, %v24425_v20  ;;  %v11945_v28 = vadd.f32 %v11944_v16, %v21045_v60  ;;  %v11946_v56 = vpop.f32.mrb[62].mxu1  ;;  %12573 = vrot.lane.b32.xlu1 %v21088_v30, %s14702_s9  ;;  %v24427_v40 = vmax.f32 %v20878_v54, %v20916_v48  ;;  %v21130_v16 = vmul.f32 0.2, %v21083_v44 }
 0xa24   : > { %24424 = vst [vmem:[#allocation149_spill] sm:$0xff] %v21097_v25  ;;  %v21124_v37 = vadd.f32 %v11943_v45, %v11541_v8  ;;  %v11947_v34 = vadd.f32 %v11946_v56, %v21068_v50  ;;  %v11948_v10 = vpop.f32.mrb[63].mxu1  ;;  %12575 = vrot.lane.b32.xlu0 %v21097_v25, %s14702_s9  ;;  %v21134_v43 = vadd.f32 %v20812_v29, %v20864_v46 }
 0xa25   : > { %24426 = vst [vmem:[#allocation147_spill] sm:$0xff] %v21110_v14  ;;  %v21122_v32 = vadd.f32 %v11906_v62, %v24427_v40  ;;  %v21136_v35 = vadd.f32 %v11945_v28, %v11542_v22  ;;  %v11949_v54 = vadd.f32 %v11948_v10, %v21068_v50  ;;  %v21145_v8 = vadd.f32 %v20814_v41, %v20854_v42 }
 0xa26   : > { %v24429_v61 = vmax.f32 %v20890_v12, %v20933_v59  ;;  %v11985_v29 = vpop.f32.mrb[64].mxu0  ;;  %v21156_v20 = vadd.f32 %v20816_v36, %v20854_v42  ;;  %v24430_v28 = vmax.f32 %v20896_v3, %v20944_v63  ;;  %v21171_v36 = vmul.f32 0.2, %v21117_v5 }
 0xa27   : > { %24428 = vst [vmem:[#allocation153_spill] sm:$0xff] %v21122_v32  ;;  %v11986_v41 = vadd.f32 %v11985_v29, %v21045_v60  ;;  %v11987_v40 = vpop.f32.mrb[65].mxu0  ;;  %12629 = vrot.lane.b32.xlu1 %v21122_v32, %s14702_s9  ;;  %v21179_v10 = vmul.f32 0.2, %v21134_v43  ;;  %v24433_v12 = vmax.f32 %v20909_v7, %v20961_v24 }
 0xa28   : > { %v21150_v62 = vadd.f32 %v11947_v34, %v24429_v61  ;;  %v21161_v56 = vadd.f32 %v11949_v54, %v24430_v28  ;;  %v11988_v34 = vadd.f32 %v11987_v40, %v21045_v60  ;;  %v11989_v3 = vpop.f32.mrb[66].mxu0  ;;  %12627 = vrot.lane.b32.xlu0 %v21110_v14, %s14702_s9  ;;  %v24431_v54 = vmax.f32 %v20900_v57, %v20947_v38 }
 0xa29   : > { %v11990_v29 = vadd.f32 %v11989_v3, %v21068_v50  ;;  %v11991_v28 = vpop.f32.mrb[67].mxu0  ;;  %v12028_v59 = vpop.f32.mrb[64].mxu1  ;;  %v21188_v40 = vmul.f32 0.2, %v21145_v8  ;;  %v21198_v57 = vmul.f32 0.2, %v21156_v20  ;;  %v21202_v38 = vadd.f32 %v20818_v33, %v20864_v46 }
 0xa2a   : > { %v21184_v61 = vadd.f32 %v11986_v41, %v24431_v54  ;;  %v21193_v22 = vadd.f32 %v11988_v34, %v24433_v12  ;;  %v11992_v63 = vadd.f32 %v11991_v28, %v21068_v50  ;;  %v12029_v48 = vadd.f32 %v12028_v59, %v21045_v60  ;;  %v12030_v45 = vpop.f32.mrb[65].mxu1 }
 0xa2b   : > { %v24435_v41 = vmax.f32 %v20913_v4, %v20964_v0  ;;  %v12031_v7 = vadd.f32 %v12030_v45, %v21045_v60  ;;  %v12032_v24 = vpop.f32.mrb[66].mxu1  ;;  %v21214_v12 = vadd.f32 %v20820_v52, %v20864_v46  ;;  %v24437_v59 = vmax.f32 %v20923_v2, %v20975_v58  ;;  %v24451_v52 = vld [vmem:[#allocation120_spill] sm:$0xff] }
 0xa2c   : > { %24432 = vst [vmem:[#allocation154_spill] sm:$0xff] %v21184_v61  ;;  %24434 = vst [vmem:[#allocation176_spill] sm:$0xff] %v21193_v22  ;;  %12581 = vrot.lane.b32.xlu1 %v21184_v61, %s14702_s9  ;;  %v24439_v0 = vmax.f32 %v20927_v53, %v20978_v39  ;;  %v12033_v45 = vadd.f32 %v12032_v24, %v21068_v50  ;;  %v12034_v34 = vpop.f32.mrb[67].mxu1  ;;  %12583 = vrot.lane.b32.xlu0 %v21193_v22, %s14702_s9  ;;  %v24450_v39 = vld [vmem:[#allocation58_spill] sm:$0xff] }
 0xa2d   : > { %v21207_v3 = vadd.f32 %v11990_v29, %v24435_v41  ;;  %v21219_v33 = vadd.f32 %v11992_v63, %v24437_v59  ;;  %v21233_v54 = vadd.f32 %v20822_v15, %v20854_v42  ;;  %v24440_v58 = vmax.f32 %v20937_v23, %v20989_v6  ;;  %v24442_v41 = vld [vmem:[#allocation121_spill] sm:$0xff] }
 0xa2e   : > { %v21224_v4 = vadd.f32 %v12029_v48, %v24439_v0  ;;  %v12035_v53 = vadd.f32 %v12034_v34, %v21068_v50  ;;  %v21247_v63 = vadd.f32 %v20824_v19, %v20854_v42  ;;  %v24441_v15 = vmax.f32 %v20941_v13, %v20992_v55  ;;  %v12071_v23 = vpop.f32.mrb[68].mxu0 }
 0xa2f   : > { %24436 = vst [vmem:[#allocation178_spill] sm:$0xff] %v21207_v3  ;;  %24438 = vst [vmem:[#allocation181_spill] sm:$0xff] %v21219_v33  ;;  %v21238_v2 = vadd.f32 %v12031_v7, %v24440_v58  ;;  %v21255_v6 = vmul.f32 0.2, %v21202_v38  ;;  %v21259_v28 = vadd.f32 %v20826_v11, %v20864_v46  ;;  %v24443_v7 = vmax.f32 %v20951_v47, %v24442_v41  ;;  %v12073_v59 = vpop.f32.mrb[69].mxu0  ;;  %v24444_v11 = vld [vmem:[#allocation35_spill] sm:$0xff] }
 0xa30   : > { %v21252_v29 = vadd.f32 %v12033_v45, %v24441_v15  ;;  %v12072_v19 = vadd.f32 %v12071_v23, %v21045_v60  ;;  %12637 = vrot.lane.b32.xlu1 %v21219_v33, %s14702_s9  ;;  %v21272_v55 = vmul.f32 0.2, %v21214_v12  ;;  %v21276_v0 = vadd.f32 %v24444_v11, %v20864_v46  ;;  %v12075_v45 = vpop.f32.mrb[70].mxu0  ;;  %12635 = vrot.lane.b32.xlu0 %v21207_v3, %s14702_s9  ;;  %v24445_v58 = vld [vmem:[#allocation36_spill] sm:$0xff]  ;;  %v24446_v15 = vld [vmem:[#allocation59_spill] sm:$0xff] }
 0xa31   : > { %v21264_v24 = vadd.f32 %v12035_v53, %v24443_v7  ;;  %v12074_v47 = vadd.f32 %v12073_v59, %v21045_v60  ;;  %v21282_v34 = vmul.f32 0.2, %v21233_v54  ;;  %v21286_v53 = vadd.f32 %v24445_v58, %v20854_v42  ;;  %v24447_v23 = vld [vmem:[#allocation119_spill] sm:$0xff]  ;;  %v12077_v13 = vpop.f32.mrb[71].mxu0  ;;  %v12114_v59 = vpop.f32.mrb[68].mxu1 }
 0xa32   : > { %v24448_v41 = vmax.f32 %v24446_v15, %v24447_v23  ;;  %v12076_v11 = vadd.f32 %v12075_v45, %v21068_v50  ;;  %v21295_v48 = vmul.f32 0.2, %v21247_v63  ;;  %v24452_v33 = vmax.f32 %v24450_v39, %v24451_v52  ;;  %v12116_v25 = vpop.f32.mrb[69].mxu1  ;;  %v24453_v45 = vld [vmem:[#allocation39_spill] sm:$0xff]  ;;  %v24454_v23 = vld [vmem:[#allocation88_spill] sm:$0xff] }
 0xa33   : > { %v12078_v58 = vadd.f32 %v12077_v13, %v21068_v50  ;;  %v12115_v32 = vadd.f32 %v12114_v59, %v21045_v60  ;;  %v21309_v15 = vadd.f32 %v24453_v45, %v20854_v42  ;;  %v12118_v52 = vpop.f32.mrb[70].mxu1  ;;  %v21320_v39 = vmul.f32 0.2, %v21276_v0  ;;  %v24457_v13 = vld [vmem:[#allocation93_spill] sm:$0xff] }
 0xa34   : > { %v21291_v7 = vadd.f32 %v12072_v19, %v24448_v41  ;;  %v21300_v22 = vadd.f32 %v12074_v47, %v24452_v33  ;;  %v21305_v19 = vmul.f32 0.2, %v21259_v28  ;;  %v24455_v41 = vld [vmem:[#allocation122_spill] sm:$0xff]  ;;  %v12117_v33 = vadd.f32 %v12116_v25, %v21045_v60  ;;  %v24458_v47 = vld [vmem:[#allocation129_spill] sm:$0xff]  ;;  %v12120_v25 = vpop.f32.mrb[71].mxu1 }
 0xa35   : > { %v24456_v3 = vmax.f32 %v24454_v23, %v24455_v41  ;;  %v24459_v59 = vmax.f32 %v24457_v13, %v24458_v47  ;;  %v24461_v45 = vmax.f32 %v21030_v9, %v21073_v27  ;;  %v24462_v41 = vld [vmem:[#allocation40_spill] sm:$0xff]  ;;  %v12121_v27 = vadd.f32 %v12120_v25, %v21068_v50 }
 0xa36   : > { %24449 = vst [vmem:[#allocation179_spill] sm:$0xff] %v21291_v7  ;;  %12589 = vrot.lane.b32.xlu1 %v21291_v7, %s14702_s9  ;;  %12591 = vrot.lane.b32.xlu0 %v21300_v22, %s14702_s9  ;;  %v21340_v7 = vadd.f32 %v24462_v41, %v20864_v46  ;;  %v11580_v9 = vmax.f32 %v21202_v38, %v21255_v6 }
 0xa37   : > { %v21314_v61 = vadd.f32 %v12076_v11, %v24456_v3  ;;  %v21325_v14 = vadd.f32 %v12078_v58, %v24459_v59  ;;  %v21330_v23 = vadd.f32 %v12115_v32, %v24461_v45  ;;  %v12119_v3 = vadd.f32 %v12118_v52, %v21068_v50  ;;  %v24464_v52 = vld [vmem:[#allocation38_spill] sm:$0xff] }
 0xa38   : > { %v21336_v11 = vmul.f32 0.2, %v21286_v53  ;;  %v24463_v58 = vmax.f32 %v21034_v51, %v21076_v17  ;;  %v11581_v32 = vmax.f32 %v21214_v12, %v21272_v55  ;;  %v21354_v47 = vadd.f32 %v24464_v52, %v20864_v46  ;;  %v12157_v51 = vpop.f32.mrb[72].mxu0 }
 0xa39   : > { %24460 = vst [vmem:[#allocation186_spill] sm:$0xff] %v21325_v14  ;;  %v24465_v59 = vmax.f32 %v21055_v49, %v21092_v21  ;;  %v11555_v17 = vmax.f32 %v21233_v54, %v21282_v34  ;;  %v24466_v38 = vmax.f32 %v21061_v26, %v21102_v18  ;;  %v12158_v6 = vadd.f32 %v12157_v51, %v21045_v60  ;;  %v12159_v55 = vpop.f32.mrb[73].mxu0  ;;  %v12200_v25 = vpop.f32.mrb[72].mxu1 }
 0xa3a   : > { %v21345_v13 = vadd.f32 %v12117_v33, %v24463_v58  ;;  %v21364_v33 = vmul.f32 0.2, %v21309_v15  ;;  %12645 = vrot.lane.b32.xlu1 %v21325_v14, %s14702_s9  ;;  %v11556_v21 = vmax.f32 %v21247_v63, %v21295_v48  ;;  %v11582_v49 = vmax.f32 %v21259_v28, %v21305_v19  ;;  %v12161_v26 = vpop.f32.mrb[74].mxu0  ;;  %12643 = vrot.lane.b32.xlu0 %v21314_v61, %s14702_s9  ;;  %v12202_v51 = vpop.f32.mrb[73].mxu1 }
 0xa3b   : > { %v21359_v45 = vadd.f32 %v12119_v3, %v24465_v59  ;;  %v21369_v12 = vadd.f32 %v12121_v27, %v24466_v38  ;;  %v12160_v34 = vadd.f32 %v12159_v55, %v21045_v60  ;;  %v21386_v3 = vmul.f32 0.2, %v21340_v7  ;;  %v12163_v19 = vpop.f32.mrb[75].mxu0 }
 0xa3c   : > { %v24467_v48 = vmax.f32 %v21065_v1, %v21105_v31  ;;  %v12162_v28 = vadd.f32 %v12161_v26, %v21068_v50  ;;  %v21395_v41 = vmul.f32 0.2, %v21354_v47  ;;  %v24468_v58 = vmax.f32 %v21083_v44, %v21130_v16  ;;  %v24470_v31 = vld [vmem:[#allocation170_spill] sm:$0xff]  ;;  %v12204_v16 = vpop.f32.mrb[74].mxu1 }
 0xa3d   : > { %v12164_v52 = vadd.f32 %v12163_v19, %v21068_v50  ;;  %v12201_v59 = vadd.f32 %v12200_v25, %v21045_v60  ;;  %v11558_v1 = vmax.f32 %v21309_v15, %v21364_v33  ;;  %v21408_v38 = vadd.f32 %v24470_v31, %v20854_v42  ;;  %v24476_v19 = vld [vmem:[#allocation49_spill] sm:$0xff] }
 0xa3e   : > { %v21391_v63 = vadd.f32 %v12158_v6, %v24467_v48  ;;  %v21400_v27 = vadd.f32 %v12160_v34, %v24468_v58  ;;  %v24471_v6 = vmax.f32 %v21117_v5, %v21171_v36  ;;  %v12203_v44 = vadd.f32 %v12202_v51, %v21045_v60  ;;  %v24472_v34 = vld [vmem:[#allocation171_spill] sm:$0xff]  ;;  %v24477_v58 = vld [vmem:[#allocation225_spill] sm:$0xff] }
 0xa3f   : > { %v21420_v26 = vadd.f32 %v24472_v34, %v20854_v42  ;;  %v24473_v15 = vmax.f32 %v21134_v43, %v21179_v10  ;;  %v24475_v5 = vmax.f32 %v21145_v8, %v21188_v40  ;;  %v12205_v48 = vadd.f32 %v12204_v16, %v21068_v50  ;;  %v24479_v51 = vld [vmem:[#allocation53_spill] sm:$0xff]  ;;  %v12243_v16 = vpop.f32.mrb[76].mxu0  ;;  %v24480_v34 = vld [vmem:[#allocation51_spill] sm:$0xff] }
 0xa40   : > { %24469 = vst [vmem:[#allocation188_spill] sm:$0xff] %v21400_v27  ;;  %v21413_v55 = vadd.f32 %v12162_v28, %v24471_v6  ;;  %12597 = vrot.lane.b32.xlu1 %v21391_v63, %s14702_s9  ;;  %v12206_v28 = vpop.f32.mrb[75].mxu1  ;;  %12599 = vrot.lane.b32.xlu0 %v21400_v27, %s14702_s9  ;;  %v21437_v25 = vadd.f32 %v24476_v19, %v20864_v46 }
 0xa41   : > { %v21425_v33 = vadd.f32 %v12164_v52, %v24473_v15  ;;  %v21430_v36 = vadd.f32 %v12201_v59, %v24475_v5  ;;  %v21441_v43 = vadd.f32 %v24477_v58, %v20864_v46  ;;  %v24478_v10 = vmax.f32 %v21156_v20, %v21198_v57  ;;  %v24481_v57 = vld [vmem:[#allocation57_spill] sm:$0xff] }
 0xa42   : > { %v12207_v40 = vadd.f32 %v12206_v28, %v21068_v50  ;;  %v11584_v52 = vmax.f32 %v21340_v7, %v21386_v3  ;;  %v11585_v59 = vmax.f32 %v21354_v47, %v21395_v41  ;;  %v21455_v31 = vadd.f32 %v24479_v51, %v20854_v42  ;;  %v12245_v47 = vpop.f32.mrb[77].mxu0  ;;  %v24482_v41 = vld [vmem:[#allocation56_spill] sm:$0xff]  ;;  %v12286_v51 = vpop.f32.mrb[76].mxu1 }
 0xa43   : > { %24474 = vst [vmem:[#allocation198_spill] sm:$0xff] %v21425_v33  ;;  %v21446_v8 = vadd.f32 %v12203_v44, %v24478_v10  ;;  %v21457_v6 = vadd.f32 %v12205_v48, %v11580_v9  ;;  %v21461_v20 = vadd.f32 %v24480_v34, %v20854_v42  ;;  %v21465_v44 = vadd.f32 %v24481_v57, %v20864_v46  ;;  %v12247_v28 = vpop.f32.mrb[78].mxu0 }
 0xa44   : > { %v21467_v15 = vadd.f32 %v12207_v40, %v11581_v32  ;;  %v12244_v7 = vadd.f32 %v12243_v16, %v21045_v60  ;;  %12653 = vrot.lane.b32.xlu1 %v21425_v33, %s14702_s9  ;;  %v11505_v9 = vmul.f32 0.2, %v21408_v38  ;;  %v11506_v3 = vmul.f32 0.2, %v21420_v26  ;;  %12651 = vrot.lane.b32.xlu0 %v21413_v55, %s14702_s9  ;;  %v12249_v40 = vpop.f32.mrb[79].mxu0 }
 0xa45   : > { %v21476_v5 = vadd.f32 %v24482_v41, %v20864_v46  ;;  %v12246_v48 = vadd.f32 %v12245_v47, %v21045_v60  ;;  %v11532_v32 = vmul.f32 0.2, %v21437_v25  ;;  %v11533_v19 = vmul.f32 0.2, %v21441_v43  ;;  %v12288_v41 = vpop.f32.mrb[77].mxu1 }
 0xa46   : > { %v21483_v58 = vadd.f32 %v12244_v7, %v11555_v17  ;;  %v12248_v10 = vadd.f32 %v12247_v28, %v21068_v50  ;;  %v11507_v16 = vmul.f32 0.2, %v21455_v31  ;;  %v12250_v57 = vadd.f32 %v12249_v40, %v21068_v50  ;;  %v12290_v7 = vpop.f32.mrb[78].mxu1 }
 0xa47   : > { %v21487_v34 = vadd.f32 %v12246_v48, %v11556_v21  ;;  %v12287_v47 = vadd.f32 %v12286_v51, %v21045_v60  ;;  %v11508_v18 = vmul.f32 0.2, %v21461_v20  ;;  %v11534_v54 = vmul.f32 0.2, %v21465_v44 }
 0xa48   : > { %v21493_v33 = vadd.f32 %v12248_v10, %v11582_v49  ;;  %v12289_v17 = vadd.f32 %v12288_v41, %v21045_v60  ;;  %12605 = vrot.lane.b32.xlu1 %v21483_v58, %s14702_s9  ;;  %v11535_v21 = vmul.f32 0.2, %v21476_v5  ;;  %v24483_v48 = vmax.f32 %v21276_v0, %v21320_v39  ;;  %v12292_v10 = vpop.f32.mrb[79].mxu1 }
 0xa49   : > { %v24485_v40 = vmax.f32 %v21286_v53, %v21336_v11  ;;  %v12291_v49 = vadd.f32 %v12290_v7, %v21068_v50  ;;  %12607 = vrot.lane.b32.xlu0 %v21487_v34, %s14702_s9  ;;  %v11559_v41 = vmax.f32 %v21408_v38, %v11505_v9  ;;  %v11560_v27 = vmax.f32 %v21420_v26, %v11506_v3  ;;  %v24486_v7 = vld [vmem:[#allocation60_spill] sm:$0xff]  ;;  %v24487_v38 = vld [vmem:[#allocation83_spill] sm:$0xff] }
 0xa4a   : > { %v21502_v28 = vadd.f32 %v12250_v57, %v24483_v48  ;;  %v21514_v14 = vadd.f32 %v12289_v17, %v11558_v1  ;;  %v12293_v0 = vadd.f32 %v12292_v10, %v21068_v50  ;;  %v11586_v39 = vmax.f32 %v21437_v25, %v11532_v32 }
 0xa4b   : > { %v21507_v51 = vadd.f32 %v12287_v47, %v24485_v40  ;;  %v11587_v53 = vmax.f32 %v21441_v43, %v11533_v19  ;;  %v11561_v11 = vmax.f32 %v21455_v31, %v11507_v16  ;;  %v21520_v57 = vadd.f32 %v12291_v49, %v11584_v52  ;;  %v12329_v47 = vpop.f32.mrb[80].mxu0  ;;  %v24489_v16 = vld [vmem:[#allocation117_spill] sm:$0xff] }
 0xa4c   : > { %24484 = vst [vmem:[#allocation196_spill] sm:$0xff] %v21502_v28  ;;  %v14020_v48 = vadd.f32 %v24486_v7, %v20854_v42  ;;  %v14021_v9 = vadd.f32 %v24487_v38, %v20854_v42  ;;  %v21526_v26 = vadd.f32 %v12293_v0, %v11585_v59  ;;  %v12330_v1 = vadd.f32 %v12329_v47, %v21045_v60  ;;  %v12331_v3 = vpop.f32.mrb[81].mxu0  ;;  %v24488_v59 = vld [vmem:[#allocation86_spill] sm:$0xff] }
 0xa4d   : > { %12577 = vrot.lane.b32.xlu1 %v21124_v37, %s14702_s9  ;;  %v11562_v25 = vmax.f32 %v21461_v20, %v11508_v18  ;;  %v11588_v43 = vmax.f32 %v21465_v44, %v11534_v54  ;;  %v11589_v52 = vmax.f32 %v21476_v5, %v11535_v21  ;;  %v12332_v31 = vadd.f32 %v12331_v3, %v21045_v60  ;;  %v12333_v32 = vpop.f32.mrb[82].mxu0  ;;  %v12372_v54 = vpop.f32.mrb[80].mxu1  ;;  %v24490_v44 = vld [vmem:[#allocation115_spill] sm:$0xff]  ;;  %v24491_v3 = vld [vmem:[#allocation124_spill] sm:$0xff] }
 0xa4e   : > { %12659 = vrot.lane.b32.xlu0 %v21493_v33, %s14702_s9  ;;  %v14022_v19 = vadd.f32 %v24488_v59, %v20864_v46  ;;  %v14023_v17 = vadd.f32 %v24489_v16, %v20864_v46  ;;  %v21541_v40 = vadd.f32 %v12330_v1, %v11559_v41  ;;  %v12334_v18 = vadd.f32 %v12333_v32, %v21068_v50  ;;  %v12335_v20 = vpop.f32.mrb[83].mxu0  ;;  %v12374_v0 = vpop.f32.mrb[81].mxu1 }
 0xa4f   : > { %v14024_v5 = vadd.f32 %v24490_v44, %v20854_v42  ;;  %v21546_v21 = vadd.f32 %v12332_v31, %v11560_v27  ;;  %v12336_v49 = vadd.f32 %v12335_v20, %v21068_v50  ;;  %v12373_v10 = vadd.f32 %v12372_v54, %v21045_v60  ;;  %v12376_v1 = vpop.f32.mrb[82].mxu1 }
 0xa50   : > { %v11509_v47 = vmul.f32 0.2, %v14020_v48  ;;  %v11510_v7 = vmul.f32 0.2, %v14021_v9  ;;  %v21550_v38 = vadd.f32 %v12334_v18, %v11586_v39  ;;  %v12375_v41 = vadd.f32 %v12374_v0, %v21045_v60  ;;  %v12378_v59 = vpop.f32.mrb[83].mxu1 }
 0xa51   : > { %12661 = vrot.lane.b32.xlu1 %v21502_v28, %s14702_s9  ;;  %v14025_v42 = vadd.f32 %v24491_v3, %v20864_v46  ;;  %v21557_v27 = vadd.f32 %v12336_v49, %v11587_v53  ;;  %v21559_v31 = vadd.f32 %v12373_v10, %v11561_v11  ;;  %v12377_v32 = vadd.f32 %v12376_v1, %v21068_v50  ;;  %v12415_v46 = vpop.f32.mrb[84].mxu0 }
 0xa52   : > { %12579 = vrot.lane.b32.xlu0 %v21136_v35, %s14702_s9  ;;  %v11536_v39 = vmul.f32 0.2, %v14022_v19  ;;  %v11537_v16 = vmul.f32 0.2, %v14023_v17  ;;  %v21564_v18 = vadd.f32 %v12375_v41, %v11562_v25  ;;  %v12379_v20 = vadd.f32 %v12378_v59, %v21068_v50  ;;  %v12417_v10 = vpop.f32.mrb[85].mxu0 }
 0xa53   : > { %v11511_v54 = vmul.f32 0.2, %v14024_v5  ;;  %v21567_v44 = vadd.f32 %v12377_v32, %v11588_v43  ;;  %v11563_v53 = vmax.f32 %v14020_v48, %v11509_v47  ;;  %v12416_v11 = vadd.f32 %v12415_v46, %v21045_v60  ;;  %v12419_v41 = vpop.f32.mrb[86].mxu0  ;;  %v12458_v47 = vpop.f32.mrb[84].mxu1 }
 0xa54   : > { %v21569_v49 = vadd.f32 %v12379_v20, %v11589_v52  ;;  %v11564_v0 = vmax.f32 %v14021_v9, %v11510_v7  ;;  %v11538_v1 = vmul.f32 0.2, %v14025_v42  ;;  %v12418_v25 = vadd.f32 %v12417_v10, %v21045_v60  ;;  %v12421_v52 = vpop.f32.mrb[87].mxu0  ;;  %v13906_v46 = vpop.f32.mrb[85].mxu1 }
 0xa55   : > { %12633 = vrot.lane.b32.xlu1 %v21161_v56, %s14702_s9  ;;  %v11590_v43 = vmax.f32 %v14022_v19, %v11536_v39  ;;  %v11591_v3 = vmax.f32 %v14023_v17, %v11537_v16  ;;  %v21577_v32 = vadd.f32 %v12416_v11, %v11563_v53  ;;  %v12420_v48 = vadd.f32 %v12419_v41, %v21068_v50  ;;  %v12461_v28 = vpop.f32.mrb[86].mxu1 }
 0xa56   : > { %12631 = vrot.lane.b32.xlu0 %v21150_v62, %s14702_s9  ;;  %v11565_v59 = vmax.f32 %v14024_v5, %v11511_v54  ;;  %v21580_v20 = vadd.f32 %v12418_v25, %v11564_v0  ;;  %v12422_v9 = vadd.f32 %v12421_v52, %v21068_v50  ;;  %v12459_v7 = vadd.f32 %v12458_v47, %v21045_v60  ;;  %v13907_v16 = vpop.f32.mrb[87].mxu1 }
 0xa57   : > { %v21584_v10 = vadd.f32 %v12420_v48, %v11590_v43  ;;  %v11592_v19 = vmax.f32 %v14025_v42, %v11538_v1  ;;  %v12462_v5 = vadd.f32 %v12461_v28, %v21068_v50  ;;  %v24493_v1 = vld [vmem:[#allocation147_spill] sm:$0xff] }
 0xa58   : > { %v21588_v17 = vadd.f32 %v12422_v9, %v11591_v3  ;;  %v21590_v39 = vadd.f32 %v12459_v7, %v11565_v59  ;;  %v24495_v3 = vld [vmem:[#allocation154_spill] sm:$0xff]  ;;  %v24499_v16 = vld [vmem:[#allocation179_spill] sm:$0xff] }
 0xa59   : > { %12613 = vrot.lane.b32.xlu1 %v21541_v40, %s14702_s9  ;;  %v21595_v54 = vadd.f32 %v12462_v5, %v11592_v19  ;;  %v24497_v9 = vld [vmem:[#allocation178_spill] sm:$0xff] }
 0xa5a   : > { %12615 = vrot.lane.b32.xlu0 %v21546_v21, %s14702_s9 }
 0xa5d   : > { %12585 = vrot.lane.b32.xlu1 %v21224_v4, %s14702_s9 }
 0xa5e   : > { %12667 = vrot.lane.b32.xlu0 %v21550_v38, %s14702_s9 }
 0xa61   : > { %12669 = vrot.lane.b32.xlu1 %v21557_v27, %s14702_s9 }
 0xa62   : > { %12587 = vrot.lane.b32.xlu0 %v21238_v2, %s14702_s9 }
 0xa65   : > { %12641 = vrot.lane.b32.xlu1 %v21264_v24, %s14702_s9 }
 0xa66   : > { %12639 = vrot.lane.b32.xlu0 %v21252_v29, %s14702_s9 }
 0xa69   : > { %12621 = vrot.lane.b32.xlu1 %v21577_v32, %s14702_s9 }
 0xa6a   : > { %12623 = vrot.lane.b32.xlu0 %v21580_v20, %s14702_s9 }
 0xa6d   : > { %12593 = vrot.lane.b32.xlu1 %v21330_v23, %s14702_s9 }
 0xa6e   : > { %12675 = vrot.lane.b32.xlu0 %v21584_v10, %s14702_s9 }
 0xa71   : > { %12677 = vrot.lane.b32.xlu1 %v21588_v17, %s14702_s9 }
 0xa72   : > { %12595 = vrot.lane.b32.xlu0 %v21345_v13, %s14702_s9 }
 0xa75   : > { %12649 = vrot.lane.b32.xlu1 %v21369_v12, %s14702_s9 }
 0xa76   : > { %12647 = vrot.lane.b32.xlu0 %v21359_v45, %s14702_s9 }
 0xa79   : > { %12601 = vrot.lane.b32.xlu1 %v21430_v36, %s14702_s9 }
 0xa7a   : > { %12603 = vrot.lane.b32.xlu0 %v21446_v8, %s14702_s9 }
 0xa7d   : > { %12657 = vrot.lane.b32.xlu1 %v21467_v15, %s14702_s9 }
 0xa7e   : > { %12655 = vrot.lane.b32.xlu0 %v21457_v6, %s14702_s9 }
 0xa81   : > { %12609 = vrot.lane.b32.xlu1 %v21507_v51, %s14702_s9 }
 0xa82   : > { %12611 = vrot.lane.b32.xlu0 %v21514_v14, %s14702_s9 }
 0xa85   : > { %12665 = vrot.lane.b32.xlu1 %v21526_v26, %s14702_s9 }
 0xa86   : > { %12663 = vrot.lane.b32.xlu0 %v21520_v57, %s14702_s9 }
 0xa89   : > { %12617 = vrot.lane.b32.xlu1 %v21559_v31, %s14702_s9 }
 0xa8a   : > { %12619 = vrot.lane.b32.xlu0 %v21564_v18, %s14702_s9 }
 0xa8d   : > { %12673 = vrot.lane.b32.xlu1 %v21569_v49, %s14702_s9 }
 0xa8e   : > { %12671 = vrot.lane.b32.xlu0 %v21567_v44, %s14702_s9 }
 0xa91   : > { %12625 = vrot.lane.b32.xlu1 %v21590_v39, %s14702_s9 }
 0xa92   : > { %12679 = vrot.lane.b32.xlu0 %v21595_v54, %s14702_s9  ;;  %s14269_s9 = smul.u32 384, %s14928_s14 }
 0xa95   : > { %v12574_v60 = vpop.permute.xlu1 %12573 }
 0xa96   : > { %v12576_v50 = vpop.permute.xlu0 %12575 }
 0xa97   : > { %v12682_v28 = vsel %vm840_vm1, %v12574_v60, %v12576_v50 }
 0xa98   : > { %v21655_v42 = vadd.f32 %v12682_v28, %v21088_v30 }
 0xa99   : > { %v12630_v53 = vpop.permute.xlu1 %12629 }
 0xa9a   : > { %24492 = vst [vmem:[#allocation206_spill] sm:$0xff] %v21655_v42  ;;  %v12628_v11 = vpop.permute.xlu0 %12627  ;;  %12896 = vrot.lane.b32.xlu1 %v21655_v42, %s14704_s23 }
 0xa9b   : > { %v12708_v0 = vsel %vm840_vm1, %v12628_v11, %v12630_v53 }
 0xa9c   : > { %v21661_v25 = vadd.f32 %v12708_v0, %v24493_v1 }
 0xa9e   : > { %24494 = vst [vmem:[#allocation208_spill] sm:$0xff] %v21661_v25  ;;  %v12582_v41 = vpop.permute.xlu1 %12581  ;;  %v21663_v43 = vpop.permute.xlu0 %12583  ;;  %12950 = vrot.lane.b32.xlu0 %v21661_v25, %s14704_s23 }
 0xa9f   : > { %v12686_v30 = vsel %vm840_vm1, %v12582_v41, %v21663_v43 }
 0xaa0   : > { %v21670_v48 = vadd.f32 %v12686_v30, %v24495_v3 }
 0xaa2   : > { %24496 = vst [vmem:[#allocation211_spill] sm:$0xff] %v21670_v48  ;;  %v21672_v52 = vpop.permute.xlu1 %12637  ;;  %v12636_v47 = vpop.permute.xlu0 %12635  ;;  %12904 = vrot.lane.b32.xlu1 %v21670_v48, %s14704_s23 }
 0xaa3   : > { %v12712_v59 = vsel %vm840_vm1, %v12636_v47, %v21672_v52 }
 0xaa4   : > { %v21679_v7 = vadd.f32 %v12712_v59, %v24497_v9 }
 0xaa6   : > { %24498 = vst [vmem:[#allocation212_spill] sm:$0xff] %v21679_v7  ;;  %12958 = vrot.lane.b32.xlu0 %v21679_v7, %s14704_s23 }
 0xaa8   : > { %v21681_v46 = vpop.permute.xlu1 %12589  ;;  %v21683_v19 = vpop.permute.xlu0 %12591 }
 0xaa9   : > { %v12690_v5 = vsel %vm840_vm1, %v21681_v46, %v21683_v19 }
 0xaaa   : > { %v21691_v60 = vadd.f32 %v12690_v5, %v24499_v16 }
 0xaac   : > { %24500 = vst [vmem:[#allocation220_spill] sm:$0xff] %v21691_v60  ;;  %v21693_v28 = vpop.permute.xlu1 %12645  ;;  %v21695_v11 = vpop.permute.xlu0 %12643  ;;  %12912 = vrot.lane.b32.xlu1 %v21691_v60, %s14704_s23 }
 0xaad   : > { %v12716_v0 = vsel %vm840_vm1, %v21695_v11, %v21693_v28 }
 0xaae   : > { %v21703_v1 = vadd.f32 %v12716_v0, %v21314_v61 }
 0xab0   : > { %24501 = vst [vmem:[#allocation217_spill] sm:$0xff] %v21703_v1  ;;  %12966 = vrot.lane.b32.xlu0 %v21703_v1, %s14704_s23 }
 0xab2   : > { %v21705_v30 = vpop.permute.xlu1 %12597  ;;  %v21707_v3 = vpop.permute.xlu0 %12599 }
 0xab3   : > { %v12694_v59 = vsel %vm840_vm1, %v21705_v30, %v21707_v3 }
 0xab4   : > { %v21715_v9 = vadd.f32 %v12694_v59, %v21391_v63 }
 0xab6   : > { %24502 = vst [vmem:[#allocation223_spill] sm:$0xff] %v21715_v9  ;;  %v21717_v5 = vpop.permute.xlu1 %12653  ;;  %v21719_v16 = vpop.permute.xlu0 %12651  ;;  %12920 = vrot.lane.b32.xlu1 %v21715_v9, %s14704_s23 }
 0xab7   : > { %v12720_v61 = vsel %vm840_vm1, %v21719_v16, %v21717_v5 }
 0xab8   : > { %v21727_v0 = vadd.f32 %v12720_v61, %v21413_v55  ;;  %v24505_v55 = vld [vmem:[#allocation149_spill] sm:$0xff] }
 0xaba   : > { %24503 = vst [vmem:[#allocation173_spill] sm:$0xff] %v21727_v0  ;;  %v21729_v1 = vpop.permute.xlu1 %12605  ;;  %12974 = vrot.lane.b32.xlu0 %v21727_v0, %s14704_s23 }
 0xabb   : > { %v21731_v60 = vpop.permute.xlu0 %12607 }
 0xabc   : > { %v12698_v63 = vsel %vm840_vm1, %v21729_v1, %v21731_v60 }
 0xabd   : > { %v21739_v59 = vadd.f32 %v12698_v63, %v21483_v58 }
 0xabf   : > { %24504 = vst [vmem:[#allocation235_spill] sm:$0xff] %v21739_v59  ;;  %v12578_v9 = vpop.permute.xlu1 %12577  ;;  %12928 = vrot.lane.b32.xlu1 %v21739_v59, %s14704_s23 }
 0xac0   : > { %v12683_v7 = vsel %vm840_vm1, %v12576_v50, %v12578_v9  ;;  %v21742_v48 = vpop.permute.xlu0 %12659 }
 0xac1   : > { %v21747_v61 = vadd.f32 %v12683_v7, %v24505_v55 }
 0xac3   : > { %24506 = vst [vmem:[#allocation37_spill] sm:$0xff] %v21747_v61  ;;  %12898 = vrot.lane.b32.xlu0 %v21747_v61, %s14704_s23  ;;  %v21751_v0 = vpop.permute.xlu1 %12661 }
 0xac4   : > { %v12724_v58 = vsel %vm840_vm1, %v21742_v48, %v21751_v0  ;;  %v12580_v63 = vpop.permute.xlu0 %12579 }
 0xac5   : > { %v21757_v50 = vadd.f32 %v12724_v58, %v21493_v33  ;;  %v12684_v25 = vsel %vm840_vm1, %v12578_v9, %v12580_v63  ;;  %v12685_v59 = vsel %vm840_vm1, %v12580_v63, %v12582_v41  ;;  %v24508_v58 = vld [vmem:[#allocation153_spill] sm:$0xff] }
 0xac6   : > { %v21762_v7 = vadd.f32 %v12684_v25, %v21124_v37  ;;  %v21769_v42 = vadd.f32 %v12685_v59, %v21136_v35 }
 0xac7   : > { %24507 = vst [vmem:[#allocation47_spill] sm:$0xff] %v21757_v50  ;;  %12982 = vrot.lane.b32.xlu0 %v21757_v50, %s14704_s23  ;;  %v12634_v55 = vpop.permute.xlu1 %12633 }
 0xac8   : > { %v12632_v61 = vpop.permute.xlu0 %12631  ;;  %12900 = vrot.lane.b32.xlu1 %v21762_v7, %s14704_s23  ;;  %v12711_v37 = vsel %vm840_vm1, %v12634_v55, %v12636_v47 }
 0xac9   : > { %v12709_v33 = vsel %vm840_vm1, %v12630_v53, %v12632_v61  ;;  %v12710_v9 = vsel %vm840_vm1, %v12632_v61, %v12634_v55  ;;  %v21789_v53 = vadd.f32 %v12711_v37, %v21161_v56 }
 0xaca   : > { %v21774_v41 = vadd.f32 %v12709_v33, %v24508_v58  ;;  %v21786_v35 = vadd.f32 %v12710_v9, %v21150_v62  ;;  %v24509_v62 = vld [vmem:[#allocation176_spill] sm:$0xff] }
 0xacb   : > { %12902 = vrot.lane.b32.xlu0 %v21769_v42, %s14704_s23  ;;  %v21779_v25 = vpop.permute.xlu1 %12613 }
 0xacc   : > { %v21781_v63 = vpop.permute.xlu0 %12615  ;;  %12952 = vrot.lane.b32.xlu1 %v21774_v41, %s14704_s23 }
 0xacd   : > { %v12702_v47 = vsel %vm840_vm1, %v21779_v25, %v21781_v63 }
 0xace   : > { %v21806_v56 = vadd.f32 %v12702_v47, %v21541_v40 }
 0xacf   : > { %12954 = vrot.lane.b32.xlu0 %v21786_v35, %s14704_s23  ;;  %v12586_v59 = vpop.permute.xlu1 %12585 }
 0xad0   : > { %v12687_v61 = vsel %vm840_vm1, %v21663_v43, %v12586_v59  ;;  %v21798_v55 = vpop.permute.xlu0 %12667  ;;  %12956 = vrot.lane.b32.xlu1 %v21789_v53, %s14704_s23  ;;  %24510 = vst [vmem:[#allocation55_spill] sm:$0xff] %v21806_v56 }
 0xad1   : > { %v21803_v33 = vadd.f32 %v12687_v61, %v24509_v62 }
 0xad3   : > { %12906 = vrot.lane.b32.xlu0 %v21803_v33, %s14704_s23  ;;  %v21810_v9 = vpop.permute.xlu1 %12669 }
 0xad4   : > { %v12728_v43 = vsel %vm840_vm1, %v21798_v55, %v21810_v9  ;;  %v12588_v58 = vpop.permute.xlu0 %12587  ;;  %12936 = vrot.lane.b32.xlu1 %v21806_v56, %s14704_s23 }
 0xad5   : > { %v21818_v37 = vadd.f32 %v12728_v43, %v21550_v38  ;;  %v12688_v61 = vsel %vm840_vm1, %v12586_v59, %v12588_v58  ;;  %v12689_v40 = vsel %vm840_vm1, %v12588_v58, %v21681_v46  ;;  %v24511_v46 = vld [vmem:[#allocation181_spill] sm:$0xff] }
 0xad6   : > { %v21824_v47 = vadd.f32 %v12688_v61, %v21224_v4  ;;  %v21831_v56 = vadd.f32 %v12689_v40, %v21238_v2 }
 0xad7   : > { %12990 = vrot.lane.b32.xlu0 %v21818_v37, %s14704_s23  ;;  %v12642_v62 = vpop.permute.xlu1 %12641 }
 0xad8   : > { %v12640_v50 = vpop.permute.xlu0 %12639  ;;  %12908 = vrot.lane.b32.xlu1 %v21824_v47, %s14704_s23  ;;  %v12715_v4 = vsel %vm840_vm1, %v12642_v62, %v21695_v11 }
 0xad9   : > { %v12713_v38 = vsel %vm840_vm1, %v21672_v52, %v12640_v50  ;;  %v12714_v59 = vsel %vm840_vm1, %v12640_v50, %v12642_v62  ;;  %v21853_v52 = vadd.f32 %v12715_v4, %v21264_v24 }
 0xada   : > { %v21837_v43 = vadd.f32 %v12713_v38, %v24511_v46  ;;  %v21850_v2 = vadd.f32 %v12714_v59, %v21252_v29 }
 0xadb   : > { %12910 = vrot.lane.b32.xlu0 %v21831_v56, %s14704_s23  ;;  %v21843_v58 = vpop.permute.xlu1 %12621 }
 0xadc   : > { %v21845_v61 = vpop.permute.xlu0 %12623  ;;  %12960 = vrot.lane.b32.xlu1 %v21837_v43, %s14704_s23 }
 0xadd   : > { %v12706_v11 = vsel %vm840_vm1, %v21843_v58, %v21845_v61 }
 0xade   : > { %v21870_v24 = vadd.f32 %v12706_v11, %v21577_v32 }
 0xadf   : > { %12962 = vrot.lane.b32.xlu0 %v21850_v2, %s14704_s23  ;;  %v12594_v50 = vpop.permute.xlu1 %12593 }
 0xae0   : > { %v12691_v40 = vsel %vm840_vm1, %v21683_v19, %v12594_v50  ;;  %v21862_v62 = vpop.permute.xlu0 %12675  ;;  %12964 = vrot.lane.b32.xlu1 %v21853_v52, %s14704_s23  ;;  %24512 = vst [vmem:[#allocation16_spill] sm:$0xff] %v21870_v24 }
 0xae1   : > { %v21867_v29 = vadd.f32 %v12691_v40, %v21300_v22 }
 0xae3   : > { %12914 = vrot.lane.b32.xlu0 %v21867_v29, %s14704_s23  ;;  %v21874_v38 = vpop.permute.xlu1 %12677 }
 0xae4   : > { %v12732_v19 = vsel %vm840_vm1, %v21862_v62, %v21874_v38  ;;  %v12596_v59 = vpop.permute.xlu0 %12595  ;;  %12944 = vrot.lane.b32.xlu1 %v21870_v24, %s14704_s23 }
 0xae5   : > { %v21882_v46 = vadd.f32 %v12732_v19, %v21584_v10  ;;  %v12692_v22 = vsel %vm840_vm1, %v12594_v50, %v12596_v59  ;;  %v12693_v32 = vsel %vm840_vm1, %v12596_v59, %v21705_v30  ;;  %v24514_v30 = vld [vmem:[#allocation186_spill] sm:$0xff] }
 0xae6   : > { %v21888_v4 = vadd.f32 %v12692_v22, %v21330_v23  ;;  %v21895_v24 = vadd.f32 %v12693_v32, %v21345_v13 }
 0xae7   : > { %24513 = vst [vmem:[#allocation48_spill] sm:$0xff] %v21882_v46  ;;  %12998 = vrot.lane.b32.xlu0 %v21882_v46, %s14704_s23  ;;  %v12650_v11 = vpop.permute.xlu1 %12649 }
 0xae8   : > { %v12648_v40 = vpop.permute.xlu0 %12647  ;;  %12916 = vrot.lane.b32.xlu1 %v21888_v4, %s14704_s23  ;;  %v12719_v23 = vsel %vm840_vm1, %v12650_v11, %v21719_v16 }
 0xae9   : > { %v12717_v10 = vsel %vm840_vm1, %v21693_v28, %v12648_v40  ;;  %v12718_v50 = vsel %vm840_vm1, %v12648_v40, %v12650_v11  ;;  %v21913_v28 = vadd.f32 %v12719_v23, %v21369_v12  ;;  %v24515_v11 = vld [vmem:[#allocation188_spill] sm:$0xff] }
 0xaea   : > { %v21901_v19 = vadd.f32 %v12717_v10, %v24514_v30  ;;  %v21910_v13 = vadd.f32 %v12718_v50, %v21359_v45 }
 0xaeb   : > { %12918 = vrot.lane.b32.xlu0 %v21895_v24, %s14704_s23  ;;  %v12602_v59 = vpop.permute.xlu1 %12601 }
 0xaec   : > { %v12604_v22 = vpop.permute.xlu0 %12603  ;;  %12968 = vrot.lane.b32.xlu1 %v21901_v19, %s14704_s23  ;;  %v12695_v32 = vsel %vm840_vm1, %v21707_v3, %v12602_v59 }
 0xaed   : > { %v12696_v40 = vsel %vm840_vm1, %v12602_v59, %v12604_v22  ;;  %v21923_v10 = vadd.f32 %v12695_v32, %v24515_v11  ;;  %v12697_v12 = vsel %vm840_vm1, %v12604_v22, %v21729_v1  ;;  %v24516_v59 = vld [vmem:[#allocation198_spill] sm:$0xff] }
 0xaee   : > { %v21928_v50 = vadd.f32 %v12696_v40, %v21430_v36  ;;  %v21937_v30 = vadd.f32 %v12697_v12, %v21446_v8 }
 0xaef   : > { %12970 = vrot.lane.b32.xlu0 %v21910_v13, %s14704_s23  ;;  %v12658_v45 = vpop.permute.xlu1 %12657 }
 0xaf0   : > { %v12656_v16 = vpop.permute.xlu0 %12655  ;;  %12972 = vrot.lane.b32.xlu1 %v21913_v28, %s14704_s23  ;;  %v12723_v36 = vsel %vm840_vm1, %v12658_v45, %v21742_v48 }
 0xaf1   : > { %v12721_v3 = vsel %vm840_vm1, %v21717_v5, %v12656_v16  ;;  %v12722_v23 = vsel %vm840_vm1, %v12656_v16, %v12658_v45  ;;  %v21953_v8 = vadd.f32 %v12723_v36, %v21467_v15 }
 0xaf2   : > { %v21941_v32 = vadd.f32 %v12721_v3, %v24516_v59  ;;  %v21950_v5 = vadd.f32 %v12722_v23, %v21457_v6  ;;  %v24517_v3 = vld [vmem:[#allocation196_spill] sm:$0xff] }
 0xaf3   : > { %12922 = vrot.lane.b32.xlu0 %v21923_v10, %s14704_s23  ;;  %v12610_v22 = vpop.permute.xlu1 %12609 }
 0xaf4   : > { %12924 = vrot.lane.b32.xlu1 %v21928_v50, %s14704_s23  ;;  %v12612_v1 = vpop.permute.xlu0 %12611  ;;  %v12699_v40 = vsel %vm840_vm1, %v21731_v60, %v12610_v22 }
 0xaf5   : > { %v12700_v16 = vsel %vm840_vm1, %v12610_v22, %v12612_v1  ;;  %v21963_v11 = vadd.f32 %v12699_v40, %v21487_v34  ;;  %v12701_v15 = vsel %vm840_vm1, %v12612_v1, %v21779_v25 }
 0xaf6   : > { %v21968_v45 = vadd.f32 %v12700_v16, %v21507_v51  ;;  %v21977_v12 = vadd.f32 %v12701_v15, %v21514_v14 }
 0xaf7   : > { %12926 = vrot.lane.b32.xlu0 %v21937_v30, %s14704_s23  ;;  %v12666_v6 = vpop.permute.xlu1 %12665 }
 0xaf8   : > { %12976 = vrot.lane.b32.xlu1 %v21941_v32, %s14704_s23  ;;  %v12664_v48 = vpop.permute.xlu0 %12663  ;;  %v12727_v51 = vsel %vm840_vm1, %v12666_v6, %v21798_v55 }
 0xaf9   : > { %v12725_v60 = vsel %vm840_vm1, %v21751_v0, %v12664_v48  ;;  %v12726_v34 = vsel %vm840_vm1, %v12664_v48, %v12666_v6  ;;  %v21993_v14 = vadd.f32 %v12727_v51, %v21526_v26 }
 0xafa   : > { %v21981_v23 = vadd.f32 %v12725_v60, %v24517_v3  ;;  %v21990_v0 = vadd.f32 %v12726_v34, %v21520_v57 }
 0xafb   : > { %12978 = vrot.lane.b32.xlu0 %v21950_v5, %s14704_s23  ;;  %v12618_v59 = vpop.permute.xlu1 %12617 }
 0xafc   : > { %12980 = vrot.lane.b32.xlu1 %v21953_v8, %s14704_s23  ;;  %v12620_v25 = vpop.permute.xlu0 %12619  ;;  %v12703_v1 = vsel %vm840_vm1, %v21781_v63, %v12618_v59 }
 0xafd   : > { %v12704_v36 = vsel %vm840_vm1, %v12618_v59, %v12620_v25  ;;  %v22003_v22 = vadd.f32 %v12703_v1, %v21546_v21  ;;  %v12705_v26 = vsel %vm840_vm1, %v12620_v25, %v21843_v58 }
 0xafe   : > { %v22008_v40 = vadd.f32 %v12704_v36, %v21559_v31  ;;  %v22017_v16 = vadd.f32 %v12705_v26, %v21564_v18 }
 0xaff   : > { %12930 = vrot.lane.b32.xlu0 %v21963_v11, %s14704_s23  ;;  %v12674_v57 = vpop.permute.xlu1 %12673 }
 0xb00   : > { %12932 = vrot.lane.b32.xlu1 %v21968_v45, %s14704_s23  ;;  %v12672_v55 = vpop.permute.xlu0 %12671  ;;  %v12731_v31 = vsel %vm840_vm1, %v12674_v57, %v21862_v62 }
 0xb01   : > { %v12729_v63 = vsel %vm840_vm1, %v21810_v9, %v12672_v55  ;;  %v12730_v21 = vsel %vm840_vm1, %v12672_v55, %v12674_v57  ;;  %v22033_v18 = vadd.f32 %v12731_v31, %v21569_v49  ;;  %v24521_v31 = vld [vmem:[#allocation206_spill] sm:$0xff] }
 0xb02   : > { %v22021_v48 = vadd.f32 %v12729_v63, %v21557_v27  ;;  %v22030_v9 = vadd.f32 %v12730_v21, %v21567_v44 }
 0xb03   : > { %12934 = vrot.lane.b32.xlu0 %v21977_v12, %s14704_s23  ;;  %v12626_v58 = vpop.permute.xlu1 %12625  ;;  %24518 = vst [vmem:[#allocation224_spill] sm:$0xff] %v22033_v18 }
 0xb04   : > { %12984 = vrot.lane.b32.xlu1 %v21981_v23, %s14704_s23  ;;  %v12707_v27 = vsel %vm840_vm1, %v21845_v61, %v12626_v58  ;;  %v12680_v62 = vpop.permute.xlu0 %12679  ;;  %v12814_v15 = vadd.f32 %v12626_v58, %v21590_v39 }
 0xb05   : > { %v22042_v6 = vadd.f32 %v12707_v27, %v21580_v20  ;;  %v12733_v44 = vsel %vm840_vm1, %v21874_v38, %v12680_v62  ;;  %v12841_v49 = vadd.f32 %v12680_v62, %v21595_v54  ;;  %v24522_v27 = vld [vmem:[#allocation37_spill] sm:$0xff] }
 0xb06   : > { %v22052_v61 = vadd.f32 %v12733_v44, %v21588_v17 }
 0xb07   : > { %12986 = vrot.lane.b32.xlu0 %v21990_v0, %s14704_s23  ;;  %24519 = vst [vmem:[#allocation50_spill] sm:$0xff] %v22042_v6 }
 0xb08   : > { %12988 = vrot.lane.b32.xlu1 %v21993_v14, %s14704_s23  ;;  %24520 = vst [vmem:[#allocation52_spill] sm:$0xff] %v22052_v61 }
 0xb0b   : > { %12938 = vrot.lane.b32.xlu0 %v22003_v22, %s14704_s23 }
 0xb0c   : > { %12940 = vrot.lane.b32.xlu1 %v22008_v40, %s14704_s23  ;;  %v12897_v39 = vpop.permute.xlu1 %12896 }
 0xb0f   : > { %12942 = vrot.lane.b32.xlu0 %v22017_v16, %s14704_s23 }
 0xb10   : > { %12992 = vrot.lane.b32.xlu1 %v22021_v48, %s14704_s23  ;;  %v12951_v20 = vpop.permute.xlu0 %12950 }
 0xb13   : > { %12994 = vrot.lane.b32.xlu0 %v22030_v9, %s14704_s23 }
 0xb14   : > { %12996 = vrot.lane.b32.xlu1 %v22033_v18, %s14704_s23  ;;  %v12905_v38 = vpop.permute.xlu1 %12904 }
 0xb17   : > { %12946 = vrot.lane.b32.xlu0 %v22042_v6, %s14704_s23 }
 0xb18   : > { %12948 = vrot.lane.b32.xlu1 %v12814_v15, %s14704_s23  ;;  %v22057_v60 = vpop.permute.xlu0 %12958 }
 0xb1b   : > { %13002 = vrot.lane.b32.xlu0 %v12841_v49, %s14704_s23 }
 0xb1c   : > { %13000 = vrot.lane.b32.xlu1 %v22052_v61, %s14704_s23  ;;  %s22088_s23 = scalar_lea.vmem [#allocation10], %s14269_s9 }
 0xb1d   : > { %s13319_s29 = sshll.u32 %s22088_s23, 4  ;;  %s22261_s29 = int_to_ptr.vmem [resolvable:$true] %s13319_s29 }
 0xb1e   : > { %v22061_v3 = vpop.permute.xlu1 %12912  ;;  %s14623_s22 = scalar_lea.vmem %s22261_s29, 6144  ;;  %p14630_p7 = scmp.lt.s32.totalorder %s22261_s29, %s14628_s10 }
 0xb1f   : > { %p14624_p11 = scmp.ne.s32.totalorder %s22261_s29, %s14623_s22  ;;  %p14631_p9 = scmp.lt.s32.totalorder %s14629_s19, %s14623_s22 }
 0xb21   : > { %p14625_p1 = pnand %p14624_p11, %p24538_p0  ;;  %p14632_p12 = por %p14631_p9, %p14630_p7 }
 0xb22   : > { %v22059_v34 = vpop.permute.xlu0 %12966 }
 0xb23   : > { %p14626_p3 = pneg %p14625_p1 }
 0xb25   : > { %p14633_p2 = pnand %p14632_p12, %p14626_p3 }
 0xb28   : > { %v22065_v54 = vpop.permute.xlu1 %12920 }
 0xb2c   : > { %v22063_v25 = vpop.permute.xlu0 %12974 }
 0xb31   : > { %v22067_v51 = vpop.permute.xlu1 %12928 }
 0xb35   : > { %v12899_v17 = vpop.permute.xlu0 %12898 }
 0xb36   : > { %v13005_v36 = vsel %vm1580_vm3, %v12897_v39, %v12899_v17 }
 0xb37   : > { %v13109_v58 = vadd.f32 %v13005_v36, %v24521_v31  ;;  %v24523_v31 = vld [vmem:[#allocation208_spill] sm:$0xff] }
 0xb39   : > { %v22069_v59 = vpop.permute.xlu0 %12982 }
 0xb3a   : > { %v12901_v1 = vpop.permute.xlu1 %12900 }
 0xb3b   : > { %v13006_v55 = vsel %vm1580_vm3, %v12899_v17, %v12901_v1 }
 0xb3c   : > { %v13110_v62 = vadd.f32 %v13006_v55, %v24522_v27 }
 0xb3d   : > { %v12903_v57 = vpop.permute.xlu0 %12902 }
 0xb3e   : > { %v13007_v26 = vsel %vm1580_vm3, %v12901_v1, %v12903_v57  ;;  %v13008_v63 = vsel %vm1580_vm3, %v12903_v57, %v12905_v38  ;;  %v12953_v21 = vpop.permute.xlu1 %12952 }
 0xb3f   : > { %v13111_v15 = vadd.f32 %v13007_v26, %v21762_v7  ;;  %v13112_v44 = vadd.f32 %v13008_v63, %v21769_v42  ;;  %v13031_v39 = vsel %vm1580_vm3, %v12951_v20, %v12953_v21  ;;  %v24524_v63 = vld [vmem:[#allocation211_spill] sm:$0xff] }
 0xb40   : > { %v13135_v55 = vadd.f32 %v13031_v39, %v24523_v31 }
 0xb41   : > { %v13161_v49 = vadd.f32 %v13111_v15, %v13109_v58  ;;  %v13162_v61 = vadd.f32 %v13112_v44, %v13110_v62  ;;  %v12955_v17 = vpop.permute.xlu0 %12954 }
 0xb42   : > { %v13032_v46 = vsel %vm1580_vm3, %v12953_v21, %v12955_v17  ;;  %v12957_v6 = vpop.permute.xlu1 %12956 }
 0xb43   : > { %v13209_v1 = vmul.f32 0.125, %v13161_v49  ;;  %v13210_v18 = vmul.f32 0.125, %v13162_v61  ;;  %v13136_v57 = vadd.f32 %v13032_v46, %v21774_v41  ;;  %v13033_v36 = vsel %vm1580_vm3, %v12955_v17, %v12957_v6 }
 0xb44   : > { %v13034_v7 = vsel %vm1580_vm3, %v12957_v6, %v22057_v60  ;;  %v13137_v42 = vadd.f32 %v13033_v36, %v21786_v35 }
 0xb45   : > { %13257 = vst [vmem:[%s22088_s23] sm:$0xff] %v13209_v1  ;;  %13258 = vst [vmem:[%s22088_s23 + $0x8] sm:$0xff] %v13210_v18  ;;  %v13138_v61 = vadd.f32 %v13034_v7, %v21789_v53  ;;  %v12907_v41 = vpop.permute.xlu0 %12906 }
 0xb46   : > { %v13185_v46 = vadd.f32 %v13137_v42, %v13135_v55  ;;  %v13009_v20 = vsel %vm1580_vm3, %v12905_v38, %v12907_v41  ;;  %v22094_v26 = vpop.permute.xlu1 %12936 }
 0xb47   : > { %v13186_v6 = vadd.f32 %v13138_v61, %v13136_v57  ;;  %v13113_v35 = vadd.f32 %v13009_v20, %v24524_v63 }
 0xb48   : > { %v13233_v21 = vmul.f32 0.125, %v13185_v46 }
 0xb49   : > { %v13234_v58 = vmul.f32 0.125, %v13186_v6  ;;  %v13163_v27 = vadd.f32 %v13113_v35, %v13111_v15  ;;  %v22097_v62 = vpop.permute.xlu0 %12990 }
 0xb4a   : > { %13281 = vst [vmem:[%s22088_s23 + $0xc0] sm:$0xff] %v13233_v21  ;;  %v12909_v49 = vpop.permute.xlu1 %12908 }
 0xb4b   : > { %13282 = vst [vmem:[%s22088_s23 + $0xc8] sm:$0xff] %v13234_v58  ;;  %v13211_v18 = vmul.f32 0.125, %v13163_v27  ;;  %v13010_v53 = vsel %vm1580_vm3, %v12907_v41, %v12909_v49  ;;  %v24525_v41 = vld [vmem:[#allocation212_spill] sm:$0xff] }
 0xb4c   : > { %v13114_v39 = vadd.f32 %v13010_v53, %v21803_v33 }
 0xb4d   : > { %13259 = vst [vmem:[%s22088_s23 + $0x10] sm:$0xff] %v13211_v18  ;;  %v12911_v38 = vpop.permute.xlu0 %12910 }
 0xb4e   : > { %v13164_v17 = vadd.f32 %v13114_v39, %v13112_v44  ;;  %v13011_v1 = vsel %vm1580_vm3, %v12909_v49, %v12911_v38  ;;  %v13012_v57 = vsel %vm1580_vm3, %v12911_v38, %v22061_v3  ;;  %v12961_v15 = vpop.permute.xlu1 %12960 }
 0xb4f   : > { %v13115_v36 = vadd.f32 %v13011_v1, %v21824_v47  ;;  %v13116_v31 = vadd.f32 %v13012_v57, %v21831_v56  ;;  %v13035_v55 = vsel %vm1580_vm3, %v22057_v60, %v12961_v15  ;;  %v24526_v57 = vld [vmem:[#allocation220_spill] sm:$0xff] }
 0xb50   : > { %v13212_v7 = vmul.f32 0.125, %v13164_v17  ;;  %v13139_v33 = vadd.f32 %v13035_v55, %v24525_v41 }
 0xb51   : > { %v13165_v46 = vadd.f32 %v13115_v36, %v13113_v35  ;;  %v13166_v44 = vadd.f32 %v13116_v31, %v13114_v39  ;;  %v12963_v20 = vpop.permute.xlu0 %12962 }
 0xb52   : > { %13260 = vst [vmem:[%s22088_s23 + $0x18] sm:$0xff] %v13212_v7  ;;  %v13187_v6 = vadd.f32 %v13139_v33, %v13137_v42  ;;  %v13036_v63 = vsel %vm1580_vm3, %v12961_v15, %v12963_v20  ;;  %v12965_v21 = vpop.permute.xlu1 %12964 }
 0xb53   : > { %v13213_v47 = vmul.f32 0.125, %v13165_v46  ;;  %v13214_v58 = vmul.f32 0.125, %v13166_v44  ;;  %v13140_v56 = vadd.f32 %v13036_v63, %v21837_v43  ;;  %v13037_v60 = vsel %vm1580_vm3, %v12963_v20, %v12965_v21 }
 0xb54   : > { %v13235_v27 = vmul.f32 0.125, %v13187_v6  ;;  %v13038_v49 = vsel %vm1580_vm3, %v12965_v21, %v22059_v34  ;;  %v13141_v35 = vadd.f32 %v13037_v60, %v21850_v2 }
 0xb55   : > { %13261 = vst [vmem:[%s22088_s23 + $0x20] sm:$0xff] %v13213_v47  ;;  %13262 = vst [vmem:[%s22088_s23 + $0x28] sm:$0xff] %v13214_v58  ;;  %v13188_v42 = vadd.f32 %v13140_v56, %v13138_v61  ;;  %v13142_v18 = vadd.f32 %v13038_v49, %v21853_v52  ;;  %v12915_v53 = vpop.permute.xlu0 %12914 }
 0xb56   : > { %13283 = vst [vmem:[%s22088_s23 + $0xd0] sm:$0xff] %v13235_v27  ;;  %v13189_v39 = vadd.f32 %v13141_v35, %v13139_v33  ;;  %v13013_v43 = vsel %vm1580_vm3, %v22061_v3, %v12915_v53  ;;  %v22125_v38 = vpop.permute.xlu1 %12944 }
 0xb57   : > { %v13236_v17 = vmul.f32 0.125, %v13188_v42  ;;  %v13190_v1 = vadd.f32 %v13142_v18, %v13140_v56  ;;  %v13117_v2 = vadd.f32 %v13013_v43, %v24526_v57  ;;  %v24527_v56 = vld [vmem:[#allocation217_spill] sm:$0xff] }
 0xb58   : > { %v13237_v15 = vmul.f32 0.125, %v13189_v39 }
 0xb59   : > { %13284 = vst [vmem:[%s22088_s23 + $0xd8] sm:$0xff] %v13236_v17  ;;  %v13238_v55 = vmul.f32 0.125, %v13190_v1  ;;  %v13167_v61 = vadd.f32 %v13117_v2, %v13115_v36  ;;  %v22129_v7 = vpop.permute.xlu0 %12998 }
 0xb5a   : > { %13285 = vst [vmem:[%s22088_s23 + $0xe0] sm:$0xff] %v13237_v15  ;;  %v12917_v52 = vpop.permute.xlu1 %12916 }
 0xb5b   : > { %13286 = vst [vmem:[%s22088_s23 + $0xe8] sm:$0xff] %v13238_v55  ;;  %v13215_v41 = vmul.f32 0.125, %v13167_v61  ;;  %v13014_v33 = vsel %vm1580_vm3, %v12915_v53, %v12917_v52 }
 0xb5c   : > { %v13118_v3 = vadd.f32 %v13014_v33, %v21867_v29 }
 0xb5d   : > { %13263 = vst [vmem:[%s22088_s23 + $0x30] sm:$0xff] %v13215_v41  ;;  %v12919_v46 = vpop.permute.xlu0 %12918  ;;  %v24528_v41 = vld [vmem:[#allocation223_spill] sm:$0xff] }
 0xb5e   : > { %v13168_v44 = vadd.f32 %v13118_v3, %v13116_v31  ;;  %v13015_v20 = vsel %vm1580_vm3, %v12917_v52, %v12919_v46  ;;  %v13016_v6 = vsel %vm1580_vm3, %v12919_v46, %v22065_v54  ;;  %v12969_v36 = vpop.permute.xlu1 %12968 }
 0xb5f   : > { %v13119_v63 = vadd.f32 %v13015_v20, %v21888_v4  ;;  %v13120_v21 = vadd.f32 %v13016_v6, %v21895_v24  ;;  %v13039_v47 = vsel %vm1580_vm3, %v22059_v34, %v12969_v36 }
 0xb60   : > { %v13216_v58 = vmul.f32 0.125, %v13168_v44  ;;  %v13143_v29 = vadd.f32 %v13039_v47, %v24527_v56 }
 0xb61   : > { %v13169_v60 = vadd.f32 %v13119_v63, %v13117_v2  ;;  %v13170_v31 = vadd.f32 %v13120_v21, %v13118_v3  ;;  %v12971_v27 = vpop.permute.xlu0 %12970 }
 0xb62   : > { %13264 = vst [vmem:[%s22088_s23 + $0x38] sm:$0xff] %v13216_v58  ;;  %v13191_v49 = vadd.f32 %v13143_v29, %v13141_v35  ;;  %v13040_v42 = vsel %vm1580_vm3, %v12969_v36, %v12971_v27  ;;  %v12973_v53 = vpop.permute.xlu1 %12972 }
 0xb63   : > { %v13217_v4 = vmul.f32 0.125, %v13169_v60  ;;  %v13218_v39 = vmul.f32 0.125, %v13170_v31  ;;  %v13144_v24 = vadd.f32 %v13040_v42, %v21901_v19  ;;  %v13041_v34 = vsel %vm1580_vm3, %v12971_v27, %v12973_v53 }
 0xb64   : > { %v13239_v43 = vmul.f32 0.125, %v13191_v49  ;;  %v13042_v17 = vsel %vm1580_vm3, %v12973_v53, %v22063_v25  ;;  %v13145_v1 = vadd.f32 %v13041_v34, %v21910_v13 }
 0xb65   : > { %13265 = vst [vmem:[%s22088_s23 + $0x40] sm:$0xff] %v13217_v4  ;;  %13266 = vst [vmem:[%s22088_s23 + $0x48] sm:$0xff] %v13218_v39  ;;  %v13192_v57 = vadd.f32 %v13144_v24, %v13142_v18  ;;  %v13146_v35 = vadd.f32 %v13042_v17, %v21913_v28  ;;  %v12923_v2 = vpop.permute.xlu0 %12922 }
 0xb66   : > { %13287 = vst [vmem:[%s22088_s23 + $0xf0] sm:$0xff] %v13239_v43  ;;  %v13193_v15 = vadd.f32 %v13145_v1, %v13143_v29  ;;  %v13017_v19 = vsel %vm1580_vm3, %v22065_v54, %v12923_v2  ;;  %v12925_v55 = vpop.permute.xlu1 %12924  ;;  %v24529_v29 = vld [vmem:[#allocation173_spill] sm:$0xff] }
 0xb67   : > { %v13240_v61 = vmul.f32 0.125, %v13192_v57  ;;  %v13194_v52 = vadd.f32 %v13146_v35, %v13144_v24  ;;  %v13121_v33 = vadd.f32 %v13017_v19, %v24528_v41  ;;  %v13018_v13 = vsel %vm1580_vm3, %v12923_v2, %v12925_v55 }
 0xb68   : > { %v13241_v3 = vmul.f32 0.125, %v13193_v15  ;;  %v13122_v18 = vadd.f32 %v13018_v13, %v21923_v10 }
 0xb69   : > { %13288 = vst [vmem:[%s22088_s23 + $0xf8] sm:$0xff] %v13240_v61  ;;  %v13242_v28 = vmul.f32 0.125, %v13194_v52  ;;  %v13171_v46 = vadd.f32 %v13121_v33, %v13119_v63  ;;  %v12927_v44 = vpop.permute.xlu0 %12926 }
 0xb6a   : > { %13289 = vst [vmem:[%s22088_s23 + $0x100] sm:$0xff] %v13241_v3  ;;  %v13172_v20 = vadd.f32 %v13122_v18, %v13120_v21  ;;  %v13019_v54 = vsel %vm1580_vm3, %v12925_v55, %v12927_v44  ;;  %v13020_v6 = vsel %vm1580_vm3, %v12927_v44, %v22067_v51  ;;  %v12977_v36 = vpop.permute.xlu1 %12976  ;;  %v24530_v55 = vld [vmem:[#allocation235_spill] sm:$0xff] }
 0xb6b   : > { %13290 = vst [vmem:[%s22088_s23 + $0x108] sm:$0xff] %v13242_v28  ;;  %v13219_v47 = vmul.f32 0.125, %v13171_v46  ;;  %v13123_v58 = vadd.f32 %v13019_v54, %v21928_v50  ;;  %v13124_v10 = vadd.f32 %v13020_v6, %v21937_v30  ;;  %v13043_v56 = vsel %vm1580_vm3, %v22063_v25, %v12977_v36  ;;  %v24531_v54 = vld [vmem:[#allocation47_spill] sm:$0xff] }
 0xb6c   : > { %v13220_v63 = vmul.f32 0.125, %v13172_v20  ;;  %v13147_v60 = vadd.f32 %v13043_v56, %v24529_v29 }
 0xb6d   : > { %13267 = vst [vmem:[%s22088_s23 + $0x50] sm:$0xff] %v13219_v47  ;;  %v13173_v21 = vadd.f32 %v13123_v58, %v13121_v33  ;;  %v13174_v31 = vadd.f32 %v13124_v10, %v13122_v18  ;;  %v12979_v27 = vpop.permute.xlu0 %12978 }
 0xb6e   : > { %13268 = vst [vmem:[%s22088_s23 + $0x58] sm:$0xff] %v13220_v63  ;;  %v13195_v49 = vadd.f32 %v13147_v60, %v13145_v1  ;;  %v13044_v42 = vsel %vm1580_vm3, %v12977_v36, %v12979_v27  ;;  %v12981_v50 = vpop.permute.xlu1 %12980 }
 0xb6f   : > { %v13221_v53 = vmul.f32 0.125, %v13173_v21  ;;  %v13222_v30 = vmul.f32 0.125, %v13174_v31  ;;  %v13148_v4 = vadd.f32 %v13044_v42, %v21941_v32  ;;  %v13045_v25 = vsel %vm1580_vm3, %v12979_v27, %v12981_v50 }
 0xb70   : > { %v13243_v39 = vmul.f32 0.125, %v13195_v49  ;;  %v13046_v24 = vsel %vm1580_vm3, %v12981_v50, %v22069_v59  ;;  %v13149_v34 = vadd.f32 %v13045_v25, %v21950_v5  ;;  %v24532_v25 = vld [vmem:[#allocation55_spill] sm:$0xff] }
 0xb71   : > { %13269 = vst [vmem:[%s22088_s23 + $0x60] sm:$0xff] %v13221_v53  ;;  %13270 = vst [vmem:[%s22088_s23 + $0x68] sm:$0xff] %v13222_v30  ;;  %v13196_v43 = vadd.f32 %v13148_v4, %v13146_v35  ;;  %v13150_v17 = vadd.f32 %v13046_v24, %v21953_v8  ;;  %v12931_v1 = vpop.permute.xlu0 %12930 }
 0xb72   : > { %13291 = vst [vmem:[%s22088_s23 + $0x110] sm:$0xff] %v13243_v39  ;;  %v13197_v57 = vadd.f32 %v13149_v34, %v13147_v60  ;;  %v13021_v32 = vsel %vm1580_vm3, %v22067_v51, %v12931_v1  ;;  %v12933_v2 = vpop.permute.xlu1 %12932 }
 0xb73   : > { %v13244_v15 = vmul.f32 0.125, %v13196_v43  ;;  %v13198_v19 = vadd.f32 %v13150_v17, %v13148_v4  ;;  %v13125_v61 = vadd.f32 %v13021_v32, %v24530_v55  ;;  %v13022_v5 = vsel %vm1580_vm3, %v12931_v1, %v12933_v2 }
 0xb74   : > { %v13245_v52 = vmul.f32 0.125, %v13197_v57  ;;  %v13126_v35 = vadd.f32 %v13022_v5, %v21963_v11 }
 0xb75   : > { %13292 = vst [vmem:[%s22088_s23 + $0x118] sm:$0xff] %v13244_v15  ;;  %v13246_v8 = vmul.f32 0.125, %v13198_v19  ;;  %v13175_v41 = vadd.f32 %v13125_v61, %v13123_v58  ;;  %v12935_v33 = vpop.permute.xlu0 %12934 }
 0xb76   : > { %13293 = vst [vmem:[%s22088_s23 + $0x120] sm:$0xff] %v13245_v52  ;;  %v13176_v13 = vadd.f32 %v13126_v35, %v13124_v10  ;;  %v13023_v51 = vsel %vm1580_vm3, %v12933_v2, %v12935_v33  ;;  %v13024_v3 = vsel %vm1580_vm3, %v12935_v33, %v22094_v26  ;;  %v12985_v18 = vpop.permute.xlu1 %12984 }
 0xb77   : > { %13294 = vst [vmem:[%s22088_s23 + $0x128] sm:$0xff] %v13246_v8  ;;  %v13223_v28 = vmul.f32 0.125, %v13175_v41  ;;  %v13127_v46 = vadd.f32 %v13023_v51, %v21968_v45  ;;  %v13128_v11 = vadd.f32 %v13024_v3, %v21977_v12  ;;  %v13047_v44 = vsel %vm1580_vm3, %v22069_v59, %v12985_v18 }
 0xb78   : > { %v13224_v20 = vmul.f32 0.125, %v13176_v13  ;;  %v13151_v6 = vadd.f32 %v13047_v44, %v24531_v54 }
 0xb79   : > { %13271 = vst [vmem:[%s22088_s23 + $0x70] sm:$0xff] %v13223_v28  ;;  %v13177_v36 = vadd.f32 %v13127_v46, %v13125_v61  ;;  %v13178_v47 = vadd.f32 %v13128_v11, %v13126_v35  ;;  %v12987_v58 = vpop.permute.xlu0 %12986  ;;  %v24533_v28 = vld [vmem:[#allocation224_spill] sm:$0xff] }
 0xb7a   : > { %13272 = vst [vmem:[%s22088_s23 + $0x78] sm:$0xff] %v13224_v20  ;;  %v13199_v10 = vadd.f32 %v13151_v6, %v13149_v34  ;;  %v13048_v56 = vsel %vm1580_vm3, %v12985_v18, %v12987_v58  ;;  %v12989_v45 = vpop.permute.xlu1 %12988 }
 0xb7b   : > { %v13225_v63 = vmul.f32 0.125, %v13177_v36  ;;  %v13226_v12 = vmul.f32 0.125, %v13178_v47  ;;  %v13152_v29 = vadd.f32 %v13048_v56, %v21981_v23  ;;  %v13049_v59 = vsel %vm1580_vm3, %v12987_v58, %v12989_v45  ;;  %v24534_v36 = vld [vmem:[#allocation16_spill] sm:$0xff] }
 0xb7c   : > { %v13247_v60 = vmul.f32 0.125, %v13199_v10  ;;  %v13050_v21 = vsel %vm1580_vm3, %v12989_v45, %v22097_v62  ;;  %v13153_v31 = vadd.f32 %v13049_v59, %v21990_v0  ;;  %v24535_v10 = vld [vmem:[#allocation50_spill] sm:$0xff] }
 0xb7d   : > { %13273 = vst [vmem:[%s22088_s23 + $0x80] sm:$0xff] %v13225_v63  ;;  %13274 = vst [vmem:[%s22088_s23 + $0x88] sm:$0xff] %v13226_v12  ;;  %v13200_v27 = vadd.f32 %v13152_v29, %v13150_v17  ;;  %v13154_v49 = vadd.f32 %v13050_v21, %v21993_v14  ;;  %v12939_v42 = vpop.permute.xlu0 %12938 }
 0xb7e   : > { %13295 = vst [vmem:[%s22088_s23 + $0x130] sm:$0xff] %v13247_v60  ;;  %v13201_v50 = vadd.f32 %v13153_v31, %v13151_v6  ;;  %v13025_v23 = vsel %vm1580_vm3, %v22094_v26, %v12939_v42  ;;  %v12941_v53 = vpop.permute.xlu1 %12940 }
 0xb7f   : > { %v13248_v30 = vmul.f32 0.125, %v13200_v27  ;;  %v13202_v4 = vadd.f32 %v13154_v49, %v13152_v29  ;;  %v13129_v39 = vadd.f32 %v13025_v23, %v24532_v25  ;;  %v13026_v0 = vsel %vm1580_vm3, %v12939_v42, %v12941_v53  ;;  %v24536_v27 = vld [vmem:[#allocation48_spill] sm:$0xff] }
 0xb80   : > { %v13249_v24 = vmul.f32 0.125, %v13201_v50  ;;  %v13130_v34 = vadd.f32 %v13026_v0, %v22003_v22  ;;  %v24537_v42 = vld [vmem:[#allocation52_spill] sm:$0xff] }
 0xb81   : > { %13296 = vst [vmem:[%s22088_s23 + $0x138] sm:$0xff] %v13248_v30  ;;  %v13250_v14 = vmul.f32 0.125, %v13202_v4  ;;  %v13179_v43 = vadd.f32 %v13129_v39, %v13127_v46  ;;  %v12943_v17 = vpop.permute.xlu0 %12942 }
 0xb82   : > { %13297 = vst [vmem:[%s22088_s23 + $0x140] sm:$0xff] %v13249_v24  ;;  %v13180_v1 = vadd.f32 %v13130_v34, %v13128_v11  ;;  %v13027_v26 = vsel %vm1580_vm3, %v12941_v53, %v12943_v17  ;;  %v13028_v57 = vsel %vm1580_vm3, %v12943_v17, %v22125_v38  ;;  %v12993_v32 = vpop.permute.xlu1 %12992 }
 0xb83   : > { %13298 = vst [vmem:[%s22088_s23 + $0x148] sm:$0xff] %v13250_v14  ;;  %v13227_v2 = vmul.f32 0.125, %v13179_v43  ;;  %v13131_v15 = vadd.f32 %v13027_v26, %v22008_v40  ;;  %v13132_v22 = vadd.f32 %v13028_v57, %v22017_v16  ;;  %v13051_v19 = vsel %vm1580_vm3, %v22097_v62, %v12993_v32 }
 0xb84   : > { %v13228_v55 = vmul.f32 0.125, %v13180_v1  ;;  %v13155_v61 = vadd.f32 %v13051_v19, %v21818_v37 }
 0xb85   : > { %13275 = vst [vmem:[%s22088_s23 + $0x90] sm:$0xff] %v13227_v2  ;;  %v13181_v5 = vadd.f32 %v13131_v15, %v13129_v39  ;;  %v13182_v52 = vadd.f32 %v13132_v22, %v13130_v34  ;;  %v12995_v35 = vpop.permute.xlu0 %12994 }
 0xb86   : > { %13276 = vst [vmem:[%s22088_s23 + $0x98] sm:$0xff] %v13228_v55  ;;  %v13203_v8 = vadd.f32 %v13155_v61, %v13153_v31  ;;  %v13052_v41 = vsel %vm1580_vm3, %v12993_v32, %v12995_v35  ;;  %v12997_v40 = vpop.permute.xlu1 %12996 }
 0xb87   : > { %v13229_v33 = vmul.f32 0.125, %v13181_v5  ;;  %v13230_v16 = vmul.f32 0.125, %v13182_v52  ;;  %v13156_v13 = vadd.f32 %v13052_v41, %v22021_v48  ;;  %v13053_v62 = vsel %vm1580_vm3, %v12995_v35, %v12997_v40 }
 0xb88   : > { %v13251_v51 = vmul.f32 0.125, %v13203_v8  ;;  %v13054_v37 = vsel %vm1580_vm3, %v12997_v40, %v22129_v7  ;;  %v13157_v3 = vadd.f32 %v13053_v62, %v22030_v9 }
 0xb89   : > { %13277 = vst [vmem:[%s22088_s23 + $0xa0] sm:$0xff] %v13229_v33  ;;  %13278 = vst [vmem:[%s22088_s23 + $0xa8] sm:$0xff] %v13230_v16  ;;  %v13204_v18 = vadd.f32 %v13156_v13, %v13154_v49  ;;  %v13158_v46 = vadd.f32 %v13054_v37, %v24533_v28  ;;  %v12947_v11 = vpop.permute.xlu0 %12946 }
 0xb8a   : > { %13299 = vst [vmem:[%s22088_s23 + $0x150] sm:$0xff] %v13251_v51  ;;  %v13205_v44 = vadd.f32 %v13157_v3, %v13155_v61  ;;  %v13029_v48 = vsel %vm1580_vm3, %v22125_v38, %v12947_v11  ;;  %v12949_v20 = vpop.permute.xlu1 %12948 }
 0xb8b   : > { %v13252_v54 = vmul.f32 0.125, %v13204_v18  ;;  %v13206_v6 = vadd.f32 %v13158_v46, %v13156_v13  ;;  %v13133_v9 = vadd.f32 %v13029_v48, %v24534_v36  ;;  %v13030_v47 = vsel %vm1580_vm3, %v12947_v11, %v12949_v20 }
 0xb8c   : > { %v13253_v58 = vmul.f32 0.125, %v13205_v44  ;;  %v13134_v56 = vadd.f32 %v13030_v47, %v24535_v10 }
 0xb8d   : > { %13300 = vst [vmem:[%s22088_s23 + $0x158] sm:$0xff] %v13252_v54  ;;  %v13254_v45 = vmul.f32 0.125, %v13206_v6  ;;  %v13183_v63 = vadd.f32 %v13133_v9, %v13131_v15  ;;  %v13003_v12 = vpop.permute.xlu0 %13002 }
 0xb8e   : > { %13301 = vst [vmem:[%s22088_s23 + $0x160] sm:$0xff] %v13253_v58  ;;  %v13184_v38 = vadd.f32 %v13134_v56, %v13132_v22  ;;  %v13001_v29 = vpop.permute.xlu1 %13000 }
 0xb8f   : > { %13302 = vst [vmem:[%s22088_s23 + $0x168] sm:$0xff] %v13254_v45  ;;  %v13231_v59 = vmul.f32 0.125, %v13183_v63  ;;  %v13055_v60 = vsel %vm1580_vm3, %v22129_v7, %v13001_v29  ;;  %v13056_v21 = vsel %vm1580_vm3, %v13001_v29, %v13003_v12 }
 0xb90   : > { %v13232_v31 = vmul.f32 0.125, %v13184_v38  ;;  %v13159_v49 = vadd.f32 %v13055_v60, %v24536_v27  ;;  %v13160_v50 = vadd.f32 %v13056_v21, %v24537_v42 }
 0xb91   : > { %13279 = vst [vmem:[%s22088_s23 + $0xb0] sm:$0xff] %v13231_v59 }
 0xb92   : > { %13280 = vst [vmem:[%s22088_s23 + $0xb8] sm:$0xff] %v13232_v31  ;;  %v13207_v23 = vadd.f32 %v13159_v49, %v13157_v3  ;;  %v13208_v53 = vadd.f32 %v13160_v50, %v13158_v46 }
 0xb94   : > { %v13255_v7 = vmul.f32 0.125, %v13207_v23  ;;  %v13256_v30 = vmul.f32 0.125, %v13208_v53 }
 0xb96   : > { %13303 = vst [vmem:[%s22088_s23 + $0x170] sm:$0xff] %v13255_v7  ;;  %13304 = vst [vmem:[%s22088_s23 + $0x178] sm:$0xff] %v13256_v30 }
 0xb97   : > { %14636 = shalt.err (!%p14633_p2)
}
 0xb98   : > { %s14637_s11 = scalar_lea.hbm %s22259_s21, 6144  ;;  %s14641_s9 = scalar_lea.hbm %s22314_s7, 12288 }
 0xb99   : > { %p14638_p13 = scmp.ne.s32.totalorder %s22259_s21, %s14637_s11  ;;  %p14642_p4 = scmp.lt.u32.totalorder %s22259_s21, %s22314_s7 }
 0xb9a   : > { %p14643_p5 = scmp.lt.u32.totalorder %s14641_s9, %s14637_s11  ;;  %p14645_p11 = scmp.lt.u32.totalorder %s14637_s11, %s22259_s21 }
 0xb9b   : > { %p14639_p6 = pnand %p14638_p13, %p24538_p0 }
 0xb9c   : > { %p14644_p8 = por %p14643_p5, %p14642_p4 }
 0xb9d   : > { %p14640_p10 = pneg %p14639_p6 }
 0xb9e   : > { %p14646_p1 = por %p14645_p11, %p14644_p8 }
 0xba0   : > { %p14647_p3 = pnand %p14646_p1, %p14640_p10 }
 0xba2   : > { %14650 = shalt.err (!%p14647_p3)
}
 0xba3   : > { %s14714_s20 = smov 3072   ;;  %s14715_s30 = smov 192  }
 0xba4   : > { %14281 = dma.vmem_to_hbm [thread:$0]  (%p24538_p0), %s22261_s29, 6144, %s22259_s21, %s13306_s28, %s14714_s20, %s14714_s20, %s14715_s30  }
 0xba5 PF: > { %s13334_s22 = sand.u32 1, %s14681_s24   ;;  %p24539_p7 = scmp.ne.s32.totalorder %s23168_s8, 0 }
 0xba6   : > { %p24540_p9 = scmp.ge.s32.totalorder %s14693_s27, 2  ;;  %s13335_s18 = scalar_lea.sflag [#allocation6], %s13334_s22 }
 0xba8   : > { %p14295_p12 = pnand %p24540_p9, %p24539_p7 }
 0xbaa   : > { %14676 = dma.done.wait (!%p14295_p12), %s13335_s18, 6144  }
 0xbab   : > { %14678 = vsyncadd (!%p14295_p12), %s13335_s18, 4294961152  ;;  %p21_p2 = scmp.ge.s32.totalorder %s14866_s13, 4   ;;  %s24541_s24 = smov %s14685_s25 }
 0xbac   : > { %s24542_s25 = smov %s14689_s26  ;;  %s24543_s26 = smov %s14882_s17 }
 0xbad   : > { %s24544_s27 = smov %s14866_s13  ;;  %23 = sbr.rel (!%p21_p2) target bundleno = 8 (0x8), region = 105 }
 0xbb4   :  { %13340 = vsyncpa [#allocation5], 1 }
 0xbb5   :  { %13342 = vsyncpa [#allocation5 + $0x1], 1 }
 0xbb6   :  { %13343 = vsyncpa [#allocation8], 1 }
 0xbb7   :  { %13344 = vsyncpa [#allocation6], 1 }
 0xbb8   :  { %13346 = vsyncpa [#allocation6 + $0x1], 1 }

</bundles_post_ra>
